<compile_context>
chip_gen: v7x
topology: tpu7x:2x2x1
jax: 0.10.0
libtpu: 0.0.40
codegen_flags: <defaults>
</compile_context>

<pallas_src>
import functools
import numpy as np

import jax
import jax.numpy as jnp
from jax.experimental import pallas as pl
from jax.experimental.pallas import tpu as pltpu


# ----------------------------------------------------------------------------
# Chip-generation capabilities (trace-time query, cached)
# ----------------------------------------------------------------------------
@functools.lru_cache(maxsize=None)
def _chip_caps():
    """Return (num_tensorcores, per-call VMEM tile budget, vmem_limit_bytes).

    v7x: 2 TensorCores / only 64 MiB VMEM per TC -> conservative tile budget.
    v5e / v6e: 1 TensorCore / 128 MiB VMEM -> larger tiles, no megacore split.
    Unknown chips fall back to the conservative (v7x-like) budget.
    """
    kind = ''
    try:
        kind = jax.devices()[0].device_kind.lower()
    except Exception:
        pass
    if 'v7' in kind:
        return 2, 24 << 20, 32 << 20
    if 'v5' in kind or 'v6' in kind:
        return 1, 48 << 20, 64 << 20
    return 1, 24 << 20, 32 << 20


# ----------------------------------------------------------------------------
# Fused matmul kernel:  O = act(A @ B + bias) [ @ Wproj + bproj ]
# ----------------------------------------------------------------------------
def _make_kernel(act, has_bias, has_proj, single_k):
    def kernel(*args):
        if single_k:
            o_ref = args[-1]
            rest = args[:-1]
            acc_ref = None
        else:
            acc_ref = args[-1]
            o_ref = args[-2]
            rest = args[:-2]

        a_ref, b_ref = rest[0], rest[1]
        pos = 2
        bias_ref = alpha_ref = w2_ref = b2_ref = None
        if has_bias:
            bias_ref = rest[pos]; pos += 1
        if act == 'prelu':
            alpha_ref = rest[pos]; pos += 1
        if has_proj:
            w2_ref = rest[pos]; b2_ref = rest[pos + 1]; pos += 2

        def epilogue(y):
            if has_bias:
                y = y + bias_ref[...]                        # (1, tn) broadcast
            if act == 'relu':
                y = jnp.maximum(y, 0.0)
            elif act == 'prelu':
                y = jnp.where(y >= 0, y, alpha_ref[...] * y)
            if has_proj:                                     # fused final 1x1 conv
                y = jnp.dot(y.astype(jnp.bfloat16), w2_ref[...],
                            preferred_element_type=jnp.float32) + b2_ref[...]
            return y.astype(o_ref.dtype)

        if single_k:
            # Single k step: no scratch accumulator, write straight to o_ref.
            y = jnp.dot(a_ref[...], b_ref[...],
                        preferred_element_type=jnp.float32)
            o_ref[...] = epilogue(y)
        else:
            k = pl.program_id(2)

            @pl.when(k == 0)
            def _init():
                acc_ref[...] = jnp.zeros_like(acc_ref)

            acc_ref[...] += jnp.dot(a_ref[...], b_ref[...],
                                    preferred_element_type=jnp.float32)

            @pl.when(k == pl.num_programs(2) - 1)
            def _epilogue():
                o_ref[...] = epilogue(acc_ref[...])

    return kernel


def _round_up(x, m):
    return (x + m - 1) // m * m


def _pick_tiles(M, Np, K, *, single_n_tile, out_cols_pad, out_bytes,
                proj_vmem, num_tc, budget):
    """Choose (tm, tn, tk, Mp, Kp).  Np is already a multiple of 128."""
    # N tile: full lane-dense width where possible (avoids re-streaming A).
    if single_n_tile or Np <= 1024:
        tn = Np
    else:
        tn = 1024
        while Np % tn:
            tn //= 2                                         # 128 always divides

    # K tile: single full-K step when small, else a dividing 2048/1024 chunk.
    if K <= 4096:
        tk, Kp = K, K
    else:
        tk = None
        for cand in (2048, 1024):
            if K % cand == 0:
                tk = cand
                break
        if tk is None:
            tk = 2048
        Kp = _round_up(K, tk)

    # M tile: as large as possible (<= 512) while dividing padded M.
    Mp = _round_up(M, 16)
    tm = min(Mp, 512)
    while Mp % tm and tm > 16:
        tm //= 2

    # Megacore split: only on multi-TensorCore chips (v7x).  Prefer splitting N:
    # B's index_map is (k, j) -- independent of i -- so splitting M re-streams
    # the full B from HBM per extra i tile.  Only split M when A traffic
    # clearly dominates B traffic (Mp >= 2 * Np).
    if num_tc >= 2 and (Mp // tm) * (Np // tn) < 2:
        if (not single_n_tile) and tn % 256 == 0:
            tn //= 2
        elif tm % 32 == 0 and Mp >= 2 * Np:
            tm //= 2

    # Give the k pipeline >= 2 stages when the (i, j) grid is tiny, so the
    # initial A/B DMA has something to hide behind (~0.35us per extra step).
    if (Mp // tm) * (Np // tn) < 4 and Kp // tk < 2 and K >= 1024:
        for nk in (2, 3, 4):
            if Kp % nk == 0 and (Kp // nk) % 128 == 0:
                tk = Kp // nk
                break

    # VMEM budget: bf16 A/B double-buffered + f32 acc + double-buffered output
    # + bias/alpha rows + (double-buffered) projection weights.
    def est(tm_, tn_, tk_):
        oc = out_cols_pad if out_cols_pad is not None else tn_
        return (2 * tm_ * tk_ * 2            # A (bf16, x2 buffers)
                + 2 * tk_ * tn_ * 2          # B (bf16, x2 buffers)
                + tm_ * tn_ * 4              # f32 accumulator scratch
                + 2 * tm_ * oc * out_bytes   # output (x2 buffers)
                + 4 * tn_ * 4                # bias + alpha rows (f32, x2)
                + proj_vmem)

    while est(tm, tn, tk) > budget and tm % 32 == 0 and tm > 32:
        tm //= 2
    while (est(tm, tn, tk) > budget and tk % 256 == 0 and tk > 512
           and Kp % (tk // 2) == 0):
        tk //= 2

    return tm, tn, tk, Mp, Kp


def fused_matmul(a, b, bias=None, alpha=None, act='none',
                 proj_w=None, proj_b=None, out_dtype=jnp.bfloat16):
    """O = act(A @ B + bias) [@ proj_w + proj_b].

    a:(M,K), b:(K,N); bias/alpha:(N,) f32; proj_w:(N,N2) bf16, proj_b:(N2,) f32.
    A/B run on the MXU in bf16 with an f32 VMEM accumulator; the epilogue
    (bias, ReLU/PReLU, optional fused 1x1 projection) runs in f32 and the
    result is stored as `out_dtype` (bf16 by default to halve writeback bytes).
    """
    M, K = a.shape
    Kb, N = b.shape
    assert K == Kb
    has_bias = bias is not None
    has_proj = proj_w is not None
    if act == 'prelu' and alpha is None:
        alpha = jnp.zeros((N,), jnp.float32)

    num_tc, budget, vmem_limit = _chip_caps()
    Np = _round_up(N, 128)
    out_bytes = jnp.dtype(out_dtype).itemsize

    if has_proj:
        N2 = proj_w.shape[1]
        Np2 = _round_up(N2, 128)
        proj_vmem = 2 * (Np * Np2 * 2 + Np2 * 4)
        out_cols_pad = Np2
    else:
        N2, Np2 = N, Np
        proj_vmem = 0
        out_cols_pad = None                 # == tn

    tm, tn, tk, Mp, Kp = _pick_tiles(
        M, Np, K, single_n_tile=has_proj, out_cols_pad=out_cols_pad,
        out_bytes=out_bytes, proj_vmem=proj_vmem, num_tc=num_tc, budget=budget)
    if has_proj:
        assert tn == Np, "fused projection requires a single N tile"

    a_p = a if a.dtype == jnp.bfloat16 else a.astype(jnp.bfloat16)
    if (Mp, Kp) != (M, K):
        a_p = jnp.pad(a_p, ((0, Mp - M), (0, Kp - K)))
    b_p = b if b.dtype == jnp.bfloat16 else b.astype(jnp.bfloat16)
    if (Kp, Np) != (K, N):
        b_p = jnp.pad(b_p, ((0, Kp - K), (0, Np - N)))

    inputs = [a_p, b_p]
    in_specs = [pl.BlockSpec((tm, tk), lambda i, j, k: (i, k)),
                pl.BlockSpec((tk, tn), lambda i, j, k: (k, j))]

    if has_bias:
        bias_p = jnp.pad(bias.astype(jnp.float32), (0, Np - N)).reshape(1, Np)
        inputs.append(bias_p)
        in_specs.append(pl.BlockSpec((1, tn), lambda i, j, k: (0, j)))
    if act == 'prelu':
        alpha_p = jnp.pad(alpha.astype(jnp.float32), (0, Np - N)).reshape(1, Np)
        inputs.append(alpha_p)
        in_specs.append(pl.BlockSpec((1, tn), lambda i, j, k: (0, j)))

    if has_proj:
        w2_p = proj_w if proj_w.dtype == jnp.bfloat16 else proj_w.astype(jnp.bfloat16)
        if (Np, Np2) != proj_w.shape:
            w2_p = jnp.pad(w2_p, ((0, Np - N), (0, Np2 - N2)))
        b2_p = jnp.pad(proj_b.astype(jnp.float32), (0, Np2 - N2)).reshape(1, Np2)
        inputs += [w2_p, b2_p]
        in_specs += [pl.BlockSpec((Np, Np2), lambda i, j, k: (0, 0)),
                     pl.BlockSpec((1, Np2), lambda i, j, k: (0, 0))]
        out_spec = pl.BlockSpec((tm, Np2), lambda i, j, k: (i, 0))
        out_cols, out_cols_valid = Np2, N2
    else:
        out_spec = pl.BlockSpec((tm, tn), lambda i, j, k: (i, j))
        out_cols, out_cols_valid = Np, N

    grid = (Mp // tm, Np // tn, Kp // tk)
    single_k = grid[2] == 1
    kernel = _make_kernel(act=act, has_bias=has_bias, has_proj=has_proj,
                          single_k=single_k)
    scratch = [] if single_k else [pltpu.VMEM((tm, tn), jnp.float32)]

    out = pl.pallas_call(
        kernel,
        out_shape=jax.ShapeDtypeStruct((Mp, out_cols), out_dtype),
        grid_spec=pltpu.PrefetchScalarGridSpec(
            num_scalar_prefetch=0,
            grid=grid,
            in_specs=in_specs,
            out_specs=out_spec,
            scratch_shapes=scratch),
        compiler_params=pltpu.CompilerParams(
            dimension_semantics=("parallel", "parallel", "arbitrary"),
            vmem_limit_bytes=vmem_limit),
    )(*inputs)

    if (Mp, out_cols) != (M, out_cols_valid):
        out = out[:M, :out_cols_valid]
    return out


# ----------------------------------------------------------------------------
# Matmul dispatcher: tiny shapes go to plain XLA (launch overhead dominates)
# ----------------------------------------------------------------------------
def dense(a, w, b=None, alpha=None, act='none', proj_w=None, proj_b=None,
          out_dtype=jnp.bfloat16):
    M, K = a.shape
    N = w.shape[1]
    if M < 128 or K < 32:
        # Tiny matmul: a pallas_call would cost more in launch/pad overhead
        # than the compute itself (PSP stage convs, backbone stub).
        y = jnp.dot(a, w, preferred_element_type=jnp.float32)
        if b is not None:
            y = y + b
        if act == 'relu':
            y = jnp.maximum(y, 0.0)
        elif act == 'prelu':
            aw = alpha if alpha is not None else jnp.zeros((N,), jnp.float32)
            y = jnp.where(y >= 0, y, aw * y)
        if proj_w is not None:
            y = jnp.dot(y.astype(jnp.bfloat16), proj_w,
                        preferred_element_type=jnp.float32) + proj_b
        return y.astype(out_dtype)
    return fused_matmul(a, w, bias=b, alpha=alpha, act=act,
                        proj_w=proj_w, proj_b=proj_b, out_dtype=out_dtype)


# ----------------------------------------------------------------------------
# Conv wrappers (hot path goes through fused_matmul)
# ----------------------------------------------------------------------------
def conv1x1(x, w, b=None, act='none', out_dtype=jnp.bfloat16):
    """x:(N,H,W,Cin) NHWC, w:(Cin,Cout)."""
    N, H, W, Cin = x.shape
    y = dense(x.reshape(N * H * W, Cin), w, b=b, act=act, out_dtype=out_dtype)
    return y.reshape(N, H, W, w.shape[1])


def conv3x3(x, w_mat, b=None, alpha=None, act='none',
            proj_w=None, proj_b=None, out_dtype=jnp.bfloat16):
    """x:(N,H,W,Cin), w_mat:(9*Cin,Cout) in (ky,kx,Cin) patch order.
    padding=1, stride=1 (im2col + fused matmul).  Optional fused projection
    (proj_w:(Cout,C2)) applies a 1x1 conv in the matmul epilogue (head)."""
    # TODO(synk): a halo-tiled Pallas conv (grid over H tiles, 9 accumulation
    # steps from a (tile_h+2, W+2, Cin) window) would remove this bf16 im2col
    # HBM round trip entirely; left as im2col for now.
    N, H, W, Cin = x.shape
    xp = x if x.dtype == jnp.bfloat16 else x.astype(jnp.bfloat16)
    xp = jnp.pad(xp, ((0, 0), (1, 1), (1, 1), (0, 0)))
    patches = jnp.concatenate(
        [xp[:, dy:dy + H, dx:dx + W, :] for dy in range(3) for dx in range(3)],
        axis=-1)                                  # (N,H,W,9*Cin), (ky,kx,Cin) order
    y = dense(patches.reshape(N * H * W, 9 * Cin), w_mat, b=b, alpha=alpha,
              act=act, proj_w=proj_w, proj_b=proj_b, out_dtype=out_dtype)
    out_c = proj_w.shape[1] if proj_w is not None else w_mat.shape[1]
    return y.reshape(N, H, W, out_c)


def fold_bn(w, gamma, beta, mean, var, eps=1e-5):
    """Fold an eval-mode BatchNorm into the preceding (bias-free) conv weight."""
    scale = gamma / jnp.sqrt(var + eps)
    return w * scale, beta - mean * scale


# ----------------------------------------------------------------------------
# Small glue: adaptive avg-pool and align_corners bilinear resize as matmuls
# ----------------------------------------------------------------------------
def adaptive_avg_pool(x, k):
    """PyTorch AdaptiveAvgPool2d((k,k)) on NHWC, via precomputed pooling matrices."""
    N, H, W, C = x.shape

    def pool_matrix(in_s, out_s):
        P = np.zeros((out_s, in_s), np.float32)
        for i in range(out_s):
            s = (i * in_s) // out_s
            e = -(-((i + 1) * in_s) // out_s)      # ceil
            P[i, s:e] = 1.0 / (e - s)
        return jnp.asarray(P)

    Ph = pool_matrix(H, k)
    Pw = pool_matrix(W, k)
    y = jnp.einsum('oh,nhwc->nowc', Ph, x.astype(jnp.float32))
    return jnp.einsum('pw,nowc->nopc', Pw, y).astype(x.dtype)


def _interp_matrix(out_s, in_s):
    """align_corners=True bilinear interpolation matrix (out_s, in_s)."""
    P = np.zeros((out_s, in_s), np.float32)
    if out_s == 1:
        P[0, 0] = 1.0
    else:
        scale = (in_s - 1) / (out_s - 1)
        for i in range(out_s):
            src = i * scale
            i0 = min(int(np.floor(src)), in_s - 1)
            i1 = min(i0 + 1, in_s - 1)
            f = src - i0
            P[i, i0] += 1.0 - f
            P[i, i1] += f
    return jnp.asarray(P)


def bilinear_resize(x, out_h, out_w):
    """F.interpolate(mode='bilinear', align_corners=True) on NHWC via two matmuls."""
    N, H, W, C = x.shape
    Ph = _interp_matrix(out_h, H)
    Pw = _interp_matrix(out_w, W)
    y = jnp.einsum('oh,nhwc->nowc', Ph, x.astype(jnp.float32))
    y = jnp.einsum('pw,nowc->nopc', Pw, y)
    return y.astype(x.dtype)


# ----------------------------------------------------------------------------
# PSPNet forward (eval mode by default)
# ----------------------------------------------------------------------------
PSP_KERNEL = (1, 2, 3, 6)
NUM_CLASSES = 3
PSP_IN_CHANNELS = 64
DEEP_FEATURES_SIZE = 32


def backbone_stub(x, p):
    # TODO(synk): the real resnet34 backbone is built via eval(backend) and is not
    # defined in the provided snippet; replaced with a deterministic stride-8
    # average-pool + 1x1-conv stub producing (feat, aux_feat).
    N, H, W, C = x.shape
    pooled = x.reshape(N, H // 8, 8, W // 8, 8, C).mean(axis=(2, 4))
    feat = conv1x1(pooled, p['wf'], p['bf'], act='relu')
    aux = conv1x1(pooled, p['wa'], p['ba'], act='relu')
    return feat, aux


def psp_module(x, p):
    h, w = x.shape[1], x.shape[2]
    feats = []
    for i, k in enumerate(PSP_KERNEL):
        pooled = adaptive_avg_pool(x, k)
        c = conv1x1(pooled, p['stage_w'][i])                       # 1x1, no bias
        feats.append(bilinear_resize(c, h, w))
    feats.append(x)
    cat = jnp.concatenate(feats, axis=-1)
    # bottleneck 1x1 conv (with bias) + ReLU, fused in the matmul epilogue
    return conv1x1(cat, p['bottle_w'], p['bottle_b'], act='relu')


def psp_upsample(x, p):
    h, w = 2 * x.shape[1], 2 * x.shape[2]
    up = bilinear_resize(x, h, w)
    return conv3x3(up, p['w'], p['b'], alpha=p['alpha'], act='prelu')


def head_block(x, p, out_dtype=jnp.float32):
    # 3x3 conv (BN folded) + ReLU + [Dropout eval = identity] + fused 1x1 conv
    return conv3x3(x, p['w'], p['b'], act='relu',
                   proj_w=p['proj_w'], proj_b=p['proj_b'], out_dtype=out_dtype)


def pspnet_forward(params, x_nchw, training=False):
    x = jnp.transpose(x_nchw, (0, 2, 3, 1))                        # NCHW -> NHWC
    N, H, W, _ = x.shape
    feat, aux_feat = backbone_stub(x, params['backbone'])
    p = psp_module(feat, params['psp'])
    # drop1 / drop2 / drop3 / drop4: identity in eval mode
    p = psp_upsample(p, params['up1'])
    p = psp_upsample(p, params['up2'])
    p = psp_upsample(p, params['up3'])
    out = head_block(p, params['head'])                            # f32 logits
    out = jnp.transpose(out, (0, 3, 1, 2))                         # NHWC -> NCHW

    if training:                                                   # aux branch only used in training
        aux = head_block(aux_feat, params['aux_head'])
        aux = bilinear_resize(aux, H, W)
        return out, jnp.transpose(aux, (0, 3, 1, 2))
    return out


# ----------------------------------------------------------------------------
# Parameters: deterministic raw params + one-time (outside jit) preparation
# ----------------------------------------------------------------------------
def build_params():
    keys = iter(jax.random.split(jax.random.PRNGKey(0), 64))

    def rnd(shape, scale=0.05):
        return scale * jax.random.normal(next(keys), shape, jnp.float32)

    def init_bn(c):
        return dict(
            gamma=1.0 + 0.1 * jax.random.normal(next(keys), (c,), jnp.float32),
            beta=0.1 * jax.random.normal(next(keys), (c,), jnp.float32),
            mean=0.1 * jax.random.normal(next(keys), (c,), jnp.float32),
            var=jax.random.uniform(next(keys), (c,), jnp.float32, 0.5, 1.5),
        )

    cin = PSP_IN_CHANNELS
    params = {
        'backbone': dict(wf=rnd((3, cin)), bf=rnd((cin,)),
                         wa=rnd((3, DEEP_FEATURES_SIZE)), ba=rnd((DEEP_FEATURES_SIZE,))),
        'psp': dict(
            stage_w=[rnd((cin, cin)) for _ in PSP_KERNEL],
            bottle_w=rnd((cin * (len(PSP_KERNEL) + 1), 1024)),
            bottle_b=rnd((1024,)),
        ),
        'up1': dict(w=rnd((3, 3, 1024, 256)), bn=init_bn(256),
                    alpha=0.25 * jnp.ones((256,), jnp.float32)),
        'up2': dict(w=rnd((3, 3, 256, 64)), bn=init_bn(64),
                    alpha=0.25 * jnp.ones((64,), jnp.float32)),
        'up3': dict(w=rnd((3, 3, 64, 64)), bn=init_bn(64),
                    alpha=0.25 * jnp.ones((64,), jnp.float32)),
        'head': dict(w3=rnd((3, 3, 64, 64)), bn=init_bn(64),
                     w1=rnd((64, NUM_CLASSES)), b1=rnd((NUM_CLASSES,))),
        'aux_head': dict(w3=rnd((3, 3, DEEP_FEATURES_SIZE, 256)), bn=init_bn(256),
                         w1=rnd((256, NUM_CLASSES)), b1=rnd((NUM_CLASSES,))),
    }
    return params


def prepare_params(raw):
    """One-time, OUTSIDE-jit weight preparation: fold BN into conv weights,
    reshape 3x3 kernels to (9*Cin, Cout) matmul form, and cast all MXU
    operands to bf16 (biases / PReLU slopes stay f32 for the f32 epilogue)."""
    bf = lambda t: jnp.asarray(t, jnp.bfloat16)
    f32 = lambda t: jnp.asarray(t, jnp.float32)

    def prep_up(p):
        w, b = fold_bn(p['w'], **p['bn'])
        kh, kw, cin, cout = p['w'].shape
        return dict(w=bf(w.reshape(kh * kw * cin, cout)), b=f32(b),
                    alpha=f32(p['alpha']))

    def prep_head(p):
        w, b = fold_bn(p['w3'], **p['bn'])
        kh, kw, cin, cout = p['w3'].shape
        return dict(w=bf(w.reshape(kh * kw * cin, cout)), b=f32(b),
                    proj_w=bf(p['w1']), proj_b=f32(p['b1']))

    return {
        'backbone': dict(wf=bf(raw['backbone']['wf']), bf=f32(raw['backbone']['bf']),
                         wa=bf(raw['backbone']['wa']), ba=f32(raw['backbone']['ba'])),
        'psp': dict(stage_w=[bf(w) for w in raw['psp']['stage_w']],
                    bottle_w=bf(raw['psp']['bottle_w']),
                    bottle_b=f32(raw['psp']['bottle_b'])),
        'up1': prep_up(raw['up1']),
        'up2': prep_up(raw['up2']),
        'up3': prep_up(raw['up3']),
        'head': prep_head(raw['head']),
        'aux_head': prep_head(raw['aux_head']),
    }


if __name__ == "__main__":
    params = prepare_params(build_params())
    x = jax.random.normal(jax.random.PRNGKey(0), (2, 3, 32, 32), jnp.float32)  # NCHW

    fwd = jax.jit(pspnet_forward)
    out = fwd(params, x)
    out = jax.block_until_ready(out)

    assert out.shape == (2, NUM_CLASSES, 32, 32), out.shape
    assert bool(jnp.all(jnp.isfinite(out)))
    print("KERNEL_OK")
</pallas_src>

<mosaic_0001>
module attributes {stable_mosaic.version = 11 : i64} {
  func.func @kernel(%arg0: i32, %arg1: i32, %arg2: i32, %arg3: memref<128x1024xbf16, #tpu.memory_space<vmem>>, %arg4: memref<1024x256xbf16, #tpu.memory_space<vmem>>, %arg5: memref<1x256xf32, #tpu.memory_space<vmem>>, %arg6: memref<1x256xf32, #tpu.memory_space<vmem>>, %arg7: memref<128x256xbf16, #tpu.memory_space<vmem>>, %arg8: memref<128x256xf32, #tpu.memory_space<vmem>>) attributes {dimension_semantics = [#tpu.dimension_semantics<parallel>, #tpu.dimension_semantics<parallel>, #tpu.dimension_semantics<arbitrary>], iteration_bounds = array<i64: 1, 1, 9>, scalar_prefetch = 0 : i64, scratch_operands = 1 : i64, tpu.core_type = #tpu.core_type<tc>, window_params = [{transform_indices = @transform_0, window_bounds = array<i64: 128, 1024>}, {transform_indices = @transform_1, window_bounds = array<i64: 1024, 256>}, {transform_indices = @transform_2, window_bounds = array<i64: 1, 256>}, {transform_indices = @transform_3, window_bounds = array<i64: 1, 256>}, {transform_indices = @transform_4, window_bounds = array<i64: 128, 256>}]} {
    %c0_i32 = arith.constant 0 : i32
    %0 = arith.cmpi eq, %arg2, %c0_i32 : i32
    %1 = arith.extui %0 : i1 to i32
    %c0_i32_0 = arith.constant 0 : i32
    %2 = arith.cmpi ne, %1, %c0_i32_0 : i32
    scf.if %2 {
      %cst_9 = arith.constant 0.000000e+00 : f32
      %12 = vector.broadcast %cst_9 : f32 to vector<128x256xf32>
      %c0_10 = arith.constant 0 : index
      %c0_11 = arith.constant 0 : index
      %13 = vector.load %arg8[%c0_10, %c0_11] : memref<128x256xf32, #tpu.memory_space<vmem>>, vector<128x256xf32>
      tpu.vector_store %arg8[%c0_10, %c0_11], %12 {strides = array<i32>} : memref<128x256xf32, #tpu.memory_space<vmem>>, vector<128x256xf32>,
    } else {
    }
    %c0 = arith.constant 0 : index
    %c0_1 = arith.constant 0 : index
    %3 = vector.load %arg8[%c0, %c0_1] : memref<128x256xf32, #tpu.memory_space<vmem>>, vector<128x256xf32>
    %c0_2 = arith.constant 0 : index
    %c0_3 = arith.constant 0 : index
    %4 = vector.load %arg3[%c0_2, %c0_3] : memref<128x1024xbf16, #tpu.memory_space<vmem>>, vector<128x1024xbf16>
    %c0_4 = arith.constant 0 : index
    %c0_5 = arith.constant 0 : index
    %5 = vector.load %arg4[%c0_4, %c0_5] : memref<1024x256xbf16, #tpu.memory_space<vmem>>, vector<1024x256xbf16>
    %cst = arith.constant dense<0.000000e+00> : vector<128x256xf32>
    %6 = tpu.matmul %4, %5, %cst {dimension_numbers = #tpu.dot_dimension_numbers<[1], [0], [0], [1], [0, 0, 1, 1], [], []>} : vector<128x1024xbf16>, vector<1024x256xbf16>, vector<128x256xf32> -> vector<128x256xf32>
    %7 = arith.addf %3, %6 : vector<128x256xf32>
    %c0_6 = arith.constant 0 : index
    %c0_7 = arith.constant 0 : index
    %8 = vector.load %arg8[%c0_6, %c0_7] : memref<128x256xf32, #tpu.memory_space<vmem>>, vector<128x256xf32>
    tpu.vector_store %arg8[%c0_6, %c0_7], %7 {strides = array<i32>} : memref<128x256xf32, #tpu.memory_space<vmem>>, vector<128x256xf32>,
    %c8_i32 = arith.constant 8 : i32
    %9 = arith.cmpi eq, %arg2, %c8_i32 : i32
    %10 = arith.extui %9 : i1 to i32
    %c0_i32_8 = arith.constant 0 : i32
    %11 = arith.cmpi ne, %10, %c0_i32_8 : i32
    scf.if %11 {
      %c0_9 = arith.constant 0 : index
      %c0_10 = arith.constant 0 : index
      %12 = vector.load %arg8[%c0_9, %c0_10] : memref<128x256xf32, #tpu.memory_space<vmem>>, vector<128x256xf32>
      %c0_11 = arith.constant 0 : index
      %c0_12 = arith.constant 0 : index
      %13 = vector.load %arg5[%c0_11, %c0_12] : memref<1x256xf32, #tpu.memory_space<vmem>>, vector<1x256xf32>
      %14 = vector.broadcast %13 : vector<1x256xf32> to vector<128x256xf32>
      %15 = arith.addf %12, %14 : vector<128x256xf32>
      %cst_13 = arith.constant 0.000000e+00 : f32
      %16 = vector.broadcast %cst_13 : f32 to vector<128x256xf32>
      %17 = arith.cmpf oge, %15, %16 : vector<128x256xf32>
      %c0_14 = arith.constant 0 : index
      %c0_15 = arith.constant 0 : index
      %18 = vector.load %arg6[%c0_14, %c0_15] : memref<1x256xf32, #tpu.memory_space<vmem>>, vector<1x256xf32>
      %19 = vector.broadcast %18 : vector<1x256xf32> to vector<128x256xf32>
      %20 = arith.mulf %19, %15 : vector<128x256xf32>
      %21 = arith.select %17, %15, %20 : vector<128x256xi1>, vector<128x256xf32>
      %22 = arith.truncf %21 : vector<128x256xf32> to vector<128x256xbf16>
      %c0_16 = arith.constant 0 : index
      %c0_17 = arith.constant 0 : index
      %23 = vector.load %arg7[%c0_16, %c0_17] : memref<128x256xbf16, #tpu.memory_space<vmem>>, vector<128x256xbf16>
      tpu.vector_store %arg7[%c0_16, %c0_17], %22 {strides = array<i32>} : memref<128x256xbf16, #tpu.memory_space<vmem>>, vector<128x256xbf16>,
    } else {
    }
    return
  }
  func.func @transform_0(%arg0: i32, %arg1: i32, %arg2: i32) -> (i32, i32) {
    %c0_i32 = arith.constant 0 : i32
    return %arg0, %arg2 : i32, i32
  }
  func.func @transform_1(%arg0: i32, %arg1: i32, %arg2: i32) -> (i32, i32) {
    %c0_i32 = arith.constant 0 : i32
    return %arg2, %arg1 : i32, i32
  }
  func.func @transform_2(%arg0: i32, %arg1: i32, %arg2: i32) -> (i32, i32) {
    %c0_i32 = arith.constant 0 : i32
    %c0_i32_0 = arith.constant 0 : i32
    return %c0_i32, %arg1 : i32, i32
  }
  func.func @transform_3(%arg0: i32, %arg1: i32, %arg2: i32) -> (i32, i32) {
    %c0_i32 = arith.constant 0 : i32
    %c0_i32_0 = arith.constant 0 : i32
    return %c0_i32, %arg1 : i32, i32
  }
  func.func @transform_4(%arg0: i32, %arg1: i32, %arg2: i32) -> (i32, i32) {
    %c0_i32 = arith.constant 0 : i32
    return %arg0, %arg1 : i32, i32
  }
}

module attributes {stable_mosaic.version = 11 : i64} {
  func.func @kernel(%arg0: i32, %arg1: i32, %arg2: i32, %arg3: memref<512x1152xbf16, #tpu.memory_space<vmem>>, %arg4: memref<1152x128xbf16, #tpu.memory_space<vmem>>, %arg5: memref<1x128xf32, #tpu.memory_space<vmem>>, %arg6: memref<1x128xf32, #tpu.memory_space<vmem>>, %arg7: memref<512x128xbf16, #tpu.memory_space<vmem>>, %arg8: memref<512x128xf32, #tpu.memory_space<vmem>>) attributes {dimension_semantics = [#tpu.dimension_semantics<parallel>, #tpu.dimension_semantics<parallel>, #tpu.dimension_semantics<arbitrary>], iteration_bounds = array<i64: 1, 1, 2>, scalar_prefetch = 0 : i64, scratch_operands = 1 : i64, tpu.core_type = #tpu.core_type<tc>, window_params = [{transform_indices = @transform_0, window_bounds = array<i64: 512, 1152>}, {transform_indices = @transform_1, window_bounds = array<i64: 1152, 128>}, {transform_indices = @transform_2, window_bounds = array<i64: 1, 128>}, {transform_indices = @transform_3, window_bounds = array<i64: 1, 128>}, {transform_indices = @transform_4, window_bounds = array<i64: 512, 128>}]} {
    %c0_i32 = arith.constant 0 : i32
    %0 = arith.cmpi eq, %arg2, %c0_i32 : i32
    %1 = arith.extui %0 : i1 to i32
    %c0_i32_0 = arith.constant 0 : i32
    %2 = arith.cmpi ne, %1, %c0_i32_0 : i32
    scf.if %2 {
      %cst_9 = arith.constant 0.000000e+00 : f32
      %12 = vector.broadcast %cst_9 : f32 to vector<512x128xf32>
      %c0_10 = arith.constant 0 : index
      %c0_11 = arith.constant 0 : index
      %13 = vector.load %arg8[%c0_10, %c0_11] : memref<512x128xf32, #tpu.memory_space<vmem>>, vector<512x128xf32>
      tpu.vector_store %arg8[%c0_10, %c0_11], %12 {strides = array<i32>} : memref<512x128xf32, #tpu.memory_space<vmem>>, vector<512x128xf32>,
    } else {
    }
    %c0 = arith.constant 0 : index
    %c0_1 = arith.constant 0 : index
    %3 = vector.load %arg8[%c0, %c0_1] : memref<512x128xf32, #tpu.memory_space<vmem>>, vector<512x128xf32>
    %c0_2 = arith.constant 0 : index
    %c0_3 = arith.constant 0 : index
    %4 = vector.load %arg3[%c0_2, %c0_3] : memref<512x1152xbf16, #tpu.memory_space<vmem>>, vector<512x1152xbf16>
    %c0_4 = arith.constant 0 : index
    %c0_5 = arith.constant 0 : index
    %5 = vector.load %arg4[%c0_4, %c0_5] : memref<1152x128xbf16, #tpu.memory_space<vmem>>, vector<1152x128xbf16>
    %cst = arith.constant dense<0.000000e+00> : vector<512x128xf32>
    %6 = tpu.matmul %4, %5, %cst {dimension_numbers = #tpu.dot_dimension_numbers<[1], [0], [0], [1], [0, 0, 1, 1], [], []>} : vector<512x1152xbf16>, vector<1152x128xbf16>, vector<512x128xf32> -> vector<512x128xf32>
    %7 = arith.addf %3, %6 : vector<512x128xf32>
    %c0_6 = arith.constant 0 : index
    %c0_7 = arith.constant 0 : index
    %8 = vector.load %arg8[%c0_6, %c0_7] : memref<512x128xf32, #tpu.memory_space<vmem>>, vector<512x128xf32>
    tpu.vector_store %arg8[%c0_6, %c0_7], %7 {strides = array<i32>} : memref<512x128xf32, #tpu.memory_space<vmem>>, vector<512x128xf32>,
    %c1_i32 = arith.constant 1 : i32
    %9 = arith.cmpi eq, %arg2, %c1_i32 : i32
    %10 = arith.extui %9 : i1 to i32
    %c0_i32_8 = arith.constant 0 : i32
    %11 = arith.cmpi ne, %10, %c0_i32_8 : i32
    scf.if %11 {
      %c0_9 = arith.constant 0 : index
      %c0_10 = arith.constant 0 : index
      %12 = vector.load %arg8[%c0_9, %c0_10] : memref<512x128xf32, #tpu.memory_space<vmem>>, vector<512x128xf32>
      %c0_11 = arith.constant 0 : index
      %c0_12 = arith.constant 0 : index
      %13 = vector.load %arg5[%c0_11, %c0_12] : memref<1x128xf32, #tpu.memory_space<vmem>>, vector<1x128xf32>
      %14 = vector.broadcast %13 : vector<1x128xf32> to vector<512x128xf32>
      %15 = arith.addf %12, %14 : vector<512x128xf32>
      %cst_13 = arith.constant 0.000000e+00 : f32
      %16 = vector.broadcast %cst_13 : f32 to vector<512x128xf32>
      %17 = arith.cmpf oge, %15, %16 : vector<512x128xf32>
      %c0_14 = arith.constant 0 : index
      %c0_15 = arith.constant 0 : index
      %18 = vector.load %arg6[%c0_14, %c0_15] : memref<1x128xf32, #tpu.memory_space<vmem>>, vector<1x128xf32>
      %19 = vector.broadcast %18 : vector<1x128xf32> to vector<512x128xf32>
      %20 = arith.mulf %19, %15 : vector<512x128xf32>
      %21 = arith.select %17, %15, %20 : vector<512x128xi1>, vector<512x128xf32>
      %22 = arith.truncf %21 : vector<512x128xf32> to vector<512x128xbf16>
      %c0_16 = arith.constant 0 : index
      %c0_17 = arith.constant 0 : index
      %23 = vector.load %arg7[%c0_16, %c0_17] : memref<512x128xbf16, #tpu.memory_space<vmem>>, vector<512x128xbf16>
      tpu.vector_store %arg7[%c0_16, %c0_17], %22 {strides = array<i32>} : memref<512x128xbf16, #tpu.memory_space<vmem>>, vector<512x128xbf16>,
    } else {
    }
    return
  }
  func.func @transform_0(%arg0: i32, %arg1: i32, %arg2: i32) -> (i32, i32) {
    %c0_i32 = arith.constant 0 : i32
    return %arg0, %arg2 : i32, i32
  }
  func.func @transform_1(%arg0: i32, %arg1: i32, %arg2: i32) -> (i32, i32) {
    %c0_i32 = arith.constant 0 : i32
    return %arg2, %arg1 : i32, i32
  }
  func.func @transform_2(%arg0: i32, %arg1: i32, %arg2: i32) -> (i32, i32) {
    %c0_i32 = arith.constant 0 : i32
    %c0_i32_0 = arith.constant 0 : i32
    return %c0_i32, %arg1 : i32, i32
  }
  func.func @transform_3(%arg0: i32, %arg1: i32, %arg2: i32) -> (i32, i32) {
    %c0_i32 = arith.constant 0 : i32
    %c0_i32_0 = arith.constant 0 : i32
    return %c0_i32, %arg1 : i32, i32
  }
  func.func @transform_4(%arg0: i32, %arg1: i32, %arg2: i32) -> (i32, i32) {
    %c0_i32 = arith.constant 0 : i32
    return %arg0, %arg1 : i32, i32
  }
}

module attributes {stable_mosaic.version = 11 : i64} {
  func.func @kernel(%arg0: i32, %arg1: i32, %arg2: i32, %arg3: memref<512x576xbf16, #tpu.memory_space<vmem>>, %arg4: memref<576x128xbf16, #tpu.memory_space<vmem>>, %arg5: memref<1x128xf32, #tpu.memory_space<vmem>>, %arg6: memref<1x128xf32, #tpu.memory_space<vmem>>, %arg7: memref<512x128xbf16, #tpu.memory_space<vmem>>) attributes {dimension_semantics = [#tpu.dimension_semantics<parallel>, #tpu.dimension_semantics<parallel>, #tpu.dimension_semantics<arbitrary>], iteration_bounds = array<i64: 4, 1, 1>, scalar_prefetch = 0 : i64, scratch_operands = 0 : i64, tpu.core_type = #tpu.core_type<tc>, window_params = [{transform_indices = @transform_0, window_bounds = array<i64: 512, 576>}, {transform_indices = @transform_1, window_bounds = array<i64: 576, 128>}, {transform_indices = @transform_2, window_bounds = array<i64: 1, 128>}, {transform_indices = @transform_3, window_bounds = array<i64: 1, 128>}, {transform_indices = @transform_4, window_bounds = array<i64: 512, 128>}]} {
    %c0 = arith.constant 0 : index
    %c0_0 = arith.constant 0 : index
    %0 = vector.load %arg3[%c0, %c0_0] : memref<512x576xbf16, #tpu.memory_space<vmem>>, vector<512x576xbf16>
    %c0_1 = arith.constant 0 : index
    %c0_2 = arith.constant 0 : index
    %1 = vector.load %arg4[%c0_1, %c0_2] : memref<576x128xbf16, #tpu.memory_space<vmem>>, vector<576x128xbf16>
    %cst = arith.constant dense<0.000000e+00> : vector<512x128xf32>
    %2 = tpu.matmul %0, %1, %cst {dimension_numbers = #tpu.dot_dimension_numbers<[1], [0], [0], [1], [0, 0, 1, 1], [], []>} : vector<512x576xbf16>, vector<576x128xbf16>, vector<512x128xf32> -> vector<512x128xf32>
    %c0_3 = arith.constant 0 : index
    %c0_4 = arith.constant 0 : index
    %3 = vector.load %arg5[%c0_3, %c0_4] : memref<1x128xf32, #tpu.memory_space<vmem>>, vector<1x128xf32>
    %4 = vector.broadcast %3 : vector<1x128xf32> to vector<512x128xf32>
    %5 = arith.addf %2, %4 : vector<512x128xf32>
    %cst_5 = arith.constant 0.000000e+00 : f32
    %6 = vector.broadcast %cst_5 : f32 to vector<512x128xf32>
    %7 = arith.cmpf oge, %5, %6 : vector<512x128xf32>
    %c0_6 = arith.constant 0 : index
    %c0_7 = arith.constant 0 : index
    %8 = vector.load %arg6[%c0_6, %c0_7] : memref<1x128xf32, #tpu.memory_space<vmem>>, vector<1x128xf32>
    %9 = vector.broadcast %8 : vector<1x128xf32> to vector<512x128xf32>
    %10 = arith.mulf %9, %5 : vector<512x128xf32>
    %11 = arith.select %7, %5, %10 : vector<512x128xi1>, vector<512x128xf32>
    %12 = arith.truncf %11 : vector<512x128xf32> to vector<512x128xbf16>
    %c0_8 = arith.constant 0 : index
    %c0_9 = arith.constant 0 : index
    %13 = vector.load %arg7[%c0_8, %c0_9] : memref<512x128xbf16, #tpu.memory_space<vmem>>, vector<512x128xbf16>
    tpu.vector_store %arg7[%c0_8, %c0_9], %12 {strides = array<i32>} : memref<512x128xbf16, #tpu.memory_space<vmem>>, vector<512x128xbf16>,
    return
  }
  func.func @transform_0(%arg0: i32, %arg1: i32, %arg2: i32) -> (i32, i32) {
    %c0_i32 = arith.constant 0 : i32
    return %arg0, %arg2 : i32, i32
  }
  func.func @transform_1(%arg0: i32, %arg1: i32, %arg2: i32) -> (i32, i32) {
    %c0_i32 = arith.constant 0 : i32
    return %arg2, %arg1 : i32, i32
  }
  func.func @transform_2(%arg0: i32, %arg1: i32, %arg2: i32) -> (i32, i32) {
    %c0_i32 = arith.constant 0 : i32
    %c0_i32_0 = arith.constant 0 : i32
    return %c0_i32, %arg1 : i32, i32
  }
  func.func @transform_3(%arg0: i32, %arg1: i32, %arg2: i32) -> (i32, i32) {
    %c0_i32 = arith.constant 0 : i32
    %c0_i32_0 = arith.constant 0 : i32
    return %c0_i32, %arg1 : i32, i32
  }
  func.func @transform_4(%arg0: i32, %arg1: i32, %arg2: i32) -> (i32, i32) {
    %c0_i32 = arith.constant 0 : i32
    return %arg0, %arg1 : i32, i32
  }
}

module attributes {stable_mosaic.version = 11 : i64} {
  func.func @kernel(%arg0: i32, %arg1: i32, %arg2: i32, %arg3: memref<512x576xbf16, #tpu.memory_space<vmem>>, %arg4: memref<576x128xbf16, #tpu.memory_space<vmem>>, %arg5: memref<1x128xf32, #tpu.memory_space<vmem>>, %arg6: memref<128x128xbf16, #tpu.memory_space<vmem>>, %arg7: memref<1x128xf32, #tpu.memory_space<vmem>>, %arg8: memref<512x128xf32, #tpu.memory_space<vmem>>) attributes {dimension_semantics = [#tpu.dimension_semantics<parallel>, #tpu.dimension_semantics<parallel>, #tpu.dimension_semantics<arbitrary>], iteration_bounds = array<i64: 4, 1, 1>, scalar_prefetch = 0 : i64, scratch_operands = 0 : i64, tpu.core_type = #tpu.core_type<tc>, window_params = [{transform_indices = @transform_0, window_bounds = array<i64: 512, 576>}, {transform_indices = @transform_1, window_bounds = array<i64: 576, 128>}, {transform_indices = @transform_2, window_bounds = array<i64: 1, 128>}, {pipeline_mode = #tpu.pipeline_mode<synchronous>, transform_indices = @transform_3, window_bounds = array<i64: 128, 128>}, {pipeline_mode = #tpu.pipeline_mode<synchronous>, transform_indices = @transform_4, window_bounds = array<i64: 1, 128>}, {transform_indices = @transform_5, window_bounds = array<i64: 512, 128>}]} {
    %c0 = arith.constant 0 : index
    %c0_0 = arith.constant 0 : index
    %0 = vector.load %arg3[%c0, %c0_0] : memref<512x576xbf16, #tpu.memory_space<vmem>>, vector<512x576xbf16>
    %c0_1 = arith.constant 0 : index
    %c0_2 = arith.constant 0 : index
    %1 = vector.load %arg4[%c0_1, %c0_2] : memref<576x128xbf16, #tpu.memory_space<vmem>>, vector<576x128xbf16>
    %cst = arith.constant dense<0.000000e+00> : vector<512x128xf32>
    %2 = tpu.matmul %0, %1, %cst {dimension_numbers = #tpu.dot_dimension_numbers<[1], [0], [0], [1], [0, 0, 1, 1], [], []>} : vector<512x576xbf16>, vector<576x128xbf16>, vector<512x128xf32> -> vector<512x128xf32>
    %c0_3 = arith.constant 0 : index
    %c0_4 = arith.constant 0 : index
    %3 = vector.load %arg5[%c0_3, %c0_4] : memref<1x128xf32, #tpu.memory_space<vmem>>, vector<1x128xf32>
    %4 = vector.broadcast %3 : vector<1x128xf32> to vector<512x128xf32>
    %5 = arith.addf %2, %4 : vector<512x128xf32>
    %cst_5 = arith.constant 0.000000e+00 : f32
    %6 = vector.broadcast %cst_5 : f32 to vector<512x128xf32>
    %7 = arith.maximumf %5, %6 : vector<512x128xf32>
    %8 = arith.truncf %7 : vector<512x128xf32> to vector<512x128xbf16>
    %c0_6 = arith.constant 0 : index
    %c0_7 = arith.constant 0 : index
    %9 = vector.load %arg6[%c0_6, %c0_7] : memref<128x128xbf16, #tpu.memory_space<vmem>>, vector<128x128xbf16>
    %cst_8 = arith.constant dense<0.000000e+00> : vector<512x128xf32>
    %10 = tpu.matmul %8, %9, %cst_8 {dimension_numbers = #tpu.dot_dimension_numbers<[1], [0], [0], [1], [0, 0, 1, 1], [], []>} : vector<512x128xbf16>, vector<128x128xbf16>, vector<512x128xf32> -> vector<512x128xf32>
    %c0_9 = arith.constant 0 : index
    %c0_10 = arith.constant 0 : index
    %11 = vector.load %arg7[%c0_9, %c0_10] : memref<1x128xf32, #tpu.memory_space<vmem>>, vector<1x128xf32>
    %12 = vector.broadcast %11 : vector<1x128xf32> to vector<512x128xf32>
    %13 = arith.addf %10, %12 : vector<512x128xf32>
    %c0_11 = arith.constant 0 : index
    %c0_12 = arith.constant 0 : index
    %14 = vector.load %arg8[%c0_11, %c0_12] : memref<512x128xf32, #tpu.memory_space<vmem>>, vector<512x128xf32>
    tpu.vector_store %arg8[%c0_11, %c0_12], %13 {strides = array<i32>} : memref<512x128xf32, #tpu.memory_space<vmem>>, vector<512x128xf32>,
    return
  }
  func.func @transform_0(%arg0: i32, %arg1: i32, %arg2: i32) -> (i32, i32) {
    %c0_i32 = arith.constant 0 : i32
    return %arg0, %arg2 : i32, i32
  }
  func.func @transform_1(%arg0: i32, %arg1: i32, %arg2: i32) -> (i32, i32) {
    %c0_i32 = arith.constant 0 : i32
    return %arg2, %arg1 : i32, i32
  }
  func.func @transform_2(%arg0: i32, %arg1: i32, %arg2: i32) -> (i32, i32) {
    %c0_i32 = arith.constant 0 : i32
    %c0_i32_0 = arith.constant 0 : i32
    return %c0_i32, %arg1 : i32, i32
  }
  func.func @transform_3(%arg0: i32, %arg1: i32, %arg2: i32) -> (i32, i32) {
    %c0_i32 = arith.constant 0 : i32
    %c0_i32_0 = arith.constant 0 : i32
    %c0_i32_1 = arith.constant 0 : i32
    return %c0_i32, %c0_i32_0 : i32, i32
  }
  func.func @transform_4(%arg0: i32, %arg1: i32, %arg2: i32) -> (i32, i32) {
    %c0_i32 = arith.constant 0 : i32
    %c0_i32_0 = arith.constant 0 : i32
    %c0_i32_1 = arith.constant 0 : i32
    return %c0_i32, %c0_i32_0 : i32, i32
  }
  func.func @transform_5(%arg0: i32, %arg1: i32, %arg2: i32) -> (i32, i32) {
    %c0_i32 = arith.constant 0 : i32
    %c0_i32_0 = arith.constant 0 : i32
    return %arg0, %c0_i32 : i32, i32
  }
}

</mosaic_0001>

<bundles_post_ra>
// kernel: pspnet_forward.4
= control target key start
LH: loop header
LB: loop body
LE: loop exit
PB: predicated region body
PF: predicated region fallthrough
CT: control target
= control target key end

     0   :  { %s3274_s15 = smov 0   ;;  %s3276_s16 = smov 0   ;;  %s3796_s0 = inlined_call_operand.vmem [shape: bf16[128,9216], index: 0, kind: input, shape index: {}]   ;;  %s3797_s1 = inlined_call_operand.vmem [shape: bf16[9216,256], index: 1, kind: input, shape index: {}]   ;;  %s3798_s2 = inlined_call_operand.vmem [shape: f32[1,256], index: 2, kind: input, shape index: {}]   ;;  %s3799_s3 = inlined_call_operand.vmem [shape: f32[1,256], index: 3, kind: input, shape index: {}]   ;;  %s3800_s4 = inlined_call_operand.vmem [shape: bf16[128,256], index: 4, kind: output, shape index: {}]  }
   0x1   :  { %s3278_s17 = smov 0   ;;  %s3280_s18 = smov 0  }
   0x2   :  { %s3282_s19 = smov 0  }
   0x3 LB: > { %s26_s20 = sadd.s32 1, %s3242_s18  ;;  %p49_p1 = scmp.ne.s32.totalorder %s3234_s16, %s3230_s15  ;;  %s3246_s19 = sphi %s3282_s19, %s14_s19   ;;  %s3242_s18 = sphi %s3280_s18, %s3804_s18   ;;  %s3238_s17 = sphi %s3278_s17, %s3803_s17   ;;  %s3234_s16 = sphi %s3276_s16, %s3802_s16   ;;  %s3230_s15 = sphi %s3274_s15, %s3801_s15  }
   0x4   : > { %p27_p0 = scmp.ge.s32.totalorder %s26_s20, 9  ;;  %p50_p2 = scmp.eq.s32.totalorder %s3246_s19, 0 }
   0x5   : > { %s42_s22 = sadd.s32 1, %s3234_s16  ;;  %p2638_p5 = scmp.ge.s32.totalorder %s3246_s19, 9 }
   0x6   : > { %s3806_s20 = smov (%p27_p0, %s26_s20), 0  ;;  %p51_p3 = por %p50_p2, %p49_p1 }
   0x7   : > { %s38_s21 = ssub.s32 %s3242_s18, %s3806_s20  ;;  %199 = sbr.rel (%p2638_p5) target bundleno = 50 (0x32), region = 24 }
   0x8   : > { %p40_p4 = scmp.eq.s32.totalorder %s38_s21, 0 }
   0xa   : > { %s3309_s23 = scalar_select %p40_p4, %s3234_s16, %s42_s22  }
   0xe   : > { %202 = sbr.rel (!%p51_p3) target bundleno = 50 (0x32), region = 28  ;;  %s204_s24 = sand.u32 (%p51_p3), 1, %s3234_s16  }
   0xf   : > { %s2861_s25 = sshll.u32 (%p51_p3), %s3242_s18, 5  ;;  %s2639_s26 = sshll.u32 (%p51_p3), %s204_s24, 9 }
  0x10   : > { %s3317_s29 = scalar_lea.vmem (%p51_p3), %s3796_s0, %s2861_s25  ;;  %s3322_s30 = scalar_lea.vmem (%p51_p3), [#allocation3], %s2639_s26 }
  0x11   : > { %v225_v0 = vld [vmem:[%s3317_s29] sm:$0xff] (%p51_p3)  ;;  %v227_v1 = vld [vmem:[%s3317_s29 + $0x8] sm:$0xff] (%p51_p3)  ;;  %v229_v2 = vld [vmem:[%s3317_s29 + $0x10] sm:$0xff] (%p51_p3) }
  0x12   : > { %226 = vst [vmem:[%s3322_s30] sm:$0xff] (%p51_p3), %v225_v0  ;;  %228 = vst [vmem:[%s3322_s30 + $0x8] sm:$0xff] (%p51_p3), %v227_v1  ;;  %v231_v3 = vld [vmem:[%s3317_s29 + $0x18] sm:$0xff] (%p51_p3)  ;;  %v233_v4 = vld [vmem:[%s3317_s29 + $0x120] sm:$0xff] (%p51_p3) }
  0x13   : > { %230 = vst [vmem:[%s3322_s30 + $0x10] sm:$0xff] (%p51_p3), %v229_v2  ;;  %v235_v5 = vld [vmem:[%s3317_s29 + $0x128] sm:$0xff] (%p51_p3)  ;;  %232 = vst [vmem:[%s3322_s30 + $0x18] sm:$0xff] (%p51_p3), %v231_v3  ;;  %v237_v6 = vld [vmem:[%s3317_s29 + $0x130] sm:$0xff] (%p51_p3) }
  0x14   : > { %234 = vst [vmem:[%s3322_s30 + $0x20] sm:$0xff] (%p51_p3), %v233_v4  ;;  %236 = vst [vmem:[%s3322_s30 + $0x28] sm:$0xff] (%p51_p3), %v235_v5  ;;  %v239_v7 = vld [vmem:[%s3317_s29 + $0x138] sm:$0xff] (%p51_p3)  ;;  %v241_v8 = vld [vmem:[%s3317_s29 + $0x240] sm:$0xff] (%p51_p3) }
  0x15   : > { %238 = vst [vmem:[%s3322_s30 + $0x30] sm:$0xff] %v237_v6  ;;  %240 = vst [vmem:[%s3322_s30 + $0x38] sm:$0xff] %v239_v7  ;;  %v243_v9 = vld [vmem:[%s3317_s29 + $0x248] sm:$0xff]  ;;  %v245_v10 = vld [vmem:[%s3317_s29 + $0x250] sm:$0xff] }
  0x16   : > { %242 = vst [vmem:[%s3322_s30 + $0x40] sm:$0xff] %v241_v8  ;;  %v247_v11 = vld [vmem:[%s3317_s29 + $0x258] sm:$0xff]  ;;  %244 = vst [vmem:[%s3322_s30 + $0x48] sm:$0xff] %v243_v9  ;;  %v249_v12 = vld [vmem:[%s3317_s29 + $0x360] sm:$0xff] }
  0x17   : > { %246 = vst [vmem:[%s3322_s30 + $0x50] sm:$0xff] %v245_v10  ;;  %248 = vst [vmem:[%s3322_s30 + $0x58] sm:$0xff] %v247_v11  ;;  %v251_v13 = vld [vmem:[%s3317_s29 + $0x368] sm:$0xff]  ;;  %v253_v14 = vld [vmem:[%s3317_s29 + $0x370] sm:$0xff] }
  0x18   : > { %250 = vst [vmem:[%s3322_s30 + $0x60] sm:$0xff] %v249_v12  ;;  %252 = vst [vmem:[%s3322_s30 + $0x68] sm:$0xff] %v251_v13  ;;  %v255_v15 = vld [vmem:[%s3317_s29 + $0x378] sm:$0xff]  ;;  %v257_v16 = vld [vmem:[%s3317_s29 + $0x480] sm:$0xff] }
  0x19   : > { %254 = vst [vmem:[%s3322_s30 + $0x70] sm:$0xff] %v253_v14  ;;  %v259_v17 = vld [vmem:[%s3317_s29 + $0x488] sm:$0xff]  ;;  %256 = vst [vmem:[%s3322_s30 + $0x78] sm:$0xff] %v255_v15  ;;  %v261_v18 = vld [vmem:[%s3317_s29 + $0x490] sm:$0xff] }
  0x1a   : > { %258 = vst [vmem:[%s3322_s30 + $0x80] sm:$0xff] %v257_v16  ;;  %260 = vst [vmem:[%s3322_s30 + $0x88] sm:$0xff] %v259_v17  ;;  %v263_v19 = vld [vmem:[%s3317_s29 + $0x498] sm:$0xff]  ;;  %v265_v20 = vld [vmem:[%s3317_s29 + $0x5a0] sm:$0xff] }
  0x1b   : > { %262 = vst [vmem:[%s3322_s30 + $0x90] sm:$0xff] %v261_v18  ;;  %264 = vst [vmem:[%s3322_s30 + $0x98] sm:$0xff] %v263_v19  ;;  %v267_v21 = vld [vmem:[%s3317_s29 + $0x5a8] sm:$0xff]  ;;  %v269_v22 = vld [vmem:[%s3317_s29 + $0x5b0] sm:$0xff] }
  0x1c   : > { %266 = vst [vmem:[%s3322_s30 + $0xa0] sm:$0xff] %v265_v20  ;;  %v271_v23 = vld [vmem:[%s3317_s29 + $0x5b8] sm:$0xff]  ;;  %268 = vst [vmem:[%s3322_s30 + $0xa8] sm:$0xff] %v267_v21  ;;  %v273_v24 = vld [vmem:[%s3317_s29 + $0x6c0] sm:$0xff] }
  0x1d   : > { %270 = vst [vmem:[%s3322_s30 + $0xb0] sm:$0xff] %v269_v22  ;;  %272 = vst [vmem:[%s3322_s30 + $0xb8] sm:$0xff] %v271_v23  ;;  %v275_v25 = vld [vmem:[%s3317_s29 + $0x6c8] sm:$0xff]  ;;  %v277_v26 = vld [vmem:[%s3317_s29 + $0x6d0] sm:$0xff] }
  0x1e   : > { %274 = vst [vmem:[%s3322_s30 + $0xc0] sm:$0xff] %v273_v24  ;;  %276 = vst [vmem:[%s3322_s30 + $0xc8] sm:$0xff] %v275_v25  ;;  %v279_v27 = vld [vmem:[%s3317_s29 + $0x6d8] sm:$0xff]  ;;  %v281_v28 = vld [vmem:[%s3317_s29 + $0x7e0] sm:$0xff] }
  0x1f   : > { %278 = vst [vmem:[%s3322_s30 + $0xd0] sm:$0xff] %v277_v26  ;;  %v283_v29 = vld [vmem:[%s3317_s29 + $0x7e8] sm:$0xff]  ;;  %280 = vst [vmem:[%s3322_s30 + $0xd8] sm:$0xff] %v279_v27  ;;  %v285_v30 = vld [vmem:[%s3317_s29 + $0x7f0] sm:$0xff] }
  0x20   : > { %282 = vst [vmem:[%s3322_s30 + $0xe0] sm:$0xff] %v281_v28  ;;  %284 = vst [vmem:[%s3322_s30 + $0xe8] sm:$0xff] %v283_v29  ;;  %v287_v31 = vld [vmem:[%s3317_s29 + $0x7f8] sm:$0xff]  ;;  %v289_v32 = vld [vmem:[%s3317_s29 + $0x900] sm:$0xff] }
  0x21   : > { %286 = vst [vmem:[%s3322_s30 + $0xf0] sm:$0xff] %v285_v30  ;;  %288 = vst [vmem:[%s3322_s30 + $0xf8] sm:$0xff] %v287_v31  ;;  %v291_v33 = vld [vmem:[%s3317_s29 + $0x908] sm:$0xff]  ;;  %v293_v34 = vld [vmem:[%s3317_s29 + $0x910] sm:$0xff] }
  0x22   : > { %290 = vst [vmem:[%s3322_s30 + $0x100] sm:$0xff] %v289_v32  ;;  %v295_v35 = vld [vmem:[%s3317_s29 + $0x918] sm:$0xff]  ;;  %292 = vst [vmem:[%s3322_s30 + $0x108] sm:$0xff] %v291_v33  ;;  %v297_v36 = vld [vmem:[%s3317_s29 + $0xa20] sm:$0xff] }
  0x23   : > { %294 = vst [vmem:[%s3322_s30 + $0x110] sm:$0xff] %v293_v34  ;;  %296 = vst [vmem:[%s3322_s30 + $0x118] sm:$0xff] %v295_v35  ;;  %v299_v37 = vld [vmem:[%s3317_s29 + $0xa28] sm:$0xff]  ;;  %v301_v38 = vld [vmem:[%s3317_s29 + $0xa30] sm:$0xff] }
  0x24   : > { %298 = vst [vmem:[%s3322_s30 + $0x120] sm:$0xff] %v297_v36  ;;  %300 = vst [vmem:[%s3322_s30 + $0x128] sm:$0xff] %v299_v37  ;;  %v303_v39 = vld [vmem:[%s3317_s29 + $0xa38] sm:$0xff]  ;;  %v305_v40 = vld [vmem:[%s3317_s29 + $0xb40] sm:$0xff] }
  0x25   : > { %302 = vst [vmem:[%s3322_s30 + $0x130] sm:$0xff] %v301_v38  ;;  %v307_v41 = vld [vmem:[%s3317_s29 + $0xb48] sm:$0xff]  ;;  %304 = vst [vmem:[%s3322_s30 + $0x138] sm:$0xff] %v303_v39  ;;  %v309_v42 = vld [vmem:[%s3317_s29 + $0xb50] sm:$0xff] }
  0x26   : > { %306 = vst [vmem:[%s3322_s30 + $0x140] sm:$0xff] %v305_v40  ;;  %308 = vst [vmem:[%s3322_s30 + $0x148] sm:$0xff] %v307_v41  ;;  %v311_v43 = vld [vmem:[%s3317_s29 + $0xb58] sm:$0xff]  ;;  %v313_v44 = vld [vmem:[%s3317_s29 + $0xc60] sm:$0xff] }
  0x27   : > { %310 = vst [vmem:[%s3322_s30 + $0x150] sm:$0xff] %v309_v42  ;;  %312 = vst [vmem:[%s3322_s30 + $0x158] sm:$0xff] %v311_v43  ;;  %v315_v45 = vld [vmem:[%s3317_s29 + $0xc68] sm:$0xff]  ;;  %v317_v46 = vld [vmem:[%s3317_s29 + $0xc70] sm:$0xff] }
  0x28   : > { %314 = vst [vmem:[%s3322_s30 + $0x160] sm:$0xff] %v313_v44  ;;  %v319_v47 = vld [vmem:[%s3317_s29 + $0xc78] sm:$0xff]  ;;  %316 = vst [vmem:[%s3322_s30 + $0x168] sm:$0xff] %v315_v45  ;;  %v321_v48 = vld [vmem:[%s3317_s29 + $0xd80] sm:$0xff] }
  0x29   : > { %318 = vst [vmem:[%s3322_s30 + $0x170] sm:$0xff] %v317_v46  ;;  %320 = vst [vmem:[%s3322_s30 + $0x178] sm:$0xff] %v319_v47  ;;  %v323_v49 = vld [vmem:[%s3317_s29 + $0xd88] sm:$0xff]  ;;  %v325_v50 = vld [vmem:[%s3317_s29 + $0xd90] sm:$0xff] }
  0x2a   : > { %322 = vst [vmem:[%s3322_s30 + $0x180] sm:$0xff] %v321_v48  ;;  %324 = vst [vmem:[%s3322_s30 + $0x188] sm:$0xff] %v323_v49  ;;  %v327_v51 = vld [vmem:[%s3317_s29 + $0xd98] sm:$0xff]  ;;  %v329_v52 = vld [vmem:[%s3317_s29 + $0xea0] sm:$0xff] }
  0x2b   : > { %326 = vst [vmem:[%s3322_s30 + $0x190] sm:$0xff] %v325_v50  ;;  %v331_v53 = vld [vmem:[%s3317_s29 + $0xea8] sm:$0xff]  ;;  %328 = vst [vmem:[%s3322_s30 + $0x198] sm:$0xff] %v327_v51  ;;  %v333_v54 = vld [vmem:[%s3317_s29 + $0xeb0] sm:$0xff] }
  0x2c   : > { %330 = vst [vmem:[%s3322_s30 + $0x1a0] sm:$0xff] %v329_v52  ;;  %332 = vst [vmem:[%s3322_s30 + $0x1a8] sm:$0xff] %v331_v53  ;;  %v335_v55 = vld [vmem:[%s3317_s29 + $0xeb8] sm:$0xff]  ;;  %v337_v56 = vld [vmem:[%s3317_s29 + $0xfc0] sm:$0xff] }
  0x2d   : > { %334 = vst [vmem:[%s3322_s30 + $0x1b0] sm:$0xff] %v333_v54  ;;  %336 = vst [vmem:[%s3322_s30 + $0x1b8] sm:$0xff] %v335_v55  ;;  %v339_v57 = vld [vmem:[%s3317_s29 + $0xfc8] sm:$0xff]  ;;  %v341_v58 = vld [vmem:[%s3317_s29 + $0xfd0] sm:$0xff] }
  0x2e   : > { %338 = vst [vmem:[%s3322_s30 + $0x1c0] sm:$0xff] %v337_v56  ;;  %v343_v59 = vld [vmem:[%s3317_s29 + $0xfd8] sm:$0xff]  ;;  %340 = vst [vmem:[%s3322_s30 + $0x1c8] sm:$0xff] %v339_v57  ;;  %v345_v60 = vld [vmem:[%s3317_s29 + $0x10e0] sm:$0xff] }
  0x2f   : > { %342 = vst [vmem:[%s3322_s30 + $0x1d0] sm:$0xff] %v341_v58  ;;  %344 = vst [vmem:[%s3322_s30 + $0x1d8] sm:$0xff] %v343_v59  ;;  %v347_v61 = vld [vmem:[%s3317_s29 + $0x10e8] sm:$0xff]  ;;  %v349_v62 = vld [vmem:[%s3317_s29 + $0x10f0] sm:$0xff] }
  0x30   : > { %346 = vst [vmem:[%s3322_s30 + $0x1e0] sm:$0xff] %v345_v60  ;;  %348 = vst [vmem:[%s3322_s30 + $0x1e8] sm:$0xff] %v347_v61  ;;  %v351_v63 = vld [vmem:[%s3317_s29 + $0x10f8] sm:$0xff] }
  0x31   : > { %350 = vst [vmem:[%s3322_s30 + $0x1f0] sm:$0xff] %v349_v62  ;;  %352 = vst [vmem:[%s3322_s30 + $0x1f8] sm:$0xff] %v351_v63 }
  0x32 PF: > { %p2642_p6 = scmp.ge.s32.totalorder %s3246_s19, 1  ;;  %p372_p7 = scmp.lt.s32.totalorder %s3246_s19, 10 }
  0x34   : > { %p373_p8 = pnand %p2642_p6, %p372_p7 }
  0x35   : > { %s379_s5 = sand.u32 (!%p373_p8), 1, %s3230_s15   ;;  %s2644_s6 = sshll.u32 (!%p373_p8), %s3238_s17, 7 }
  0x36   : > { %376 = sbr.rel (%p373_p8) target bundleno = 512 (0x200), region = 55  ;;  %s2643_s7 = sshll.u32 (!%p373_p8), %s379_s5, 9 }
  0x37   : > { %p431_p9 = scmp.lt.s32.totalorder (!%p373_p8), %s2644_s6, 1151  ;;  %s3458_s12 = scalar_lea.vmem (!%p373_p8), [#allocation3], %s2643_s7 }
  0x38   : > { %p2647_p10 = scmp.ne.s32.totalorder (!%p373_p8), %s3238_s17, 0 }
  0x3d   : > { %s3808_s6 = smov (!%p431_p9, %s2644_s6), 1151  ;;  %466 = sbr.rel (%p2647_p10) target bundleno = 79 (0x4f), region = 63 }
  0x3e   : > { %s2862_s8 = sshll.u32 %s3808_s6, 3  ;;  %v3248_v0 = vmov (!%p2647_p10), 0.0  }
  0x3f   : > { %s3456_s11 = scalar_lea.vmem %s3797_s1, %s2862_s8  ;;  %467 = vst [vmem:[#allocation2] sm:$0xff] (!%p2647_p10), %v3248_v0  ;;  %468 = vst [vmem:[#allocation2 + $0x8] sm:$0xff] (!%p2647_p10), %v3248_v0 }
  0x40   : > { %469 = vst [vmem:[#allocation2 + $0x10] sm:$0xff] (!%p2647_p10), %v3248_v0  ;;  %470 = vst [vmem:[#allocation2 + $0x18] sm:$0xff] (!%p2647_p10), %v3248_v0 }
  0x41   : > { %471 = vst [vmem:[#allocation2 + $0x20] sm:$0xff] (!%p2647_p10), %v3248_v0  ;;  %472 = vst [vmem:[#allocation2 + $0x28] sm:$0xff] (!%p2647_p10), %v3248_v0 }
  0x42   : > { %473 = vst [vmem:[#allocation2 + $0x30] sm:$0xff] (!%p2647_p10), %v3248_v0  ;;  %474 = vst [vmem:[#allocation2 + $0x38] sm:$0xff] (!%p2647_p10), %v3248_v0 }
  0x43   : > { %475 = vst [vmem:[#allocation2 + $0x40] sm:$0xff] (!%p2647_p10), %v3248_v0  ;;  %476 = vst [vmem:[#allocation2 + $0x48] sm:$0xff] (!%p2647_p10), %v3248_v0 }
  0x44   : > { %477 = vst [vmem:[#allocation2 + $0x50] sm:$0xff] %v3248_v0  ;;  %478 = vst [vmem:[#allocation2 + $0x58] sm:$0xff] %v3248_v0 }
  0x45   : > { %479 = vst [vmem:[#allocation2 + $0x60] sm:$0xff] %v3248_v0  ;;  %480 = vst [vmem:[#allocation2 + $0x68] sm:$0xff] %v3248_v0 }
  0x46   : > { %481 = vst [vmem:[#allocation2 + $0x70] sm:$0xff] %v3248_v0  ;;  %482 = vst [vmem:[#allocation2 + $0x78] sm:$0xff] %v3248_v0 }
  0x47   : > { %483 = vst [vmem:[#allocation2 + $0x80] sm:$0xff] %v3248_v0  ;;  %484 = vst [vmem:[#allocation2 + $0x88] sm:$0xff] %v3248_v0 }
  0x48   : > { %485 = vst [vmem:[#allocation2 + $0x90] sm:$0xff] %v3248_v0  ;;  %486 = vst [vmem:[#allocation2 + $0x98] sm:$0xff] %v3248_v0 }
  0x49   : > { %487 = vst [vmem:[#allocation2 + $0xa0] sm:$0xff] %v3248_v0  ;;  %488 = vst [vmem:[#allocation2 + $0xa8] sm:$0xff] %v3248_v0 }
  0x4a   : > { %489 = vst [vmem:[#allocation2 + $0xb0] sm:$0xff] %v3248_v0  ;;  %490 = vst [vmem:[#allocation2 + $0xb8] sm:$0xff] %v3248_v0 }
  0x4b   : > { %491 = vst [vmem:[#allocation2 + $0xc0] sm:$0xff] %v3248_v0  ;;  %492 = vst [vmem:[#allocation2 + $0xc8] sm:$0xff] %v3248_v0 }
  0x4c   : > { %493 = vst [vmem:[#allocation2 + $0xd0] sm:$0xff] %v3248_v0  ;;  %494 = vst [vmem:[#allocation2 + $0xd8] sm:$0xff] %v3248_v0 }
  0x4d   : > { %495 = vst [vmem:[#allocation2 + $0xe0] sm:$0xff] %v3248_v0  ;;  %496 = vst [vmem:[#allocation2 + $0xe8] sm:$0xff] %v3248_v0 }
  0x4e   : > { %497 = vst [vmem:[#allocation2 + $0xf0] sm:$0xff] %v3248_v0  ;;  %498 = vst [vmem:[#allocation2 + $0xf8] sm:$0xff] %v3248_v0 }
  0x4f PF: > { %v3016_v1 = vld [vmem:[%s3456_s11 + $0x4] ss:$8 sps:$4 sm:$0xff]   ;;  %v3020_v3 = vld [vmem:[%s3456_s11] ss:$8 sps:$4 sm:$0xff]   ;;  %v3022_v5 = vld [vmem:[%s3456_s11 + $0x14] ss:$8 sps:$4 sm:$0xff]  }
  0x50   : > { %v3018_v2 = vld [vmem:[%s3456_s11 + $0x204] ss:$8 sps:$4 sm:$0xff]   ;;  %1683 = vmatprep.subr.bf16.mxu1 %v3016_v1  ;;  %v3021_v4 = vld [vmem:[%s3456_s11 + $0x200] ss:$8 sps:$4 sm:$0xff]   ;;  %v3024_v6 = vld [vmem:[%s3456_s11 + $0x214] ss:$8 sps:$4 sm:$0xff]  }
  0x51   : > { %1909 = vmatprep.subr.bf16.mxu0 %v3018_v2  ;;  %1684 = vmatpush1.bf16.msra.mxu1 %v3020_v3  ;;  %v3026_v7 = vld [vmem:[%s3456_s11 + $0x10] ss:$8 sps:$4 sm:$0xff]   ;;  %v3028_v9 = vld [vmem:[%s3456_s11 + $0x24] ss:$8 sps:$4 sm:$0xff]   ;;  %v3032_v11 = vld [vmem:[%s3456_s11 + $0x20] ss:$8 sps:$4 sm:$0xff]  }
  0x52   : > { %1910 = vmatpush1.bf16.msra.mxu0 %v3021_v4  ;;  %1685 = vmatprep.subr.bf16.mxu1 %v3022_v5  ;;  %v3027_v8 = vld [vmem:[%s3456_s11 + $0x210] ss:$8 sps:$4 sm:$0xff]   ;;  %v3030_v10 = vld [vmem:[%s3456_s11 + $0x224] ss:$8 sps:$4 sm:$0xff]   ;;  %v3033_v12 = vld [vmem:[%s3456_s11 + $0x220] ss:$8 sps:$4 sm:$0xff]  }
  0x53   : > { %1911 = vmatprep.subr.bf16.mxu0 %v3024_v6  ;;  %v3034_v13 = vld [vmem:[%s3456_s11 + $0x34] ss:$8 sps:$4 sm:$0xff]   ;;  %v3038_v15 = vld [vmem:[%s3456_s11 + $0x30] ss:$8 sps:$4 sm:$0xff]   ;;  %v3040_v17 = vld [vmem:[%s3456_s11 + $0x44] ss:$8 sps:$4 sm:$0xff]  }
  0x54   : > { %v3036_v14 = vld [vmem:[%s3456_s11 + $0x234] ss:$8 sps:$4 sm:$0xff]   ;;  %v3039_v16 = vld [vmem:[%s3456_s11 + $0x230] ss:$8 sps:$4 sm:$0xff]   ;;  %v3042_v18 = vld [vmem:[%s3456_s11 + $0x244] ss:$8 sps:$4 sm:$0xff]  }
  0x55   : > { %1686 = vmatpush1.bf16.msra.mxu1 %v3026_v7  ;;  %v3044_v19 = vld [vmem:[%s3456_s11 + $0x40] ss:$8 sps:$4 sm:$0xff]   ;;  %v3046_v21 = vld [vmem:[%s3456_s11 + $0x54] ss:$8 sps:$4 sm:$0xff]   ;;  %v3050_v23 = vld [vmem:[%s3456_s11 + $0x50] ss:$8 sps:$4 sm:$0xff]  }
  0x56   : > { %1912 = vmatpush1.bf16.msra.mxu0 %v3027_v8  ;;  %1687 = vmatprep.subr.bf16.mxu1 %v3028_v9  ;;  %v3045_v20 = vld [vmem:[%s3456_s11 + $0x240] ss:$8 sps:$4 sm:$0xff]   ;;  %v3048_v22 = vld [vmem:[%s3456_s11 + $0x254] ss:$8 sps:$4 sm:$0xff]   ;;  %v3051_v24 = vld [vmem:[%s3456_s11 + $0x250] ss:$8 sps:$4 sm:$0xff]  }
  0x57   : > { %1913 = vmatprep.subr.bf16.mxu0 %v3030_v10  ;;  %v3052_v25 = vld [vmem:[%s3456_s11 + $0x64] ss:$8 sps:$4 sm:$0xff]   ;;  %v3056_v27 = vld [vmem:[%s3456_s11 + $0x60] ss:$8 sps:$4 sm:$0xff]   ;;  %v3058_v29 = vld [vmem:[%s3456_s11 + $0x74] ss:$8 sps:$4 sm:$0xff]  }
  0x58   : > { %v3054_v26 = vld [vmem:[%s3456_s11 + $0x264] ss:$8 sps:$4 sm:$0xff]   ;;  %v3057_v28 = vld [vmem:[%s3456_s11 + $0x260] ss:$8 sps:$4 sm:$0xff]   ;;  %v3060_v30 = vld [vmem:[%s3456_s11 + $0x274] ss:$8 sps:$4 sm:$0xff]  }
  0x59   : > { %1688 = vmatpush1.bf16.msra.mxu1 %v3032_v11  ;;  %v3062_v31 = vld [vmem:[%s3456_s11 + $0x70] ss:$8 sps:$4 sm:$0xff]   ;;  %v3064_v33 = vld [vmem:[%s3456_s11 + $0x84] ss:$8 sps:$4 sm:$0xff]   ;;  %v3068_v35 = vld [vmem:[%s3456_s11 + $0x80] ss:$8 sps:$4 sm:$0xff]  }
  0x5a   : > { %1914 = vmatpush1.bf16.msra.mxu0 %v3033_v12  ;;  %1689 = vmatprep.subr.bf16.mxu1 %v3034_v13  ;;  %v3063_v32 = vld [vmem:[%s3456_s11 + $0x270] ss:$8 sps:$4 sm:$0xff]   ;;  %v3066_v34 = vld [vmem:[%s3456_s11 + $0x284] ss:$8 sps:$4 sm:$0xff]   ;;  %v3069_v36 = vld [vmem:[%s3456_s11 + $0x280] ss:$8 sps:$4 sm:$0xff]  }
  0x5b   : > { %1915 = vmatprep.subr.bf16.mxu0 %v3036_v14  ;;  %v3070_v37 = vld [vmem:[%s3456_s11 + $0x94] ss:$8 sps:$4 sm:$0xff]   ;;  %v3074_v39 = vld [vmem:[%s3456_s11 + $0x90] ss:$8 sps:$4 sm:$0xff]   ;;  %v3076_v41 = vld [vmem:[%s3456_s11 + $0xa4] ss:$8 sps:$4 sm:$0xff]  }
  0x5c   : > { %v3072_v38 = vld [vmem:[%s3456_s11 + $0x294] ss:$8 sps:$4 sm:$0xff]   ;;  %v3075_v40 = vld [vmem:[%s3456_s11 + $0x290] ss:$8 sps:$4 sm:$0xff]   ;;  %v3078_v42 = vld [vmem:[%s3456_s11 + $0x2a4] ss:$8 sps:$4 sm:$0xff]  }
  0x5d   : > { %1690 = vmatpush1.bf16.msra.mxu1 %v3038_v15  ;;  %v3080_v43 = vld [vmem:[%s3456_s11 + $0xa0] ss:$8 sps:$4 sm:$0xff]   ;;  %v3082_v45 = vld [vmem:[%s3456_s11 + $0xb4] ss:$8 sps:$4 sm:$0xff]   ;;  %v3086_v47 = vld [vmem:[%s3456_s11 + $0xb0] ss:$8 sps:$4 sm:$0xff]  }
  0x5e   : > { %1916 = vmatpush1.bf16.msra.mxu0 %v3039_v16  ;;  %1691 = vmatprep.subr.bf16.mxu1 %v3040_v17  ;;  %v3081_v44 = vld [vmem:[%s3456_s11 + $0x2a0] ss:$8 sps:$4 sm:$0xff]   ;;  %v3084_v46 = vld [vmem:[%s3456_s11 + $0x2b4] ss:$8 sps:$4 sm:$0xff]   ;;  %v3087_v48 = vld [vmem:[%s3456_s11 + $0x2b0] ss:$8 sps:$4 sm:$0xff]  }
  0x5f   : > { %1917 = vmatprep.subr.bf16.mxu0 %v3042_v18  ;;  %v531_v49 = vld [vmem:[%s3458_s12] sm:$0xff]  ;;  %v533_v51 = vld [vmem:[%s3458_s12 + $0x10] sm:$0xff]  ;;  %p2840_p11 = scmp.ne.s32.totalorder %s3238_s17, 8 }
  0x60   : > { %v535_v50 = vld [vmem:[%s3458_s12 + $0x20] sm:$0xff]  ;;  %v537_v52 = vld [vmem:[%s3458_s12 + $0x30] sm:$0xff] }
  0x61   : > { %1692 = vmatpush1.bf16.msra.mxu1 %v3044_v19  ;;  %v3088_v53 = vld [vmem:[%s3456_s11 + $0xc4] ss:$8 sps:$4 sm:$0xff]   ;;  %v2649_v54 = vcombine.high %v531_v49, %v535_v50  ;;  %v2653_v56 = vcombine.high %v533_v51, %v537_v52  ;;  %v3092_v57 = vld [vmem:[%s3456_s11 + $0xc0] ss:$8 sps:$4 sm:$0xff]   ;;  %v3094_v59 = vld [vmem:[%s3456_s11 + $0xd4] ss:$8 sps:$4 sm:$0xff]   ;;  %v2648_v12 = vcombine.low %v531_v49, %v535_v50  ;;  %v2652_v13 = vcombine.low %v533_v51, %v537_v52 }
  0x62   : > { %1918 = vmatpush1.bf16.msra.mxu0 %v3045_v20  ;;  %1693 = vmatprep.subr.bf16.mxu1 %v3046_v21  ;;  %v3090_v55 = vld [vmem:[%s3456_s11 + $0x2c4] ss:$8 sps:$4 sm:$0xff]   ;;  %v3093_v58 = vld [vmem:[%s3456_s11 + $0x2c0] ss:$8 sps:$4 sm:$0xff]   ;;  %v3096_v60 = vld [vmem:[%s3456_s11 + $0x2d4] ss:$8 sps:$4 sm:$0xff]  }
  0x63   : > { %1919 = vmatprep.subr.bf16.mxu0 %v3048_v22  ;;  %1715 = vmatprep.mubr.bf16.mxu1 %v2649_v54  ;;  %v3098_v61 = vld [vmem:[%s3456_s11 + $0xd0] ss:$8 sps:$4 sm:$0xff]   ;;  %v3100_v63 = vld [vmem:[%s3456_s11 + $0xe4] ss:$8 sps:$4 sm:$0xff]   ;;  %v3104_v1 = vld [vmem:[%s3456_s11 + $0xe0] ss:$8 sps:$4 sm:$0xff]  }
  0x64   : > { %1941 = vmatprep.mubr.bf16.mxu0 %v2653_v56  ;;  %v3099_v62 = vld [vmem:[%s3456_s11 + $0x2d0] ss:$8 sps:$4 sm:$0xff]   ;;  %v3102_v0 = vld [vmem:[%s3456_s11 + $0x2e4] ss:$8 sps:$4 sm:$0xff]   ;;  %v3105_v2 = vld [vmem:[%s3456_s11 + $0x2e0] ss:$8 sps:$4 sm:$0xff]  }
  0x65   : > { %1694 = vmatpush1.bf16.msra.mxu1 %v3050_v23  ;;  %v3106_v3 = vld [vmem:[%s3456_s11 + $0xf4] ss:$8 sps:$4 sm:$0xff]   ;;  %v3110_v5 = vld [vmem:[%s3456_s11 + $0xf0] ss:$8 sps:$4 sm:$0xff]   ;;  %v3114_v7 = vld [vmem:[%s3456_s11 + $0x104] ss:$8 sps:$4 sm:$0xff]  }
  0x66   : > { %1920 = vmatpush1.bf16.msra.mxu0 %v3051_v24  ;;  %1695 = vmatprep.subr.bf16.mxu1 %v3052_v25  ;;  %v3108_v4 = vld [vmem:[%s3456_s11 + $0x2f4] ss:$8 sps:$4 sm:$0xff]   ;;  %v3111_v6 = vld [vmem:[%s3456_s11 + $0x2f0] ss:$8 sps:$4 sm:$0xff]   ;;  %v3117_v8 = vld [vmem:[%s3456_s11 + $0x304] ss:$8 sps:$4 sm:$0xff]  }
  0x67   : > { %1921 = vmatprep.subr.bf16.mxu0 %v3054_v26  ;;  %v3112_v9 = vld [vmem:[%s3456_s11 + $0x100] ss:$8 sps:$4 sm:$0xff]   ;;  %v541_v15 = vld [vmem:[%s3458_s12 + $0x50] sm:$0xff]  ;;  %v3126_v23 = vld [vmem:[%s3456_s11 + $0x124] ss:$8 sps:$4 sm:$0xff]  }
  0x68   : > { %v3115_v10 = vld [vmem:[%s3456_s11 + $0x300] ss:$8 sps:$4 sm:$0xff]   ;;  %v545_v16 = vld [vmem:[%s3458_s12 + $0x70] sm:$0xff]  ;;  %v3129_v24 = vld [vmem:[%s3456_s11 + $0x324] ss:$8 sps:$4 sm:$0xff]  }
  0x69   : > { %1696 = vmatpush1.bf16.msra.mxu1 %v3056_v27  ;;  %v539_v11 = vld [vmem:[%s3458_s12 + $0x40] sm:$0xff]  ;;  %v3120_v17 = vld [vmem:[%s3456_s11 + $0x114] ss:$8 sps:$4 sm:$0xff]   ;;  %v2661_v20 = vcombine.high %v541_v15, %v545_v16  ;;  %v3118_v21 = vld [vmem:[%s3456_s11 + $0x110] ss:$8 sps:$4 sm:$0xff]  }
  0x6a   : > { %1922 = vmatpush1.bf16.msra.mxu0 %v3057_v28  ;;  %1697 = vmatprep.subr.bf16.mxu1 %v3058_v29  ;;  %v543_v14 = vld [vmem:[%s3458_s12 + $0x60] sm:$0xff]  ;;  %v3123_v18 = vld [vmem:[%s3456_s11 + $0x314] ss:$8 sps:$4 sm:$0xff]   ;;  %v3121_v22 = vld [vmem:[%s3456_s11 + $0x310] ss:$8 sps:$4 sm:$0xff]  }
  0x6b   : > { %1923 = vmatprep.subr.bf16.mxu0 %v3060_v30  ;;  %v2657_v19 = vcombine.high %v539_v11, %v543_v14  ;;  %v3124_v25 = vld [vmem:[%s3456_s11 + $0x120] ss:$8 sps:$4 sm:$0xff]   ;;  %v2656_v29 = vcombine.low %v539_v11, %v543_v14  ;;  %v2660_v30 = vcombine.low %v541_v15, %v545_v16  ;;  %v3144_v49 = vld [vmem:[%s3456_s11 + $0x154] ss:$8 sps:$4 sm:$0xff]   ;;  %v3145_v54 = vld [vmem:[%s3456_s11 + $0x350] ss:$8 sps:$4 sm:$0xff]  }
  0x6c   : > { %v3127_v26 = vld [vmem:[%s3456_s11 + $0x320] ss:$8 sps:$4 sm:$0xff]   ;;  %v3147_v50 = vld [vmem:[%s3456_s11 + $0x354] ss:$8 sps:$4 sm:$0xff]   ;;  %v3153_v56 = vld [vmem:[%s3456_s11 + $0x364] ss:$8 sps:$4 sm:$0xff]  }
  0x6d   : > { %1698 = vmatpush1.bf16.msra.mxu1 %v3062_v31  ;;  %v547_v27 = vld [vmem:[%s3458_s12 + $0x80] sm:$0xff]  ;;  %v549_v31 = vld [vmem:[%s3458_s12 + $0x90] sm:$0xff] }
  0x6e   : > { %1924 = vmatpush1.bf16.msra.mxu0 %v3063_v32  ;;  %1699 = vmatprep.subr.bf16.mxu1 %v3064_v33  ;;  %v551_v28 = vld [vmem:[%s3458_s12 + $0xa0] sm:$0xff]  ;;  %v553_v32 = vld [vmem:[%s3458_s12 + $0xb0] sm:$0xff] }
  0x6f   : > { %1925 = vmatprep.subr.bf16.mxu0 %v3066_v34  ;;  %v3132_v33 = vld [vmem:[%s3456_s11 + $0x134] ss:$8 sps:$4 sm:$0xff]   ;;  %v3160_v15 = vld [vmem:[%s3456_s11 + $0x180] ss:$8 sps:$4 sm:$0xff]  }
  0x70   : > { %v3135_v34 = vld [vmem:[%s3456_s11 + $0x334] ss:$8 sps:$4 sm:$0xff]   ;;  %v3163_v16 = vld [vmem:[%s3456_s11 + $0x380] ss:$8 sps:$4 sm:$0xff]  }
  0x71   : > { %1700 = vmatpush1.bf16.msra.mxu1 %v3068_v35  ;;  %v2665_v35 = vcombine.high %v547_v27, %v551_v28  ;;  %v577_v14 = vld [vmem:[%s3458_s12 + $0x170] sm:$0xff] }
  0x72   : > { %1926 = vmatpush1.bf16.msra.mxu0 %v3069_v36  ;;  %1701 = vmatprep.subr.bf16.mxu1 %v3070_v37  ;;  %v2669_v36 = vcombine.high %v549_v31, %v553_v32  ;;  %v3130_v37 = vld [vmem:[%s3456_s11 + $0x130] ss:$8 sps:$4 sm:$0xff]  }
  0x73   : > { %1927 = vmatprep.subr.bf16.mxu0 %v3072_v38  ;;  %v3133_v38 = vld [vmem:[%s3456_s11 + $0x330] ss:$8 sps:$4 sm:$0xff]  }
  0x75   : > { %1702 = vmatpush1.bf16.msra.mxu1 %v3074_v39  ;;  %v3138_v39 = vld [vmem:[%s3456_s11 + $0x144] ss:$8 sps:$4 sm:$0xff]  }
  0x76   : > { %1928 = vmatpush1.bf16.msra.mxu0 %v3075_v40  ;;  %1703 = vmatprep.subr.bf16.mxu1 %v3076_v41  ;;  %v3141_v40 = vld [vmem:[%s3456_s11 + $0x344] ss:$8 sps:$4 sm:$0xff]   ;;  %v3136_v41 = vld [vmem:[%s3456_s11 + $0x140] ss:$8 sps:$4 sm:$0xff]  }
  0x77   : > { %1929 = vmatprep.subr.bf16.mxu0 %v3078_v42  ;;  %v3139_v42 = vld [vmem:[%s3456_s11 + $0x340] ss:$8 sps:$4 sm:$0xff]  }
  0x79   : > { %1704 = vmatpush1.bf16.msra.mxu1 %v3080_v43  ;;  %v555_v43 = vld [vmem:[%s3458_s12 + $0xc0] sm:$0xff] }
  0x7a   : > { %1930 = vmatpush1.bf16.msra.mxu0 %v3081_v44  ;;  %1705 = vmatprep.subr.bf16.mxu1 %v3082_v45  ;;  %v559_v44 = vld [vmem:[%s3458_s12 + $0xe0] sm:$0xff]  ;;  %v2664_v45 = vcombine.low %v547_v27, %v551_v28 }
  0x7b   : > { %1931 = vmatprep.subr.bf16.mxu0 %v3084_v46  ;;  %v2668_v46 = vcombine.low %v549_v31, %v553_v32  ;;  %v2673_v51 = vcombine.high %v555_v43, %v559_v44  ;;  %v583_v28 = vld [vmem:[%s3458_s12 + $0x1a0] sm:$0xff] }
  0x7c   : > { %v3172_v31 = vld [vmem:[%s3456_s11 + $0x1a0] ss:$8 sps:$4 sm:$0xff]  }
  0x7d   : > { %1706 = vmatpush1.bf16.msra.mxu1 %v3086_v47  ;;  %v557_v47 = vld [vmem:[%s3458_s12 + $0xd0] sm:$0xff]  ;;  %v3175_v32 = vld [vmem:[%s3456_s11 + $0x3a0] ss:$8 sps:$4 sm:$0xff]  }
  0x7e   : > { %1932 = vmatpush1.bf16.msra.mxu0 %v3087_v48  ;;  %1707 = vmatprep.subr.bf16.mxu1 %v3088_v53  ;;  %v561_v48 = vld [vmem:[%s3458_s12 + $0xf0] sm:$0xff] }
  0x7f   : > { %1933 = vmatprep.subr.bf16.mxu0 %v3090_v55  ;;  %v2677_v52 = vcombine.high %v557_v47, %v561_v48  ;;  %v3142_v53 = vld [vmem:[%s3456_s11 + $0x150] ss:$8 sps:$4 sm:$0xff]   ;;  %v3150_v55 = vld [vmem:[%s3456_s11 + $0x164] ss:$8 sps:$4 sm:$0xff]  }
  0x81   : > { %1708 = vmatpush1.bf16.msra.mxu1 %v3092_v57  ;;  %v3148_v57 = vld [vmem:[%s3456_s11 + $0x160] ss:$8 sps:$4 sm:$0xff]  }
  0x82   : > { %1934 = vmatpush1.bf16.msra.mxu0 %v3093_v58  ;;  %1709 = vmatprep.subr.bf16.mxu1 %v3094_v59  ;;  %v563_v58 = vld [vmem:[%s3458_s12 + $0x100] sm:$0xff] }
  0x83   : > { %1935 = vmatprep.subr.bf16.mxu0 %v3096_v60  ;;  %v567_v59 = vld [vmem:[%s3458_s12 + $0x120] sm:$0xff]  ;;  %v2672_v60 = vcombine.low %v555_v43, %v559_v44 }
  0x84   : > { %v2680_v11 = vcombine.low %v563_v58, %v567_v59  ;;  %v591_v44 = vld [vmem:[%s3458_s12 + $0x1e0] sm:$0xff] }
  0x85   : > { %1710 = vmatpush1.bf16.msra.mxu1 %v3098_v61  ;;  %v2676_v61 = vcombine.low %v557_v47, %v561_v48  ;;  %v3184_v47 = vld [vmem:[%s3456_s11 + $0x1c0] ss:$8 sps:$4 sm:$0xff]  }
  0x86   : > { %1936 = vmatpush1.bf16.msra.mxu0 %v3099_v62  ;;  %1711 = vmatprep.subr.bf16.mxu1 %v3100_v63  ;;  %v565_v62 = vld [vmem:[%s3458_s12 + $0x110] sm:$0xff]  ;;  %v3187_v48 = vld [vmem:[%s3456_s11 + $0x3c0] ss:$8 sps:$4 sm:$0xff]  }
  0x87   : > { %1937 = vmatprep.subr.bf16.mxu0 %v3102_v0  ;;  %v569_v63 = vld [vmem:[%s3458_s12 + $0x130] sm:$0xff]  ;;  %v3151_v0 = vld [vmem:[%s3456_s11 + $0x360] ss:$8 sps:$4 sm:$0xff]  }
  0x89   : > { %1712 = vmatpush1.bf16.msra.mxu1 %v3104_v1  ;;  %v3156_v1 = vld [vmem:[%s3456_s11 + $0x174] ss:$8 sps:$4 sm:$0xff]  }
  0x8a   : > { %1938 = vmatpush1.bf16.msra.mxu0 %v3105_v2  ;;  %1713 = vmatprep.subr.bf16.mxu1 %v3106_v3  ;;  %v3159_v2 = vld [vmem:[%s3456_s11 + $0x374] ss:$8 sps:$4 sm:$0xff]   ;;  %v2681_v3 = vcombine.high %v563_v58, %v567_v59 }
  0x8b   : > { %1939 = vmatprep.subr.bf16.mxu0 %v3108_v4  ;;  %v2685_v4 = vcombine.high %v565_v62, %v569_v63 }
  0x8d   : > { %1714 = vmatpush1.bf16.msra.mxu1 %v3110_v5  ;;  %v3154_v5 = vld [vmem:[%s3456_s11 + $0x170] ss:$8 sps:$4 sm:$0xff]  }
  0x8e   : > { %1940 = vmatpush1.bf16.msra.mxu0 %v3111_v6  ;;  %1796 = vmatprep.subr.bf16.mxu1 %v3114_v7  ;;  %v3157_v6 = vld [vmem:[%s3456_s11 + $0x370] ss:$8 sps:$4 sm:$0xff]   ;;  %v3162_v7 = vld [vmem:[%s3456_s11 + $0x184] ss:$8 sps:$4 sm:$0xff]  }
  0x8f   : > { %2022 = vmatprep.subr.bf16.mxu0 %v3117_v8  ;;  %v3165_v8 = vld [vmem:[%s3456_s11 + $0x384] ss:$8 sps:$4 sm:$0xff]  }
  0x90   : > { %1716 = vmatmul.mubr.bf16.vlgmr.msra.gmra.mrb[0].mxu1 %v2648_v12  ;;  %v2684_v12 = vcombine.low %v565_v62, %v569_v63  ;;  %v538_v62 = vld [vmem:[%s3458_s12 + $0x38] sm:$0xff]  ;;  %v3196_v63 = vld [vmem:[%s3456_s11 + $0x1e0] ss:$8 sps:$4 sm:$0xff]  }
  0x91   : > { %1942 = vmatmul.mubr.bf16.vlgmr.msra.gmra.mrb[0].mxu0 %v2652_v13  ;;  %1797 = vmatpush1.bf16.msra.mxu1 %v3112_v9  ;;  %v571_v9 = vld [vmem:[%s3458_s12 + $0x140] sm:$0xff]  ;;  %v573_v13 = vld [vmem:[%s3458_s12 + $0x150] sm:$0xff] }
  0x92   : > { %2023 = vmatpush1.bf16.msra.mxu0 %v3115_v10  ;;  %1798 = vmatprep.subr.bf16.mxu1 %v3120_v17  ;;  %v575_v10 = vld [vmem:[%s3458_s12 + $0x160] sm:$0xff]  ;;  %v3168_v17 = vld [vmem:[%s3456_s11 + $0x194] ss:$8 sps:$4 sm:$0xff]   ;;  %v2692_v27 = vcombine.low %v573_v13, %v577_v14 }
  0x93   : > { %2024 = vmatprep.subr.bf16.mxu0 %v3123_v18  ;;  %1725 = vmatprep.mubr.bf16.mxu1 %v2657_v19  ;;  %v3171_v18 = vld [vmem:[%s3456_s11 + $0x394] ss:$8 sps:$4 sm:$0xff]   ;;  %v2689_v19 = vcombine.high %v571_v9, %v575_v10 }
  0x94   : > { %1951 = vmatprep.mubr.bf16.mxu0 %v2661_v20  ;;  %v2693_v20 = vcombine.high %v573_v13, %v577_v14 }
  0x95   : > { %1799 = vmatpush1.bf16.msra.mxu1 %v3118_v21  ;;  %v3166_v21 = vld [vmem:[%s3456_s11 + $0x190] ss:$8 sps:$4 sm:$0xff]  }
  0x96   : > { %2025 = vmatpush1.bf16.msra.mxu0 %v3121_v22  ;;  %1800 = vmatprep.subr.bf16.mxu1 %v3126_v23  ;;  %v3169_v22 = vld [vmem:[%s3456_s11 + $0x390] ss:$8 sps:$4 sm:$0xff]   ;;  %v3174_v23 = vld [vmem:[%s3456_s11 + $0x1a4] ss:$8 sps:$4 sm:$0xff]  }
  0x97   : > { %2026 = vmatprep.subr.bf16.mxu0 %v3129_v24  ;;  %v3177_v24 = vld [vmem:[%s3456_s11 + $0x3a4] ss:$8 sps:$4 sm:$0xff]  }
  0x98   : > { %1726 = vmatmul.mubr.bf16.gmra.mrb[4].mxu1 %v2656_v29  ;;  %v581_v29 = vld [vmem:[%s3458_s12 + $0x190] sm:$0xff] }
  0x99   : > { %1952 = vmatmul.mubr.bf16.gmra.mrb[4].mxu0 %v2660_v30  ;;  %1801 = vmatpush1.bf16.msra.mxu1 %v3124_v25  ;;  %v579_v25 = vld [vmem:[%s3458_s12 + $0x180] sm:$0xff]  ;;  %v585_v30 = vld [vmem:[%s3458_s12 + $0x1b0] sm:$0xff] }
  0x9a   : > { %2027 = vmatpush1.bf16.msra.mxu0 %v3127_v26  ;;  %1802 = vmatprep.subr.bf16.mxu1 %v3132_v33  ;;  %v2688_v26 = vcombine.low %v571_v9, %v575_v10  ;;  %v3180_v33 = vld [vmem:[%s3456_s11 + $0x1b4] ss:$8 sps:$4 sm:$0xff]   ;;  %v2700_v43 = vcombine.low %v581_v29, %v585_v30 }
  0x9b   : > { %2028 = vmatprep.subr.bf16.mxu0 %v3135_v34  ;;  %1735 = vmatprep.mubr.bf16.mxu1 %v2665_v35  ;;  %v3183_v34 = vld [vmem:[%s3456_s11 + $0x3b4] ss:$8 sps:$4 sm:$0xff]   ;;  %v2697_v35 = vcombine.high %v579_v25, %v583_v28 }
  0x9c   : > { %1961 = vmatprep.mubr.bf16.mxu0 %v2669_v36  ;;  %v2701_v36 = vcombine.high %v581_v29, %v585_v30  ;;  %v542_v9 = vld [vmem:[%s3458_s12 + $0x58] sm:$0xff] }
  0x9d   : > { %1803 = vmatpush1.bf16.msra.mxu1 %v3130_v37  ;;  %v3178_v37 = vld [vmem:[%s3456_s11 + $0x1b0] ss:$8 sps:$4 sm:$0xff]  }
  0x9e   : > { %2029 = vmatpush1.bf16.msra.mxu0 %v3133_v38  ;;  %1804 = vmatprep.subr.bf16.mxu1 %v3138_v39  ;;  %v3181_v38 = vld [vmem:[%s3456_s11 + $0x3b0] ss:$8 sps:$4 sm:$0xff]   ;;  %v3186_v39 = vld [vmem:[%s3456_s11 + $0x1c4] ss:$8 sps:$4 sm:$0xff]  }
  0x9f   : > { %2030 = vmatprep.subr.bf16.mxu0 %v3141_v40  ;;  %v3189_v40 = vld [vmem:[%s3456_s11 + $0x3c4] ss:$8 sps:$4 sm:$0xff]   ;;  %v546_v10 = vld [vmem:[%s3458_s12 + $0x78] sm:$0xff] }
  0xa0   : > { %1736 = vmatmul.mubr.bf16.gmra.mrb[8].mxu1 %v2664_v45  ;;  %v589_v45 = vld [vmem:[%s3458_s12 + $0x1d0] sm:$0xff]  ;;  %v2663_v14 = vcombine.high %v542_v9, %v546_v10 }
  0xa1   : > { %1962 = vmatmul.mubr.bf16.gmra.mrb[8].mxu0 %v2668_v46  ;;  %1805 = vmatpush1.bf16.msra.mxu1 %v3136_v41  ;;  %v587_v41 = vld [vmem:[%s3458_s12 + $0x1c0] sm:$0xff]  ;;  %v593_v46 = vld [vmem:[%s3458_s12 + $0x1f0] sm:$0xff] }
  0xa2   : > { %2031 = vmatpush1.bf16.msra.mxu0 %v3139_v42  ;;  %1806 = vmatprep.subr.bf16.mxu1 %v3144_v49  ;;  %v2696_v42 = vcombine.low %v579_v25, %v583_v28  ;;  %v3192_v49 = vld [vmem:[%s3456_s11 + $0x1d4] ss:$8 sps:$4 sm:$0xff]   ;;  %v2704_v58 = vcombine.low %v587_v41, %v591_v44  ;;  %v2708_v59 = vcombine.low %v589_v45, %v593_v46 }
  0xa3   : > { %2032 = vmatprep.subr.bf16.mxu0 %v3147_v50  ;;  %1745 = vmatprep.mubr.bf16.mxu1 %v2673_v51  ;;  %v3195_v50 = vld [vmem:[%s3456_s11 + $0x3d4] ss:$8 sps:$4 sm:$0xff]   ;;  %v2705_v51 = vcombine.high %v587_v41, %v591_v44 }
  0xa4   : > { %1971 = vmatprep.mubr.bf16.mxu0 %v2677_v52  ;;  %v2709_v52 = vcombine.high %v589_v45, %v593_v46  ;;  %v558_v25 = vld [vmem:[%s3458_s12 + $0xd8] sm:$0xff] }
  0xa5   : > { %1807 = vmatpush1.bf16.msra.mxu1 %v3142_v53  ;;  %v3190_v53 = vld [vmem:[%s3456_s11 + $0x1d0] ss:$8 sps:$4 sm:$0xff]  }
  0xa6   : > { %2033 = vmatpush1.bf16.msra.mxu0 %v3145_v54  ;;  %1808 = vmatprep.subr.bf16.mxu1 %v3150_v55  ;;  %v3193_v54 = vld [vmem:[%s3456_s11 + $0x3d0] ss:$8 sps:$4 sm:$0xff]   ;;  %v3198_v55 = vld [vmem:[%s3456_s11 + $0x1e4] ss:$8 sps:$4 sm:$0xff]  }
  0xa7   : > { %2034 = vmatprep.subr.bf16.mxu0 %v3153_v56  ;;  %v3201_v56 = vld [vmem:[%s3456_s11 + $0x3e4] ss:$8 sps:$4 sm:$0xff]   ;;  %v574_v41 = vld [vmem:[%s3458_s12 + $0x158] sm:$0xff] }
  0xa8   : > { %1746 = vmatmul.mubr.bf16.gmra.mrb[12].mxu1 %v2672_v60  ;;  %v536_v60 = vld [vmem:[%s3458_s12 + $0x28] sm:$0xff] }
  0xa9   : > { %1972 = vmatmul.mubr.bf16.gmra.mrb[12].mxu0 %v2676_v61  ;;  %1809 = vmatpush1.bf16.msra.mxu1 %v3148_v57  ;;  %v532_v57 = vld [vmem:[%s3458_s12 + $0x8] sm:$0xff]  ;;  %v534_v61 = vld [vmem:[%s3458_s12 + $0x18] sm:$0xff] }
  0xaa   : > { %2035 = vmatpush1.bf16.msra.mxu0 %v3151_v0  ;;  %1810 = vmatprep.subr.bf16.mxu1 %v3156_v1  ;;  %v3199_v0 = vld [vmem:[%s3456_s11 + $0x3e0] ss:$8 sps:$4 sm:$0xff]   ;;  %v3204_v1 = vld [vmem:[%s3456_s11 + $0x1f4] ss:$8 sps:$4 sm:$0xff]  }
  0xab   : > { %2036 = vmatprep.subr.bf16.mxu0 %v3159_v2  ;;  %1755 = vmatprep.mubr.bf16.mxu1 %v2681_v3  ;;  %v3207_v2 = vld [vmem:[%s3456_s11 + $0x3f4] ss:$8 sps:$4 sm:$0xff]   ;;  %v2651_v3 = vcombine.high %v532_v57, %v536_v60 }
  0xac   : > { %1981 = vmatprep.mubr.bf16.mxu0 %v2685_v4  ;;  %v2655_v4 = vcombine.high %v534_v61, %v538_v62 }
  0xad   : > { %1811 = vmatpush1.bf16.msra.mxu1 %v3154_v5  ;;  %v3202_v5 = vld [vmem:[%s3456_s11 + $0x1f0] ss:$8 sps:$4 sm:$0xff]  }
  0xae   : > { %2037 = vmatpush1.bf16.msra.mxu0 %v3157_v6  ;;  %1812 = vmatprep.subr.bf16.mxu1 %v3162_v7  ;;  %v3205_v6 = vld [vmem:[%s3456_s11 + $0x3f0] ss:$8 sps:$4 sm:$0xff]   ;;  %v540_v7 = vld [vmem:[%s3458_s12 + $0x48] sm:$0xff] }
  0xaf   : > { %2038 = vmatprep.subr.bf16.mxu0 %v3165_v8  ;;  %v544_v8 = vld [vmem:[%s3458_s12 + $0x68] sm:$0xff] }
  0xb0   : > { %1756 = vmatmul.mubr.bf16.gmra.mrb[16].mxu1 %v2680_v11  ;;  %v2650_v11 = vcombine.low %v532_v57, %v536_v60  ;;  %v2659_v13 = vcombine.high %v540_v7, %v544_v8  ;;  %v590_v57 = vld [vmem:[%s3458_s12 + $0x1d8] sm:$0xff] }
  0xb1   : > { %1982 = vmatmul.mubr.bf16.gmra.mrb[16].mxu0 %v2684_v12  ;;  %1813 = vmatpush1.bf16.msra.mxu1 %v3160_v15  ;;  %v2654_v12 = vcombine.low %v534_v61, %v538_v62  ;;  %v548_v15 = vld [vmem:[%s3458_s12 + $0x88] sm:$0xff] }
  0xb2   : > { %2039 = vmatpush1.bf16.msra.mxu0 %v3163_v16  ;;  %1814 = vmatprep.subr.bf16.mxu1 %v3168_v17  ;;  %v552_v16 = vld [vmem:[%s3458_s12 + $0xa8] sm:$0xff]  ;;  %v550_v17 = vld [vmem:[%s3458_s12 + $0x98] sm:$0xff] }
  0xb3   : > { %2040 = vmatprep.subr.bf16.mxu0 %v3171_v18  ;;  %1765 = vmatprep.mubr.bf16.mxu1 %v2689_v19  ;;  %v554_v18 = vld [vmem:[%s3458_s12 + $0xb8] sm:$0xff]  ;;  %v2658_v19 = vcombine.low %v540_v7, %v544_v8 }
  0xb4   : > { %1991 = vmatprep.mubr.bf16.mxu0 %v2693_v20  ;;  %v2662_v20 = vcombine.low %v542_v9, %v546_v10  ;;  %v2670_v28 = vcombine.low %v550_v17, %v554_v18  ;;  %v501_v10 = vld [vmem:[#allocation2 + $0x10] sm:$0xff] }
  0xb5   : > { %1815 = vmatpush1.bf16.msra.mxu1 %v3166_v21  ;;  %v2667_v21 = vcombine.high %v548_v15, %v552_v16 }
  0xb6   : > { %2041 = vmatpush1.bf16.msra.mxu0 %v3169_v22  ;;  %1816 = vmatprep.subr.bf16.mxu1 %v3174_v23  ;;  %v2671_v22 = vcombine.high %v550_v17, %v554_v18  ;;  %v556_v23 = vld [vmem:[%s3458_s12 + $0xc8] sm:$0xff] }
  0xb7   : > { %2042 = vmatprep.subr.bf16.mxu0 %v3177_v24  ;;  %v560_v24 = vld [vmem:[%s3458_s12 + $0xe8] sm:$0xff] }
  0xb8   : > { %1766 = vmatmul.mubr.bf16.gmra.mrb[20].mxu1 %v2688_v26  ;;  %v562_v26 = vld [vmem:[%s3458_s12 + $0xf8] sm:$0xff]  ;;  %v2675_v29 = vcombine.high %v556_v23, %v560_v24 }
  0xb9   : > { %1992 = vmatmul.mubr.bf16.gmra.mrb[20].mxu0 %v2692_v27  ;;  %1817 = vmatpush1.bf16.msra.mxu1 %v3172_v31  ;;  %v2666_v27 = vcombine.low %v548_v15, %v552_v16  ;;  %v2679_v30 = vcombine.high %v558_v25, %v562_v26  ;;  %v564_v31 = vld [vmem:[%s3458_s12 + $0x108] sm:$0xff]  ;;  %v502_v15 = vld [vmem:[#allocation2 + $0x18] sm:$0xff] }
  0xba   : > { %2043 = vmatpush1.bf16.msra.mxu0 %v3175_v32  ;;  %1818 = vmatprep.subr.bf16.mxu1 %v3180_v33  ;;  %v568_v32 = vld [vmem:[%s3458_s12 + $0x128] sm:$0xff]  ;;  %v566_v33 = vld [vmem:[%s3458_s12 + $0x118] sm:$0xff] }
  0xbb   : > { %2044 = vmatprep.subr.bf16.mxu0 %v3183_v34  ;;  %1775 = vmatprep.mubr.bf16.mxu1 %v2697_v35  ;;  %v570_v34 = vld [vmem:[%s3458_s12 + $0x138] sm:$0xff]  ;;  %v2674_v35 = vcombine.low %v556_v23, %v560_v24 }
  0xbc   : > { %2001 = vmatprep.mubr.bf16.mxu0 %v2701_v36  ;;  %v2678_v36 = vcombine.low %v558_v25, %v562_v26  ;;  %v2686_v44 = vcombine.low %v566_v33, %v570_v34  ;;  %v504_v26 = vld [vmem:[#allocation2 + $0x28] sm:$0xff] }
  0xbd   : > { %1819 = vmatpush1.bf16.msra.mxu1 %v3178_v37  ;;  %v2683_v37 = vcombine.high %v564_v31, %v568_v32 }
  0xbe   : > { %2045 = vmatpush1.bf16.msra.mxu0 %v3181_v38  ;;  %1820 = vmatprep.subr.bf16.mxu1 %v3186_v39  ;;  %v2687_v38 = vcombine.high %v566_v33, %v570_v34  ;;  %v572_v39 = vld [vmem:[%s3458_s12 + $0x148] sm:$0xff] }
  0xbf   : > { %2046 = vmatprep.subr.bf16.mxu0 %v3189_v40  ;;  %v576_v40 = vld [vmem:[%s3458_s12 + $0x168] sm:$0xff] }
  0xc0   : > { %1776 = vmatmul.mubr.bf16.gmra.mrb[24].mxu1 %v2696_v42  ;;  %v578_v42 = vld [vmem:[%s3458_s12 + $0x178] sm:$0xff]  ;;  %v2691_v45 = vcombine.high %v572_v39, %v576_v40 }
  0xc1   : > { %2002 = vmatmul.mubr.bf16.gmra.mrb[24].mxu0 %v2700_v43  ;;  %1821 = vmatpush1.bf16.msra.mxu1 %v3184_v47  ;;  %v2682_v43 = vcombine.low %v564_v31, %v568_v32  ;;  %v2695_v46 = vcombine.high %v574_v41, %v578_v42  ;;  %v580_v47 = vld [vmem:[%s3458_s12 + $0x188] sm:$0xff] }
  0xc2   : > { %2047 = vmatpush1.bf16.msra.mxu0 %v3187_v48  ;;  %1822 = vmatprep.subr.bf16.mxu1 %v3192_v49  ;;  %v584_v48 = vld [vmem:[%s3458_s12 + $0x1a8] sm:$0xff]  ;;  %v582_v49 = vld [vmem:[%s3458_s12 + $0x198] sm:$0xff] }
  0xc3   : > { %2048 = vmatprep.subr.bf16.mxu0 %v3195_v50  ;;  %1785 = vmatprep.mubr.bf16.mxu1 %v2705_v51  ;;  %v586_v50 = vld [vmem:[%s3458_s12 + $0x1b8] sm:$0xff]  ;;  %v2690_v51 = vcombine.low %v572_v39, %v576_v40 }
  0xc4   : > { %2011 = vmatprep.mubr.bf16.mxu0 %v2709_v52  ;;  %v2694_v52 = vcombine.low %v574_v41, %v578_v42  ;;  %v2702_v60 = vcombine.low %v582_v49, %v586_v50  ;;  %v507_v42 = vld [vmem:[#allocation2 + $0x40] sm:$0xff] }
  0xc5   : > { %1823 = vmatpush1.bf16.msra.mxu1 %v3190_v53  ;;  %v2699_v53 = vcombine.high %v580_v47, %v584_v48 }
  0xc6   : > { %2049 = vmatpush1.bf16.msra.mxu0 %v3193_v54  ;;  %1824 = vmatprep.subr.bf16.mxu1 %v3198_v55  ;;  %v2703_v54 = vcombine.high %v582_v49, %v586_v50  ;;  %v588_v55 = vld [vmem:[%s3458_s12 + $0x1c8] sm:$0xff]  ;;  %v509_v50 = vld [vmem:[#allocation2 + $0x50] sm:$0xff] }
  0xc7   : > { %2050 = vmatprep.subr.bf16.mxu0 %v3201_v56  ;;  %v592_v56 = vld [vmem:[%s3458_s12 + $0x1e8] sm:$0xff] }
  0xc8   : > { %1786 = vmatmul.mubr.bf16.gmra.mrb[28].mxu1 %v2704_v58  ;;  %v594_v58 = vld [vmem:[%s3458_s12 + $0x1f8] sm:$0xff]  ;;  %v2707_v61 = vcombine.high %v588_v55, %v592_v56 }
  0xc9   : > { %2012 = vmatmul.mubr.bf16.gmra.mrb[28].mxu0 %v2708_v59  ;;  %1825 = vmatpush1.bf16.msra.mxu1 %v3196_v63  ;;  %v2698_v59 = vcombine.low %v580_v47, %v584_v48  ;;  %v2711_v62 = vcombine.high %v590_v57, %v594_v58  ;;  %v2706_v63 = vcombine.low %v588_v55, %v592_v56  ;;  %v510_v55 = vld [vmem:[#allocation2 + $0x58] sm:$0xff] }
  0xca   : > { %2051 = vmatpush1.bf16.msra.mxu0 %v3199_v0  ;;  %1826 = vmatprep.subr.bf16.mxu1 %v3204_v1  ;;  %v2710_v0 = vcombine.low %v590_v57, %v594_v58 }
  0xcb   : > { %2052 = vmatprep.subr.bf16.mxu0 %v3207_v2  ;;  %1828 = vmatprep.mubr.bf16.mxu1 %v2651_v3  ;;  %v499_v2 = vld [vmem:[#allocation2] sm:$0xff] }
  0xcc   : > { %2054 = vmatprep.mubr.bf16.mxu0 %v2655_v4 }
  0xcd   : > { %1827 = vmatpush1.bf16.msra.mxu1 %v3202_v5 }
  0xce   : > { %2053 = vmatpush1.bf16.msra.mxu0 %v3205_v6  ;;  %v500_v6 = vld [vmem:[#allocation2 + $0x8] sm:$0xff] }
  0xd0   : > { %1829 = vmatmul.mubr.bf16.vlgmr.msra.gmra.mrb[0].mxu1 %v2650_v11 }
  0xd1   : > { %2055 = vmatmul.mubr.bf16.vlgmr.msra.gmra.mrb[0].mxu0 %v2654_v12  ;;  %1838 = vmatprep.mubr.bf16.mxu1 %v2659_v13 }
  0xd2   : > { %2064 = vmatprep.mubr.bf16.mxu0 %v2663_v14 }
  0xd8   : > { %1839 = vmatmul.mubr.bf16.gmra.mrb[4].mxu1 %v2658_v19 }
  0xd9   : > { %2065 = vmatmul.mubr.bf16.gmra.mrb[4].mxu0 %v2662_v20  ;;  %1848 = vmatprep.mubr.bf16.mxu1 %v2667_v21 }
  0xda   : > { %2074 = vmatprep.mubr.bf16.mxu0 %v2671_v22  ;;  %v503_v22 = vld [vmem:[#allocation2 + $0x20] sm:$0xff] }
  0xe0   : > { %1849 = vmatmul.mubr.bf16.gmra.mrb[8].mxu1 %v2666_v27 }
  0xe1   : > { %2075 = vmatmul.mubr.bf16.gmra.mrb[8].mxu0 %v2670_v28  ;;  %1858 = vmatprep.mubr.bf16.mxu1 %v2675_v29 }
  0xe2   : > { %2084 = vmatprep.mubr.bf16.mxu0 %v2679_v30  ;;  %v505_v30 = vld [vmem:[#allocation2 + $0x30] sm:$0xff] }
  0xe8   : > { %1859 = vmatmul.mubr.bf16.gmra.mrb[12].mxu1 %v2674_v35  ;;  %v506_v35 = vld [vmem:[#allocation2 + $0x38] sm:$0xff] }
  0xe9   : > { %2085 = vmatmul.mubr.bf16.gmra.mrb[12].mxu0 %v2678_v36  ;;  %1868 = vmatprep.mubr.bf16.mxu1 %v2683_v37 }
  0xea   : > { %2094 = vmatprep.mubr.bf16.mxu0 %v2687_v38 }
  0xf0   : > { %1869 = vmatmul.mubr.bf16.gmra.mrb[16].mxu1 %v2682_v43 }
  0xf1   : > { %2095 = vmatmul.mubr.bf16.gmra.mrb[16].mxu0 %v2686_v44  ;;  %1878 = vmatprep.mubr.bf16.mxu1 %v2691_v45 }
  0xf2   : > { %2104 = vmatprep.mubr.bf16.mxu0 %v2695_v46  ;;  %v508_v46 = vld [vmem:[#allocation2 + $0x48] sm:$0xff] }
  0xf8   : > { %1879 = vmatmul.mubr.bf16.gmra.mrb[20].mxu1 %v2690_v51 }
  0xf9   : > { %2105 = vmatmul.mubr.bf16.gmra.mrb[20].mxu0 %v2694_v52  ;;  %1888 = vmatprep.mubr.bf16.mxu1 %v2699_v53 }
  0xfa   : > { %2114 = vmatprep.mubr.bf16.mxu0 %v2703_v54 }
 0x100   : > { %1889 = vmatmul.mubr.bf16.gmra.mrb[24].mxu1 %v2698_v59 }
 0x101   : > { %2115 = vmatmul.mubr.bf16.gmra.mrb[24].mxu0 %v2702_v60  ;;  %1898 = vmatprep.mubr.bf16.mxu1 %v2707_v61 }
 0x102   : > { %2124 = vmatprep.mubr.bf16.mxu0 %v2711_v62  ;;  %v511_v62 = vld [vmem:[#allocation2 + $0x60] sm:$0xff] }
 0x108   : > { %1899 = vmatmul.mubr.bf16.gmra.mrb[28].mxu1 %v2706_v63 }
 0x109   : > { %2125 = vmatmul.mubr.bf16.gmra.mrb[28].mxu0 %v2710_v0 }
 0x1a3   : > { %v1830_v1 = vpop.f32.mrb[0].mxu1 }
 0x1a4   : > { %v2056_v3 = vpop.f32.mrb[0].mxu0  ;;  %v1832_v5 = vpop.f32.mrb[1].mxu1 }
 0x1a5   : > { %v2879_v4 = vadd.f32 %v2056_v3, %v1830_v1  ;;  %v2058_v7 = vpop.f32.mrb[1].mxu0  ;;  %v1834_v9 = vpop.f32.mrb[2].mxu1 }
 0x1a6   : > { %v2880_v8 = vadd.f32 %v2058_v7, %v1832_v5  ;;  %v2060_v11 = vpop.f32.mrb[2].mxu0  ;;  %v1836_v14 = vpop.f32.mrb[3].mxu1 }
 0x1a7   : > { %v2135_v12 = vadd.f32 %v2879_v4, %v499_v2  ;;  %v2881_v13 = vadd.f32 %v2060_v11, %v1834_v9  ;;  %v2062_v16 = vpop.f32.mrb[3].mxu0  ;;  %v512_v2 = vld [vmem:[#allocation2 + $0x68] sm:$0xff]  ;;  %v514_v11 = vld [vmem:[#allocation2 + $0x78] sm:$0xff] }
 0x1a8   : > { %v2136_v17 = vadd.f32 %v2880_v8, %v500_v6  ;;  %v2882_v18 = vadd.f32 %v2062_v16, %v1836_v14  ;;  %v513_v6 = vld [vmem:[#allocation2 + $0x70] sm:$0xff] }
 0x1a9   : > { %2167 = vst [vmem:[#allocation2] sm:$0xff] %v2135_v12  ;;  %v2137_v19 = vadd.f32 %v2881_v13, %v501_v10 }
 0x1aa   : > { %2168 = vst [vmem:[#allocation2 + $0x8] sm:$0xff] %v2136_v17  ;;  %v2138_v20 = vadd.f32 %v2882_v18, %v502_v15  ;;  %v515_v18 = vld [vmem:[#allocation2 + $0x80] sm:$0xff] }
 0x1ab   : > { %2169 = vst [vmem:[#allocation2 + $0x10] sm:$0xff] %v2137_v19  ;;  %v1840_v21 = vpop.f32.mrb[4].mxu1 }
 0x1ac   : > { %2170 = vst [vmem:[#allocation2 + $0x18] sm:$0xff] %v2138_v20  ;;  %v2066_v23 = vpop.f32.mrb[4].mxu0  ;;  %v1842_v25 = vpop.f32.mrb[5].mxu1 }
 0x1ad   : > { %v2883_v24 = vadd.f32 %v2066_v23, %v1840_v21  ;;  %v2068_v27 = vpop.f32.mrb[5].mxu0  ;;  %v1844_v29 = vpop.f32.mrb[6].mxu1 }
 0x1ae   : > { %v2884_v28 = vadd.f32 %v2068_v27, %v1842_v25  ;;  %v2070_v31 = vpop.f32.mrb[6].mxu0  ;;  %v1846_v34 = vpop.f32.mrb[7].mxu1 }
 0x1af   : > { %v2139_v32 = vadd.f32 %v2883_v24, %v503_v22  ;;  %v2885_v33 = vadd.f32 %v2070_v31, %v1844_v29  ;;  %v2072_v36 = vpop.f32.mrb[7].mxu0  ;;  %v516_v22 = vld [vmem:[#allocation2 + $0x88] sm:$0xff]  ;;  %v518_v31 = vld [vmem:[#allocation2 + $0x98] sm:$0xff] }
 0x1b0   : > { %v2140_v37 = vadd.f32 %v2884_v28, %v504_v26  ;;  %v2886_v38 = vadd.f32 %v2072_v36, %v1846_v34  ;;  %v517_v26 = vld [vmem:[#allocation2 + $0x90] sm:$0xff] }
 0x1b1   : > { %2171 = vst [vmem:[#allocation2 + $0x20] sm:$0xff] %v2139_v32  ;;  %v2141_v39 = vadd.f32 %v2885_v33, %v505_v30 }
 0x1b2   : > { %2172 = vst [vmem:[#allocation2 + $0x28] sm:$0xff] %v2140_v37  ;;  %v2142_v40 = vadd.f32 %v2886_v38, %v506_v35  ;;  %v519_v38 = vld [vmem:[#allocation2 + $0xa0] sm:$0xff] }
 0x1b3   : > { %2173 = vst [vmem:[#allocation2 + $0x30] sm:$0xff] %v2141_v39  ;;  %v1850_v41 = vpop.f32.mrb[8].mxu1 }
 0x1b4   : > { %2174 = vst [vmem:[#allocation2 + $0x38] sm:$0xff] %v2142_v40  ;;  %v2076_v43 = vpop.f32.mrb[8].mxu0  ;;  %v1852_v45 = vpop.f32.mrb[9].mxu1 }
 0x1b5   : > { %v2887_v44 = vadd.f32 %v2076_v43, %v1850_v41  ;;  %v2078_v47 = vpop.f32.mrb[9].mxu0  ;;  %v1854_v49 = vpop.f32.mrb[10].mxu1 }
 0x1b6   : > { %v2888_v48 = vadd.f32 %v2078_v47, %v1852_v45  ;;  %v2080_v51 = vpop.f32.mrb[10].mxu0  ;;  %v1856_v54 = vpop.f32.mrb[11].mxu1 }
 0x1b7   : > { %v2143_v52 = vadd.f32 %v2887_v44, %v507_v42  ;;  %v2889_v53 = vadd.f32 %v2080_v51, %v1854_v49  ;;  %v2082_v56 = vpop.f32.mrb[11].mxu0  ;;  %v520_v42 = vld [vmem:[#allocation2 + $0xa8] sm:$0xff]  ;;  %v522_v51 = vld [vmem:[#allocation2 + $0xb8] sm:$0xff] }
 0x1b8   : > { %v2144_v57 = vadd.f32 %v2888_v48, %v508_v46  ;;  %v2890_v58 = vadd.f32 %v2082_v56, %v1856_v54  ;;  %v521_v46 = vld [vmem:[#allocation2 + $0xb0] sm:$0xff] }
 0x1b9   : > { %2175 = vst [vmem:[#allocation2 + $0x40] sm:$0xff] %v2143_v52  ;;  %v2145_v59 = vadd.f32 %v2889_v53, %v509_v50 }
 0x1ba   : > { %2176 = vst [vmem:[#allocation2 + $0x48] sm:$0xff] %v2144_v57  ;;  %v2146_v60 = vadd.f32 %v2890_v58, %v510_v55  ;;  %v523_v58 = vld [vmem:[#allocation2 + $0xc0] sm:$0xff] }
 0x1bb   : > { %2177 = vst [vmem:[#allocation2 + $0x50] sm:$0xff] %v2145_v59  ;;  %v1860_v61 = vpop.f32.mrb[12].mxu1 }
 0x1bc   : > { %2178 = vst [vmem:[#allocation2 + $0x58] sm:$0xff] %v2146_v60  ;;  %v2086_v63 = vpop.f32.mrb[12].mxu0  ;;  %v1862_v1 = vpop.f32.mrb[13].mxu1 }
 0x1bd   : > { %v2891_v0 = vadd.f32 %v2086_v63, %v1860_v61  ;;  %v2088_v3 = vpop.f32.mrb[13].mxu0  ;;  %v1864_v5 = vpop.f32.mrb[14].mxu1 }
 0x1be   : > { %v2892_v4 = vadd.f32 %v2088_v3, %v1862_v1  ;;  %v2090_v7 = vpop.f32.mrb[14].mxu0  ;;  %v1866_v10 = vpop.f32.mrb[15].mxu1 }
 0x1bf   : > { %v2147_v8 = vadd.f32 %v2891_v0, %v511_v62  ;;  %v2893_v9 = vadd.f32 %v2090_v7, %v1864_v5  ;;  %v2092_v12 = vpop.f32.mrb[15].mxu0  ;;  %v524_v62 = vld [vmem:[#allocation2 + $0xc8] sm:$0xff]  ;;  %v526_v7 = vld [vmem:[#allocation2 + $0xd8] sm:$0xff] }
 0x1c0   : > { %v2148_v13 = vadd.f32 %v2892_v4, %v512_v2  ;;  %v2894_v14 = vadd.f32 %v2092_v12, %v1866_v10  ;;  %v525_v2 = vld [vmem:[#allocation2 + $0xd0] sm:$0xff] }
 0x1c1   : > { %2179 = vst [vmem:[#allocation2 + $0x60] sm:$0xff] %v2147_v8  ;;  %v2149_v15 = vadd.f32 %v2893_v9, %v513_v6 }
 0x1c2   : > { %2180 = vst [vmem:[#allocation2 + $0x68] sm:$0xff] %v2148_v13  ;;  %v2150_v16 = vadd.f32 %v2894_v14, %v514_v11  ;;  %v527_v14 = vld [vmem:[#allocation2 + $0xe0] sm:$0xff] }
 0x1c3   : > { %2181 = vst [vmem:[#allocation2 + $0x70] sm:$0xff] %v2149_v15  ;;  %v1870_v17 = vpop.f32.mrb[16].mxu1 }
 0x1c4   : > { %2182 = vst [vmem:[#allocation2 + $0x78] sm:$0xff] %v2150_v16  ;;  %v2096_v19 = vpop.f32.mrb[16].mxu0  ;;  %v1872_v21 = vpop.f32.mrb[17].mxu1 }
 0x1c5   : > { %v2895_v20 = vadd.f32 %v2096_v19, %v1870_v17  ;;  %v2098_v23 = vpop.f32.mrb[17].mxu0  ;;  %v1874_v25 = vpop.f32.mrb[18].mxu1 }
 0x1c6   : > { %v2896_v24 = vadd.f32 %v2098_v23, %v1872_v21  ;;  %v2100_v27 = vpop.f32.mrb[18].mxu0  ;;  %v1876_v30 = vpop.f32.mrb[19].mxu1 }
 0x1c7   : > { %v2151_v28 = vadd.f32 %v2895_v20, %v515_v18  ;;  %v2897_v29 = vadd.f32 %v2100_v27, %v1874_v25  ;;  %v2102_v32 = vpop.f32.mrb[19].mxu0  ;;  %v528_v18 = vld [vmem:[#allocation2 + $0xe8] sm:$0xff]  ;;  %v530_v27 = vld [vmem:[#allocation2 + $0xf8] sm:$0xff] }
 0x1c8   : > { %v2152_v33 = vadd.f32 %v2896_v24, %v516_v22  ;;  %v2898_v34 = vadd.f32 %v2102_v32, %v1876_v30  ;;  %v529_v22 = vld [vmem:[#allocation2 + $0xf0] sm:$0xff] }
 0x1c9   : > { %2183 = vst [vmem:[#allocation2 + $0x80] sm:$0xff] %v2151_v28  ;;  %v2153_v35 = vadd.f32 %v2897_v29, %v517_v26 }
 0x1ca   : > { %2184 = vst [vmem:[#allocation2 + $0x88] sm:$0xff] %v2152_v33  ;;  %v2154_v36 = vadd.f32 %v2898_v34, %v518_v31  ;;  %v2237_v33 = vlaneseq (!%p2840_p11) }
 0x1cb   : > { %2185 = vst [vmem:[#allocation2 + $0x90] sm:$0xff] %v2153_v35  ;;  %v1880_v37 = vpop.f32.mrb[20].mxu1  ;;  %v2235_v35 = vld [vmem:[%s3798_s2] sm:$0x3] (!%p2840_p11) }
 0x1cc   : > { %2186 = vst [vmem:[#allocation2 + $0x98] sm:$0xff] %v2154_v36  ;;  %v2106_v39 = vpop.f32.mrb[20].mxu0  ;;  %v1882_v41 = vpop.f32.mrb[21].mxu1  ;;  %v2238_v34 = vshrl.u32 (!%p2840_p11), %v2237_v33, 7  ;;  %v2311_v36 = vld [vmem:[%s3799_s3] sm:$0x3] (!%p2840_p11) }
 0x1cd   : > { %v2899_v40 = vadd.f32 %v2106_v39, %v1880_v37  ;;  %v2108_v43 = vpop.f32.mrb[21].mxu0  ;;  %v1884_v45 = vpop.f32.mrb[22].mxu1  ;;  %v2203_v37 = vld [vmem:[#allocation2] sm:$0xff] (!%p2840_p11) }
 0x1ce   : > { %v2900_v44 = vadd.f32 %v2108_v43, %v1882_v41  ;;  %v2110_v47 = vpop.f32.mrb[22].mxu0  ;;  %v1886_v50 = vpop.f32.mrb[23].mxu1  ;;  %v2239_v39 = vsub.s32 (!%p2840_p11), 0, %v2238_v34  ;;  %v2205_v41 = vld [vmem:[#allocation2 + $0x10] sm:$0xff] (!%p2840_p11)  ;;  %v2207_v43 = vld [vmem:[#allocation2 + $0x20] sm:$0xff] (!%p2840_p11) }
 0x1cf   : > { %v2155_v48 = vadd.f32 %v2899_v40, %v519_v38  ;;  %v2901_v49 = vadd.f32 %v2110_v47, %v1884_v45  ;;  %v2112_v52 = vpop.f32.mrb[23].mxu0  ;;  %v2204_v38 = vld [vmem:[#allocation2 + $0x8] sm:$0xff] (!%p2840_p11)  ;;  %v2243_v40 = vsub.s32 (!%p2840_p11), 1, %v2238_v34  ;;  %v2218_v34 = vld [vmem:[#allocation2 + $0x78] sm:$0xff] (!%p2840_p11) }
 0x1d0   : > { %v2156_v53 = vadd.f32 %v2900_v44, %v520_v42  ;;  %v2902_v54 = vadd.f32 %v2112_v52, %v1886_v50  ;;  %v2206_v42 = vld [vmem:[#allocation2 + $0x18] sm:$0xff] (!%p2840_p11)  ;;  %v3660_v44 = vrot.slane (!%p2840_p11), %v2235_v35, %v2239_v39 }
 0x1d1   : > { %2187 = vst [vmem:[#allocation2 + $0xa0] sm:$0xff] %v2155_v48  ;;  %v2157_v55 = vadd.f32 %v2901_v49, %v521_v46  ;;  %v3662_v45 = vrot.slane (!%p2840_p11), %v2235_v35, %v2243_v40  ;;  %v3664_v46 = vrot.slane (!%p2840_p11), %v2311_v36, %v2239_v39  ;;  %v3666_v47 = vrot.slane (!%p2840_p11), %v2311_v36, %v2243_v40  ;;  %v2208_v48 = vld [vmem:[#allocation2 + $0x28] sm:$0xff] (!%p2840_p11)  ;;  %v2209_v49 = vld [vmem:[#allocation2 + $0x30] sm:$0xff] (!%p2840_p11)  ;;  %v2210_v50 = vld [vmem:[#allocation2 + $0x38] sm:$0xff] (!%p2840_p11) }
 0x1d2   : > { %2188 = vst [vmem:[#allocation2 + $0xa8] sm:$0xff] %v2156_v53  ;;  %v2158_v56 = vadd.f32 %v2902_v54, %v522_v51  ;;  %v2247_v51 = vadd.f32 (!%p2840_p11), %v3660_v44, %v2203_v37  ;;  %v2249_v53 = vadd.f32 (!%p2840_p11), %v3660_v44, %v2205_v41  ;;  %v2219_v39 = vld [vmem:[#allocation2 + $0x80] sm:$0xff] (!%p2840_p11)  ;;  %v2220_v40 = vld [vmem:[#allocation2 + $0x88] sm:$0xff] (!%p2840_p11)  ;;  %v2221_v41 = vld [vmem:[#allocation2 + $0x90] sm:$0xff] (!%p2840_p11) }
 0x1d3   : > { %2189 = vst [vmem:[#allocation2 + $0xb0] sm:$0xff] %v2157_v55  ;;  %v1890_v57 = vpop.f32.mrb[24].mxu1  ;;  %v2248_v52 = vadd.f32 (!%p2840_p11), %v3662_v45, %v2204_v38  ;;  %v2250_v54 = vadd.f32 (!%p2840_p11), %v3662_v45, %v2206_v42  ;;  %v2251_v55 = vadd.f32 (!%p2840_p11), %v3660_v44, %v2207_v43 }
 0x1d4   : > { %2190 = vst [vmem:[#allocation2 + $0xb8] sm:$0xff] %v2158_v56  ;;  %v2116_v59 = vpop.f32.mrb[24].mxu0  ;;  %v1892_v61 = vpop.f32.mrb[25].mxu1  ;;  %v2252_v56 = vadd.f32 (!%p2840_p11), %v3662_v45, %v2208_v48  ;;  %vm2279_vm0 = vcmp.ge.f32.partialorder (!%p2840_p11), %v2247_v51, 0.0  ;;  %vm2281_vm2 = vcmp.ge.f32.partialorder (!%p2840_p11), %v2249_v53, 0.0 }
 0x1d5   : > { %v2903_v60 = vadd.f32 %v2116_v59, %v1890_v57  ;;  %v2118_v63 = vpop.f32.mrb[25].mxu0  ;;  %v1894_v1 = vpop.f32.mrb[26].mxu1  ;;  %v2253_v57 = vadd.f32 (!%p2840_p11), %v3660_v44, %v2209_v49  ;;  %vm2280_vm1 = vcmp.ge.f32.partialorder (!%p2840_p11), %v2248_v52, 0.0  ;;  %v2323_v59 = vmul.f32 (!%p2840_p11), %v3664_v46, %v2247_v51 }
 0x1d6   : > { %v2904_v0 = vadd.f32 %v2118_v63, %v1892_v61  ;;  %v2120_v3 = vpop.f32.mrb[26].mxu0  ;;  %v1896_v6 = vpop.f32.mrb[27].mxu1  ;;  %vm2282_vm3 = vcmp.ge.f32.partialorder (!%p2840_p11), %v2250_v54, 0.0  ;;  %v2325_v61 = vmul.f32 (!%p2840_p11), %v3664_v46, %v2249_v53  ;;  %vm2283_vm4 = vcmp.ge.f32.partialorder (!%p2840_p11), %v2251_v55, 0.0 }
 0x1d7   : > { %v2159_v4 = vadd.f32 %v2903_v60, %v523_v58  ;;  %v2905_v5 = vadd.f32 %v2120_v3, %v1894_v1  ;;  %v2122_v8 = vpop.f32.mrb[27].mxu0  ;;  %v2254_v58 = vadd.f32 (!%p2840_p11), %v3662_v45, %v2210_v50  ;;  %v2324_v60 = vmul.f32 (!%p2840_p11), %v3666_v47, %v2248_v52  ;;  %v2211_v1 = vld [vmem:[#allocation2 + $0x40] sm:$0xff] (!%p2840_p11) }
 0x1d8   : > { %v2160_v9 = vadd.f32 %v2904_v0, %v524_v62  ;;  %v2906_v10 = vadd.f32 %v2122_v8, %v1896_v6  ;;  %v2326_v62 = vmul.f32 (!%p2840_p11), %v3666_v47, %v2250_v54  ;;  %v2355_v63 = vsel (!%p2840_p11), %vm2279_vm0, %v2247_v51, %v2323_v59  ;;  %v2212_v6 = vld [vmem:[#allocation2 + $0x48] sm:$0xff] (!%p2840_p11)  ;;  %v2214_v8 = vld [vmem:[#allocation2 + $0x58] sm:$0xff] (!%p2840_p11)  ;;  %v2223_v59 = vld [vmem:[#allocation2 + $0xa0] sm:$0xff] (!%p2840_p11) }
 0x1d9   : > { %2191 = vst [vmem:[#allocation2 + $0xc0] sm:$0xff] %v2159_v4  ;;  %v2161_v11 = vadd.f32 %v2905_v5, %v525_v2  ;;  %v2356_v0 = vsel (!%p2840_p11), %vm2280_vm1, %v2248_v52, %v2324_v60  ;;  %vm2284_vm5 = vcmp.ge.f32.partialorder (!%p2840_p11), %v2252_v56, 0.0  ;;  %v2357_v3 = vsel (!%p2840_p11), %vm2281_vm2, %v2249_v53, %v2325_v61 }
 0x1da   : > { %2192 = vst [vmem:[#allocation2 + $0xc8] sm:$0xff] %v2160_v9  ;;  %v2162_v12 = vadd.f32 %v2906_v10, %v526_v7  ;;  %v2863_v2 = vpack.c.bf16 (!%p2840_p11), %v2356_v0, %v2355_v63  ;;  %v2358_v4 = vsel (!%p2840_p11), %vm2282_vm3, %v2250_v54, %v2326_v62  ;;  %v2327_v5 = vmul.f32 (!%p2840_p11), %v3664_v46, %v2251_v55  ;;  %v2213_v7 = vld [vmem:[#allocation2 + $0x50] sm:$0xff] (!%p2840_p11)  ;;  %v2222_v54 = vld [vmem:[#allocation2 + $0x98] sm:$0xff] (!%p2840_p11)  ;;  %v2224_v62 = vld [vmem:[#allocation2 + $0xa8] sm:$0xff] (!%p2840_p11) }
 0x1db   : > { %2193 = vst [vmem:[#allocation2 + $0xd0] sm:$0xff] %v2161_v11  ;;  %v1900_v13 = vpop.f32.mrb[28].mxu1  ;;  %v2864_v9 = vpack.c.bf16 (!%p2840_p11), %v2358_v4, %v2357_v3  ;;  %v2328_v10 = vmul.f32 (!%p2840_p11), %v3666_v47, %v2252_v56  ;;  %vm2285_vm6 = vcmp.ge.f32.partialorder (!%p2840_p11), %v2253_v57, 0.0  ;;  %vm2286_vm7 = vcmp.ge.f32.partialorder (!%p2840_p11), %v2254_v58, 0.0 }
 0x1dc   : > { %2194 = vst [vmem:[#allocation2 + $0xd8] sm:$0xff] %v2162_v12  ;;  %v2126_v15 = vpop.f32.mrb[28].mxu0  ;;  %v1902_v17 = vpop.f32.mrb[29].mxu1  ;;  %2483 = vst [vmem:[%s3800_s4] sm:$0xff] (!%p2840_p11), %v2863_v2  ;;  %v2359_v11 = vsel (!%p2840_p11), %vm2283_vm4, %v2251_v55, %v2327_v5  ;;  %v2329_v12 = vmul.f32 (!%p2840_p11), %v3664_v46, %v2253_v57  ;;  %v2262_v49 = vadd.f32 (!%p2840_p11), %v3662_v45, %v2218_v34 }
 0x1dd   : > { %v2907_v16 = vadd.f32 %v2126_v15, %v1900_v13  ;;  %v2128_v19 = vpop.f32.mrb[29].mxu0  ;;  %v1904_v21 = vpop.f32.mrb[30].mxu1  ;;  %v2330_v13 = vmul.f32 (!%p2840_p11), %v3666_v47, %v2254_v58  ;;  %2484 = vst [vmem:[%s3800_s4 + $0x8] sm:$0xff] (!%p2840_p11), %v2864_v9  ;;  %v2360_v15 = vsel (!%p2840_p11), %vm2284_vm5, %v2252_v56, %v2328_v10  ;;  %v2263_v52 = vadd.f32 (!%p2840_p11), %v3660_v44, %v2219_v39  ;;  %v2226_v10 = vld [vmem:[#allocation2 + $0xb8] sm:$0xff] (!%p2840_p11) }
 0x1de   : > { %v2908_v20 = vadd.f32 %v2128_v19, %v1902_v17  ;;  %v2130_v23 = vpop.f32.mrb[30].mxu0  ;;  %v1906_v26 = vpop.f32.mrb[31].mxu1  ;;  %2202 = sbr.rel (%p2840_p11) target bundleno = 512 (0x200), region = 67  ;;  %v2257_v17 = vadd.f32 (!%p2840_p11), %v3660_v44, %v2213_v7  ;;  %v2865_v19 = vpack.c.bf16 (!%p2840_p11), %v2360_v15, %v2359_v11  ;;  %v2264_v53 = vadd.f32 (!%p2840_p11), %v3662_v45, %v2220_v40 }
 0x1df   : > { %v2163_v24 = vadd.f32 %v2907_v16, %v527_v14  ;;  %v2909_v25 = vadd.f32 %v2130_v23, %v1904_v21  ;;  %v2132_v28 = vpop.f32.mrb[31].mxu0  ;;  %v2255_v14 = vadd.f32 (!%p2840_p11), %v3660_v44, %v2211_v1  ;;  %v2256_v16 = vadd.f32 (!%p2840_p11), %v3662_v45, %v2212_v6  ;;  %v2216_v23 = vld [vmem:[#allocation2 + $0x68] sm:$0xff] (!%p2840_p11)  ;;  %v2225_v6 = vld [vmem:[#allocation2 + $0xb0] sm:$0xff] (!%p2840_p11) }
 0x1e0   : > { %v2164_v29 = vadd.f32 %v2908_v20, %v528_v18  ;;  %v2910_v30 = vadd.f32 %v2132_v28, %v1906_v26  ;;  %v2258_v18 = vadd.f32 (!%p2840_p11), %v3662_v45, %v2214_v8  ;;  %v2361_v20 = vsel (!%p2840_p11), %vm2285_vm6, %v2253_v57, %v2329_v12  ;;  %2485 = vst [vmem:[%s3800_s4 + $0x10] sm:$0xff] (!%p2840_p11), %v2865_v19  ;;  %v2227_v11 = vld [vmem:[#allocation2 + $0xc0] sm:$0xff] (!%p2840_p11) }
 0x1e1   : > { %2195 = vst [vmem:[#allocation2 + $0xe0] sm:$0xff] %v2163_v24  ;;  %v2165_v31 = vadd.f32 %v2909_v25, %v529_v22  ;;  %v2362_v21 = vsel (!%p2840_p11), %vm2286_vm7, %v2254_v58, %v2330_v13  ;;  %vm2287_vm8 = vcmp.ge.f32.partialorder (!%p2840_p11), %v2255_v14, 0.0  ;;  %v2215_v22 = vld [vmem:[#allocation2 + $0x60] sm:$0xff] (!%p2840_p11)  ;;  %vm2288_vm9 = vcmp.ge.f32.partialorder (!%p2840_p11), %v2256_v16, 0.0  ;;  %v2228_v15 = vld [vmem:[#allocation2 + $0xc8] sm:$0xff] (!%p2840_p11) }
 0x1e2   : > { %2196 = vst [vmem:[#allocation2 + $0xe8] sm:$0xff] %v2164_v29  ;;  %v2166_v32 = vadd.f32 %v2910_v30, %v530_v27  ;;  %v2866_v24 = vpack.c.bf16 (!%p2840_p11), %v2362_v21, %v2361_v20  ;;  %v2331_v25 = vmul.f32 (!%p2840_p11), %v3664_v46, %v2255_v14  ;;  %v2332_v26 = vmul.f32 (!%p2840_p11), %v3666_v47, %v2256_v16  ;;  %v2217_v27 = vld [vmem:[#allocation2 + $0x70] sm:$0xff] (!%p2840_p11) }
 0x1e3   : > { %2197 = vst [vmem:[#allocation2 + $0xf0] sm:$0xff] %v2165_v31  ;;  %vm2289_vm10 = vcmp.ge.f32.partialorder (!%p2840_p11), %v2257_v17, 0.0  ;;  %vm2290_vm11 = vcmp.ge.f32.partialorder (!%p2840_p11), %v2258_v18, 0.0  ;;  %v2333_v28 = vmul.f32 (!%p2840_p11), %v3664_v46, %v2257_v17  ;;  %v2334_v29 = vmul.f32 (!%p2840_p11), %v3666_v47, %v2258_v18 }
 0x1e4   : > { %2198 = vst [vmem:[#allocation2 + $0xf8] sm:$0xff] %v2166_v32  ;;  %2486 = vst [vmem:[%s3800_s4 + $0x18] sm:$0xff] (!%p2840_p11), %v2866_v24  ;;  %v2363_v30 = vsel (!%p2840_p11), %vm2287_vm8, %v2255_v14, %v2331_v25  ;;  %v2364_v31 = vsel (!%p2840_p11), %vm2288_vm9, %v2256_v16, %v2332_v26  ;;  %v2259_v32 = vadd.f32 (!%p2840_p11), %v3660_v44, %v2215_v22  ;;  %vm2294_vm15 = vcmp.ge.f32.partialorder (!%p2840_p11), %v2262_v49, 0.0  ;;  %v2229_v26 = vld [vmem:[#allocation2 + $0xd0] sm:$0xff] (!%p2840_p11) }
 0x1e5   : > { %v2260_v33 = vadd.f32 %v3662_v45, %v2216_v23  ;;  %v2867_v35 = vpack.c.bf16 %v2364_v31, %v2363_v30  ;;  %v2365_v36 = vsel %vm2289_vm10, %v2257_v17, %v2333_v28  ;;  %v2366_v37 = vsel %vm2290_vm11, %v2258_v18, %v2334_v29 }
 0x1e6   : > { %v2261_v38 = vadd.f32 %v3660_v44, %v2217_v27  ;;  %v2868_v42 = vpack.c.bf16 %v2366_v37, %v2365_v36  ;;  %vm2291_vm12 = vcmp.ge.f32.partialorder %v2259_v32, 0.0  ;;  %v2335_v43 = vmul.f32 %v3664_v46, %v2259_v32  ;;  %v2230_v27 = vld [vmem:[#allocation2 + $0xd8] sm:$0xff] }
 0x1e7   : > { %vm2292_vm13 = vcmp.ge.f32.partialorder %v2260_v33, 0.0  ;;  %2487 = vst [vmem:[%s3800_s4 + $0x20] sm:$0xff] %v2867_v35  ;;  %v2336_v48 = vmul.f32 %v3666_v47, %v2260_v33  ;;  %v2265_v55 = vadd.f32 %v3660_v44, %v2221_v41  ;;  %v2338_v57 = vmul.f32 %v3666_v47, %v2262_v49 }
 0x1e8   : > { %vm2293_vm14 = vcmp.ge.f32.partialorder %v2261_v38, 0.0  ;;  %v2337_v50 = vmul.f32 %v3664_v46, %v2261_v38  ;;  %2488 = vst [vmem:[%s3800_s4 + $0x28] sm:$0xff] %v2868_v42  ;;  %v2367_v51 = vsel %vm2291_vm12, %v2259_v32, %v2335_v43  ;;  %vm2295_vm0 = vcmp.ge.f32.partialorder %v2263_v52, 0.0  ;;  %v2231_v28 = vld [vmem:[#allocation2 + $0xe0] sm:$0xff] }
 0x1e9   : > { %v2368_v56 = vsel %vm2292_vm13, %v2260_v33, %v2336_v48  ;;  %vm2296_vm1 = vcmp.ge.f32.partialorder %v2264_v53, 0.0  ;;  %v2339_v61 = vmul.f32 %v3664_v46, %v2263_v52  ;;  %v2370_v63 = vsel %vm2294_vm15, %v2262_v49, %v2338_v57  ;;  %v2232_v31 = vld [vmem:[#allocation2 + $0xe8] sm:$0xff] }
 0x1ea   : > { %v2369_v58 = vsel %vm2293_vm14, %v2261_v38, %v2337_v50  ;;  %v2869_v60 = vpack.c.bf16 %v2368_v56, %v2367_v51  ;;  %v2340_v0 = vmul.f32 %v3666_v47, %v2264_v53  ;;  %v2266_v1 = vadd.f32 %v3662_v45, %v2222_v54  ;;  %v2233_v43 = vld [vmem:[#allocation2 + $0xf0] sm:$0xff] }
 0x1eb   : > { %vm2297_vm2 = vcmp.ge.f32.partialorder %v2265_v55, 0.0  ;;  %v2870_v2 = vpack.c.bf16 %v2370_v63, %v2369_v58  ;;  %v2371_v3 = vsel %vm2295_vm0, %v2263_v52, %v2339_v61  ;;  %v2341_v4 = vmul.f32 %v3664_v46, %v2265_v55  ;;  %v2234_v48 = vld [vmem:[#allocation2 + $0xf8] sm:$0xff] }
 0x1ec   : > { %2489 = vst [vmem:[%s3800_s4 + $0x30] sm:$0xff] %v2869_v60  ;;  %v2267_v5 = vadd.f32 %v3660_v44, %v2223_v59  ;;  %v2372_v7 = vsel %vm2296_vm1, %v2264_v53, %v2340_v0  ;;  %vm2298_vm3 = vcmp.ge.f32.partialorder %v2266_v1, 0.0  ;;  %v2342_v8 = vmul.f32 %v3666_v47, %v2266_v1 }
 0x1ed   : > { %v2268_v9 = vadd.f32 %v3662_v45, %v2224_v62  ;;  %2490 = vst [vmem:[%s3800_s4 + $0x38] sm:$0xff] %v2870_v2  ;;  %v2871_v12 = vpack.c.bf16 %v2372_v7, %v2371_v3  ;;  %v2373_v13 = vsel %vm2297_vm2, %v2265_v55, %v2341_v4  ;;  %v2269_v18 = vadd.f32 %v3660_v44, %v2225_v6 }
 0x1ee   : > { %vm2299_vm4 = vcmp.ge.f32.partialorder %v2267_v5, 0.0  ;;  %v2343_v14 = vmul.f32 %v3664_v46, %v2267_v5  ;;  %v2374_v16 = vsel %vm2298_vm3, %v2266_v1, %v2342_v8  ;;  %v2270_v21 = vadd.f32 %v3662_v45, %v2226_v10 }
 0x1ef   : > { %vm2300_vm5 = vcmp.ge.f32.partialorder %v2268_v9, 0.0  ;;  %v2344_v17 = vmul.f32 %v3666_v47, %v2268_v9  ;;  %2491 = vst [vmem:[%s3800_s4 + $0x40] sm:$0xff] %v2871_v12  ;;  %v2872_v19 = vpack.c.bf16 %v2374_v16, %v2373_v13  ;;  %v2271_v22 = vadd.f32 %v3660_v44, %v2227_v11 }
 0x1f0   : > { %v2375_v20 = vsel %vm2299_vm4, %v2267_v5, %v2343_v14  ;;  %vm2301_vm6 = vcmp.ge.f32.partialorder %v2269_v18, 0.0  ;;  %v2345_v24 = vmul.f32 %v3664_v46, %v2269_v18  ;;  %v2272_v25 = vadd.f32 %v3662_v45, %v2228_v15 }
 0x1f1   : > { %v2376_v23 = vsel %vm2300_vm5, %v2268_v9, %v2344_v17  ;;  %2492 = vst [vmem:[%s3800_s4 + $0x48] sm:$0xff] %v2872_v19  ;;  %vm2302_vm7 = vcmp.ge.f32.partialorder %v2270_v21, 0.0  ;;  %v2346_v30 = vmul.f32 %v3666_v47, %v2270_v21  ;;  %vm2303_vm8 = vcmp.ge.f32.partialorder %v2271_v22, 0.0 }
 0x1f2   : > { %v2873_v29 = vpack.c.bf16 %v2376_v23, %v2375_v20  ;;  %v2377_v32 = vsel %vm2301_vm6, %v2269_v18, %v2345_v24  ;;  %vm2304_vm9 = vcmp.ge.f32.partialorder %v2272_v25, 0.0  ;;  %v2347_v33 = vmul.f32 %v3664_v46, %v2271_v22 }
 0x1f3   : > { %v2348_v34 = vmul.f32 %v3666_v47, %v2272_v25  ;;  %v2378_v35 = vsel %vm2302_vm7, %v2270_v21, %v2346_v30  ;;  %v2273_v36 = vadd.f32 %v3660_v44, %v2229_v26  ;;  %v2274_v37 = vadd.f32 %v3662_v45, %v2230_v27 }
 0x1f4   : > { %2493 = vst [vmem:[%s3800_s4 + $0x50] sm:$0xff] %v2873_v29  ;;  %v2275_v38 = vadd.f32 %v3660_v44, %v2231_v28  ;;  %v2874_v39 = vpack.c.bf16 %v2378_v35, %v2377_v32  ;;  %v2379_v40 = vsel %vm2303_vm8, %v2271_v22, %v2347_v33  ;;  %v2276_v42 = vadd.f32 %v3662_v45, %v2232_v31 }
 0x1f5   : > { %v2380_v41 = vsel %vm2304_vm9, %v2272_v25, %v2348_v34  ;;  %vm2305_vm10 = vcmp.ge.f32.partialorder %v2273_v36, 0.0  ;;  %vm2306_vm11 = vcmp.ge.f32.partialorder %v2274_v37, 0.0  ;;  %v2349_v50 = vmul.f32 %v3664_v46, %v2273_v36 }
 0x1f6   : > { %v2875_v49 = vpack.c.bf16 %v2380_v41, %v2379_v40  ;;  %2494 = vst [vmem:[%s3800_s4 + $0x58] sm:$0xff] %v2874_v39  ;;  %v2350_v51 = vmul.f32 %v3666_v47, %v2274_v37  ;;  %vm2307_vm12 = vcmp.ge.f32.partialorder %v2275_v38, 0.0  ;;  %vm2308_vm13 = vcmp.ge.f32.partialorder %v2276_v42, 0.0 }
 0x1f7   : > { %v2351_v52 = vmul.f32 %v3664_v46, %v2275_v38  ;;  %v2381_v53 = vsel %vm2305_vm10, %v2273_v36, %v2349_v50  ;;  %v2352_v54 = vmul.f32 %v3666_v47, %v2276_v42  ;;  %v2277_v55 = vadd.f32 %v3660_v44, %v2233_v43 }
 0x1f8   : > { %2495 = vst [vmem:[%s3800_s4 + $0x60] sm:$0xff] %v2875_v49  ;;  %v2278_v56 = vadd.f32 %v3662_v45, %v2234_v48  ;;  %v2382_v57 = vsel %vm2306_vm11, %v2274_v37, %v2350_v51 }
 0x1f9   : > { %v2383_v58 = vsel %vm2307_vm12, %v2275_v38, %v2351_v52  ;;  %v2876_v59 = vpack.c.bf16 %v2382_v57, %v2381_v53  ;;  %v2384_v60 = vsel %vm2308_vm13, %v2276_v42, %v2352_v54  ;;  %vm2309_vm14 = vcmp.ge.f32.partialorder %v2277_v55, 0.0 }
 0x1fa   : > { %vm2310_vm15 = vcmp.ge.f32.partialorder %v2278_v56, 0.0  ;;  %v2877_v61 = vpack.c.bf16 %v2384_v60, %v2383_v58  ;;  %v2353_v62 = vmul.f32 %v3664_v46, %v2277_v55  ;;  %v2354_v63 = vmul.f32 %v3666_v47, %v2278_v56 }
 0x1fb   : > { %2496 = vst [vmem:[%s3800_s4 + $0x68] sm:$0xff] %v2876_v59 }
 0x1fc   : > { %2497 = vst [vmem:[%s3800_s4 + $0x70] sm:$0xff] %v2877_v61  ;;  %v2385_v44 = vsel %vm2309_vm14, %v2277_v55, %v2353_v62  ;;  %v2386_v45 = vsel %vm2310_vm15, %v2278_v56, %v2354_v63 }
 0x1fd   : > { %v2878_v0 = vpack.c.bf16 %v2386_v45, %v2385_v44 }
 0x1ff   : > { %2498 = vst [vmem:[%s3800_s4 + $0x78] sm:$0xff] %v2878_v0 }
 0x200 PF: > { %s14_s19 = sadd.s32 1, %s3246_s19   ;;  %s3801_s15 = smov %s3234_s16 }
 0x201   : > { %p11_p12 = scmp.ge.s32.totalorder %s14_s19, 11   ;;  %s3802_s16 = smov %s3309_s23 }
 0x202   : > { %s3803_s17 = smov %s3242_s18  ;;  %s3804_s18 = smov %s3806_s20 }
 0x203   :  { %13 = sbr.rel (!%p11_p12) target bundleno = 3 (0x3), region = 111 }

// kernel: pspnet_forward.5
= control target key start
LH: loop header
LB: loop body
LE: loop exit
PB: predicated region body
PF: predicated region fallthrough
CT: control target
= control target key end

     0   :  { %s7715_s15 = smov 0   ;;  %s7717_s16 = smov 0   ;;  %s9590_s0 = inlined_call_operand.vmem [shape: bf16[512,2304], index: 0, kind: input, shape index: {}]   ;;  %s9591_s1 = inlined_call_operand.vmem [shape: bf16[2304,128], index: 1, kind: input, shape index: {}]   ;;  %s9592_s2 = inlined_call_operand.vmem [shape: f32[1,128], index: 2, kind: input, shape index: {}]   ;;  %s9593_s3 = inlined_call_operand.vmem [shape: f32[1,128], index: 3, kind: input, shape index: {}]   ;;  %s9594_s4 = inlined_call_operand.vmem [shape: bf16[512,128], index: 4, kind: output, shape index: {}]  }
   0x1   :  { %s7719_s17 = smov 0   ;;  %s7721_s18 = smov 0  }
   0x2   :  { %s7723_s19 = smov 0  }
   0x3 LB: > { %s26_s20 = sadd.s32 1, %s7682_s18  ;;  %p49_p1 = scmp.ne.s32.totalorder %s7674_s16, %s7670_s15  ;;  %s7686_s19 = sphi %s7723_s19, %s14_s19   ;;  %s7682_s18 = sphi %s7721_s18, %s9634_s18   ;;  %s7678_s17 = sphi %s7719_s17, %s9633_s17   ;;  %s7674_s16 = sphi %s7717_s16, %s9632_s16   ;;  %s7670_s15 = sphi %s7715_s15, %s9631_s15  }
   0x4   : > { %p27_p0 = scmp.ge.s32.totalorder %s26_s20, 2  ;;  %p50_p2 = scmp.eq.s32.totalorder %s7686_s19, 0 }
   0x5   : > { %s42_s22 = sadd.s32 1, %s7674_s16  ;;  %p5824_p5 = scmp.ge.s32.totalorder %s7686_s19, 2 }
   0x6   : > { %s9636_s20 = smov (%p27_p0, %s26_s20), 0  ;;  %p51_p3 = por %p50_p2, %p49_p1 }
   0x7   : > { %s38_s21 = ssub.s32 %s7682_s18, %s9636_s20  ;;  %195 = sbr.rel (%p5824_p5) target bundleno = 189 (0xbd), region = 24 }
   0x8   : > { %p40_p4 = scmp.eq.s32.totalorder %s38_s21, 0 }
   0xa   : > { %s7750_s23 = scalar_select %p40_p4, %s7674_s16, %s42_s22  }
   0xe   : > { %198 = sbr.rel (!%p51_p3) target bundleno = 189 (0xbd), region = 28  ;;  %s200_s24 = sand.u32 (%p51_p3), 1, %s7674_s16  }
   0xf   : > { %s6388_s25 = smul.u32 (%p51_p3), 36, %s7682_s18 }
  0x10   : > { %s7116_s26 = smul.u32 (%p51_p3), 2304, %s200_s24 }
  0x11   : > { %s7758_s29 = scalar_lea.vmem (%p51_p3), %s9590_s0, %s6388_s25 }
  0x12   : > { %v223_v0 = vld [vmem:[%s7758_s29] sm:$0xff] (%p51_p3)  ;;  %v225_v1 = vld [vmem:[%s7758_s29 + $0x8] sm:$0xff] (%p51_p3)  ;;  %v227_v2 = vld [vmem:[%s7758_s29 + $0x10] sm:$0xff] (%p51_p3)  ;;  %s7763_s30 = scalar_lea.vmem (%p51_p3), [#allocation3], %s7116_s26 }
  0x13   : > { %224 = vst [vmem:[%s7763_s30] sm:$0xff] (%p51_p3), %v223_v0  ;;  %226 = vst [vmem:[%s7763_s30 + $0x8] sm:$0xff] (%p51_p3), %v225_v1  ;;  %v229_v3 = vld [vmem:[%s7758_s29 + $0x18] sm:$0xff] (%p51_p3)  ;;  %v231_v4 = vld [vmem:[%s7758_s29 + $0x48] sm:$0xff] (%p51_p3) }
  0x14   : > { %228 = vst [vmem:[%s7763_s30 + $0x10] sm:$0xff] (%p51_p3), %v227_v2  ;;  %v233_v5 = vld [vmem:[%s7758_s29 + $0x50] sm:$0xff] (%p51_p3)  ;;  %230 = vst [vmem:[%s7763_s30 + $0x18] sm:$0xff] (%p51_p3), %v229_v3  ;;  %v235_v6 = vld [vmem:[%s7758_s29 + $0x58] sm:$0xff] (%p51_p3) }
  0x15   : > { %232 = vst [vmem:[%s7763_s30 + $0x24] sm:$0xff] %v231_v4  ;;  %234 = vst [vmem:[%s7763_s30 + $0x2c] sm:$0xff] %v233_v5  ;;  %v237_v7 = vld [vmem:[%s7758_s29 + $0x60] sm:$0xff]  ;;  %v239_v8 = vld [vmem:[%s7758_s29 + $0x90] sm:$0xff] }
  0x16   : > { %236 = vst [vmem:[%s7763_s30 + $0x34] sm:$0xff] %v235_v6  ;;  %238 = vst [vmem:[%s7763_s30 + $0x3c] sm:$0xff] %v237_v7  ;;  %v241_v9 = vld [vmem:[%s7758_s29 + $0x98] sm:$0xff]  ;;  %v243_v10 = vld [vmem:[%s7758_s29 + $0xa0] sm:$0xff] }
  0x17   : > { %240 = vst [vmem:[%s7763_s30 + $0x48] sm:$0xff] %v239_v8  ;;  %v245_v11 = vld [vmem:[%s7758_s29 + $0xa8] sm:$0xff]  ;;  %242 = vst [vmem:[%s7763_s30 + $0x50] sm:$0xff] %v241_v9  ;;  %v247_v12 = vld [vmem:[%s7758_s29 + $0xd8] sm:$0xff] }
  0x18   : > { %244 = vst [vmem:[%s7763_s30 + $0x58] sm:$0xff] %v243_v10  ;;  %246 = vst [vmem:[%s7763_s30 + $0x60] sm:$0xff] %v245_v11  ;;  %v249_v13 = vld [vmem:[%s7758_s29 + $0xe0] sm:$0xff]  ;;  %v251_v14 = vld [vmem:[%s7758_s29 + $0xe8] sm:$0xff] }
  0x19   : > { %248 = vst [vmem:[%s7763_s30 + $0x6c] sm:$0xff] %v247_v12  ;;  %250 = vst [vmem:[%s7763_s30 + $0x74] sm:$0xff] %v249_v13  ;;  %v253_v15 = vld [vmem:[%s7758_s29 + $0xf0] sm:$0xff]  ;;  %v255_v16 = vld [vmem:[%s7758_s29 + $0x120] sm:$0xff] }
  0x1a   : > { %252 = vst [vmem:[%s7763_s30 + $0x7c] sm:$0xff] %v251_v14  ;;  %v257_v17 = vld [vmem:[%s7758_s29 + $0x128] sm:$0xff]  ;;  %254 = vst [vmem:[%s7763_s30 + $0x84] sm:$0xff] %v253_v15  ;;  %v259_v18 = vld [vmem:[%s7758_s29 + $0x130] sm:$0xff] }
  0x1b   : > { %256 = vst [vmem:[%s7763_s30 + $0x90] sm:$0xff] %v255_v16  ;;  %258 = vst [vmem:[%s7763_s30 + $0x98] sm:$0xff] %v257_v17  ;;  %v261_v19 = vld [vmem:[%s7758_s29 + $0x138] sm:$0xff]  ;;  %v263_v20 = vld [vmem:[%s7758_s29 + $0x168] sm:$0xff] }
  0x1c   : > { %260 = vst [vmem:[%s7763_s30 + $0xa0] sm:$0xff] %v259_v18  ;;  %262 = vst [vmem:[%s7763_s30 + $0xa8] sm:$0xff] %v261_v19  ;;  %v265_v21 = vld [vmem:[%s7758_s29 + $0x170] sm:$0xff]  ;;  %v267_v22 = vld [vmem:[%s7758_s29 + $0x178] sm:$0xff] }
  0x1d   : > { %264 = vst [vmem:[%s7763_s30 + $0xb4] sm:$0xff] %v263_v20  ;;  %v269_v23 = vld [vmem:[%s7758_s29 + $0x180] sm:$0xff]  ;;  %266 = vst [vmem:[%s7763_s30 + $0xbc] sm:$0xff] %v265_v21  ;;  %v271_v24 = vld [vmem:[%s7758_s29 + $0x1b0] sm:$0xff] }
  0x1e   : > { %268 = vst [vmem:[%s7763_s30 + $0xc4] sm:$0xff] %v267_v22  ;;  %270 = vst [vmem:[%s7763_s30 + $0xcc] sm:$0xff] %v269_v23  ;;  %v273_v25 = vld [vmem:[%s7758_s29 + $0x1b8] sm:$0xff]  ;;  %v275_v26 = vld [vmem:[%s7758_s29 + $0x1c0] sm:$0xff] }
  0x1f   : > { %272 = vst [vmem:[%s7763_s30 + $0xd8] sm:$0xff] %v271_v24  ;;  %274 = vst [vmem:[%s7763_s30 + $0xe0] sm:$0xff] %v273_v25  ;;  %v277_v27 = vld [vmem:[%s7758_s29 + $0x1c8] sm:$0xff]  ;;  %v279_v28 = vld [vmem:[%s7758_s29 + $0x1f8] sm:$0xff] }
  0x20   : > { %276 = vst [vmem:[%s7763_s30 + $0xe8] sm:$0xff] %v275_v26  ;;  %v281_v29 = vld [vmem:[%s7758_s29 + $0x200] sm:$0xff]  ;;  %278 = vst [vmem:[%s7763_s30 + $0xf0] sm:$0xff] %v277_v27  ;;  %v283_v30 = vld [vmem:[%s7758_s29 + $0x208] sm:$0xff] }
  0x21   : > { %280 = vst [vmem:[%s7763_s30 + $0xfc] sm:$0xff] %v279_v28  ;;  %282 = vst [vmem:[%s7763_s30 + $0x104] sm:$0xff] %v281_v29  ;;  %v285_v31 = vld [vmem:[%s7758_s29 + $0x210] sm:$0xff]  ;;  %v287_v32 = vld [vmem:[%s7758_s29 + $0x240] sm:$0xff] }
  0x22   : > { %284 = vst [vmem:[%s7763_s30 + $0x10c] sm:$0xff] %v283_v30  ;;  %286 = vst [vmem:[%s7763_s30 + $0x114] sm:$0xff] %v285_v31  ;;  %v289_v33 = vld [vmem:[%s7758_s29 + $0x248] sm:$0xff]  ;;  %v291_v34 = vld [vmem:[%s7758_s29 + $0x250] sm:$0xff] }
  0x23   : > { %288 = vst [vmem:[%s7763_s30 + $0x120] sm:$0xff] %v287_v32  ;;  %v293_v35 = vld [vmem:[%s7758_s29 + $0x258] sm:$0xff]  ;;  %290 = vst [vmem:[%s7763_s30 + $0x128] sm:$0xff] %v289_v33  ;;  %v295_v36 = vld [vmem:[%s7758_s29 + $0x288] sm:$0xff] }
  0x24   : > { %292 = vst [vmem:[%s7763_s30 + $0x130] sm:$0xff] %v291_v34  ;;  %294 = vst [vmem:[%s7763_s30 + $0x138] sm:$0xff] %v293_v35  ;;  %v297_v37 = vld [vmem:[%s7758_s29 + $0x290] sm:$0xff]  ;;  %v299_v38 = vld [vmem:[%s7758_s29 + $0x298] sm:$0xff] }
  0x25   : > { %296 = vst [vmem:[%s7763_s30 + $0x144] sm:$0xff] %v295_v36  ;;  %298 = vst [vmem:[%s7763_s30 + $0x14c] sm:$0xff] %v297_v37  ;;  %v301_v39 = vld [vmem:[%s7758_s29 + $0x2a0] sm:$0xff]  ;;  %v303_v40 = vld [vmem:[%s7758_s29 + $0x2d0] sm:$0xff] }
  0x26   : > { %300 = vst [vmem:[%s7763_s30 + $0x154] sm:$0xff] %v299_v38  ;;  %v305_v41 = vld [vmem:[%s7758_s29 + $0x2d8] sm:$0xff]  ;;  %302 = vst [vmem:[%s7763_s30 + $0x15c] sm:$0xff] %v301_v39  ;;  %v307_v42 = vld [vmem:[%s7758_s29 + $0x2e0] sm:$0xff] }
  0x27   : > { %304 = vst [vmem:[%s7763_s30 + $0x168] sm:$0xff] %v303_v40  ;;  %306 = vst [vmem:[%s7763_s30 + $0x170] sm:$0xff] %v305_v41  ;;  %v309_v43 = vld [vmem:[%s7758_s29 + $0x2e8] sm:$0xff]  ;;  %v311_v44 = vld [vmem:[%s7758_s29 + $0x318] sm:$0xff] }
  0x28   : > { %308 = vst [vmem:[%s7763_s30 + $0x178] sm:$0xff] %v307_v42  ;;  %310 = vst [vmem:[%s7763_s30 + $0x180] sm:$0xff] %v309_v43  ;;  %v313_v45 = vld [vmem:[%s7758_s29 + $0x320] sm:$0xff]  ;;  %v315_v46 = vld [vmem:[%s7758_s29 + $0x328] sm:$0xff] }
  0x29   : > { %312 = vst [vmem:[%s7763_s30 + $0x18c] sm:$0xff] %v311_v44  ;;  %v317_v47 = vld [vmem:[%s7758_s29 + $0x330] sm:$0xff]  ;;  %314 = vst [vmem:[%s7763_s30 + $0x194] sm:$0xff] %v313_v45  ;;  %v319_v48 = vld [vmem:[%s7758_s29 + $0x360] sm:$0xff] }
  0x2a   : > { %316 = vst [vmem:[%s7763_s30 + $0x19c] sm:$0xff] %v315_v46  ;;  %318 = vst [vmem:[%s7763_s30 + $0x1a4] sm:$0xff] %v317_v47  ;;  %v321_v49 = vld [vmem:[%s7758_s29 + $0x368] sm:$0xff]  ;;  %v323_v50 = vld [vmem:[%s7758_s29 + $0x370] sm:$0xff] }
  0x2b   : > { %320 = vst [vmem:[%s7763_s30 + $0x1b0] sm:$0xff] %v319_v48  ;;  %322 = vst [vmem:[%s7763_s30 + $0x1b8] sm:$0xff] %v321_v49  ;;  %v325_v51 = vld [vmem:[%s7758_s29 + $0x378] sm:$0xff]  ;;  %v327_v52 = vld [vmem:[%s7758_s29 + $0x3a8] sm:$0xff] }
  0x2c   : > { %324 = vst [vmem:[%s7763_s30 + $0x1c0] sm:$0xff] %v323_v50  ;;  %v329_v53 = vld [vmem:[%s7758_s29 + $0x3b0] sm:$0xff]  ;;  %326 = vst [vmem:[%s7763_s30 + $0x1c8] sm:$0xff] %v325_v51  ;;  %v331_v54 = vld [vmem:[%s7758_s29 + $0x3b8] sm:$0xff] }
  0x2d   : > { %328 = vst [vmem:[%s7763_s30 + $0x1d4] sm:$0xff] %v327_v52  ;;  %330 = vst [vmem:[%s7763_s30 + $0x1dc] sm:$0xff] %v329_v53  ;;  %v333_v55 = vld [vmem:[%s7758_s29 + $0x3c0] sm:$0xff]  ;;  %v335_v56 = vld [vmem:[%s7758_s29 + $0x3f0] sm:$0xff] }
  0x2e   : > { %332 = vst [vmem:[%s7763_s30 + $0x1e4] sm:$0xff] %v331_v54  ;;  %334 = vst [vmem:[%s7763_s30 + $0x1ec] sm:$0xff] %v333_v55  ;;  %v337_v57 = vld [vmem:[%s7758_s29 + $0x3f8] sm:$0xff]  ;;  %v339_v58 = vld [vmem:[%s7758_s29 + $0x400] sm:$0xff] }
  0x2f   : > { %336 = vst [vmem:[%s7763_s30 + $0x1f8] sm:$0xff] %v335_v56  ;;  %v341_v59 = vld [vmem:[%s7758_s29 + $0x408] sm:$0xff]  ;;  %338 = vst [vmem:[%s7763_s30 + $0x200] sm:$0xff] %v337_v57  ;;  %v343_v60 = vld [vmem:[%s7758_s29 + $0x438] sm:$0xff] }
  0x30   : > { %340 = vst [vmem:[%s7763_s30 + $0x208] sm:$0xff] %v339_v58  ;;  %342 = vst [vmem:[%s7763_s30 + $0x210] sm:$0xff] %v341_v59  ;;  %v345_v61 = vld [vmem:[%s7758_s29 + $0x440] sm:$0xff]  ;;  %v347_v62 = vld [vmem:[%s7758_s29 + $0x448] sm:$0xff] }
  0x31   : > { %344 = vst [vmem:[%s7763_s30 + $0x21c] sm:$0xff] %v343_v60  ;;  %346 = vst [vmem:[%s7763_s30 + $0x224] sm:$0xff] %v345_v61  ;;  %v349_v63 = vld [vmem:[%s7758_s29 + $0x450] sm:$0xff]  ;;  %v351_v0 = vld [vmem:[%s7758_s29 + $0x480] sm:$0xff] }
  0x32   : > { %348 = vst [vmem:[%s7763_s30 + $0x22c] sm:$0xff] %v347_v62  ;;  %v353_v1 = vld [vmem:[%s7758_s29 + $0x488] sm:$0xff]  ;;  %350 = vst [vmem:[%s7763_s30 + $0x234] sm:$0xff] %v349_v63  ;;  %v355_v2 = vld [vmem:[%s7758_s29 + $0x490] sm:$0xff] }
  0x33   : > { %352 = vst [vmem:[%s7763_s30 + $0x240] sm:$0xff] %v351_v0  ;;  %354 = vst [vmem:[%s7763_s30 + $0x248] sm:$0xff] %v353_v1  ;;  %v357_v3 = vld [vmem:[%s7758_s29 + $0x498] sm:$0xff]  ;;  %v359_v4 = vld [vmem:[%s7758_s29 + $0x4c8] sm:$0xff] }
  0x34   : > { %356 = vst [vmem:[%s7763_s30 + $0x250] sm:$0xff] %v355_v2  ;;  %358 = vst [vmem:[%s7763_s30 + $0x258] sm:$0xff] %v357_v3  ;;  %v361_v5 = vld [vmem:[%s7758_s29 + $0x4d0] sm:$0xff]  ;;  %v363_v6 = vld [vmem:[%s7758_s29 + $0x4d8] sm:$0xff] }
  0x35   : > { %360 = vst [vmem:[%s7763_s30 + $0x264] sm:$0xff] %v359_v4  ;;  %v365_v7 = vld [vmem:[%s7758_s29 + $0x4e0] sm:$0xff]  ;;  %362 = vst [vmem:[%s7763_s30 + $0x26c] sm:$0xff] %v361_v5  ;;  %v367_v8 = vld [vmem:[%s7758_s29 + $0x510] sm:$0xff] }
  0x36   : > { %364 = vst [vmem:[%s7763_s30 + $0x274] sm:$0xff] %v363_v6  ;;  %366 = vst [vmem:[%s7763_s30 + $0x27c] sm:$0xff] %v365_v7  ;;  %v369_v9 = vld [vmem:[%s7758_s29 + $0x518] sm:$0xff]  ;;  %v371_v10 = vld [vmem:[%s7758_s29 + $0x520] sm:$0xff] }
  0x37   : > { %368 = vst [vmem:[%s7763_s30 + $0x288] sm:$0xff] %v367_v8  ;;  %370 = vst [vmem:[%s7763_s30 + $0x290] sm:$0xff] %v369_v9  ;;  %v373_v11 = vld [vmem:[%s7758_s29 + $0x528] sm:$0xff]  ;;  %v375_v12 = vld [vmem:[%s7758_s29 + $0x558] sm:$0xff] }
  0x38   : > { %372 = vst [vmem:[%s7763_s30 + $0x298] sm:$0xff] %v371_v10  ;;  %v377_v13 = vld [vmem:[%s7758_s29 + $0x560] sm:$0xff]  ;;  %374 = vst [vmem:[%s7763_s30 + $0x2a0] sm:$0xff] %v373_v11  ;;  %v379_v14 = vld [vmem:[%s7758_s29 + $0x568] sm:$0xff] }
  0x39   : > { %376 = vst [vmem:[%s7763_s30 + $0x2ac] sm:$0xff] %v375_v12  ;;  %378 = vst [vmem:[%s7763_s30 + $0x2b4] sm:$0xff] %v377_v13  ;;  %v381_v15 = vld [vmem:[%s7758_s29 + $0x570] sm:$0xff]  ;;  %v383_v16 = vld [vmem:[%s7758_s29 + $0x5a0] sm:$0xff] }
  0x3a   : > { %380 = vst [vmem:[%s7763_s30 + $0x2bc] sm:$0xff] %v379_v14  ;;  %382 = vst [vmem:[%s7763_s30 + $0x2c4] sm:$0xff] %v381_v15  ;;  %v385_v17 = vld [vmem:[%s7758_s29 + $0x5a8] sm:$0xff]  ;;  %v387_v18 = vld [vmem:[%s7758_s29 + $0x5b0] sm:$0xff] }
  0x3b   : > { %384 = vst [vmem:[%s7763_s30 + $0x2d0] sm:$0xff] %v383_v16  ;;  %v389_v19 = vld [vmem:[%s7758_s29 + $0x5b8] sm:$0xff]  ;;  %386 = vst [vmem:[%s7763_s30 + $0x2d8] sm:$0xff] %v385_v17  ;;  %v391_v20 = vld [vmem:[%s7758_s29 + $0x5e8] sm:$0xff] }
  0x3c   : > { %388 = vst [vmem:[%s7763_s30 + $0x2e0] sm:$0xff] %v387_v18  ;;  %390 = vst [vmem:[%s7763_s30 + $0x2e8] sm:$0xff] %v389_v19  ;;  %v393_v21 = vld [vmem:[%s7758_s29 + $0x5f0] sm:$0xff]  ;;  %v395_v22 = vld [vmem:[%s7758_s29 + $0x5f8] sm:$0xff] }
  0x3d   : > { %392 = vst [vmem:[%s7763_s30 + $0x2f4] sm:$0xff] %v391_v20  ;;  %394 = vst [vmem:[%s7763_s30 + $0x2fc] sm:$0xff] %v393_v21  ;;  %v397_v23 = vld [vmem:[%s7758_s29 + $0x600] sm:$0xff]  ;;  %v399_v24 = vld [vmem:[%s7758_s29 + $0x630] sm:$0xff] }
  0x3e   : > { %396 = vst [vmem:[%s7763_s30 + $0x304] sm:$0xff] %v395_v22  ;;  %v401_v25 = vld [vmem:[%s7758_s29 + $0x638] sm:$0xff]  ;;  %398 = vst [vmem:[%s7763_s30 + $0x30c] sm:$0xff] %v397_v23  ;;  %v403_v26 = vld [vmem:[%s7758_s29 + $0x640] sm:$0xff] }
  0x3f   : > { %400 = vst [vmem:[%s7763_s30 + $0x318] sm:$0xff] %v399_v24  ;;  %402 = vst [vmem:[%s7763_s30 + $0x320] sm:$0xff] %v401_v25  ;;  %v405_v27 = vld [vmem:[%s7758_s29 + $0x648] sm:$0xff]  ;;  %v407_v28 = vld [vmem:[%s7758_s29 + $0x678] sm:$0xff] }
  0x40   : > { %404 = vst [vmem:[%s7763_s30 + $0x328] sm:$0xff] %v403_v26  ;;  %406 = vst [vmem:[%s7763_s30 + $0x330] sm:$0xff] %v405_v27  ;;  %v409_v29 = vld [vmem:[%s7758_s29 + $0x680] sm:$0xff]  ;;  %v411_v30 = vld [vmem:[%s7758_s29 + $0x688] sm:$0xff] }
  0x41   : > { %408 = vst [vmem:[%s7763_s30 + $0x33c] sm:$0xff] %v407_v28  ;;  %v413_v31 = vld [vmem:[%s7758_s29 + $0x690] sm:$0xff]  ;;  %410 = vst [vmem:[%s7763_s30 + $0x344] sm:$0xff] %v409_v29  ;;  %v415_v32 = vld [vmem:[%s7758_s29 + $0x6c0] sm:$0xff] }
  0x42   : > { %412 = vst [vmem:[%s7763_s30 + $0x34c] sm:$0xff] %v411_v30  ;;  %414 = vst [vmem:[%s7763_s30 + $0x354] sm:$0xff] %v413_v31  ;;  %v417_v33 = vld [vmem:[%s7758_s29 + $0x6c8] sm:$0xff]  ;;  %v419_v34 = vld [vmem:[%s7758_s29 + $0x6d0] sm:$0xff] }
  0x43   : > { %416 = vst [vmem:[%s7763_s30 + $0x360] sm:$0xff] %v415_v32  ;;  %418 = vst [vmem:[%s7763_s30 + $0x368] sm:$0xff] %v417_v33  ;;  %v421_v35 = vld [vmem:[%s7758_s29 + $0x6d8] sm:$0xff]  ;;  %v423_v36 = vld [vmem:[%s7758_s29 + $0x708] sm:$0xff] }
  0x44   : > { %420 = vst [vmem:[%s7763_s30 + $0x370] sm:$0xff] %v419_v34  ;;  %v425_v37 = vld [vmem:[%s7758_s29 + $0x710] sm:$0xff]  ;;  %422 = vst [vmem:[%s7763_s30 + $0x378] sm:$0xff] %v421_v35  ;;  %v427_v38 = vld [vmem:[%s7758_s29 + $0x718] sm:$0xff] }
  0x45   : > { %424 = vst [vmem:[%s7763_s30 + $0x384] sm:$0xff] %v423_v36  ;;  %426 = vst [vmem:[%s7763_s30 + $0x38c] sm:$0xff] %v425_v37  ;;  %v429_v39 = vld [vmem:[%s7758_s29 + $0x720] sm:$0xff]  ;;  %v431_v40 = vld [vmem:[%s7758_s29 + $0x750] sm:$0xff] }
  0x46   : > { %428 = vst [vmem:[%s7763_s30 + $0x394] sm:$0xff] %v427_v38  ;;  %430 = vst [vmem:[%s7763_s30 + $0x39c] sm:$0xff] %v429_v39  ;;  %v433_v41 = vld [vmem:[%s7758_s29 + $0x758] sm:$0xff]  ;;  %v435_v42 = vld [vmem:[%s7758_s29 + $0x760] sm:$0xff] }
  0x47   : > { %432 = vst [vmem:[%s7763_s30 + $0x3a8] sm:$0xff] %v431_v40  ;;  %v437_v43 = vld [vmem:[%s7758_s29 + $0x768] sm:$0xff]  ;;  %434 = vst [vmem:[%s7763_s30 + $0x3b0] sm:$0xff] %v433_v41  ;;  %v439_v44 = vld [vmem:[%s7758_s29 + $0x798] sm:$0xff] }
  0x48   : > { %436 = vst [vmem:[%s7763_s30 + $0x3b8] sm:$0xff] %v435_v42  ;;  %438 = vst [vmem:[%s7763_s30 + $0x3c0] sm:$0xff] %v437_v43  ;;  %v441_v45 = vld [vmem:[%s7758_s29 + $0x7a0] sm:$0xff]  ;;  %v443_v46 = vld [vmem:[%s7758_s29 + $0x7a8] sm:$0xff] }
  0x49   : > { %440 = vst [vmem:[%s7763_s30 + $0x3cc] sm:$0xff] %v439_v44  ;;  %442 = vst [vmem:[%s7763_s30 + $0x3d4] sm:$0xff] %v441_v45  ;;  %v445_v47 = vld [vmem:[%s7758_s29 + $0x7b0] sm:$0xff]  ;;  %v447_v48 = vld [vmem:[%s7758_s29 + $0x7e0] sm:$0xff] }
  0x4a   : > { %444 = vst [vmem:[%s7763_s30 + $0x3dc] sm:$0xff] %v443_v46  ;;  %v449_v49 = vld [vmem:[%s7758_s29 + $0x7e8] sm:$0xff]  ;;  %446 = vst [vmem:[%s7763_s30 + $0x3e4] sm:$0xff] %v445_v47  ;;  %v451_v50 = vld [vmem:[%s7758_s29 + $0x7f0] sm:$0xff] }
  0x4b   : > { %448 = vst [vmem:[%s7763_s30 + $0x3f0] sm:$0xff] %v447_v48  ;;  %450 = vst [vmem:[%s7763_s30 + $0x3f8] sm:$0xff] %v449_v49  ;;  %v453_v51 = vld [vmem:[%s7758_s29 + $0x7f8] sm:$0xff]  ;;  %v455_v52 = vld [vmem:[%s7758_s29 + $0x828] sm:$0xff] }
  0x4c   : > { %452 = vst [vmem:[%s7763_s30 + $0x400] sm:$0xff] %v451_v50  ;;  %454 = vst [vmem:[%s7763_s30 + $0x408] sm:$0xff] %v453_v51  ;;  %v457_v53 = vld [vmem:[%s7758_s29 + $0x830] sm:$0xff]  ;;  %v459_v54 = vld [vmem:[%s7758_s29 + $0x838] sm:$0xff] }
  0x4d   : > { %456 = vst [vmem:[%s7763_s30 + $0x414] sm:$0xff] %v455_v52  ;;  %v461_v55 = vld [vmem:[%s7758_s29 + $0x840] sm:$0xff]  ;;  %458 = vst [vmem:[%s7763_s30 + $0x41c] sm:$0xff] %v457_v53  ;;  %v463_v56 = vld [vmem:[%s7758_s29 + $0x870] sm:$0xff] }
  0x4e   : > { %460 = vst [vmem:[%s7763_s30 + $0x424] sm:$0xff] %v459_v54  ;;  %462 = vst [vmem:[%s7763_s30 + $0x42c] sm:$0xff] %v461_v55  ;;  %v465_v57 = vld [vmem:[%s7758_s29 + $0x878] sm:$0xff]  ;;  %v467_v58 = vld [vmem:[%s7758_s29 + $0x880] sm:$0xff] }
  0x4f   : > { %464 = vst [vmem:[%s7763_s30 + $0x438] sm:$0xff] %v463_v56  ;;  %466 = vst [vmem:[%s7763_s30 + $0x440] sm:$0xff] %v465_v57  ;;  %v469_v59 = vld [vmem:[%s7758_s29 + $0x888] sm:$0xff]  ;;  %v471_v60 = vld [vmem:[%s7758_s29 + $0x8b8] sm:$0xff] }
  0x50   : > { %468 = vst [vmem:[%s7763_s30 + $0x448] sm:$0xff] %v467_v58  ;;  %v473_v61 = vld [vmem:[%s7758_s29 + $0x8c0] sm:$0xff]  ;;  %470 = vst [vmem:[%s7763_s30 + $0x450] sm:$0xff] %v469_v59  ;;  %v475_v62 = vld [vmem:[%s7758_s29 + $0x8c8] sm:$0xff] }
  0x51   : > { %472 = vst [vmem:[%s7763_s30 + $0x45c] sm:$0xff] %v471_v60  ;;  %474 = vst [vmem:[%s7763_s30 + $0x464] sm:$0xff] %v473_v61  ;;  %v477_v63 = vld [vmem:[%s7758_s29 + $0x8d0] sm:$0xff]  ;;  %v479_v0 = vld [vmem:[%s7758_s29 + $0x900] sm:$0xff] }
  0x52   : > { %476 = vst [vmem:[%s7763_s30 + $0x46c] sm:$0xff] %v475_v62  ;;  %478 = vst [vmem:[%s7763_s30 + $0x474] sm:$0xff] %v477_v63  ;;  %v481_v1 = vld [vmem:[%s7758_s29 + $0x908] sm:$0xff]  ;;  %v483_v2 = vld [vmem:[%s7758_s29 + $0x910] sm:$0xff] }
  0x53   : > { %480 = vst [vmem:[%s7763_s30 + $0x480] sm:$0xff] %v479_v0  ;;  %v485_v3 = vld [vmem:[%s7758_s29 + $0x918] sm:$0xff]  ;;  %482 = vst [vmem:[%s7763_s30 + $0x488] sm:$0xff] %v481_v1  ;;  %v487_v4 = vld [vmem:[%s7758_s29 + $0x948] sm:$0xff] }
  0x54   : > { %484 = vst [vmem:[%s7763_s30 + $0x490] sm:$0xff] %v483_v2  ;;  %486 = vst [vmem:[%s7763_s30 + $0x498] sm:$0xff] %v485_v3  ;;  %v489_v5 = vld [vmem:[%s7758_s29 + $0x950] sm:$0xff]  ;;  %v491_v6 = vld [vmem:[%s7758_s29 + $0x958] sm:$0xff] }
  0x55   : > { %488 = vst [vmem:[%s7763_s30 + $0x4a4] sm:$0xff] %v487_v4  ;;  %490 = vst [vmem:[%s7763_s30 + $0x4ac] sm:$0xff] %v489_v5  ;;  %v493_v7 = vld [vmem:[%s7758_s29 + $0x960] sm:$0xff]  ;;  %v495_v8 = vld [vmem:[%s7758_s29 + $0x990] sm:$0xff] }
  0x56   : > { %492 = vst [vmem:[%s7763_s30 + $0x4b4] sm:$0xff] %v491_v6  ;;  %v497_v9 = vld [vmem:[%s7758_s29 + $0x998] sm:$0xff]  ;;  %494 = vst [vmem:[%s7763_s30 + $0x4bc] sm:$0xff] %v493_v7  ;;  %v499_v10 = vld [vmem:[%s7758_s29 + $0x9a0] sm:$0xff] }
  0x57   : > { %496 = vst [vmem:[%s7763_s30 + $0x4c8] sm:$0xff] %v495_v8  ;;  %498 = vst [vmem:[%s7763_s30 + $0x4d0] sm:$0xff] %v497_v9  ;;  %v501_v11 = vld [vmem:[%s7758_s29 + $0x9a8] sm:$0xff]  ;;  %v503_v12 = vld [vmem:[%s7758_s29 + $0x9d8] sm:$0xff] }
  0x58   : > { %500 = vst [vmem:[%s7763_s30 + $0x4d8] sm:$0xff] %v499_v10  ;;  %502 = vst [vmem:[%s7763_s30 + $0x4e0] sm:$0xff] %v501_v11  ;;  %v505_v13 = vld [vmem:[%s7758_s29 + $0x9e0] sm:$0xff]  ;;  %v507_v14 = vld [vmem:[%s7758_s29 + $0x9e8] sm:$0xff] }
  0x59   : > { %504 = vst [vmem:[%s7763_s30 + $0x4ec] sm:$0xff] %v503_v12  ;;  %v509_v15 = vld [vmem:[%s7758_s29 + $0x9f0] sm:$0xff]  ;;  %506 = vst [vmem:[%s7763_s30 + $0x4f4] sm:$0xff] %v505_v13  ;;  %v511_v16 = vld [vmem:[%s7758_s29 + $0xa20] sm:$0xff] }
  0x5a   : > { %508 = vst [vmem:[%s7763_s30 + $0x4fc] sm:$0xff] %v507_v14  ;;  %510 = vst [vmem:[%s7763_s30 + $0x504] sm:$0xff] %v509_v15  ;;  %v513_v17 = vld [vmem:[%s7758_s29 + $0xa28] sm:$0xff]  ;;  %v515_v18 = vld [vmem:[%s7758_s29 + $0xa30] sm:$0xff] }
  0x5b   : > { %512 = vst [vmem:[%s7763_s30 + $0x510] sm:$0xff] %v511_v16  ;;  %514 = vst [vmem:[%s7763_s30 + $0x518] sm:$0xff] %v513_v17  ;;  %v517_v19 = vld [vmem:[%s7758_s29 + $0xa38] sm:$0xff]  ;;  %v519_v20 = vld [vmem:[%s7758_s29 + $0xa68] sm:$0xff] }
  0x5c   : > { %516 = vst [vmem:[%s7763_s30 + $0x520] sm:$0xff] %v515_v18  ;;  %v521_v21 = vld [vmem:[%s7758_s29 + $0xa70] sm:$0xff]  ;;  %518 = vst [vmem:[%s7763_s30 + $0x528] sm:$0xff] %v517_v19  ;;  %v523_v22 = vld [vmem:[%s7758_s29 + $0xa78] sm:$0xff] }
  0x5d   : > { %520 = vst [vmem:[%s7763_s30 + $0x534] sm:$0xff] %v519_v20  ;;  %522 = vst [vmem:[%s7763_s30 + $0x53c] sm:$0xff] %v521_v21  ;;  %v525_v23 = vld [vmem:[%s7758_s29 + $0xa80] sm:$0xff]  ;;  %v527_v24 = vld [vmem:[%s7758_s29 + $0xab0] sm:$0xff] }
  0x5e   : > { %524 = vst [vmem:[%s7763_s30 + $0x544] sm:$0xff] %v523_v22  ;;  %526 = vst [vmem:[%s7763_s30 + $0x54c] sm:$0xff] %v525_v23  ;;  %v529_v25 = vld [vmem:[%s7758_s29 + $0xab8] sm:$0xff]  ;;  %v531_v26 = vld [vmem:[%s7758_s29 + $0xac0] sm:$0xff] }
  0x5f   : > { %528 = vst [vmem:[%s7763_s30 + $0x558] sm:$0xff] %v527_v24  ;;  %v533_v27 = vld [vmem:[%s7758_s29 + $0xac8] sm:$0xff]  ;;  %530 = vst [vmem:[%s7763_s30 + $0x560] sm:$0xff] %v529_v25  ;;  %v535_v28 = vld [vmem:[%s7758_s29 + $0xaf8] sm:$0xff] }
  0x60   : > { %532 = vst [vmem:[%s7763_s30 + $0x568] sm:$0xff] %v531_v26  ;;  %534 = vst [vmem:[%s7763_s30 + $0x570] sm:$0xff] %v533_v27  ;;  %v537_v29 = vld [vmem:[%s7758_s29 + $0xb00] sm:$0xff]  ;;  %v539_v30 = vld [vmem:[%s7758_s29 + $0xb08] sm:$0xff] }
  0x61   : > { %536 = vst [vmem:[%s7763_s30 + $0x57c] sm:$0xff] %v535_v28  ;;  %538 = vst [vmem:[%s7763_s30 + $0x584] sm:$0xff] %v537_v29  ;;  %v541_v31 = vld [vmem:[%s7758_s29 + $0xb10] sm:$0xff]  ;;  %v543_v32 = vld [vmem:[%s7758_s29 + $0xb40] sm:$0xff] }
  0x62   : > { %540 = vst [vmem:[%s7763_s30 + $0x58c] sm:$0xff] %v539_v30  ;;  %v545_v33 = vld [vmem:[%s7758_s29 + $0xb48] sm:$0xff]  ;;  %542 = vst [vmem:[%s7763_s30 + $0x594] sm:$0xff] %v541_v31  ;;  %v547_v34 = vld [vmem:[%s7758_s29 + $0xb50] sm:$0xff] }
  0x63   : > { %544 = vst [vmem:[%s7763_s30 + $0x5a0] sm:$0xff] %v543_v32  ;;  %546 = vst [vmem:[%s7763_s30 + $0x5a8] sm:$0xff] %v545_v33  ;;  %v549_v35 = vld [vmem:[%s7758_s29 + $0xb58] sm:$0xff]  ;;  %v551_v36 = vld [vmem:[%s7758_s29 + $0xb88] sm:$0xff] }
  0x64   : > { %548 = vst [vmem:[%s7763_s30 + $0x5b0] sm:$0xff] %v547_v34  ;;  %550 = vst [vmem:[%s7763_s30 + $0x5b8] sm:$0xff] %v549_v35  ;;  %v553_v37 = vld [vmem:[%s7758_s29 + $0xb90] sm:$0xff]  ;;  %v555_v38 = vld [vmem:[%s7758_s29 + $0xb98] sm:$0xff] }
  0x65   : > { %552 = vst [vmem:[%s7763_s30 + $0x5c4] sm:$0xff] %v551_v36  ;;  %v557_v39 = vld [vmem:[%s7758_s29 + $0xba0] sm:$0xff]  ;;  %554 = vst [vmem:[%s7763_s30 + $0x5cc] sm:$0xff] %v553_v37  ;;  %v559_v40 = vld [vmem:[%s7758_s29 + $0xbd0] sm:$0xff] }
  0x66   : > { %556 = vst [vmem:[%s7763_s30 + $0x5d4] sm:$0xff] %v555_v38  ;;  %558 = vst [vmem:[%s7763_s30 + $0x5dc] sm:$0xff] %v557_v39  ;;  %v561_v41 = vld [vmem:[%s7758_s29 + $0xbd8] sm:$0xff]  ;;  %v563_v42 = vld [vmem:[%s7758_s29 + $0xbe0] sm:$0xff] }
  0x67   : > { %560 = vst [vmem:[%s7763_s30 + $0x5e8] sm:$0xff] %v559_v40  ;;  %562 = vst [vmem:[%s7763_s30 + $0x5f0] sm:$0xff] %v561_v41  ;;  %v565_v43 = vld [vmem:[%s7758_s29 + $0xbe8] sm:$0xff]  ;;  %v567_v44 = vld [vmem:[%s7758_s29 + $0xc18] sm:$0xff] }
  0x68   : > { %564 = vst [vmem:[%s7763_s30 + $0x5f8] sm:$0xff] %v563_v42  ;;  %v569_v45 = vld [vmem:[%s7758_s29 + $0xc20] sm:$0xff]  ;;  %566 = vst [vmem:[%s7763_s30 + $0x600] sm:$0xff] %v565_v43  ;;  %v571_v46 = vld [vmem:[%s7758_s29 + $0xc28] sm:$0xff] }
  0x69   : > { %568 = vst [vmem:[%s7763_s30 + $0x60c] sm:$0xff] %v567_v44  ;;  %570 = vst [vmem:[%s7763_s30 + $0x614] sm:$0xff] %v569_v45  ;;  %v573_v47 = vld [vmem:[%s7758_s29 + $0xc30] sm:$0xff]  ;;  %v575_v48 = vld [vmem:[%s7758_s29 + $0xc60] sm:$0xff] }
  0x6a   : > { %572 = vst [vmem:[%s7763_s30 + $0x61c] sm:$0xff] %v571_v46  ;;  %574 = vst [vmem:[%s7763_s30 + $0x624] sm:$0xff] %v573_v47  ;;  %v577_v49 = vld [vmem:[%s7758_s29 + $0xc68] sm:$0xff]  ;;  %v579_v50 = vld [vmem:[%s7758_s29 + $0xc70] sm:$0xff] }
  0x6b   : > { %576 = vst [vmem:[%s7763_s30 + $0x630] sm:$0xff] %v575_v48  ;;  %v581_v51 = vld [vmem:[%s7758_s29 + $0xc78] sm:$0xff]  ;;  %578 = vst [vmem:[%s7763_s30 + $0x638] sm:$0xff] %v577_v49  ;;  %v583_v52 = vld [vmem:[%s7758_s29 + $0xca8] sm:$0xff] }
  0x6c   : > { %580 = vst [vmem:[%s7763_s30 + $0x640] sm:$0xff] %v579_v50  ;;  %582 = vst [vmem:[%s7763_s30 + $0x648] sm:$0xff] %v581_v51  ;;  %v585_v53 = vld [vmem:[%s7758_s29 + $0xcb0] sm:$0xff]  ;;  %v587_v54 = vld [vmem:[%s7758_s29 + $0xcb8] sm:$0xff] }
  0x6d   : > { %584 = vst [vmem:[%s7763_s30 + $0x654] sm:$0xff] %v583_v52  ;;  %586 = vst [vmem:[%s7763_s30 + $0x65c] sm:$0xff] %v585_v53  ;;  %v589_v55 = vld [vmem:[%s7758_s29 + $0xcc0] sm:$0xff]  ;;  %v591_v56 = vld [vmem:[%s7758_s29 + $0xcf0] sm:$0xff] }
  0x6e   : > { %588 = vst [vmem:[%s7763_s30 + $0x664] sm:$0xff] %v587_v54  ;;  %v593_v57 = vld [vmem:[%s7758_s29 + $0xcf8] sm:$0xff]  ;;  %590 = vst [vmem:[%s7763_s30 + $0x66c] sm:$0xff] %v589_v55  ;;  %v595_v58 = vld [vmem:[%s7758_s29 + $0xd00] sm:$0xff] }
  0x6f   : > { %592 = vst [vmem:[%s7763_s30 + $0x678] sm:$0xff] %v591_v56  ;;  %594 = vst [vmem:[%s7763_s30 + $0x680] sm:$0xff] %v593_v57  ;;  %v597_v59 = vld [vmem:[%s7758_s29 + $0xd08] sm:$0xff]  ;;  %v599_v60 = vld [vmem:[%s7758_s29 + $0xd38] sm:$0xff] }
  0x70   : > { %596 = vst [vmem:[%s7763_s30 + $0x688] sm:$0xff] %v595_v58  ;;  %598 = vst [vmem:[%s7763_s30 + $0x690] sm:$0xff] %v597_v59  ;;  %v601_v61 = vld [vmem:[%s7758_s29 + $0xd40] sm:$0xff]  ;;  %v603_v62 = vld [vmem:[%s7758_s29 + $0xd48] sm:$0xff] }
  0x71   : > { %600 = vst [vmem:[%s7763_s30 + $0x69c] sm:$0xff] %v599_v60  ;;  %v605_v63 = vld [vmem:[%s7758_s29 + $0xd50] sm:$0xff]  ;;  %602 = vst [vmem:[%s7763_s30 + $0x6a4] sm:$0xff] %v601_v61  ;;  %v607_v0 = vld [vmem:[%s7758_s29 + $0xd80] sm:$0xff] }
  0x72   : > { %604 = vst [vmem:[%s7763_s30 + $0x6ac] sm:$0xff] %v603_v62  ;;  %606 = vst [vmem:[%s7763_s30 + $0x6b4] sm:$0xff] %v605_v63  ;;  %v609_v1 = vld [vmem:[%s7758_s29 + $0xd88] sm:$0xff]  ;;  %v611_v2 = vld [vmem:[%s7758_s29 + $0xd90] sm:$0xff] }
  0x73   : > { %608 = vst [vmem:[%s7763_s30 + $0x6c0] sm:$0xff] %v607_v0  ;;  %610 = vst [vmem:[%s7763_s30 + $0x6c8] sm:$0xff] %v609_v1  ;;  %v613_v3 = vld [vmem:[%s7758_s29 + $0xd98] sm:$0xff]  ;;  %v615_v4 = vld [vmem:[%s7758_s29 + $0xdc8] sm:$0xff] }
  0x74   : > { %612 = vst [vmem:[%s7763_s30 + $0x6d0] sm:$0xff] %v611_v2  ;;  %v617_v5 = vld [vmem:[%s7758_s29 + $0xdd0] sm:$0xff]  ;;  %614 = vst [vmem:[%s7763_s30 + $0x6d8] sm:$0xff] %v613_v3  ;;  %v619_v6 = vld [vmem:[%s7758_s29 + $0xdd8] sm:$0xff] }
  0x75   : > { %616 = vst [vmem:[%s7763_s30 + $0x6e4] sm:$0xff] %v615_v4  ;;  %618 = vst [vmem:[%s7763_s30 + $0x6ec] sm:$0xff] %v617_v5  ;;  %v621_v7 = vld [vmem:[%s7758_s29 + $0xde0] sm:$0xff]  ;;  %v623_v8 = vld [vmem:[%s7758_s29 + $0xe10] sm:$0xff] }
  0x76   : > { %620 = vst [vmem:[%s7763_s30 + $0x6f4] sm:$0xff] %v619_v6  ;;  %622 = vst [vmem:[%s7763_s30 + $0x6fc] sm:$0xff] %v621_v7  ;;  %v625_v9 = vld [vmem:[%s7758_s29 + $0xe18] sm:$0xff]  ;;  %v627_v10 = vld [vmem:[%s7758_s29 + $0xe20] sm:$0xff] }
  0x77   : > { %624 = vst [vmem:[%s7763_s30 + $0x708] sm:$0xff] %v623_v8  ;;  %v629_v11 = vld [vmem:[%s7758_s29 + $0xe28] sm:$0xff]  ;;  %626 = vst [vmem:[%s7763_s30 + $0x710] sm:$0xff] %v625_v9  ;;  %v631_v12 = vld [vmem:[%s7758_s29 + $0xe58] sm:$0xff] }
  0x78   : > { %628 = vst [vmem:[%s7763_s30 + $0x718] sm:$0xff] %v627_v10  ;;  %630 = vst [vmem:[%s7763_s30 + $0x720] sm:$0xff] %v629_v11  ;;  %v633_v13 = vld [vmem:[%s7758_s29 + $0xe60] sm:$0xff]  ;;  %v635_v14 = vld [vmem:[%s7758_s29 + $0xe68] sm:$0xff] }
  0x79   : > { %632 = vst [vmem:[%s7763_s30 + $0x72c] sm:$0xff] %v631_v12  ;;  %634 = vst [vmem:[%s7763_s30 + $0x734] sm:$0xff] %v633_v13  ;;  %v637_v15 = vld [vmem:[%s7758_s29 + $0xe70] sm:$0xff]  ;;  %v639_v16 = vld [vmem:[%s7758_s29 + $0xea0] sm:$0xff] }
  0x7a   : > { %636 = vst [vmem:[%s7763_s30 + $0x73c] sm:$0xff] %v635_v14  ;;  %v641_v17 = vld [vmem:[%s7758_s29 + $0xea8] sm:$0xff]  ;;  %638 = vst [vmem:[%s7763_s30 + $0x744] sm:$0xff] %v637_v15  ;;  %v643_v18 = vld [vmem:[%s7758_s29 + $0xeb0] sm:$0xff] }
  0x7b   : > { %640 = vst [vmem:[%s7763_s30 + $0x750] sm:$0xff] %v639_v16  ;;  %642 = vst [vmem:[%s7763_s30 + $0x758] sm:$0xff] %v641_v17  ;;  %v645_v19 = vld [vmem:[%s7758_s29 + $0xeb8] sm:$0xff]  ;;  %v647_v20 = vld [vmem:[%s7758_s29 + $0xee8] sm:$0xff] }
  0x7c   : > { %644 = vst [vmem:[%s7763_s30 + $0x760] sm:$0xff] %v643_v18  ;;  %646 = vst [vmem:[%s7763_s30 + $0x768] sm:$0xff] %v645_v19  ;;  %v649_v21 = vld [vmem:[%s7758_s29 + $0xef0] sm:$0xff]  ;;  %v651_v22 = vld [vmem:[%s7758_s29 + $0xef8] sm:$0xff] }
  0x7d   : > { %648 = vst [vmem:[%s7763_s30 + $0x774] sm:$0xff] %v647_v20  ;;  %v653_v23 = vld [vmem:[%s7758_s29 + $0xf00] sm:$0xff]  ;;  %650 = vst [vmem:[%s7763_s30 + $0x77c] sm:$0xff] %v649_v21  ;;  %v655_v24 = vld [vmem:[%s7758_s29 + $0xf30] sm:$0xff] }
  0x7e   : > { %652 = vst [vmem:[%s7763_s30 + $0x784] sm:$0xff] %v651_v22  ;;  %654 = vst [vmem:[%s7763_s30 + $0x78c] sm:$0xff] %v653_v23  ;;  %v657_v25 = vld [vmem:[%s7758_s29 + $0xf38] sm:$0xff]  ;;  %v659_v26 = vld [vmem:[%s7758_s29 + $0xf40] sm:$0xff] }
  0x7f   : > { %656 = vst [vmem:[%s7763_s30 + $0x798] sm:$0xff] %v655_v24  ;;  %658 = vst [vmem:[%s7763_s30 + $0x7a0] sm:$0xff] %v657_v25  ;;  %v661_v27 = vld [vmem:[%s7758_s29 + $0xf48] sm:$0xff]  ;;  %v663_v28 = vld [vmem:[%s7758_s29 + $0xf78] sm:$0xff] }
  0x80   : > { %660 = vst [vmem:[%s7763_s30 + $0x7a8] sm:$0xff] %v659_v26  ;;  %v665_v29 = vld [vmem:[%s7758_s29 + $0xf80] sm:$0xff]  ;;  %662 = vst [vmem:[%s7763_s30 + $0x7b0] sm:$0xff] %v661_v27  ;;  %v667_v30 = vld [vmem:[%s7758_s29 + $0xf88] sm:$0xff] }
  0x81   : > { %664 = vst [vmem:[%s7763_s30 + $0x7bc] sm:$0xff] %v663_v28  ;;  %666 = vst [vmem:[%s7763_s30 + $0x7c4] sm:$0xff] %v665_v29  ;;  %v669_v31 = vld [vmem:[%s7758_s29 + $0xf90] sm:$0xff]  ;;  %v671_v32 = vld [vmem:[%s7758_s29 + $0xfc0] sm:$0xff] }
  0x82   : > { %668 = vst [vmem:[%s7763_s30 + $0x7cc] sm:$0xff] %v667_v30  ;;  %670 = vst [vmem:[%s7763_s30 + $0x7d4] sm:$0xff] %v669_v31  ;;  %v673_v33 = vld [vmem:[%s7758_s29 + $0xfc8] sm:$0xff]  ;;  %v675_v34 = vld [vmem:[%s7758_s29 + $0xfd0] sm:$0xff] }
  0x83   : > { %672 = vst [vmem:[%s7763_s30 + $0x7e0] sm:$0xff] %v671_v32  ;;  %v677_v35 = vld [vmem:[%s7758_s29 + $0xfd8] sm:$0xff]  ;;  %674 = vst [vmem:[%s7763_s30 + $0x7e8] sm:$0xff] %v673_v33  ;;  %v679_v36 = vld [vmem:[%s7758_s29 + $0x1008] sm:$0xff] }
  0x84   : > { %676 = vst [vmem:[%s7763_s30 + $0x7f0] sm:$0xff] %v675_v34  ;;  %678 = vst [vmem:[%s7763_s30 + $0x7f8] sm:$0xff] %v677_v35  ;;  %v681_v37 = vld [vmem:[%s7758_s29 + $0x1010] sm:$0xff]  ;;  %v683_v38 = vld [vmem:[%s7758_s29 + $0x1018] sm:$0xff] }
  0x85   : > { %680 = vst [vmem:[%s7763_s30 + $0x804] sm:$0xff] %v679_v36  ;;  %682 = vst [vmem:[%s7763_s30 + $0x80c] sm:$0xff] %v681_v37  ;;  %v685_v39 = vld [vmem:[%s7758_s29 + $0x1020] sm:$0xff]  ;;  %v687_v40 = vld [vmem:[%s7758_s29 + $0x1050] sm:$0xff] }
  0x86   : > { %684 = vst [vmem:[%s7763_s30 + $0x814] sm:$0xff] %v683_v38  ;;  %v689_v41 = vld [vmem:[%s7758_s29 + $0x1058] sm:$0xff]  ;;  %686 = vst [vmem:[%s7763_s30 + $0x81c] sm:$0xff] %v685_v39  ;;  %v691_v42 = vld [vmem:[%s7758_s29 + $0x1060] sm:$0xff] }
  0x87   : > { %688 = vst [vmem:[%s7763_s30 + $0x828] sm:$0xff] %v687_v40  ;;  %690 = vst [vmem:[%s7763_s30 + $0x830] sm:$0xff] %v689_v41  ;;  %v693_v43 = vld [vmem:[%s7758_s29 + $0x1068] sm:$0xff]  ;;  %v695_v44 = vld [vmem:[%s7758_s29 + $0x1098] sm:$0xff] }
  0x88   : > { %692 = vst [vmem:[%s7763_s30 + $0x838] sm:$0xff] %v691_v42  ;;  %694 = vst [vmem:[%s7763_s30 + $0x840] sm:$0xff] %v693_v43  ;;  %v697_v45 = vld [vmem:[%s7758_s29 + $0x10a0] sm:$0xff]  ;;  %v699_v46 = vld [vmem:[%s7758_s29 + $0x10a8] sm:$0xff] }
  0x89   : > { %696 = vst [vmem:[%s7763_s30 + $0x84c] sm:$0xff] %v695_v44  ;;  %v701_v47 = vld [vmem:[%s7758_s29 + $0x10b0] sm:$0xff]  ;;  %698 = vst [vmem:[%s7763_s30 + $0x854] sm:$0xff] %v697_v45  ;;  %v703_v48 = vld [vmem:[%s7758_s29 + $0x10e0] sm:$0xff] }
  0x8a   : > { %700 = vst [vmem:[%s7763_s30 + $0x85c] sm:$0xff] %v699_v46  ;;  %702 = vst [vmem:[%s7763_s30 + $0x864] sm:$0xff] %v701_v47  ;;  %v705_v49 = vld [vmem:[%s7758_s29 + $0x10e8] sm:$0xff]  ;;  %v707_v50 = vld [vmem:[%s7758_s29 + $0x10f0] sm:$0xff] }
  0x8b   : > { %704 = vst [vmem:[%s7763_s30 + $0x870] sm:$0xff] %v703_v48  ;;  %706 = vst [vmem:[%s7763_s30 + $0x878] sm:$0xff] %v705_v49  ;;  %v709_v51 = vld [vmem:[%s7758_s29 + $0x10f8] sm:$0xff]  ;;  %v711_v52 = vld [vmem:[%s7758_s29 + $0x1128] sm:$0xff] }
  0x8c   : > { %708 = vst [vmem:[%s7763_s30 + $0x880] sm:$0xff] %v707_v50  ;;  %v713_v53 = vld [vmem:[%s7758_s29 + $0x1130] sm:$0xff]  ;;  %710 = vst [vmem:[%s7763_s30 + $0x888] sm:$0xff] %v709_v51  ;;  %v715_v54 = vld [vmem:[%s7758_s29 + $0x1138] sm:$0xff] }
  0x8d   : > { %712 = vst [vmem:[%s7763_s30 + $0x894] sm:$0xff] %v711_v52  ;;  %714 = vst [vmem:[%s7763_s30 + $0x89c] sm:$0xff] %v713_v53  ;;  %v717_v55 = vld [vmem:[%s7758_s29 + $0x1140] sm:$0xff]  ;;  %v719_v56 = vld [vmem:[%s7758_s29 + $0x1170] sm:$0xff] }
  0x8e   : > { %716 = vst [vmem:[%s7763_s30 + $0x8a4] sm:$0xff] %v715_v54  ;;  %718 = vst [vmem:[%s7763_s30 + $0x8ac] sm:$0xff] %v717_v55  ;;  %v721_v57 = vld [vmem:[%s7758_s29 + $0x1178] sm:$0xff]  ;;  %v723_v58 = vld [vmem:[%s7758_s29 + $0x1180] sm:$0xff] }
  0x8f   : > { %720 = vst [vmem:[%s7763_s30 + $0x8b8] sm:$0xff] %v719_v56  ;;  %v725_v59 = vld [vmem:[%s7758_s29 + $0x1188] sm:$0xff]  ;;  %722 = vst [vmem:[%s7763_s30 + $0x8c0] sm:$0xff] %v721_v57  ;;  %v727_v60 = vld [vmem:[%s7758_s29 + $0x11b8] sm:$0xff] }
  0x90   : > { %724 = vst [vmem:[%s7763_s30 + $0x8c8] sm:$0xff] %v723_v58  ;;  %726 = vst [vmem:[%s7763_s30 + $0x8d0] sm:$0xff] %v725_v59  ;;  %v729_v61 = vld [vmem:[%s7758_s29 + $0x11c0] sm:$0xff]  ;;  %v731_v62 = vld [vmem:[%s7758_s29 + $0x11c8] sm:$0xff] }
  0x91   : > { %728 = vst [vmem:[%s7763_s30 + $0x8dc] sm:$0xff] %v727_v60  ;;  %730 = vst [vmem:[%s7763_s30 + $0x8e4] sm:$0xff] %v729_v61  ;;  %v733_v63 = vld [vmem:[%s7758_s29 + $0x11d0] sm:$0xff]  ;;  %v5826_v0 = vld [vmem:[%s7758_s29 + $0x20] sm:$0xf] }
  0x92   : > { %732 = vst [vmem:[%s7763_s30 + $0x8ec] sm:$0xff] %v731_v62  ;;  %v5828_v1 = vld [vmem:[%s7758_s29 + $0x68] sm:$0xf]  ;;  %734 = vst [vmem:[%s7763_s30 + $0x8f4] sm:$0xff] %v733_v63  ;;  %v5830_v2 = vld [vmem:[%s7758_s29 + $0xb0] sm:$0xf] }
  0x93   : > { %5827 = vst [vmem:[%s7763_s30 + $0x20] sm:$0xf] %v5826_v0  ;;  %5829 = vst [vmem:[%s7763_s30 + $0x44] sm:$0xf] %v5828_v1  ;;  %v5832_v3 = vld [vmem:[%s7758_s29 + $0xf8] sm:$0xf] }
  0x94   : > { %v5834_v4 = vld [vmem:[%s7758_s29 + $0x140] sm:$0xf]  ;;  %5831 = vst [vmem:[%s7763_s30 + $0x68] sm:$0xf] %v5830_v2  ;;  %5833 = vst [vmem:[%s7763_s30 + $0x8c] sm:$0xf] %v5832_v3 }
  0x95   : > { %5835 = vst [vmem:[%s7763_s30 + $0xb0] sm:$0xf] %v5834_v4  ;;  %v5836_v5 = vld [vmem:[%s7758_s29 + $0x188] sm:$0xf]  ;;  %v5838_v6 = vld [vmem:[%s7758_s29 + $0x1d0] sm:$0xf] }
  0x96   : > { %v5840_v7 = vld [vmem:[%s7758_s29 + $0x218] sm:$0xf]  ;;  %5837 = vst [vmem:[%s7763_s30 + $0xd4] sm:$0xf] %v5836_v5  ;;  %5839 = vst [vmem:[%s7763_s30 + $0xf8] sm:$0xf] %v5838_v6 }
  0x97   : > { %5841 = vst [vmem:[%s7763_s30 + $0x11c] sm:$0xf] %v5840_v7  ;;  %v5842_v8 = vld [vmem:[%s7758_s29 + $0x260] sm:$0xf]  ;;  %v5844_v9 = vld [vmem:[%s7758_s29 + $0x2a8] sm:$0xf] }
  0x98   : > { %v5846_v10 = vld [vmem:[%s7758_s29 + $0x2f0] sm:$0xf]  ;;  %5843 = vst [vmem:[%s7763_s30 + $0x140] sm:$0xf] %v5842_v8  ;;  %5845 = vst [vmem:[%s7763_s30 + $0x164] sm:$0xf] %v5844_v9 }
  0x99   : > { %5847 = vst [vmem:[%s7763_s30 + $0x188] sm:$0xf] %v5846_v10  ;;  %v5848_v11 = vld [vmem:[%s7758_s29 + $0x338] sm:$0xf]  ;;  %v5850_v12 = vld [vmem:[%s7758_s29 + $0x380] sm:$0xf] }
  0x9a   : > { %v5852_v13 = vld [vmem:[%s7758_s29 + $0x3c8] sm:$0xf]  ;;  %5849 = vst [vmem:[%s7763_s30 + $0x1ac] sm:$0xf] %v5848_v11  ;;  %5851 = vst [vmem:[%s7763_s30 + $0x1d0] sm:$0xf] %v5850_v12 }
  0x9b   : > { %5853 = vst [vmem:[%s7763_s30 + $0x1f4] sm:$0xf] %v5852_v13  ;;  %v5854_v14 = vld [vmem:[%s7758_s29 + $0x410] sm:$0xf]  ;;  %v5856_v15 = vld [vmem:[%s7758_s29 + $0x458] sm:$0xf] }
  0x9c   : > { %v5858_v16 = vld [vmem:[%s7758_s29 + $0x4a0] sm:$0xf]  ;;  %5855 = vst [vmem:[%s7763_s30 + $0x218] sm:$0xf] %v5854_v14  ;;  %5857 = vst [vmem:[%s7763_s30 + $0x23c] sm:$0xf] %v5856_v15 }
  0x9d   : > { %5859 = vst [vmem:[%s7763_s30 + $0x260] sm:$0xf] %v5858_v16  ;;  %v5860_v17 = vld [vmem:[%s7758_s29 + $0x4e8] sm:$0xf]  ;;  %v5862_v18 = vld [vmem:[%s7758_s29 + $0x530] sm:$0xf] }
  0x9e   : > { %v5864_v19 = vld [vmem:[%s7758_s29 + $0x578] sm:$0xf]  ;;  %5861 = vst [vmem:[%s7763_s30 + $0x284] sm:$0xf] %v5860_v17  ;;  %5863 = vst [vmem:[%s7763_s30 + $0x2a8] sm:$0xf] %v5862_v18 }
  0x9f   : > { %5865 = vst [vmem:[%s7763_s30 + $0x2cc] sm:$0xf] %v5864_v19  ;;  %v5866_v20 = vld [vmem:[%s7758_s29 + $0x5c0] sm:$0xf]  ;;  %v5868_v21 = vld [vmem:[%s7758_s29 + $0x608] sm:$0xf] }
  0xa0   : > { %v5870_v22 = vld [vmem:[%s7758_s29 + $0x650] sm:$0xf]  ;;  %5867 = vst [vmem:[%s7763_s30 + $0x2f0] sm:$0xf] %v5866_v20  ;;  %5869 = vst [vmem:[%s7763_s30 + $0x314] sm:$0xf] %v5868_v21 }
  0xa1   : > { %5871 = vst [vmem:[%s7763_s30 + $0x338] sm:$0xf] %v5870_v22  ;;  %v5872_v23 = vld [vmem:[%s7758_s29 + $0x698] sm:$0xf]  ;;  %v5874_v24 = vld [vmem:[%s7758_s29 + $0x6e0] sm:$0xf] }
  0xa2   : > { %v5876_v25 = vld [vmem:[%s7758_s29 + $0x728] sm:$0xf]  ;;  %5873 = vst [vmem:[%s7763_s30 + $0x35c] sm:$0xf] %v5872_v23  ;;  %5875 = vst [vmem:[%s7763_s30 + $0x380] sm:$0xf] %v5874_v24 }
  0xa3   : > { %5877 = vst [vmem:[%s7763_s30 + $0x3a4] sm:$0xf] %v5876_v25  ;;  %v5878_v26 = vld [vmem:[%s7758_s29 + $0x770] sm:$0xf]  ;;  %v5880_v27 = vld [vmem:[%s7758_s29 + $0x7b8] sm:$0xf] }
  0xa4   : > { %v5882_v28 = vld [vmem:[%s7758_s29 + $0x800] sm:$0xf]  ;;  %5879 = vst [vmem:[%s7763_s30 + $0x3c8] sm:$0xf] %v5878_v26  ;;  %5881 = vst [vmem:[%s7763_s30 + $0x3ec] sm:$0xf] %v5880_v27 }
  0xa5   : > { %5883 = vst [vmem:[%s7763_s30 + $0x410] sm:$0xf] %v5882_v28  ;;  %v5884_v29 = vld [vmem:[%s7758_s29 + $0x848] sm:$0xf]  ;;  %v5886_v30 = vld [vmem:[%s7758_s29 + $0x890] sm:$0xf] }
  0xa6   : > { %v5888_v31 = vld [vmem:[%s7758_s29 + $0x8d8] sm:$0xf]  ;;  %5885 = vst [vmem:[%s7763_s30 + $0x434] sm:$0xf] %v5884_v29  ;;  %5887 = vst [vmem:[%s7763_s30 + $0x458] sm:$0xf] %v5886_v30 }
  0xa7   : > { %5889 = vst [vmem:[%s7763_s30 + $0x47c] sm:$0xf] %v5888_v31  ;;  %v5890_v32 = vld [vmem:[%s7758_s29 + $0x920] sm:$0xf]  ;;  %v5892_v33 = vld [vmem:[%s7758_s29 + $0x968] sm:$0xf] }
  0xa8   : > { %v5894_v34 = vld [vmem:[%s7758_s29 + $0x9b0] sm:$0xf]  ;;  %5891 = vst [vmem:[%s7763_s30 + $0x4a0] sm:$0xf] %v5890_v32  ;;  %5893 = vst [vmem:[%s7763_s30 + $0x4c4] sm:$0xf] %v5892_v33 }
  0xa9   : > { %5895 = vst [vmem:[%s7763_s30 + $0x4e8] sm:$0xf] %v5894_v34  ;;  %v5896_v35 = vld [vmem:[%s7758_s29 + $0x9f8] sm:$0xf]  ;;  %v5898_v36 = vld [vmem:[%s7758_s29 + $0xa40] sm:$0xf] }
  0xaa   : > { %v5900_v37 = vld [vmem:[%s7758_s29 + $0xa88] sm:$0xf]  ;;  %5897 = vst [vmem:[%s7763_s30 + $0x50c] sm:$0xf] %v5896_v35  ;;  %5899 = vst [vmem:[%s7763_s30 + $0x530] sm:$0xf] %v5898_v36 }
  0xab   : > { %5901 = vst [vmem:[%s7763_s30 + $0x554] sm:$0xf] %v5900_v37  ;;  %v5902_v38 = vld [vmem:[%s7758_s29 + $0xad0] sm:$0xf]  ;;  %v5904_v39 = vld [vmem:[%s7758_s29 + $0xb18] sm:$0xf] }
  0xac   : > { %v5906_v40 = vld [vmem:[%s7758_s29 + $0xb60] sm:$0xf]  ;;  %5903 = vst [vmem:[%s7763_s30 + $0x578] sm:$0xf] %v5902_v38  ;;  %5905 = vst [vmem:[%s7763_s30 + $0x59c] sm:$0xf] %v5904_v39 }
  0xad   : > { %5907 = vst [vmem:[%s7763_s30 + $0x5c0] sm:$0xf] %v5906_v40  ;;  %v5908_v41 = vld [vmem:[%s7758_s29 + $0xba8] sm:$0xf]  ;;  %v5910_v42 = vld [vmem:[%s7758_s29 + $0xbf0] sm:$0xf] }
  0xae   : > { %v5912_v43 = vld [vmem:[%s7758_s29 + $0xc38] sm:$0xf]  ;;  %5909 = vst [vmem:[%s7763_s30 + $0x5e4] sm:$0xf] %v5908_v41  ;;  %5911 = vst [vmem:[%s7763_s30 + $0x608] sm:$0xf] %v5910_v42 }
  0xaf   : > { %5913 = vst [vmem:[%s7763_s30 + $0x62c] sm:$0xf] %v5912_v43  ;;  %v5914_v44 = vld [vmem:[%s7758_s29 + $0xc80] sm:$0xf]  ;;  %v5916_v45 = vld [vmem:[%s7758_s29 + $0xcc8] sm:$0xf] }
  0xb0   : > { %v5918_v46 = vld [vmem:[%s7758_s29 + $0xd10] sm:$0xf]  ;;  %5915 = vst [vmem:[%s7763_s30 + $0x650] sm:$0xf] %v5914_v44  ;;  %5917 = vst [vmem:[%s7763_s30 + $0x674] sm:$0xf] %v5916_v45 }
  0xb1   : > { %5919 = vst [vmem:[%s7763_s30 + $0x698] sm:$0xf] %v5918_v46  ;;  %v5920_v47 = vld [vmem:[%s7758_s29 + $0xd58] sm:$0xf]  ;;  %v5922_v48 = vld [vmem:[%s7758_s29 + $0xda0] sm:$0xf] }
  0xb2   : > { %v5924_v49 = vld [vmem:[%s7758_s29 + $0xde8] sm:$0xf]  ;;  %5921 = vst [vmem:[%s7763_s30 + $0x6bc] sm:$0xf] %v5920_v47  ;;  %5923 = vst [vmem:[%s7763_s30 + $0x6e0] sm:$0xf] %v5922_v48 }
  0xb3   : > { %5925 = vst [vmem:[%s7763_s30 + $0x704] sm:$0xf] %v5924_v49  ;;  %v5926_v50 = vld [vmem:[%s7758_s29 + $0xe30] sm:$0xf]  ;;  %v5928_v51 = vld [vmem:[%s7758_s29 + $0xe78] sm:$0xf] }
  0xb4   : > { %v5930_v52 = vld [vmem:[%s7758_s29 + $0xec0] sm:$0xf]  ;;  %5927 = vst [vmem:[%s7763_s30 + $0x728] sm:$0xf] %v5926_v50  ;;  %5929 = vst [vmem:[%s7763_s30 + $0x74c] sm:$0xf] %v5928_v51 }
  0xb5   : > { %5931 = vst [vmem:[%s7763_s30 + $0x770] sm:$0xf] %v5930_v52  ;;  %v5932_v53 = vld [vmem:[%s7758_s29 + $0xf08] sm:$0xf]  ;;  %v5934_v54 = vld [vmem:[%s7758_s29 + $0xf50] sm:$0xf] }
  0xb6   : > { %v5936_v55 = vld [vmem:[%s7758_s29 + $0xf98] sm:$0xf]  ;;  %5933 = vst [vmem:[%s7763_s30 + $0x794] sm:$0xf] %v5932_v53  ;;  %5935 = vst [vmem:[%s7763_s30 + $0x7b8] sm:$0xf] %v5934_v54 }
  0xb7   : > { %5937 = vst [vmem:[%s7763_s30 + $0x7dc] sm:$0xf] %v5936_v55  ;;  %v5938_v56 = vld [vmem:[%s7758_s29 + $0xfe0] sm:$0xf]  ;;  %v5940_v57 = vld [vmem:[%s7758_s29 + $0x1028] sm:$0xf] }
  0xb8   : > { %v5942_v58 = vld [vmem:[%s7758_s29 + $0x1070] sm:$0xf]  ;;  %5939 = vst [vmem:[%s7763_s30 + $0x800] sm:$0xf] %v5938_v56  ;;  %5941 = vst [vmem:[%s7763_s30 + $0x824] sm:$0xf] %v5940_v57 }
  0xb9   : > { %5943 = vst [vmem:[%s7763_s30 + $0x848] sm:$0xf] %v5942_v58  ;;  %v5944_v59 = vld [vmem:[%s7758_s29 + $0x10b8] sm:$0xf]  ;;  %v5946_v60 = vld [vmem:[%s7758_s29 + $0x1100] sm:$0xf] }
  0xba   : > { %v5948_v61 = vld [vmem:[%s7758_s29 + $0x1148] sm:$0xf]  ;;  %5945 = vst [vmem:[%s7763_s30 + $0x86c] sm:$0xf] %v5944_v59  ;;  %5947 = vst [vmem:[%s7763_s30 + $0x890] sm:$0xf] %v5946_v60 }
  0xbb   : > { %5949 = vst [vmem:[%s7763_s30 + $0x8b4] sm:$0xf] %v5948_v61  ;;  %v5950_v62 = vld [vmem:[%s7758_s29 + $0x1190] sm:$0xf]  ;;  %v5952_v63 = vld [vmem:[%s7758_s29 + $0x11d8] sm:$0xf] }
  0xbc   : > { %5951 = vst [vmem:[%s7763_s30 + $0x8d8] sm:$0xf] %v5950_v62  ;;  %5953 = vst [vmem:[%s7763_s30 + $0x8fc] sm:$0xf] %v5952_v63 }
  0xbd PF: > { %p5954_p6 = scmp.ge.s32.totalorder %s7686_s19, 1  ;;  %p886_p7 = scmp.lt.s32.totalorder %s7686_s19, 3 }
  0xbf   : > { %p887_p8 = pnand %p5954_p6, %p886_p7 }
  0xc1   : > { %890 = sbr.rel (%p887_p8) target bundleno = 1152 (0x480), region = 58 }
  0xc8   : > { %s893_s5 = sand.u32 1, %s7670_s15   ;;  %s937_s6 = smul.u32 144, %s7678_s17 }
  0xc9   : > { %s7117_s7 = smul.u32 2304, %s893_s5  ;;  %p5956_p10 = scmp.ne.s32.totalorder %s7678_s17, 0 }
  0xca   : > { %p938_p9 = scmp.lt.s32.totalorder %s937_s6, 287  ;;  %v7688_v0 = vmov (!%p5956_p10), 0.0  }
  0xcb   : > { %s8411_s12 = scalar_lea.vmem [#allocation3], %s7117_s7  ;;  %965 = sbr.rel (%p5956_p10) target bundleno = 235 (0xeb), region = 66  ;;  %966 = vst [vmem:[#allocation2] sm:$0xff] (!%p5956_p10), %v7688_v0  ;;  %967 = vst [vmem:[#allocation2 + $0x8] sm:$0xff] (!%p5956_p10), %v7688_v0 }
  0xcc   : > { %s9638_s6 = smov (!%p938_p9, %s937_s6), 287  ;;  %968 = vst [vmem:[#allocation2 + $0x10] sm:$0xff] (!%p5956_p10), %v7688_v0  ;;  %969 = vst [vmem:[#allocation2 + $0x18] sm:$0xff] (!%p5956_p10), %v7688_v0 }
  0xcd   : > { %s5955_s8 = sshll.u32 %s9638_s6, 2  ;;  %970 = vst [vmem:[#allocation2 + $0x20] sm:$0xff] (!%p5956_p10), %v7688_v0  ;;  %971 = vst [vmem:[#allocation2 + $0x28] sm:$0xff] (!%p5956_p10), %v7688_v0 }
  0xce   : > { %s8409_s11 = scalar_lea.vmem %s9591_s1, %s5955_s8  ;;  %972 = vst [vmem:[#allocation2 + $0x30] sm:$0xff] (!%p5956_p10), %v7688_v0  ;;  %973 = vst [vmem:[#allocation2 + $0x38] sm:$0xff] (!%p5956_p10), %v7688_v0 }
  0xcf   : > { %974 = vst [vmem:[#allocation2 + $0x40] sm:$0xff] (!%p5956_p10), %v7688_v0  ;;  %975 = vst [vmem:[#allocation2 + $0x48] sm:$0xff] (!%p5956_p10), %v7688_v0 }
  0xd0   : > { %976 = vst [vmem:[#allocation2 + $0x50] sm:$0xff] (!%p5956_p10), %v7688_v0  ;;  %977 = vst [vmem:[#allocation2 + $0x58] sm:$0xff] (!%p5956_p10), %v7688_v0 }
  0xd1   : > { %978 = vst [vmem:[#allocation2 + $0x60] sm:$0xff] (!%p5956_p10), %v7688_v0  ;;  %979 = vst [vmem:[#allocation2 + $0x68] sm:$0xff] (!%p5956_p10), %v7688_v0 }
  0xd2   : > { %980 = vst [vmem:[#allocation2 + $0x70] sm:$0xff] %v7688_v0  ;;  %981 = vst [vmem:[#allocation2 + $0x78] sm:$0xff] %v7688_v0 }
  0xd3   : > { %982 = vst [vmem:[#allocation2 + $0x80] sm:$0xff] %v7688_v0  ;;  %983 = vst [vmem:[#allocation2 + $0x88] sm:$0xff] %v7688_v0 }
  0xd4   : > { %984 = vst [vmem:[#allocation2 + $0x90] sm:$0xff] %v7688_v0  ;;  %985 = vst [vmem:[#allocation2 + $0x98] sm:$0xff] %v7688_v0 }
  0xd5   : > { %986 = vst [vmem:[#allocation2 + $0xa0] sm:$0xff] %v7688_v0  ;;  %987 = vst [vmem:[#allocation2 + $0xa8] sm:$0xff] %v7688_v0 }
  0xd6   : > { %988 = vst [vmem:[#allocation2 + $0xb0] sm:$0xff] %v7688_v0  ;;  %989 = vst [vmem:[#allocation2 + $0xb8] sm:$0xff] %v7688_v0 }
  0xd7   : > { %990 = vst [vmem:[#allocation2 + $0xc0] sm:$0xff] %v7688_v0  ;;  %991 = vst [vmem:[#allocation2 + $0xc8] sm:$0xff] %v7688_v0 }
  0xd8   : > { %992 = vst [vmem:[#allocation2 + $0xd0] sm:$0xff] %v7688_v0  ;;  %993 = vst [vmem:[#allocation2 + $0xd8] sm:$0xff] %v7688_v0 }
  0xd9   : > { %994 = vst [vmem:[#allocation2 + $0xe0] sm:$0xff] %v7688_v0  ;;  %995 = vst [vmem:[#allocation2 + $0xe8] sm:$0xff] %v7688_v0 }
  0xda   : > { %996 = vst [vmem:[#allocation2 + $0xf0] sm:$0xff] %v7688_v0  ;;  %997 = vst [vmem:[#allocation2 + $0xf8] sm:$0xff] %v7688_v0 }
  0xdb   : > { %998 = vst [vmem:[#allocation2 + $0x100] sm:$0xff] %v7688_v0  ;;  %999 = vst [vmem:[#allocation2 + $0x108] sm:$0xff] %v7688_v0 }
  0xdc   : > { %1000 = vst [vmem:[#allocation2 + $0x110] sm:$0xff] %v7688_v0  ;;  %1001 = vst [vmem:[#allocation2 + $0x118] sm:$0xff] %v7688_v0 }
  0xdd   : > { %1002 = vst [vmem:[#allocation2 + $0x120] sm:$0xff] %v7688_v0  ;;  %1003 = vst [vmem:[#allocation2 + $0x128] sm:$0xff] %v7688_v0 }
  0xde   : > { %1004 = vst [vmem:[#allocation2 + $0x130] sm:$0xff] %v7688_v0  ;;  %1005 = vst [vmem:[#allocation2 + $0x138] sm:$0xff] %v7688_v0 }
  0xdf   : > { %1006 = vst [vmem:[#allocation2 + $0x140] sm:$0xff] %v7688_v0  ;;  %1007 = vst [vmem:[#allocation2 + $0x148] sm:$0xff] %v7688_v0 }
  0xe0   : > { %1008 = vst [vmem:[#allocation2 + $0x150] sm:$0xff] %v7688_v0  ;;  %1009 = vst [vmem:[#allocation2 + $0x158] sm:$0xff] %v7688_v0 }
  0xe1   : > { %1010 = vst [vmem:[#allocation2 + $0x160] sm:$0xff] %v7688_v0  ;;  %1011 = vst [vmem:[#allocation2 + $0x168] sm:$0xff] %v7688_v0 }
  0xe2   : > { %1012 = vst [vmem:[#allocation2 + $0x170] sm:$0xff] %v7688_v0  ;;  %1013 = vst [vmem:[#allocation2 + $0x178] sm:$0xff] %v7688_v0 }
  0xe3   : > { %1014 = vst [vmem:[#allocation2 + $0x180] sm:$0xff] %v7688_v0  ;;  %1015 = vst [vmem:[#allocation2 + $0x188] sm:$0xff] %v7688_v0 }
  0xe4   : > { %1016 = vst [vmem:[#allocation2 + $0x190] sm:$0xff] %v7688_v0  ;;  %1017 = vst [vmem:[#allocation2 + $0x198] sm:$0xff] %v7688_v0 }
  0xe5   : > { %1018 = vst [vmem:[#allocation2 + $0x1a0] sm:$0xff] %v7688_v0  ;;  %1019 = vst [vmem:[#allocation2 + $0x1a8] sm:$0xff] %v7688_v0 }
  0xe6   : > { %1020 = vst [vmem:[#allocation2 + $0x1b0] sm:$0xff] %v7688_v0  ;;  %1021 = vst [vmem:[#allocation2 + $0x1b8] sm:$0xff] %v7688_v0 }
  0xe7   : > { %1022 = vst [vmem:[#allocation2 + $0x1c0] sm:$0xff] %v7688_v0  ;;  %1023 = vst [vmem:[#allocation2 + $0x1c8] sm:$0xff] %v7688_v0 }
  0xe8   : > { %1024 = vst [vmem:[#allocation2 + $0x1d0] sm:$0xff] %v7688_v0  ;;  %1025 = vst [vmem:[#allocation2 + $0x1d8] sm:$0xff] %v7688_v0 }
  0xe9   : > { %1026 = vst [vmem:[#allocation2 + $0x1e0] sm:$0xff] %v7688_v0  ;;  %1027 = vst [vmem:[#allocation2 + $0x1e8] sm:$0xff] %v7688_v0 }
  0xea   : > { %1028 = vst [vmem:[#allocation2 + $0x1f0] sm:$0xff] %v7688_v0  ;;  %1029 = vst [vmem:[#allocation2 + $0x1f8] sm:$0xff] %v7688_v0 }
  0xeb PF: > { %v7160_v1 = vld [vmem:[%s8409_s11] sm:$0xff]   ;;  %v7689_v2 = vmov 0   ;;  %v7162_v4 = vld [vmem:[%s8409_s11 + $0x8] sm:$0xff]   ;;  %v7164_v6 = vld [vmem:[%s8409_s11 + $0x10] sm:$0xff]   ;;  %p6317_p11 = scmp.ne.s32.totalorder %s7678_s17, 1 }
  0xec   : > { %3462 = vmatprep.subr.bf16.mxu1 %v7689_v2  ;;  %3751 = vmatprep.subr.bf16.mxu0 %v7689_v2  ;;  %v8482_v3 = vld [vmem:[%s8409_s11 + $0x80] sm:$0xff]   ;;  %v8488_v5 = vld [vmem:[%s8409_s11 + $0x88] sm:$0xff]   ;;  %v8495_v7 = vld [vmem:[%s8409_s11 + $0x90] sm:$0xff]  }
  0xed   : > { %3463 = vmatpush1.bf16.msra.mxu1 %v7160_v1  ;;  %3752 = vmatpush1.bf16.msra.mxu0 %v8482_v3  ;;  %v7166_v8 = vld [vmem:[%s8409_s11 + $0x18] sm:$0xff]   ;;  %v7168_v10 = vld [vmem:[%s8409_s11 + $0x20] sm:$0xff]   ;;  %v7170_v12 = vld [vmem:[%s8409_s11 + $0x28] sm:$0xff]  }
  0xee   : > { %3464 = vmatprep.subr.bf16.mxu1 %v7689_v2  ;;  %3753 = vmatprep.subr.bf16.mxu0 %v7689_v2  ;;  %v8502_v9 = vld [vmem:[%s8409_s11 + $0x98] sm:$0xff]   ;;  %v8509_v11 = vld [vmem:[%s8409_s11 + $0xa0] sm:$0xff]   ;;  %v8516_v13 = vld [vmem:[%s8409_s11 + $0xa8] sm:$0xff]  }
  0xef   : > { %v7172_v14 = vld [vmem:[%s8409_s11 + $0x30] sm:$0xff]   ;;  %v7174_v16 = vld [vmem:[%s8409_s11 + $0x38] sm:$0xff]   ;;  %v7176_v18 = vld [vmem:[%s8409_s11 + $0x40] sm:$0xff]  }
  0xf0   : > { %v8523_v15 = vld [vmem:[%s8409_s11 + $0xb0] sm:$0xff]   ;;  %v8530_v17 = vld [vmem:[%s8409_s11 + $0xb8] sm:$0xff]   ;;  %v8537_v19 = vld [vmem:[%s8409_s11 + $0xc0] sm:$0xff]  }
  0xf1   : > { %3465 = vmatpush1.bf16.msra.mxu1 %v7162_v4  ;;  %3754 = vmatpush1.bf16.msra.mxu0 %v8488_v5  ;;  %v7194_v20 = vld [vmem:[%s8411_s12 + $0x4] ss:$36 sps:$4 sm:$0xff]   ;;  %v7197_v22 = vld [vmem:[%s8411_s12 + $0xc] ss:$36 sps:$4 sm:$0xff]   ;;  %v7182_v26 = vld [vmem:[%s8409_s11 + $0x58] sm:$0xff]  }
  0xf2   : > { %3466 = vmatprep.subr.bf16.mxu1 %v7689_v2  ;;  %3755 = vmatprep.subr.bf16.mxu0 %v7689_v2  ;;  %v7178_v21 = vld [vmem:[%s8409_s11 + $0x48] sm:$0xff]   ;;  %v7180_v24 = vld [vmem:[%s8409_s11 + $0x50] sm:$0xff]   ;;  %v8560_v27 = vld [vmem:[%s8409_s11 + $0xd8] sm:$0xff]  }
  0xf3   : > { %v8546_v23 = vld [vmem:[%s8409_s11 + $0xc8] sm:$0xff]   ;;  %3494 = vmatprep.mubr.bf16.mxu1 %v7194_v20  ;;  %3783 = vmatprep.mubr.bf16.mxu0 %v7197_v22  ;;  %v8553_v25 = vld [vmem:[%s8409_s11 + $0xd0] sm:$0xff]   ;;  %v7184_v28 = vld [vmem:[%s8409_s11 + $0x60] sm:$0xff]  }
  0xf4   : > { %v8567_v29 = vld [vmem:[%s8409_s11 + $0xe0] sm:$0xff]   ;;  %v7186_v30 = vld [vmem:[%s8409_s11 + $0x68] sm:$0xff]   ;;  %v7188_v32 = vld [vmem:[%s8409_s11 + $0x70] sm:$0xff]  }
  0xf5   : > { %3467 = vmatpush1.bf16.msra.mxu1 %v7164_v6  ;;  %3756 = vmatpush1.bf16.msra.mxu0 %v8495_v7  ;;  %v8574_v31 = vld [vmem:[%s8409_s11 + $0xe8] sm:$0xff]   ;;  %v8581_v33 = vld [vmem:[%s8409_s11 + $0xf0] sm:$0xff]   ;;  %v7190_v34 = vld [vmem:[%s8409_s11 + $0x78] sm:$0xff]  }
  0xf6   : > { %3468 = vmatprep.subr.bf16.mxu1 %v7689_v2  ;;  %3757 = vmatprep.subr.bf16.mxu0 %v7689_v2  ;;  %v8588_v35 = vld [vmem:[%s8409_s11 + $0xf8] sm:$0xff]   ;;  %v7192_v36 = vld [vmem:[%s8411_s12] ss:$36 sps:$4 sm:$0xff]   ;;  %v7195_v37 = vld [vmem:[%s8411_s12 + $0x8] ss:$36 sps:$4 sm:$0xff]  }
  0xf7   : > { %v7198_v38 = vld [vmem:[%s8409_s11 + $0x100] sm:$0xff]   ;;  %v7200_v39 = vld [vmem:[%s8411_s12 + $0x4c] ss:$36 sps:$4 sm:$0xff]   ;;  %v7202_v40 = vld [vmem:[%s8411_s12 + $0x54] ss:$36 sps:$4 sm:$0xff]  }
  0xf8   : > { %v7199_v41 = vld [vmem:[%s8409_s11 + $0x108] sm:$0xff]   ;;  %v7205_v43 = vld [vmem:[%s8411_s12 + $0x50] ss:$36 sps:$4 sm:$0xff]   ;;  %v7210_v46 = vld [vmem:[%s8411_s12 + $0x9c] ss:$36 sps:$4 sm:$0xff]  }
  0xf9   : > { %3469 = vmatpush1.bf16.msra.mxu1 %v7166_v8  ;;  %3758 = vmatpush1.bf16.msra.mxu0 %v8502_v9  ;;  %v7204_v42 = vld [vmem:[%s8411_s12 + $0x48] ss:$36 sps:$4 sm:$0xff]   ;;  %v7208_v44 = vld [vmem:[%s8411_s12 + $0x94] ss:$36 sps:$4 sm:$0xff]   ;;  %v7214_v50 = vld [vmem:[%s8409_s11 + $0x120] sm:$0xff]  }
  0xfa   : > { %3470 = vmatprep.subr.bf16.mxu1 %v7689_v2  ;;  %3759 = vmatprep.subr.bf16.mxu0 %v7689_v2  ;;  %v7206_v45 = vld [vmem:[%s8409_s11 + $0x110] sm:$0xff]   ;;  %v7207_v47 = vld [vmem:[%s8409_s11 + $0x118] sm:$0xff]   ;;  %v7218_v52 = vld [vmem:[%s8411_s12 + $0xe4] ss:$36 sps:$4 sm:$0xff]  }
  0xfb   : > { %v7212_v48 = vld [vmem:[%s8411_s12 + $0x90] ss:$36 sps:$4 sm:$0xff]   ;;  %v7213_v49 = vld [vmem:[%s8411_s12 + $0x98] ss:$36 sps:$4 sm:$0xff]   ;;  %v7215_v53 = vld [vmem:[%s8409_s11 + $0x128] sm:$0xff]  }
  0xfc   : > { %v7216_v51 = vld [vmem:[%s8411_s12 + $0xdc] ss:$36 sps:$4 sm:$0xff]   ;;  %v7224_v56 = vld [vmem:[%s8411_s12 + $0x124] ss:$36 sps:$4 sm:$0xff]   ;;  %v7222_v57 = vld [vmem:[%s8409_s11 + $0x130] sm:$0xff]  }
  0xfd   : > { %3471 = vmatpush1.bf16.msra.mxu1 %v7168_v10  ;;  %3760 = vmatpush1.bf16.msra.mxu0 %v8509_v11  ;;  %v7220_v54 = vld [vmem:[%s8411_s12 + $0xd8] ss:$36 sps:$4 sm:$0xff]   ;;  %v7221_v55 = vld [vmem:[%s8411_s12 + $0xe0] ss:$36 sps:$4 sm:$0xff]   ;;  %v7226_v58 = vld [vmem:[%s8411_s12 + $0x12c] ss:$36 sps:$4 sm:$0xff]  }
  0xfe   : > { %3472 = vmatprep.subr.bf16.mxu1 %v7689_v2  ;;  %3761 = vmatprep.subr.bf16.mxu0 %v7689_v2  ;;  %v7223_v59 = vld [vmem:[%s8409_s11 + $0x138] sm:$0xff]   ;;  %v7228_v60 = vld [vmem:[%s8411_s12 + $0x120] ss:$36 sps:$4 sm:$0xff]   ;;  %v7229_v61 = vld [vmem:[%s8411_s12 + $0x128] ss:$36 sps:$4 sm:$0xff]  }
  0xff   : > { %v7230_v62 = vld [vmem:[%s8409_s11 + $0x140] sm:$0xff]   ;;  %v7232_v63 = vld [vmem:[%s8411_s12 + $0x16c] ss:$36 sps:$4 sm:$0xff]   ;;  %v7234_v0 = vld [vmem:[%s8411_s12 + $0x174] ss:$36 sps:$4 sm:$0xff]  }
 0x100   : > { %v7231_v1 = vld [vmem:[%s8409_s11 + $0x148] sm:$0xff]   ;;  %v7237_v4 = vld [vmem:[%s8411_s12 + $0x170] ss:$36 sps:$4 sm:$0xff]   ;;  %v7239_v8 = vld [vmem:[%s8409_s11 + $0x158] sm:$0xff]  }
 0x101   : > { %3473 = vmatpush1.bf16.msra.mxu1 %v7170_v12  ;;  %3762 = vmatpush1.bf16.msra.mxu0 %v8516_v13  ;;  %v7238_v6 = vld [vmem:[%s8409_s11 + $0x150] sm:$0xff]   ;;  %v7245_v10 = vld [vmem:[%s8411_s12 + $0x1b8] ss:$36 sps:$4 sm:$0xff]  }
 0x102   : > { %3474 = vmatprep.subr.bf16.mxu1 %v7689_v2  ;;  %3763 = vmatprep.subr.bf16.mxu0 %v7689_v2  ;;  %v7248_v12 = vld [vmem:[%s8411_s12 + $0x1fc] ss:$36 sps:$4 sm:$0xff]   ;;  %v7258_v22 = vld [vmem:[%s8411_s12 + $0x10] ss:$36 sps:$4 sm:$0xff]  }
 0x103   : > { %v7255_v20 = vld [vmem:[%s8409_s11 + $0x178] sm:$0xff]  }
 0x105   : > { %3475 = vmatpush1.bf16.msra.mxu1 %v7172_v14  ;;  %3764 = vmatpush1.bf16.msra.mxu0 %v8523_v15  ;;  %v7247_v14 = vld [vmem:[%s8409_s11 + $0x168] sm:$0xff]  }
 0x106   : > { %3476 = vmatprep.subr.bf16.mxu1 %v7689_v2  ;;  %3765 = vmatprep.subr.bf16.mxu0 %v7689_v2 }
 0x109   : > { %3477 = vmatpush1.bf16.msra.mxu1 %v7174_v16  ;;  %3766 = vmatpush1.bf16.msra.mxu0 %v8530_v17  ;;  %v7253_v16 = vld [vmem:[%s8411_s12 + $0x200] ss:$36 sps:$4 sm:$0xff]  }
 0x10a   : > { %3478 = vmatprep.subr.bf16.mxu1 %v7689_v2  ;;  %3767 = vmatprep.subr.bf16.mxu0 %v7689_v2 }
 0x10d   : > { %3479 = vmatpush1.bf16.msra.mxu1 %v7176_v18  ;;  %3768 = vmatpush1.bf16.msra.mxu0 %v8537_v19  ;;  %v7254_v18 = vld [vmem:[%s8409_s11 + $0x170] sm:$0xff]  }
 0x10e   : > { %3480 = vmatprep.subr.bf16.mxu1 %v7689_v2  ;;  %3769 = vmatprep.subr.bf16.mxu0 %v7689_v2 }
 0x111   : > { %3481 = vmatpush1.bf16.msra.mxu1 %v7178_v21  ;;  %3770 = vmatpush1.bf16.msra.mxu0 %v8546_v23  ;;  %v7261_v21 = vld [vmem:[%s8411_s12 + $0x240] ss:$36 sps:$4 sm:$0xff]  }
 0x112   : > { %3482 = vmatprep.subr.bf16.mxu1 %v7689_v2  ;;  %3771 = vmatprep.subr.bf16.mxu0 %v7689_v2 }
 0x115   : > { %3483 = vmatpush1.bf16.msra.mxu1 %v7180_v24  ;;  %3772 = vmatpush1.bf16.msra.mxu0 %v8553_v25  ;;  %v7262_v24 = vld [vmem:[%s8409_s11 + $0x180] sm:$0xff]  }
 0x116   : > { %3484 = vmatprep.subr.bf16.mxu1 %v7689_v2  ;;  %3773 = vmatprep.subr.bf16.mxu0 %v7689_v2 }
 0x119   : > { %3485 = vmatpush1.bf16.msra.mxu1 %v7182_v26  ;;  %3774 = vmatpush1.bf16.msra.mxu0 %v8560_v27  ;;  %v7267_v26 = vld [vmem:[%s8411_s12 + $0x288] ss:$36 sps:$4 sm:$0xff]  }
 0x11a   : > { %3486 = vmatprep.subr.bf16.mxu1 %v7689_v2  ;;  %3775 = vmatprep.subr.bf16.mxu0 %v7689_v2 }
 0x11d   : > { %3487 = vmatpush1.bf16.msra.mxu1 %v7184_v28  ;;  %3776 = vmatpush1.bf16.msra.mxu0 %v8567_v29  ;;  %v7268_v28 = vld [vmem:[%s8411_s12 + $0x58] ss:$36 sps:$4 sm:$0xff]  }
 0x11e   : > { %3488 = vmatprep.subr.bf16.mxu1 %v7689_v2  ;;  %3777 = vmatprep.subr.bf16.mxu0 %v7689_v2 }
 0x121   : > { %3489 = vmatpush1.bf16.msra.mxu1 %v7186_v30  ;;  %3778 = vmatpush1.bf16.msra.mxu0 %v8574_v31  ;;  %v7271_v30 = vld [vmem:[%s8411_s12 + $0xa4] ss:$36 sps:$4 sm:$0xff]  }
 0x122   : > { %3490 = vmatprep.subr.bf16.mxu1 %v7689_v2  ;;  %3779 = vmatprep.subr.bf16.mxu0 %v7689_v2 }
 0x125   : > { %3491 = vmatpush1.bf16.msra.mxu1 %v7188_v32  ;;  %3780 = vmatpush1.bf16.msra.mxu0 %v8581_v33  ;;  %v7273_v32 = vld [vmem:[%s8411_s12 + $0x2d0] ss:$36 sps:$4 sm:$0xff]  }
 0x126   : > { %3492 = vmatprep.subr.bf16.mxu1 %v7689_v2  ;;  %3781 = vmatprep.subr.bf16.mxu0 %v7689_v2 }
 0x129   : > { %3493 = vmatpush1.bf16.msra.mxu1 %v7190_v34  ;;  %3782 = vmatpush1.bf16.msra.mxu0 %v8588_v35  ;;  %v7274_v34 = vld [vmem:[%s8411_s12 + $0xa0] ss:$36 sps:$4 sm:$0xff]  }
 0x12a   : > { %6764 = vmatprep.subr.bf16.mxu1 %v7689_v2  ;;  %4040 = vmatprep.subr.bf16.mxu0 %v7689_v2 }
 0x12c   : > { %3495 = vmatmul.mubr.bf16.vlgmr.msra.gmra.mrb[0].mxu1 %v7192_v36  ;;  %3784 = vmatmul.mubr.bf16.vlgmr.msra.gmra.mrb[0].mxu0 %v7195_v37  ;;  %v7278_v36 = vld [vmem:[%s8411_s12 + $0xec] ss:$36 sps:$4 sm:$0xff]   ;;  %v7314_v37 = vld [vmem:[%s8409_s11 + $0x1a0] sm:$0xff]  }
 0x12d   : > { %6780 = vmatpush1.bf16.msra.mxu1 %v8482_v3  ;;  %4041 = vmatpush1.bf16.msra.mxu0 %v7198_v38  ;;  %v7236_v3 = vld [vmem:[%s8411_s12 + $0x168] ss:$36 sps:$4 sm:$0xff]  }
 0x12e   : > { %3502 = vmatprep.mubr.bf16.mxu1 %v7200_v39  ;;  %4042 = vmatprep.subr.bf16.mxu0 %v7689_v2  ;;  %v7327_v38 = vld [vmem:[%s8409_s11 + $0x1a8] sm:$0xff]   ;;  %v7280_v39 = vld [vmem:[%s8411_s12 + $0x318] ss:$36 sps:$4 sm:$0xff]  }
 0x12f   : > { %3791 = vmatprep.mubr.bf16.mxu0 %v7202_v40  ;;  %6765 = vmatprep.subr.bf16.mxu1 %v7689_v2  ;;  %v7281_v40 = vld [vmem:[%s8411_s12 + $0xe8] ss:$36 sps:$4 sm:$0xff]  }
 0x131   : > { %6781 = vmatpush1.bf16.msra.mxu1 %v8488_v5  ;;  %4043 = vmatpush1.bf16.msra.mxu0 %v7199_v41  ;;  %v7240_v5 = vld [vmem:[%s8411_s12 + $0x1b4] ss:$36 sps:$4 sm:$0xff]   ;;  %v7282_v41 = vld [vmem:[%s8411_s12 + $0x364] ss:$36 sps:$4 sm:$0xff]  }
 0x132   : > { %6766 = vmatprep.subr.bf16.mxu1 %v7689_v2  ;;  %4044 = vmatprep.subr.bf16.mxu0 %v7689_v2 }
 0x134   : > { %3503 = vmatmul.mubr.bf16.gmra.mrb[4].mxu1 %v7204_v42  ;;  %3792 = vmatmul.mubr.bf16.gmra.mrb[4].mxu0 %v7205_v43  ;;  %v7284_v42 = vld [vmem:[%s8411_s12 + $0x134] ss:$36 sps:$4 sm:$0xff]  }
 0x135   : > { %3510 = vmatprep.mubr.bf16.mxu1 %v7208_v44  ;;  %4045 = vmatpush1.bf16.msra.mxu0 %v7206_v45  ;;  %v7340_v43 = vld [vmem:[%s8409_s11 + $0x1b0] sm:$0xff]   ;;  %v7353_v44 = vld [vmem:[%s8409_s11 + $0x1b8] sm:$0xff]   ;;  %v7286_v45 = vld [vmem:[%s8411_s12 + $0x360] ss:$36 sps:$4 sm:$0xff]  }
 0x136   : > { %3799 = vmatprep.mubr.bf16.mxu0 %v7210_v46  ;;  %4046 = vmatprep.subr.bf16.mxu0 %v7689_v2  ;;  %v7287_v46 = vld [vmem:[%s8411_s12 + $0x130] ss:$36 sps:$4 sm:$0xff]  }
 0x137   : > { %6782 = vmatpush1.bf16.msra.mxu1 %v8495_v7  ;;  %v7242_v7 = vld [vmem:[%s8411_s12 + $0x1bc] ss:$36 sps:$4 sm:$0xff]  }
 0x138   : > { %6767 = vmatprep.subr.bf16.mxu1 %v7689_v2 }
 0x139   : > { %4047 = vmatpush1.bf16.msra.mxu0 %v7207_v47  ;;  %v7289_v47 = vld [vmem:[%s8411_s12 + $0x3ac] ss:$36 sps:$4 sm:$0xff]  }
 0x13a   : > { %4048 = vmatprep.subr.bf16.mxu0 %v7689_v2 }
 0x13b   : > { %6783 = vmatpush1.bf16.msra.mxu1 %v8502_v9  ;;  %v7244_v9 = vld [vmem:[%s8411_s12 + $0x1b0] ss:$36 sps:$4 sm:$0xff]  }
 0x13c   : > { %3511 = vmatmul.mubr.bf16.gmra.mrb[8].mxu1 %v7212_v48  ;;  %6768 = vmatprep.subr.bf16.mxu1 %v7689_v2  ;;  %v7291_v48 = vld [vmem:[%s8411_s12 + $0x17c] ss:$36 sps:$4 sm:$0xff]  }
 0x13d   : > { %3800 = vmatmul.mubr.bf16.gmra.mrb[8].mxu0 %v7213_v49  ;;  %3518 = vmatprep.mubr.bf16.mxu1 %v7216_v51  ;;  %v7366_v49 = vld [vmem:[%s8409_s11 + $0x1c0] sm:$0xff]   ;;  %v7293_v51 = vld [vmem:[%s8411_s12 + $0x3a8] ss:$36 sps:$4 sm:$0xff]  }
 0x13e   : > { %4049 = vmatpush1.bf16.msra.mxu0 %v7214_v50  ;;  %3807 = vmatprep.mubr.bf16.mxu0 %v7218_v52  ;;  %v7379_v50 = vld [vmem:[%s8409_s11 + $0x1c8] sm:$0xff]   ;;  %v7294_v52 = vld [vmem:[%s8411_s12 + $0x178] ss:$36 sps:$4 sm:$0xff]  }
 0x13f   : > { %4050 = vmatprep.subr.bf16.mxu0 %v7689_v2  ;;  %6784 = vmatpush1.bf16.msra.mxu1 %v8509_v11  ;;  %v7246_v11 = vld [vmem:[%s8409_s11 + $0x160] sm:$0xff]  }
 0x140   : > { %6769 = vmatprep.subr.bf16.mxu1 %v7689_v2 }
 0x142   : > { %4051 = vmatpush1.bf16.msra.mxu0 %v7215_v53  ;;  %v7295_v53 = vld [vmem:[%s8411_s12 + $0x3f4] ss:$36 sps:$4 sm:$0xff]  }
 0x143   : > { %4052 = vmatprep.subr.bf16.mxu0 %v7689_v2  ;;  %6785 = vmatpush1.bf16.msra.mxu1 %v8516_v13  ;;  %v7250_v13 = vld [vmem:[%s8411_s12 + $0x204] ss:$36 sps:$4 sm:$0xff]  }
 0x144   : > { %3519 = vmatmul.mubr.bf16.gmra.mrb[12].mxu1 %v7220_v54  ;;  %6770 = vmatprep.subr.bf16.mxu1 %v7689_v2  ;;  %v7297_v54 = vld [vmem:[%s8411_s12 + $0x1c4] ss:$36 sps:$4 sm:$0xff]  }
 0x145   : > { %3808 = vmatmul.mubr.bf16.gmra.mrb[12].mxu0 %v7221_v55  ;;  %3526 = vmatprep.mubr.bf16.mxu1 %v7224_v56  ;;  %v7392_v55 = vld [vmem:[%s8409_s11 + $0x1d0] sm:$0xff]  }
 0x146   : > { %4053 = vmatpush1.bf16.msra.mxu0 %v7222_v57  ;;  %3815 = vmatprep.mubr.bf16.mxu0 %v7226_v58  ;;  %v7299_v56 = vld [vmem:[%s8411_s12 + $0x3f0] ss:$36 sps:$4 sm:$0xff]   ;;  %v7300_v57 = vld [vmem:[%s8411_s12 + $0x1c0] ss:$36 sps:$4 sm:$0xff]  }
 0x147   : > { %4054 = vmatprep.subr.bf16.mxu0 %v7689_v2  ;;  %6786 = vmatpush1.bf16.msra.mxu1 %v8523_v15  ;;  %v7252_v15 = vld [vmem:[%s8411_s12 + $0x1f8] ss:$36 sps:$4 sm:$0xff]  }
 0x148   : > { %6771 = vmatprep.subr.bf16.mxu1 %v7689_v2  ;;  %v7302_v58 = vld [vmem:[%s8411_s12 + $0x43c] ss:$36 sps:$4 sm:$0xff]  }
 0x14a   : > { %4055 = vmatpush1.bf16.msra.mxu0 %v7223_v59  ;;  %v7304_v59 = vld [vmem:[%s8411_s12 + $0x20c] ss:$36 sps:$4 sm:$0xff]  }
 0x14b   : > { %4056 = vmatprep.subr.bf16.mxu0 %v7689_v2  ;;  %6787 = vmatpush1.bf16.msra.mxu1 %v8530_v17  ;;  %v7256_v17 = vld [vmem:[%s8411_s12 + $0x244] ss:$36 sps:$4 sm:$0xff]  }
 0x14c   : > { %3527 = vmatmul.mubr.bf16.gmra.mrb[16].mxu1 %v7228_v60  ;;  %6772 = vmatprep.subr.bf16.mxu1 %v7689_v2  ;;  %v7405_v60 = vld [vmem:[%s8409_s11 + $0x1d8] sm:$0xff]  }
 0x14d   : > { %3816 = vmatmul.mubr.bf16.gmra.mrb[16].mxu0 %v7229_v61  ;;  %3534 = vmatprep.mubr.bf16.mxu1 %v7232_v63  ;;  %v7306_v61 = vld [vmem:[%s8411_s12 + $0x438] ss:$36 sps:$4 sm:$0xff]   ;;  %v7308_v63 = vld [vmem:[%s8411_s12 + $0x484] ss:$36 sps:$4 sm:$0xff]  }
 0x14e   : > { %4057 = vmatpush1.bf16.msra.mxu0 %v7230_v62  ;;  %3823 = vmatprep.mubr.bf16.mxu0 %v7234_v0  ;;  %v7307_v62 = vld [vmem:[%s8411_s12 + $0x208] ss:$36 sps:$4 sm:$0xff]   ;;  %v7310_v0 = vld [vmem:[%s8411_s12 + $0x254] ss:$36 sps:$4 sm:$0xff]  }
 0x14f   : > { %4058 = vmatprep.subr.bf16.mxu0 %v7689_v2  ;;  %6788 = vmatpush1.bf16.msra.mxu1 %v8537_v19  ;;  %v7260_v19 = vld [vmem:[%s8411_s12 + $0x14] ss:$36 sps:$4 sm:$0xff]  }
 0x150   : > { %6773 = vmatprep.subr.bf16.mxu1 %v7689_v2 }
 0x152   : > { %4059 = vmatpush1.bf16.msra.mxu0 %v7231_v1  ;;  %v7312_v1 = vld [vmem:[%s8411_s12 + $0x480] ss:$36 sps:$4 sm:$0xff]  }
 0x153   : > { %4060 = vmatprep.subr.bf16.mxu0 %v7689_v2  ;;  %6789 = vmatpush1.bf16.msra.mxu1 %v8546_v23  ;;  %v7263_v23 = vld [vmem:[%s8411_s12 + $0x28c] ss:$36 sps:$4 sm:$0xff]  }
 0x154   : > { %3535 = vmatmul.mubr.bf16.gmra.mrb[20].mxu1 %v7236_v3  ;;  %6774 = vmatprep.subr.bf16.mxu1 %v7689_v2  ;;  %v7313_v3 = vld [vmem:[%s8411_s12 + $0x250] ss:$36 sps:$4 sm:$0xff]  }
 0x155   : > { %3824 = vmatmul.mubr.bf16.gmra.mrb[20].mxu0 %v7237_v4  ;;  %3542 = vmatprep.mubr.bf16.mxu1 %v7240_v5  ;;  %v7315_v4 = vld [vmem:[%s8411_s12 + $0x4cc] ss:$36 sps:$4 sm:$0xff]   ;;  %v7317_v5 = vld [vmem:[%s8411_s12 + $0x29c] ss:$36 sps:$4 sm:$0xff]  }
 0x156   : > { %4061 = vmatpush1.bf16.msra.mxu0 %v7238_v6  ;;  %3831 = vmatprep.mubr.bf16.mxu0 %v7242_v7  ;;  %v7418_v6 = vld [vmem:[%s8409_s11 + $0x1e0] sm:$0xff]  }
 0x157   : > { %4062 = vmatprep.subr.bf16.mxu0 %v7689_v2  ;;  %6790 = vmatpush1.bf16.msra.mxu1 %v8553_v25  ;;  %v7265_v25 = vld [vmem:[%s8411_s12 + $0x5c] ss:$36 sps:$4 sm:$0xff]  }
 0x158   : > { %6775 = vmatprep.subr.bf16.mxu1 %v7689_v2  ;;  %v8751_v7 = vld [vmem:[%s8409_s11 + $0x200] sm:$0xff]  }
 0x15a   : > { %4063 = vmatpush1.bf16.msra.mxu0 %v7239_v8  ;;  %v7319_v8 = vld [vmem:[%s8411_s12 + $0x4c8] ss:$36 sps:$4 sm:$0xff]  }
 0x15b   : > { %4064 = vmatprep.subr.bf16.mxu0 %v7689_v2  ;;  %6791 = vmatpush1.bf16.msra.mxu1 %v8560_v27  ;;  %v7275_v27 = vld [vmem:[%s8409_s11 + $0x188] sm:$0xff]  }
 0x15c   : > { %3543 = vmatmul.mubr.bf16.gmra.mrb[24].mxu1 %v7244_v9  ;;  %6776 = vmatprep.subr.bf16.mxu1 %v7689_v2  ;;  %v7320_v9 = vld [vmem:[%s8411_s12 + $0x298] ss:$36 sps:$4 sm:$0xff]  }
 0x15d   : > { %3832 = vmatmul.mubr.bf16.gmra.mrb[24].mxu0 %v7245_v10  ;;  %3550 = vmatprep.mubr.bf16.mxu1 %v7248_v12  ;;  %v7321_v10 = vld [vmem:[%s8411_s12 + $0x514] ss:$36 sps:$4 sm:$0xff]  }
 0x15e   : > { %4065 = vmatpush1.bf16.msra.mxu0 %v7246_v11  ;;  %3839 = vmatprep.mubr.bf16.mxu0 %v7250_v13  ;;  %v7323_v11 = vld [vmem:[%s8411_s12 + $0x2e4] ss:$36 sps:$4 sm:$0xff]   ;;  %v7325_v12 = vld [vmem:[%s8411_s12 + $0x510] ss:$36 sps:$4 sm:$0xff]  }
 0x15f   : > { %4066 = vmatprep.subr.bf16.mxu0 %v7689_v2  ;;  %6792 = vmatpush1.bf16.msra.mxu1 %v8567_v29  ;;  %v7269_v29 = vld [vmem:[%s8411_s12 + $0x2d4] ss:$36 sps:$4 sm:$0xff]   ;;  %v7326_v13 = vld [vmem:[%s8411_s12 + $0x2e0] ss:$36 sps:$4 sm:$0xff]  }
 0x160   : > { %6777 = vmatprep.subr.bf16.mxu1 %v7689_v2 }
 0x162   : > { %4067 = vmatpush1.bf16.msra.mxu0 %v7247_v14  ;;  %v7328_v14 = vld [vmem:[%s8411_s12 + $0x55c] ss:$36 sps:$4 sm:$0xff]  }
 0x163   : > { %4068 = vmatprep.subr.bf16.mxu0 %v7689_v2  ;;  %6793 = vmatpush1.bf16.msra.mxu1 %v8574_v31  ;;  %v7288_v31 = vld [vmem:[%s8409_s11 + $0x190] sm:$0xff]  }
 0x164   : > { %3551 = vmatmul.mubr.bf16.gmra.mrb[28].mxu1 %v7252_v15  ;;  %6778 = vmatprep.subr.bf16.mxu1 %v7689_v2  ;;  %v7330_v15 = vld [vmem:[%s8411_s12 + $0x32c] ss:$36 sps:$4 sm:$0xff]  }
 0x165   : > { %3840 = vmatmul.mubr.bf16.gmra.mrb[28].mxu0 %v7253_v16  ;;  %3558 = vmatprep.mubr.bf16.mxu1 %v7256_v17  ;;  %v7432_v16 = vld [vmem:[%s8409_s11 + $0x1e8] sm:$0xff]   ;;  %v7332_v17 = vld [vmem:[%s8411_s12 + $0x558] ss:$36 sps:$4 sm:$0xff]  }
 0x166   : > { %4069 = vmatpush1.bf16.msra.mxu0 %v7254_v18  ;;  %4072 = vmatprep.mubr.bf16.mxu0 %v7260_v19  ;;  %v7333_v18 = vld [vmem:[%s8411_s12 + $0x328] ss:$36 sps:$4 sm:$0xff]  }
 0x167   : > { %4070 = vmatprep.subr.bf16.mxu0 %v7689_v2  ;;  %6794 = vmatpush1.bf16.msra.mxu1 %v8581_v33  ;;  %v7301_v33 = vld [vmem:[%s8409_s11 + $0x198] sm:$0xff]   ;;  %v7334_v19 = vld [vmem:[%s8411_s12 + $0x5a4] ss:$36 sps:$4 sm:$0xff]  }
 0x168   : > { %6779 = vmatprep.subr.bf16.mxu1 %v7689_v2 }
 0x16a   : > { %4071 = vmatpush1.bf16.msra.mxu0 %v7255_v20  ;;  %v7336_v20 = vld [vmem:[%s8411_s12 + $0x374] ss:$36 sps:$4 sm:$0xff]  }
 0x16b   : > { %4329 = vmatprep.subr.bf16.mxu0 %v7689_v2  ;;  %6795 = vmatpush1.bf16.msra.mxu1 %v8588_v35  ;;  %v7276_v35 = vld [vmem:[%s8411_s12 + $0x31c] ss:$36 sps:$4 sm:$0xff]  }
 0x16c   : > { %3559 = vmatmul.mubr.bf16.gmra.mrb[32].mxu1 %v7261_v21  ;;  %6684 = vmatprep.subr.bf16.mxu1 %v8751_v7  ;;  %v7338_v21 = vld [vmem:[%s8411_s12 + $0x5a0] ss:$36 sps:$4 sm:$0xff]  }
 0x16d   : > { %4073 = vmatmul.mubr.bf16.vlgmr.msra.gmra.mrb[0].mxu0 %v7258_v22  ;;  %3566 = vmatprep.mubr.bf16.mxu1 %v7263_v23  ;;  %v7339_v22 = vld [vmem:[%s8411_s12 + $0x370] ss:$36 sps:$4 sm:$0xff]  }
 0x16e   : > { %4330 = vmatpush1.bf16.msra.mxu0 %v7262_v24  ;;  %4080 = vmatprep.mubr.bf16.mxu0 %v7265_v25  ;;  %v7341_v23 = vld [vmem:[%s8411_s12 + $0x5ec] ss:$36 sps:$4 sm:$0xff]   ;;  %v7343_v24 = vld [vmem:[%s8411_s12 + $0x3bc] ss:$36 sps:$4 sm:$0xff]  }
 0x16f   : > { %4331 = vmatprep.subr.bf16.mxu0 %v7689_v2  ;;  %v7446_v25 = vld [vmem:[%s8409_s11 + $0x1f0] sm:$0xff]  }
 0x172   : > { %4332 = vmatpush1.bf16.msra.mxu0 %v7275_v27  ;;  %v7346_v27 = vld [vmem:[%s8411_s12 + $0x3b8] ss:$36 sps:$4 sm:$0xff]  }
 0x173   : > { %4333 = vmatprep.subr.bf16.mxu0 %v7689_v2 }
 0x174   : > { %3567 = vmatmul.mubr.bf16.gmra.mrb[36].mxu1 %v7267_v26  ;;  %v7345_v26 = vld [vmem:[%s8411_s12 + $0x5e8] ss:$36 sps:$4 sm:$0xff]  }
 0x175   : > { %4081 = vmatmul.mubr.bf16.gmra.mrb[4].mxu0 %v7268_v28  ;;  %3574 = vmatprep.mubr.bf16.mxu1 %v7269_v29  ;;  %v7347_v28 = vld [vmem:[%s8411_s12 + $0x634] ss:$36 sps:$4 sm:$0xff]   ;;  %v7349_v29 = vld [vmem:[%s8411_s12 + $0x404] ss:$36 sps:$4 sm:$0xff]  }
 0x176   : > { %4088 = vmatprep.mubr.bf16.mxu0 %v7271_v30  ;;  %4334 = vmatpush1.bf16.msra.mxu0 %v7288_v31  ;;  %v7351_v30 = vld [vmem:[%s8411_s12 + $0x630] ss:$36 sps:$4 sm:$0xff]   ;;  %v7352_v31 = vld [vmem:[%s8411_s12 + $0x400] ss:$36 sps:$4 sm:$0xff]  }
 0x177   : > { %4335 = vmatprep.subr.bf16.mxu0 %v7689_v2 }
 0x17a   : > { %4336 = vmatpush1.bf16.msra.mxu0 %v7301_v33  ;;  %v7356_v33 = vld [vmem:[%s8411_s12 + $0x44c] ss:$36 sps:$4 sm:$0xff]  }
 0x17b   : > { %4337 = vmatprep.subr.bf16.mxu0 %v7689_v2 }
 0x17c   : > { %3575 = vmatmul.mubr.bf16.gmra.mrb[40].mxu1 %v7273_v32  ;;  %v7354_v32 = vld [vmem:[%s8411_s12 + $0x67c] ss:$36 sps:$4 sm:$0xff]  }
 0x17d   : > { %4089 = vmatmul.mubr.bf16.gmra.mrb[8].mxu0 %v7274_v34  ;;  %3582 = vmatprep.mubr.bf16.mxu1 %v7276_v35  ;;  %v7358_v34 = vld [vmem:[%s8411_s12 + $0x678] ss:$36 sps:$4 sm:$0xff]   ;;  %v7359_v35 = vld [vmem:[%s8411_s12 + $0x448] ss:$36 sps:$4 sm:$0xff]  }
 0x17e   : > { %4096 = vmatprep.mubr.bf16.mxu0 %v7278_v36  ;;  %4338 = vmatpush1.bf16.msra.mxu0 %v7314_v37  ;;  %v7360_v36 = vld [vmem:[%s8411_s12 + $0x6c4] ss:$36 sps:$4 sm:$0xff]   ;;  %v7362_v37 = vld [vmem:[%s8411_s12 + $0x494] ss:$36 sps:$4 sm:$0xff]  }
 0x17f   : > { %4339 = vmatprep.subr.bf16.mxu0 %v7689_v2 }
 0x182   : > { %4340 = vmatpush1.bf16.msra.mxu0 %v7327_v38  ;;  %v7364_v38 = vld [vmem:[%s8411_s12 + $0x6c0] ss:$36 sps:$4 sm:$0xff]  }
 0x183   : > { %4341 = vmatprep.subr.bf16.mxu0 %v7689_v2 }
 0x184   : > { %3583 = vmatmul.mubr.bf16.gmra.mrb[44].mxu1 %v7280_v39  ;;  %v7365_v39 = vld [vmem:[%s8411_s12 + $0x490] ss:$36 sps:$4 sm:$0xff]  }
 0x185   : > { %4097 = vmatmul.mubr.bf16.gmra.mrb[12].mxu0 %v7281_v40  ;;  %3590 = vmatprep.mubr.bf16.mxu1 %v7282_v41  ;;  %v7367_v40 = vld [vmem:[%s8411_s12 + $0x70c] ss:$36 sps:$4 sm:$0xff]   ;;  %v7369_v41 = vld [vmem:[%s8411_s12 + $0x4dc] ss:$36 sps:$4 sm:$0xff]  }
 0x186   : > { %4104 = vmatprep.mubr.bf16.mxu0 %v7284_v42  ;;  %4342 = vmatpush1.bf16.msra.mxu0 %v7340_v43  ;;  %v7371_v42 = vld [vmem:[%s8411_s12 + $0x708] ss:$36 sps:$4 sm:$0xff]   ;;  %v7372_v43 = vld [vmem:[%s8411_s12 + $0x4d8] ss:$36 sps:$4 sm:$0xff]  }
 0x187   : > { %4343 = vmatprep.subr.bf16.mxu0 %v7689_v2 }
 0x18a   : > { %4344 = vmatpush1.bf16.msra.mxu0 %v7353_v44  ;;  %v7373_v44 = vld [vmem:[%s8411_s12 + $0x754] ss:$36 sps:$4 sm:$0xff]  }
 0x18b   : > { %4345 = vmatprep.subr.bf16.mxu0 %v7689_v2 }
 0x18c   : > { %3591 = vmatmul.mubr.bf16.gmra.mrb[48].mxu1 %v7286_v45  ;;  %v7375_v45 = vld [vmem:[%s8411_s12 + $0x524] ss:$36 sps:$4 sm:$0xff]  }
 0x18d   : > { %4105 = vmatmul.mubr.bf16.gmra.mrb[16].mxu0 %v7287_v46  ;;  %3598 = vmatprep.mubr.bf16.mxu1 %v7289_v47  ;;  %v7377_v46 = vld [vmem:[%s8411_s12 + $0x750] ss:$36 sps:$4 sm:$0xff]   ;;  %v7378_v47 = vld [vmem:[%s8411_s12 + $0x520] ss:$36 sps:$4 sm:$0xff]  }
 0x18e   : > { %4112 = vmatprep.mubr.bf16.mxu0 %v7291_v48  ;;  %4346 = vmatpush1.bf16.msra.mxu0 %v7366_v49  ;;  %v7380_v48 = vld [vmem:[%s8411_s12 + $0x79c] ss:$36 sps:$4 sm:$0xff]   ;;  %v7382_v49 = vld [vmem:[%s8411_s12 + $0x56c] ss:$36 sps:$4 sm:$0xff]  }
 0x18f   : > { %4347 = vmatprep.subr.bf16.mxu0 %v7689_v2 }
 0x192   : > { %4348 = vmatpush1.bf16.msra.mxu0 %v7379_v50 }
 0x193   : > { %4349 = vmatprep.subr.bf16.mxu0 %v7689_v2 }
 0x194   : > { %3599 = vmatmul.mubr.bf16.gmra.mrb[52].mxu1 %v7293_v51 }
 0x195   : > { %4113 = vmatmul.mubr.bf16.gmra.mrb[20].mxu0 %v7294_v52  ;;  %3606 = vmatprep.mubr.bf16.mxu1 %v7295_v53  ;;  %v7384_v52 = vld [vmem:[%s8411_s12 + $0x798] ss:$36 sps:$4 sm:$0xff]  }
 0x196   : > { %4120 = vmatprep.mubr.bf16.mxu0 %v7297_v54  ;;  %4350 = vmatpush1.bf16.msra.mxu0 %v7392_v55  ;;  %v7385_v54 = vld [vmem:[%s8411_s12 + $0x568] ss:$36 sps:$4 sm:$0xff]  }
 0x197   : > { %4351 = vmatprep.subr.bf16.mxu0 %v7689_v2  ;;  %v7386_v55 = vld [vmem:[%s8411_s12 + $0x7e4] ss:$36 sps:$4 sm:$0xff]  }
 0x19a   : > { %4352 = vmatpush1.bf16.msra.mxu0 %v7405_v60  ;;  %v7390_v60 = vld [vmem:[%s8411_s12 + $0x7e0] ss:$36 sps:$4 sm:$0xff]  }
 0x19b   : > { %4353 = vmatprep.subr.bf16.mxu0 %v7689_v2 }
 0x19c   : > { %3607 = vmatmul.mubr.bf16.gmra.mrb[56].mxu1 %v7299_v56 }
 0x19d   : > { %4121 = vmatmul.mubr.bf16.gmra.mrb[24].mxu0 %v7300_v57  ;;  %3614 = vmatprep.mubr.bf16.mxu1 %v7302_v58  ;;  %v7388_v57 = vld [vmem:[%s8411_s12 + $0x5b4] ss:$36 sps:$4 sm:$0xff]  }
 0x19e   : > { %4128 = vmatprep.mubr.bf16.mxu0 %v7304_v59  ;;  %4354 = vmatpush1.bf16.msra.mxu0 %v7418_v6 }
 0x19f   : > { %4355 = vmatprep.subr.bf16.mxu0 %v7689_v2 }
 0x1a2   : > { %4356 = vmatpush1.bf16.msra.mxu0 %v7432_v16  ;;  %v7404_v16 = vld [vmem:[%s8411_s12 + $0x640] ss:$36 sps:$4 sm:$0xff]  }
 0x1a3   : > { %4357 = vmatprep.subr.bf16.mxu0 %v7689_v2 }
 0x1a4   : > { %3615 = vmatmul.mubr.bf16.gmra.mrb[60].mxu1 %v7306_v61 }
 0x1a5   : > { %4129 = vmatmul.mubr.bf16.gmra.mrb[28].mxu0 %v7307_v62  ;;  %3622 = vmatprep.mubr.bf16.mxu1 %v7308_v63  ;;  %v7391_v62 = vld [vmem:[%s8411_s12 + $0x5b0] ss:$36 sps:$4 sm:$0xff]  }
 0x1a6   : > { %4136 = vmatprep.mubr.bf16.mxu0 %v7310_v0  ;;  %4358 = vmatpush1.bf16.msra.mxu0 %v7446_v25  ;;  %v7393_v63 = vld [vmem:[%s8411_s12 + $0x82c] ss:$36 sps:$4 sm:$0xff]  }
 0x1a7   : > { %4359 = vmatprep.subr.bf16.mxu0 %v7689_v2  ;;  %v7459_v2 = vld [vmem:[%s8409_s11 + $0x1f8] sm:$0xff]   ;;  %v7414_v25 = vld [vmem:[%s8411_s12 + $0x24c] ss:$36 sps:$4 sm:$0xff]  }
 0x1aa   : > { %4360 = vmatpush1.bf16.msra.mxu0 %v7459_v2  ;;  %v7420_v2 = vld [vmem:[%s8411_s12 + $0x294] ss:$36 sps:$4 sm:$0xff]  }
 0x1ac   : > { %3623 = vmatmul.mubr.bf16.gmra.mrb[64].mxu1 %v7312_v1  ;;  %v7395_v1 = vld [vmem:[%s8411_s12 + $0x5fc] ss:$36 sps:$4 sm:$0xff]  }
 0x1ad   : > { %4137 = vmatmul.mubr.bf16.gmra.mrb[32].mxu0 %v7313_v3  ;;  %3630 = vmatprep.mubr.bf16.mxu1 %v7315_v4 }
 0x1ae   : > { %4144 = vmatprep.mubr.bf16.mxu0 %v7317_v5  ;;  %v7397_v5 = vld [vmem:[%s8411_s12 + $0x828] ss:$36 sps:$4 sm:$0xff]  }
 0x1b4   : > { %3631 = vmatmul.mubr.bf16.gmra.mrb[68].mxu1 %v7319_v8  ;;  %v7398_v8 = vld [vmem:[%s8411_s12 + $0x5f8] ss:$36 sps:$4 sm:$0xff]  }
 0x1b5   : > { %4145 = vmatmul.mubr.bf16.gmra.mrb[36].mxu0 %v7320_v9  ;;  %3638 = vmatprep.mubr.bf16.mxu1 %v7321_v10  ;;  %v7399_v9 = vld [vmem:[%s8411_s12 + $0x874] ss:$36 sps:$4 sm:$0xff]  }
 0x1b6   : > { %4152 = vmatprep.mubr.bf16.mxu0 %v7323_v11  ;;  %v7401_v11 = vld [vmem:[%s8411_s12 + $0x644] ss:$36 sps:$4 sm:$0xff]  }
 0x1bc   : > { %3639 = vmatmul.mubr.bf16.gmra.mrb[72].mxu1 %v7325_v12 }
 0x1bd   : > { %4153 = vmatmul.mubr.bf16.gmra.mrb[40].mxu0 %v7326_v13  ;;  %3646 = vmatprep.mubr.bf16.mxu1 %v7328_v14  ;;  %v7403_v14 = vld [vmem:[%s8411_s12 + $0x870] ss:$36 sps:$4 sm:$0xff]  }
 0x1be   : > { %4160 = vmatprep.mubr.bf16.mxu0 %v7330_v15 }
 0x1c4   : > { %3647 = vmatmul.mubr.bf16.gmra.mrb[76].mxu1 %v7332_v17  ;;  %v7406_v17 = vld [vmem:[%s8411_s12 + $0x8bc] ss:$36 sps:$4 sm:$0xff]  }
 0x1c5   : > { %4161 = vmatmul.mubr.bf16.gmra.mrb[44].mxu0 %v7333_v18  ;;  %3654 = vmatprep.mubr.bf16.mxu1 %v7334_v19  ;;  %v7408_v19 = vld [vmem:[%s8411_s12 + $0x68c] ss:$36 sps:$4 sm:$0xff]  }
 0x1c6   : > { %4168 = vmatprep.mubr.bf16.mxu0 %v7336_v20 }
 0x1cc   : > { %3655 = vmatmul.mubr.bf16.gmra.mrb[80].mxu1 %v7338_v21 }
 0x1cd   : > { %4169 = vmatmul.mubr.bf16.gmra.mrb[48].mxu0 %v7339_v22  ;;  %3662 = vmatprep.mubr.bf16.mxu1 %v7341_v23  ;;  %v7410_v22 = vld [vmem:[%s8411_s12 + $0x8b8] ss:$36 sps:$4 sm:$0xff]  }
 0x1ce   : > { %4176 = vmatprep.mubr.bf16.mxu0 %v7343_v24  ;;  %v7411_v24 = vld [vmem:[%s8411_s12 + $0x688] ss:$36 sps:$4 sm:$0xff]  }
 0x1d4   : > { %3663 = vmatmul.mubr.bf16.gmra.mrb[84].mxu1 %v7345_v26 }
 0x1d5   : > { %4177 = vmatmul.mubr.bf16.gmra.mrb[52].mxu0 %v7346_v27  ;;  %3670 = vmatprep.mubr.bf16.mxu1 %v7347_v28  ;;  %v7415_v27 = vld [vmem:[%s8411_s12 + $0x6d4] ss:$36 sps:$4 sm:$0xff]  }
 0x1d6   : > { %4184 = vmatprep.mubr.bf16.mxu0 %v7349_v29 }
 0x1dc   : > { %3671 = vmatmul.mubr.bf16.gmra.mrb[88].mxu1 %v7351_v30  ;;  %v7412_v30 = vld [vmem:[%s8411_s12 + $0x248] ss:$36 sps:$4 sm:$0xff]  }
 0x1dd   : > { %4185 = vmatmul.mubr.bf16.gmra.mrb[56].mxu0 %v7352_v31  ;;  %3678 = vmatprep.mubr.bf16.mxu1 %v7354_v32  ;;  %v7417_v32 = vld [vmem:[%s8411_s12 + $0x6d0] ss:$36 sps:$4 sm:$0xff]  }
 0x1de   : > { %4192 = vmatprep.mubr.bf16.mxu0 %v7356_v33 }
 0x1e4   : > { %3679 = vmatmul.mubr.bf16.gmra.mrb[92].mxu1 %v7358_v34  ;;  %v7422_v34 = vld [vmem:[%s8411_s12 + $0x71c] ss:$36 sps:$4 sm:$0xff]  }
 0x1e5   : > { %4193 = vmatmul.mubr.bf16.gmra.mrb[60].mxu0 %v7359_v35  ;;  %3686 = vmatprep.mubr.bf16.mxu1 %v7360_v36  ;;  %v7439_v35 = vld [vmem:[%s8409_s11 + $0x208] sm:$0xff]   ;;  %v7460_v36 = vld [vmem:[%s8409_s11 + $0x210] sm:$0xff]  }
 0x1e6   : > { %4200 = vmatprep.mubr.bf16.mxu0 %v7362_v37 }
 0x1ec   : > { %3687 = vmatmul.mubr.bf16.gmra.mrb[96].mxu1 %v7364_v38 }
 0x1ed   : > { %4201 = vmatmul.mubr.bf16.gmra.mrb[64].mxu0 %v7365_v39  ;;  %3694 = vmatprep.mubr.bf16.mxu1 %v7367_v40  ;;  %v7424_v39 = vld [vmem:[%s8411_s12 + $0x290] ss:$36 sps:$4 sm:$0xff]  }
 0x1ee   : > { %4208 = vmatprep.mubr.bf16.mxu0 %v7369_v41  ;;  %v7425_v41 = vld [vmem:[%s8411_s12 + $0x718] ss:$36 sps:$4 sm:$0xff]  }
 0x1f4   : > { %3695 = vmatmul.mubr.bf16.gmra.mrb[100].mxu1 %v7371_v42  ;;  %v7426_v42 = vld [vmem:[%s8411_s12 + $0x2dc] ss:$36 sps:$4 sm:$0xff]  }
 0x1f5   : > { %4209 = vmatmul.mubr.bf16.gmra.mrb[68].mxu0 %v7372_v43  ;;  %3702 = vmatprep.mubr.bf16.mxu1 %v7373_v44  ;;  %v7428_v44 = vld [vmem:[%s8411_s12 + $0x764] ss:$36 sps:$4 sm:$0xff]  }
 0x1f6   : > { %4216 = vmatprep.mubr.bf16.mxu0 %v7375_v45 }
 0x1fc   : > { %3703 = vmatmul.mubr.bf16.gmra.mrb[104].mxu1 %v7377_v46  ;;  %v7498_v46 = vld [vmem:[%s8409_s11 + $0x220] sm:$0xff]  }
 0x1fd   : > { %4217 = vmatmul.mubr.bf16.gmra.mrb[72].mxu0 %v7378_v47  ;;  %3710 = vmatprep.mubr.bf16.mxu1 %v7380_v48  ;;  %v7430_v48 = vld [vmem:[%s8411_s12 + $0x2d8] ss:$36 sps:$4 sm:$0xff]  }
 0x1fe   : > { %4224 = vmatprep.mubr.bf16.mxu0 %v7382_v49 }
 0x1ff   : > { %v8800_v50 = vpop.f32.mrb[0].mxu1 }
 0x200   : > { %v3498_v51 = vpop.f32.mrb[1].mxu1 }
 0x201   : > { %v8803_v53 = vpop.f32.mrb[2].mxu1  ;;  %v7431_v51 = vld [vmem:[%s8411_s12 + $0x760] ss:$36 sps:$4 sm:$0xff]  }
 0x202   : > { %v3501_v56 = vpop.f32.mrb[3].mxu1 }
 0x203   : > { %v7517_v56 = vld [vmem:[%s8409_s11 + $0x228] sm:$0xff]  }
 0x204   : > { %3711 = vmatmul.mubr.bf16.gmra.mrb[108].mxu1 %v7384_v52  ;;  %v7433_v52 = vld [vmem:[%s8411_s12 + $0x324] ss:$36 sps:$4 sm:$0xff]  }
 0x205   : > { %4225 = vmatmul.mubr.bf16.gmra.mrb[76].mxu0 %v7385_v54  ;;  %3718 = vmatprep.mubr.bf16.mxu1 %v7386_v55  ;;  %v7435_v55 = vld [vmem:[%s8411_s12 + $0x7ac] ss:$36 sps:$4 sm:$0xff]  }
 0x206   : > { %4232 = vmatprep.mubr.bf16.mxu0 %v7388_v57  ;;  %v7536_v57 = vld [vmem:[%s8409_s11 + $0x230] sm:$0xff]  }
 0x207   : > { %v8808_v58 = vpop.f32.mrb[4].mxu1 }
 0x208   : > { %v3506_v59 = vpop.f32.mrb[5].mxu1 }
 0x209   : > { %v8811_v61 = vpop.f32.mrb[6].mxu1  ;;  %v7437_v59 = vld [vmem:[%s8411_s12 + $0x320] ss:$36 sps:$4 sm:$0xff]  }
 0x20a   : > { %v3509_v0 = vpop.f32.mrb[7].mxu1 }
 0x20b   : > { %v7444_v0 = vld [vmem:[%s8411_s12 + $0x368] ss:$36 sps:$4 sm:$0xff]  }
 0x20c   : > { %3719 = vmatmul.mubr.bf16.gmra.mrb[112].mxu1 %v7390_v60  ;;  %v7438_v60 = vld [vmem:[%s8411_s12 + $0x7a8] ss:$36 sps:$4 sm:$0xff]  }
 0x20d   : > { %4233 = vmatmul.mubr.bf16.gmra.mrb[80].mxu0 %v7391_v62  ;;  %3726 = vmatprep.mubr.bf16.mxu1 %v7393_v63  ;;  %v7440_v62 = vld [vmem:[%s8411_s12 + $0x36c] ss:$36 sps:$4 sm:$0xff]   ;;  %v7442_v63 = vld [vmem:[%s8411_s12 + $0x7f4] ss:$36 sps:$4 sm:$0xff]  }
 0x20e   : > { %4240 = vmatprep.mubr.bf16.mxu0 %v7395_v1  ;;  %v7445_v1 = vld [vmem:[%s8411_s12 + $0x7f0] ss:$36 sps:$4 sm:$0xff]  }
 0x20f   : > { %v8816_v3 = vpop.f32.mrb[8].mxu1 }
 0x210   : > { %v3514_v4 = vpop.f32.mrb[9].mxu1 }
 0x211   : > { %v8819_v6 = vpop.f32.mrb[10].mxu1  ;;  %v7447_v4 = vld [vmem:[%s8411_s12 + $0x3b4] ss:$36 sps:$4 sm:$0xff]  }
 0x212   : > { %v3517_v10 = vpop.f32.mrb[11].mxu1 }
 0x213   : > { %v7453_v10 = vld [vmem:[%s8411_s12 + $0x3fc] ss:$36 sps:$4 sm:$0xff]  }
 0x214   : > { %3727 = vmatmul.mubr.bf16.gmra.mrb[116].mxu1 %v7397_v5  ;;  %v7449_v5 = vld [vmem:[%s8411_s12 + $0x83c] ss:$36 sps:$4 sm:$0xff]  }
 0x215   : > { %4241 = vmatmul.mubr.bf16.gmra.mrb[84].mxu0 %v7398_v8  ;;  %3734 = vmatprep.mubr.bf16.mxu1 %v7399_v9  ;;  %v7451_v8 = vld [vmem:[%s8411_s12 + $0x3b0] ss:$36 sps:$4 sm:$0xff]   ;;  %v7452_v9 = vld [vmem:[%s8411_s12 + $0x838] ss:$36 sps:$4 sm:$0xff]  }
 0x216   : > { %4248 = vmatprep.mubr.bf16.mxu0 %v7401_v11  ;;  %v7455_v11 = vld [vmem:[%s8411_s12 + $0x884] ss:$36 sps:$4 sm:$0xff]  }
 0x217   : > { %v8824_v12 = vpop.f32.mrb[12].mxu1 }
 0x218   : > { %v3522_v13 = vpop.f32.mrb[13].mxu1 }
 0x219   : > { %v8827_v15 = vpop.f32.mrb[14].mxu1  ;;  %v7555_v13 = vld [vmem:[%s8409_s11 + $0x238] sm:$0xff]  }
 0x21a   : > { %v3525_v18 = vpop.f32.mrb[15].mxu1 }
 0x21b   : > { %v7463_v18 = vld [vmem:[%s8411_s12 + $0x8cc] ss:$36 sps:$4 sm:$0xff]  }
 0x21c   : > { %3735 = vmatmul.mubr.bf16.gmra.mrb[120].mxu1 %v7403_v14  ;;  %v7457_v14 = vld [vmem:[%s8411_s12 + $0x3f8] ss:$36 sps:$4 sm:$0xff]  }
 0x21d   : > { %4249 = vmatmul.mubr.bf16.gmra.mrb[88].mxu0 %v7404_v16  ;;  %3742 = vmatprep.mubr.bf16.mxu1 %v7406_v17  ;;  %v7458_v16 = vld [vmem:[%s8411_s12 + $0x880] ss:$36 sps:$4 sm:$0xff]  }
 0x21e   : > { %4256 = vmatprep.mubr.bf16.mxu0 %v7408_v19  ;;  %v7461_v17 = vld [vmem:[%s8411_s12 + $0x444] ss:$36 sps:$4 sm:$0xff]  }
 0x21f   : > { %v8832_v20 = vpop.f32.mrb[16].mxu1  ;;  %v7465_v19 = vld [vmem:[%s8411_s12 + $0x440] ss:$36 sps:$4 sm:$0xff]  }
 0x220   : > { %v3530_v21 = vpop.f32.mrb[17].mxu1 }
 0x221   : > { %v8835_v23 = vpop.f32.mrb[18].mxu1  ;;  %v7466_v21 = vld [vmem:[%s8411_s12 + $0x8c8] ss:$36 sps:$4 sm:$0xff]  }
 0x222   : > { %v3533_v26 = vpop.f32.mrb[19].mxu1 }
 0x223   : > { %v7469_v26 = vld [vmem:[%s8411_s12 + $0x18] ss:$36 sps:$4 sm:$0xff]  }
 0x224   : > { %3743 = vmatmul.mubr.bf16.gmra.mrb[124].mxu1 %v7410_v22  ;;  %v7467_v22 = vld [vmem:[%s8411_s12 + $0x48c] ss:$36 sps:$4 sm:$0xff]  }
 0x225   : > { %4257 = vmatmul.mubr.bf16.gmra.mrb[92].mxu0 %v7411_v24  ;;  %3847 = vmatprep.mubr.bf16.mxu1 %v7414_v25  ;;  %v7471_v24 = vld [vmem:[%s8411_s12 + $0x1c] ss:$36 sps:$4 sm:$0xff]   ;;  %v7472_v25 = vld [vmem:[%s8411_s12 + $0x488] ss:$36 sps:$4 sm:$0xff]  }
 0x226   : > { %4264 = vmatprep.mubr.bf16.mxu0 %v7415_v27  ;;  %v7473_v27 = vld [vmem:[%s8411_s12 + $0x4d4] ss:$36 sps:$4 sm:$0xff]  }
 0x227   : > { %v8840_v28 = vpop.f32.mrb[20].mxu1 }
 0x228   : > { %v3538_v29 = vpop.f32.mrb[21].mxu1 }
 0x229   : > { %v8843_v31 = vpop.f32.mrb[22].mxu1  ;;  %v7475_v29 = vld [vmem:[%s8411_s12 + $0x64] ss:$36 sps:$4 sm:$0xff]  }
 0x22a   : > { %v3541_v33 = vpop.f32.mrb[23].mxu1 }
 0x22b   : > { %v7480_v33 = vld [vmem:[%s8411_s12 + $0x51c] ss:$36 sps:$4 sm:$0xff]  }
 0x22c   : > { %3848 = vmatmul.mubr.bf16.vlgmr.msra.gmra.mrb[32].mxu1 %v7412_v30  ;;  %v7477_v30 = vld [vmem:[%s8411_s12 + $0x4d0] ss:$36 sps:$4 sm:$0xff]  }
 0x22d   : > { %4265 = vmatmul.mubr.bf16.gmra.mrb[96].mxu0 %v7417_v32  ;;  %6685 = vmatpush3.bf16.msra.mxu1 %v8751_v7  ;;  %v7479_v7 = vld [vmem:[%s8409_s11 + $0x218] sm:$0xff]   ;;  %v7478_v32 = vld [vmem:[%s8411_s12 + $0x60] ss:$36 sps:$4 sm:$0xff]  }
 0x22e   : > { %3855 = vmatprep.mubr.bf16.mxu1 %v7420_v2  ;;  %4272 = vmatprep.mubr.bf16.mxu0 %v7422_v34  ;;  %v7482_v2 = vld [vmem:[%s8411_s12 + $0xac] ss:$36 sps:$4 sm:$0xff]   ;;  %v7484_v34 = vld [vmem:[%s8411_s12 + $0x518] ss:$36 sps:$4 sm:$0xff]  }
 0x22f   : > { %v8851_v37 = vpop.f32.mrb[24].mxu1  ;;  %6686 = vmatprep.subr.bf16.mxu1 %v7439_v35 }
 0x230   : > { %v3546_v38 = vpop.f32.mrb[25].mxu1 }
 0x231   : > { %v8854_v40 = vpop.f32.mrb[26].mxu1  ;;  %6687 = vmatpush3.bf16.msra.mxu1 %v7439_v35  ;;  %v7485_v35 = vld [vmem:[%s8411_s12 + $0xa8] ss:$36 sps:$4 sm:$0xff]   ;;  %v7488_v38 = vld [vmem:[%s8411_s12 + $0xf4] ss:$36 sps:$4 sm:$0xff]  }
 0x232   : > { %v3549_v43 = vpop.f32.mrb[27].mxu1  ;;  %6688 = vmatprep.subr.bf16.mxu1 %v7460_v36 }
 0x233   : > { %v7494_v43 = vld [vmem:[%s8411_s12 + $0x13c] ss:$36 sps:$4 sm:$0xff]  }
 0x234   : > { %3856 = vmatmul.mubr.bf16.gmra.mrb[36].mxu1 %v7424_v39  ;;  %v7490_v39 = vld [vmem:[%s8411_s12 + $0x560] ss:$36 sps:$4 sm:$0xff]  }
 0x235   : > { %4273 = vmatmul.mubr.bf16.gmra.mrb[100].mxu0 %v7425_v41  ;;  %3863 = vmatprep.mubr.bf16.mxu1 %v7426_v42  ;;  %v7491_v41 = vld [vmem:[%s8411_s12 + $0xf0] ss:$36 sps:$4 sm:$0xff]  }
 0x236   : > { %4280 = vmatprep.mubr.bf16.mxu0 %v7428_v44  ;;  %6689 = vmatpush3.bf16.msra.mxu1 %v7460_v36  ;;  %v7486_v36 = vld [vmem:[%s8411_s12 + $0x564] ss:$36 sps:$4 sm:$0xff]   ;;  %v7492_v42 = vld [vmem:[%s8411_s12 + $0x5ac] ss:$36 sps:$4 sm:$0xff]  }
 0x237   : > { %v8860_v45 = vpop.f32.mrb[28].mxu1  ;;  %6690 = vmatprep.subr.bf16.mxu1 %v7479_v7  ;;  %v7496_v44 = vld [vmem:[%s8411_s12 + $0x5a8] ss:$36 sps:$4 sm:$0xff]  }
 0x238   : > { %v3554_v47 = vpop.f32.mrb[29].mxu1 }
 0x239   : > { %v8864_v49 = vpop.f32.mrb[30].mxu1  ;;  %v7501_v47 = vld [vmem:[%s8411_s12 + $0x184] ss:$36 sps:$4 sm:$0xff]  }
 0x23a   : > { %v3557_v54 = vpop.f32.mrb[31].mxu1  ;;  %6691 = vmatpush3.bf16.msra.mxu1 %v7479_v7  ;;  %v7497_v7 = vld [vmem:[%s8411_s12 + $0x138] ss:$36 sps:$4 sm:$0xff]  }
 0x23b   : > { %6692 = vmatprep.subr.bf16.mxu1 %v7498_v46  ;;  %v7507_v54 = vld [vmem:[%s8411_s12 + $0x1cc] ss:$36 sps:$4 sm:$0xff]  }
 0x23c   : > { %3864 = vmatmul.mubr.bf16.gmra.mrb[40].mxu1 %v7430_v48  ;;  %v7503_v48 = vld [vmem:[%s8411_s12 + $0x5f0] ss:$36 sps:$4 sm:$0xff]  }
 0x23d   : > { %4281 = vmatmul.mubr.bf16.gmra.mrb[104].mxu0 %v7431_v51  ;;  %3871 = vmatprep.mubr.bf16.mxu1 %v7433_v52  ;;  %v7504_v51 = vld [vmem:[%s8411_s12 + $0x180] ss:$36 sps:$4 sm:$0xff]  }
 0x23e   : > { %4288 = vmatprep.mubr.bf16.mxu0 %v7435_v55  ;;  %6693 = vmatpush3.bf16.msra.mxu1 %v7498_v46  ;;  %v7499_v46 = vld [vmem:[%s8411_s12 + $0x5f4] ss:$36 sps:$4 sm:$0xff]   ;;  %v7505_v52 = vld [vmem:[%s8411_s12 + $0x63c] ss:$36 sps:$4 sm:$0xff]  }
 0x23f   : > { %6694 = vmatprep.subr.bf16.mxu1 %v7517_v56  ;;  %v7509_v55 = vld [vmem:[%s8411_s12 + $0x638] ss:$36 sps:$4 sm:$0xff]  }
 0x242   : > { %6695 = vmatpush3.bf16.msra.mxu1 %v7517_v56  ;;  %v7510_v56 = vld [vmem:[%s8411_s12 + $0x1c8] ss:$36 sps:$4 sm:$0xff]  }
 0x243   : > { %6696 = vmatprep.subr.bf16.mxu1 %v7536_v57 }
 0x244   : > { %3872 = vmatmul.mubr.bf16.gmra.mrb[44].mxu1 %v7437_v59  ;;  %v7513_v59 = vld [vmem:[%s8411_s12 + $0x214] ss:$36 sps:$4 sm:$0xff]  }
 0x245   : > { %4289 = vmatmul.mubr.bf16.gmra.mrb[108].mxu0 %v7438_v60  ;;  %3879 = vmatprep.mubr.bf16.mxu1 %v7440_v62  ;;  %v7515_v60 = vld [vmem:[%s8411_s12 + $0x680] ss:$36 sps:$4 sm:$0xff]   ;;  %v7516_v62 = vld [vmem:[%s8411_s12 + $0x210] ss:$36 sps:$4 sm:$0xff]  }
 0x246   : > { %4296 = vmatprep.mubr.bf16.mxu0 %v7442_v63  ;;  %6697 = vmatpush3.bf16.msra.mxu1 %v7536_v57  ;;  %v7511_v57 = vld [vmem:[%s8411_s12 + $0x684] ss:$36 sps:$4 sm:$0xff]   ;;  %v7518_v63 = vld [vmem:[%s8411_s12 + $0x6cc] ss:$36 sps:$4 sm:$0xff]  }
 0x247   : > { %6698 = vmatprep.subr.bf16.mxu1 %v7555_v13 }
 0x24a   : > { %6699 = vmatpush3.bf16.msra.mxu1 %v7555_v13  ;;  %v7532_v13 = vld [vmem:[%s8411_s12 + $0x2ec] ss:$36 sps:$4 sm:$0xff]  }
 0x24c   : > { %3880 = vmatmul.mubr.bf16.gmra.mrb[48].mxu1 %v7444_v0  ;;  %v7520_v0 = vld [vmem:[%s8411_s12 + $0x25c] ss:$36 sps:$4 sm:$0xff]  }
 0x24d   : > { %4297 = vmatmul.mubr.bf16.gmra.mrb[112].mxu0 %v7445_v1  ;;  %3887 = vmatprep.mubr.bf16.mxu1 %v7447_v4  ;;  %v7522_v1 = vld [vmem:[%s8411_s12 + $0x6c8] ss:$36 sps:$4 sm:$0xff]   ;;  %v7523_v4 = vld [vmem:[%s8411_s12 + $0x258] ss:$36 sps:$4 sm:$0xff]  }
 0x24e   : > { %4304 = vmatprep.mubr.bf16.mxu0 %v7449_v5  ;;  %v7524_v5 = vld [vmem:[%s8411_s12 + $0x714] ss:$36 sps:$4 sm:$0xff]  }
 0x254   : > { %3888 = vmatmul.mubr.bf16.gmra.mrb[52].mxu1 %v7451_v8  ;;  %v7526_v8 = vld [vmem:[%s8411_s12 + $0x2a4] ss:$36 sps:$4 sm:$0xff]  }
 0x255   : > { %4305 = vmatmul.mubr.bf16.gmra.mrb[116].mxu0 %v7452_v9  ;;  %3895 = vmatprep.mubr.bf16.mxu1 %v7453_v10  ;;  %v7528_v9 = vld [vmem:[%s8411_s12 + $0x710] ss:$36 sps:$4 sm:$0xff]   ;;  %v7529_v10 = vld [vmem:[%s8411_s12 + $0x2a0] ss:$36 sps:$4 sm:$0xff]  }
 0x256   : > { %4312 = vmatprep.mubr.bf16.mxu0 %v7455_v11  ;;  %v7530_v11 = vld [vmem:[%s8411_s12 + $0x75c] ss:$36 sps:$4 sm:$0xff]  }
 0x25c   : > { %3896 = vmatmul.mubr.bf16.gmra.mrb[56].mxu1 %v7457_v14  ;;  %v7534_v14 = vld [vmem:[%s8411_s12 + $0x758] ss:$36 sps:$4 sm:$0xff]  }
 0x25d   : > { %4313 = vmatmul.mubr.bf16.gmra.mrb[120].mxu0 %v7458_v16  ;;  %3903 = vmatprep.mubr.bf16.mxu1 %v7461_v17  ;;  %v7535_v16 = vld [vmem:[%s8411_s12 + $0x2e8] ss:$36 sps:$4 sm:$0xff]  }
 0x25e   : > { %4320 = vmatprep.mubr.bf16.mxu0 %v7463_v18  ;;  %v7537_v17 = vld [vmem:[%s8411_s12 + $0x7a4] ss:$36 sps:$4 sm:$0xff]   ;;  %v7539_v18 = vld [vmem:[%s8411_s12 + $0x334] ss:$36 sps:$4 sm:$0xff]  }
 0x264   : > { %3904 = vmatmul.mubr.bf16.gmra.mrb[60].mxu1 %v7465_v19  ;;  %v7541_v19 = vld [vmem:[%s8411_s12 + $0x7a0] ss:$36 sps:$4 sm:$0xff]  }
 0x265   : > { %4321 = vmatmul.mubr.bf16.gmra.mrb[124].mxu0 %v7466_v21  ;;  %3911 = vmatprep.mubr.bf16.mxu1 %v7467_v22  ;;  %v7542_v21 = vld [vmem:[%s8411_s12 + $0x330] ss:$36 sps:$4 sm:$0xff]  }
 0x266   : > { %4361 = vmatprep.mubr.bf16.mxu0 %v7471_v24  ;;  %v7543_v22 = vld [vmem:[%s8411_s12 + $0x7ec] ss:$36 sps:$4 sm:$0xff]   ;;  %v7545_v24 = vld [vmem:[%s8411_s12 + $0x37c] ss:$36 sps:$4 sm:$0xff]  }
 0x26c   : > { %3912 = vmatmul.mubr.bf16.gmra.mrb[64].mxu1 %v7472_v25  ;;  %v7547_v25 = vld [vmem:[%s8411_s12 + $0x7e8] ss:$36 sps:$4 sm:$0xff]  }
 0x26d   : > { %4362 = vmatmul.mubr.bf16.vlgmr.msra.gmra.mrb[0].mxu0 %v7469_v26  ;;  %3919 = vmatprep.mubr.bf16.mxu1 %v7473_v27  ;;  %v7548_v26 = vld [vmem:[%s8411_s12 + $0x378] ss:$36 sps:$4 sm:$0xff]  }
 0x26e   : > { %4369 = vmatprep.mubr.bf16.mxu0 %v7475_v29  ;;  %v7549_v27 = vld [vmem:[%s8411_s12 + $0x834] ss:$36 sps:$4 sm:$0xff]   ;;  %v7551_v29 = vld [vmem:[%s8411_s12 + $0x3c4] ss:$36 sps:$4 sm:$0xff]  }
 0x274   : > { %3920 = vmatmul.mubr.bf16.gmra.mrb[68].mxu1 %v7477_v30  ;;  %v7553_v30 = vld [vmem:[%s8411_s12 + $0x830] ss:$36 sps:$4 sm:$0xff]  }
 0x275   : > { %4370 = vmatmul.mubr.bf16.gmra.mrb[4].mxu0 %v7478_v32  ;;  %3927 = vmatprep.mubr.bf16.mxu1 %v7480_v33  ;;  %v7554_v32 = vld [vmem:[%s8411_s12 + $0x3c0] ss:$36 sps:$4 sm:$0xff]  }
 0x276   : > { %4377 = vmatprep.mubr.bf16.mxu0 %v7482_v2  ;;  %v7556_v33 = vld [vmem:[%s8411_s12 + $0x87c] ss:$36 sps:$4 sm:$0xff]   ;;  %v7558_v2 = vld [vmem:[%s8411_s12 + $0x40c] ss:$36 sps:$4 sm:$0xff]  }
 0x27c   : > { %3928 = vmatmul.mubr.bf16.gmra.mrb[72].mxu1 %v7484_v34  ;;  %v7560_v34 = vld [vmem:[%s8411_s12 + $0x878] ss:$36 sps:$4 sm:$0xff]  }
 0x27d   : > { %4378 = vmatmul.mubr.bf16.gmra.mrb[8].mxu0 %v7485_v35  ;;  %3935 = vmatprep.mubr.bf16.mxu1 %v7486_v36  ;;  %v7561_v35 = vld [vmem:[%s8411_s12 + $0x408] ss:$36 sps:$4 sm:$0xff]  }
 0x27e   : > { %4385 = vmatprep.mubr.bf16.mxu0 %v7488_v38  ;;  %v7562_v36 = vld [vmem:[%s8411_s12 + $0x8c4] ss:$36 sps:$4 sm:$0xff]   ;;  %v7564_v38 = vld [vmem:[%s8411_s12 + $0x454] ss:$36 sps:$4 sm:$0xff]  }
 0x284   : > { %3936 = vmatmul.mubr.bf16.gmra.mrb[76].mxu1 %v7490_v39  ;;  %v7566_v39 = vld [vmem:[%s8411_s12 + $0x8c0] ss:$36 sps:$4 sm:$0xff]  }
 0x285   : > { %4386 = vmatmul.mubr.bf16.gmra.mrb[12].mxu0 %v7491_v41  ;;  %3943 = vmatprep.mubr.bf16.mxu1 %v7492_v42  ;;  %v7567_v41 = vld [vmem:[%s8411_s12 + $0x450] ss:$36 sps:$4 sm:$0xff]   ;;  %v7570_v42 = vld [vmem:[%s8411_s12 + $0x20] ss:$36 sps:$4 sm:$0xff]  }
 0x286   : > { %4393 = vmatprep.mubr.bf16.mxu0 %v7494_v43  ;;  %v7568_v43 = vld [vmem:[%s8411_s12 + $0x49c] ss:$36 sps:$4 sm:$0xff]  }
 0x28c   : > { %3944 = vmatmul.mubr.bf16.gmra.mrb[80].mxu1 %v7496_v44  ;;  %v7572_v44 = vld [vmem:[%s8411_s12 + $0x68] ss:$36 sps:$4 sm:$0xff]  }
 0x28d   : > { %4394 = vmatmul.mubr.bf16.gmra.mrb[16].mxu0 %v7497_v7  ;;  %3951 = vmatprep.mubr.bf16.mxu1 %v7499_v46  ;;  %v7571_v7 = vld [vmem:[%s8411_s12 + $0x498] ss:$36 sps:$4 sm:$0xff]   ;;  %v7575_v46 = vld [vmem:[%s8411_s12 + $0xb0] ss:$36 sps:$4 sm:$0xff]  }
 0x28e   : > { %4401 = vmatprep.mubr.bf16.mxu0 %v7501_v47  ;;  %v7573_v47 = vld [vmem:[%s8411_s12 + $0x4e4] ss:$36 sps:$4 sm:$0xff]  }
 0x294   : > { %3952 = vmatmul.mubr.bf16.gmra.mrb[84].mxu1 %v7503_v48  ;;  %v7577_v48 = vld [vmem:[%s8411_s12 + $0xf8] ss:$36 sps:$4 sm:$0xff]  }
 0x295   : > { %4402 = vmatmul.mubr.bf16.gmra.mrb[20].mxu0 %v7504_v51  ;;  %3959 = vmatprep.mubr.bf16.mxu1 %v7505_v52  ;;  %v7576_v51 = vld [vmem:[%s8411_s12 + $0x4e0] ss:$36 sps:$4 sm:$0xff]  }
 0x296   : > { %4409 = vmatprep.mubr.bf16.mxu0 %v7507_v54  ;;  %v7580_v52 = vld [vmem:[%s8411_s12 + $0x140] ss:$36 sps:$4 sm:$0xff]   ;;  %v7578_v54 = vld [vmem:[%s8411_s12 + $0x52c] ss:$36 sps:$4 sm:$0xff]  }
 0x29c   : > { %3960 = vmatmul.mubr.bf16.gmra.mrb[88].mxu1 %v7509_v55  ;;  %v7582_v55 = vld [vmem:[%s8411_s12 + $0x188] ss:$36 sps:$4 sm:$0xff]  }
 0x29d   : > { %4410 = vmatmul.mubr.bf16.gmra.mrb[24].mxu0 %v7510_v56  ;;  %3967 = vmatprep.mubr.bf16.mxu1 %v7511_v57  ;;  %v7581_v56 = vld [vmem:[%s8411_s12 + $0x528] ss:$36 sps:$4 sm:$0xff]   ;;  %v7585_v57 = vld [vmem:[%s8411_s12 + $0x1d0] ss:$36 sps:$4 sm:$0xff]  }
 0x29e   : > { %4417 = vmatprep.mubr.bf16.mxu0 %v7513_v59  ;;  %v7583_v59 = vld [vmem:[%s8411_s12 + $0x574] ss:$36 sps:$4 sm:$0xff]  }
 0x2a4   : > { %3968 = vmatmul.mubr.bf16.gmra.mrb[92].mxu1 %v7515_v60 }
 0x2a5   : > { %4418 = vmatmul.mubr.bf16.gmra.mrb[28].mxu0 %v7516_v62  ;;  %3975 = vmatprep.mubr.bf16.mxu1 %v7518_v63  ;;  %v7587_v63 = vld [vmem:[%s8411_s12 + $0x218] ss:$36 sps:$4 sm:$0xff]  }
 0x2a6   : > { %4425 = vmatprep.mubr.bf16.mxu0 %v7520_v0 }
 0x2ac   : > { %3976 = vmatmul.mubr.bf16.gmra.mrb[96].mxu1 %v7522_v1  ;;  %v7586_v1 = vld [vmem:[%s8411_s12 + $0x570] ss:$36 sps:$4 sm:$0xff]  }
 0x2ad   : > { %4426 = vmatmul.mubr.bf16.gmra.mrb[32].mxu0 %v7523_v4  ;;  %3983 = vmatprep.mubr.bf16.mxu1 %v7524_v5  ;;  %v7590_v4 = vld [vmem:[%s8411_s12 + $0x260] ss:$36 sps:$4 sm:$0xff]  }
 0x2ae   : > { %4433 = vmatprep.mubr.bf16.mxu0 %v7526_v8  ;;  %v7588_v8 = vld [vmem:[%s8411_s12 + $0x5bc] ss:$36 sps:$4 sm:$0xff]  }
 0x2b4   : > { %3984 = vmatmul.mubr.bf16.gmra.mrb[100].mxu1 %v7528_v9 }
 0x2b5   : > { %4434 = vmatmul.mubr.bf16.gmra.mrb[36].mxu0 %v7529_v10  ;;  %3991 = vmatprep.mubr.bf16.mxu1 %v7530_v11  ;;  %v7592_v11 = vld [vmem:[%s8411_s12 + $0x2a8] ss:$36 sps:$4 sm:$0xff]  }
 0x2b6   : > { %4441 = vmatprep.mubr.bf16.mxu0 %v7532_v13 }
 0x2bc   : > { %3992 = vmatmul.mubr.bf16.gmra.mrb[104].mxu1 %v7534_v14  ;;  %v7591_v14 = vld [vmem:[%s8411_s12 + $0x5b8] ss:$36 sps:$4 sm:$0xff]  }
 0x2bd   : > { %4442 = vmatmul.mubr.bf16.gmra.mrb[40].mxu0 %v7535_v16  ;;  %3999 = vmatprep.mubr.bf16.mxu1 %v7537_v17  ;;  %v7595_v16 = vld [vmem:[%s8411_s12 + $0x2f0] ss:$36 sps:$4 sm:$0xff]  }
 0x2be   : > { %4449 = vmatprep.mubr.bf16.mxu0 %v7539_v18  ;;  %v7593_v18 = vld [vmem:[%s8411_s12 + $0x604] ss:$36 sps:$4 sm:$0xff]  }
 0x2c4   : > { %4000 = vmatmul.mubr.bf16.gmra.mrb[108].mxu1 %v7541_v19 }
 0x2c5   : > { %4450 = vmatmul.mubr.bf16.gmra.mrb[44].mxu0 %v7542_v21  ;;  %4007 = vmatprep.mubr.bf16.mxu1 %v7543_v22  ;;  %v7597_v22 = vld [vmem:[%s8411_s12 + $0x338] ss:$36 sps:$4 sm:$0xff]  }
 0x2c6   : > { %4457 = vmatprep.mubr.bf16.mxu0 %v7545_v24 }
 0x2cc   : > { %4008 = vmatmul.mubr.bf16.gmra.mrb[112].mxu1 %v7547_v25  ;;  %v7596_v25 = vld [vmem:[%s8411_s12 + $0x600] ss:$36 sps:$4 sm:$0xff]  }
 0x2cd   : > { %4458 = vmatmul.mubr.bf16.gmra.mrb[48].mxu0 %v7548_v26  ;;  %4015 = vmatprep.mubr.bf16.mxu1 %v7549_v27  ;;  %v7600_v26 = vld [vmem:[%s8411_s12 + $0x380] ss:$36 sps:$4 sm:$0xff]  }
 0x2ce   : > { %4465 = vmatprep.mubr.bf16.mxu0 %v7551_v29  ;;  %v7598_v29 = vld [vmem:[%s8411_s12 + $0x64c] ss:$36 sps:$4 sm:$0xff]  }
 0x2d4   : > { %4016 = vmatmul.mubr.bf16.gmra.mrb[116].mxu1 %v7553_v30 }
 0x2d5   : > { %4466 = vmatmul.mubr.bf16.gmra.mrb[52].mxu0 %v7554_v32  ;;  %4023 = vmatprep.mubr.bf16.mxu1 %v7556_v33  ;;  %v7602_v33 = vld [vmem:[%s8411_s12 + $0x3c8] ss:$36 sps:$4 sm:$0xff]  }
 0x2d6   : > { %4473 = vmatprep.mubr.bf16.mxu0 %v7558_v2 }
 0x2dc   : > { %4024 = vmatmul.mubr.bf16.gmra.mrb[120].mxu1 %v7560_v34  ;;  %v7601_v34 = vld [vmem:[%s8411_s12 + $0x648] ss:$36 sps:$4 sm:$0xff]  }
 0x2dd   : > { %4474 = vmatmul.mubr.bf16.gmra.mrb[56].mxu0 %v7561_v35  ;;  %4031 = vmatprep.mubr.bf16.mxu1 %v7562_v36  ;;  %v7605_v35 = vld [vmem:[%s8411_s12 + $0x410] ss:$36 sps:$4 sm:$0xff]  }
 0x2de   : > { %4481 = vmatprep.mubr.bf16.mxu0 %v7564_v38  ;;  %v7603_v38 = vld [vmem:[%s8411_s12 + $0x694] ss:$36 sps:$4 sm:$0xff]  }
 0x2e4   : > { %4032 = vmatmul.mubr.bf16.gmra.mrb[124].mxu1 %v7566_v39 }
 0x2e5   : > { %4482 = vmatmul.mubr.bf16.gmra.mrb[60].mxu0 %v7567_v41  ;;  %6700 = vmatprep.mubr.bf16.mxu1 %v7570_v42  ;;  %v7607_v42 = vld [vmem:[%s8411_s12 + $0x458] ss:$36 sps:$4 sm:$0xff]  }
 0x2e6   : > { %4489 = vmatprep.mubr.bf16.mxu0 %v7568_v43 }
 0x2ec   : > { %6701 = vmatmul.mubr.bf16.vlgmr.msra.gmra.mrb[128].mxu1 %v7572_v44  ;;  %v7606_v44 = vld [vmem:[%s8411_s12 + $0x690] ss:$36 sps:$4 sm:$0xff]  }
 0x2ed   : > { %4490 = vmatmul.mubr.bf16.gmra.mrb[64].mxu0 %v7571_v7  ;;  %6704 = vmatprep.mubr.bf16.mxu1 %v7575_v46  ;;  %v7610_v7 = vld [vmem:[%s8411_s12 + $0x4a0] ss:$36 sps:$4 sm:$0xff]  }
 0x2ee   : > { %4497 = vmatprep.mubr.bf16.mxu0 %v7573_v47  ;;  %v7608_v47 = vld [vmem:[%s8411_s12 + $0x6dc] ss:$36 sps:$4 sm:$0xff]  }
 0x2f4   : > { %6705 = vmatmul.mubr.bf16.gmra.mrb[132].mxu1 %v7577_v48 }
 0x2f5   : > { %4498 = vmatmul.mubr.bf16.gmra.mrb[68].mxu0 %v7576_v51  ;;  %6708 = vmatprep.mubr.bf16.mxu1 %v7580_v52  ;;  %v7612_v52 = vld [vmem:[%s8411_s12 + $0x4e8] ss:$36 sps:$4 sm:$0xff]  }
 0x2f6   : > { %4505 = vmatprep.mubr.bf16.mxu0 %v7578_v54 }
 0x2fc   : > { %6709 = vmatmul.mubr.bf16.gmra.mrb[136].mxu1 %v7582_v55  ;;  %v7611_v55 = vld [vmem:[%s8411_s12 + $0x6d8] ss:$36 sps:$4 sm:$0xff]  }
 0x2fd   : > { %4506 = vmatmul.mubr.bf16.gmra.mrb[72].mxu0 %v7581_v56  ;;  %6712 = vmatprep.mubr.bf16.mxu1 %v7585_v57  ;;  %v7615_v56 = vld [vmem:[%s8411_s12 + $0x530] ss:$36 sps:$4 sm:$0xff]  }
 0x2fe   : > { %4513 = vmatprep.mubr.bf16.mxu0 %v7583_v59  ;;  %v7613_v59 = vld [vmem:[%s8411_s12 + $0x724] ss:$36 sps:$4 sm:$0xff]  }
 0x2ff   : > { %v8968_v60 = vpop.f32.mrb[32].mxu1 }
 0x300   : > { %v3851_v62 = vpop.f32.mrb[33].mxu1 }
 0x301   : > { %v8971_v0 = vpop.f32.mrb[34].mxu1 }
 0x302   : > { %v3854_v5 = vpop.f32.mrb[35].mxu1 }
 0x303   : > { %v7616_v5 = vld [vmem:[%s8411_s12 + $0x720] ss:$36 sps:$4 sm:$0xff]  }
 0x304   : > { %6713 = vmatmul.mubr.bf16.gmra.mrb[140].mxu1 %v7587_v63 }
 0x305   : > { %4514 = vmatmul.mubr.bf16.gmra.mrb[76].mxu0 %v7586_v1  ;;  %6716 = vmatprep.mubr.bf16.mxu1 %v7590_v4  ;;  %v7617_v1 = vld [vmem:[%s8411_s12 + $0x578] ss:$36 sps:$4 sm:$0xff]  }
 0x306   : > { %4521 = vmatprep.mubr.bf16.mxu0 %v7588_v8  ;;  %v7620_v8 = vld [vmem:[%s8411_s12 + $0x5c0] ss:$36 sps:$4 sm:$0xff]  }
 0x307   : > { %v8976_v9 = vpop.f32.mrb[36].mxu1 }
 0x308   : > { %v3859_v10 = vpop.f32.mrb[37].mxu1 }
 0x309   : > { %v8979_v13 = vpop.f32.mrb[38].mxu1 }
 0x30a   : > { %v3862_v17 = vpop.f32.mrb[39].mxu1 }
 0x30b   : > { %v7622_v17 = vld [vmem:[%s8411_s12 + $0x608] ss:$36 sps:$4 sm:$0xff]  }
 0x30c   : > { %6717 = vmatmul.mubr.bf16.gmra.mrb[144].mxu1 %v7592_v11  ;;  %v7618_v11 = vld [vmem:[%s8411_s12 + $0x76c] ss:$36 sps:$4 sm:$0xff]  }
 0x30d   : > { %4522 = vmatmul.mubr.bf16.gmra.mrb[80].mxu0 %v7591_v14  ;;  %6720 = vmatprep.mubr.bf16.mxu1 %v7595_v16 }
 0x30e   : > { %4529 = vmatprep.mubr.bf16.mxu0 %v7593_v18 }
 0x30f   : > { %v8984_v19 = vpop.f32.mrb[40].mxu1 }
 0x310   : > { %v3867_v21 = vpop.f32.mrb[41].mxu1 }
 0x311   : > { %v8987_v24 = vpop.f32.mrb[42].mxu1  ;;  %v7621_v21 = vld [vmem:[%s8411_s12 + $0x768] ss:$36 sps:$4 sm:$0xff]  }
 0x312   : > { %v3870_v27 = vpop.f32.mrb[43].mxu1 }
 0x314   : > { %6721 = vmatmul.mubr.bf16.gmra.mrb[148].mxu1 %v7597_v22  ;;  %v7625_v22 = vld [vmem:[%s8411_s12 + $0x650] ss:$36 sps:$4 sm:$0xff]  }
 0x315   : > { %4530 = vmatmul.mubr.bf16.gmra.mrb[84].mxu0 %v7596_v25  ;;  %6724 = vmatprep.mubr.bf16.mxu1 %v7600_v26  ;;  %v7623_v26 = vld [vmem:[%s8411_s12 + $0x7b4] ss:$36 sps:$4 sm:$0xff]  }
 0x316   : > { %4537 = vmatprep.mubr.bf16.mxu0 %v7598_v29 }
 0x317   : > { %v8992_v30 = vpop.f32.mrb[44].mxu1 }
 0x318   : > { %v3875_v32 = vpop.f32.mrb[45].mxu1 }
 0x319   : > { %v8995_v2 = vpop.f32.mrb[46].mxu1 }
 0x31a   : > { %v3878_v36 = vpop.f32.mrb[47].mxu1 }
 0x31c   : > { %6725 = vmatmul.mubr.bf16.gmra.mrb[152].mxu1 %v7602_v33  ;;  %v7627_v33 = vld [vmem:[%s8411_s12 + $0x698] ss:$36 sps:$4 sm:$0xff]  }
 0x31d   : > { %4538 = vmatmul.mubr.bf16.gmra.mrb[88].mxu0 %v7601_v34  ;;  %6728 = vmatprep.mubr.bf16.mxu1 %v7605_v35 }
 0x31e   : > { %4545 = vmatprep.mubr.bf16.mxu0 %v7603_v38  ;;  %v7626_v38 = vld [vmem:[%s8411_s12 + $0x7b0] ss:$36 sps:$4 sm:$0xff]  }
 0x31f   : > { %v9000_v39 = vpop.f32.mrb[48].mxu1 }
 0x320   : > { %v3883_v41 = vpop.f32.mrb[49].mxu1 }
 0x321   : > { %v9003_v43 = vpop.f32.mrb[50].mxu1  ;;  %v7630_v41 = vld [vmem:[%s8411_s12 + $0x6e0] ss:$36 sps:$4 sm:$0xff]  }
 0x322   : > { %v3886_v46 = vpop.f32.mrb[51].mxu1 }
 0x324   : > { %6729 = vmatmul.mubr.bf16.gmra.mrb[156].mxu1 %v7607_v42 }
 0x325   : > { %4546 = vmatmul.mubr.bf16.gmra.mrb[92].mxu0 %v7606_v44  ;;  %6732 = vmatprep.mubr.bf16.mxu1 %v7610_v7  ;;  %v7628_v7 = vld [vmem:[%s8411_s12 + $0x7fc] ss:$36 sps:$4 sm:$0xff]  }
 0x326   : > { %4553 = vmatprep.mubr.bf16.mxu0 %v7608_v47 }
 0x327   : > { %v9008_v48 = vpop.f32.mrb[52].mxu1 }
 0x328   : > { %v3891_v51 = vpop.f32.mrb[53].mxu1 }
 0x329   : > { %v9011_v54 = vpop.f32.mrb[54].mxu1 }
 0x32a   : > { %v3894_v57 = vpop.f32.mrb[55].mxu1 }
 0x32c   : > { %6733 = vmatmul.mubr.bf16.gmra.mrb[160].mxu1 %v7612_v52 }
 0x32d   : > { %4554 = vmatmul.mubr.bf16.gmra.mrb[96].mxu0 %v7611_v55  ;;  %6736 = vmatprep.mubr.bf16.mxu1 %v7615_v56  ;;  %v7632_v55 = vld [vmem:[%s8411_s12 + $0x728] ss:$36 sps:$4 sm:$0xff]  }
 0x32e   : > { %4561 = vmatprep.mubr.bf16.mxu0 %v7613_v59 }
 0x32f   : > { %v9016_v62 = vpop.f32.mrb[56].mxu1 }
 0x330   : > { %v3899_v63 = vpop.f32.mrb[57].mxu1 }
 0x331   : > { %v9019_v4 = vpop.f32.mrb[58].mxu1  ;;  %v7635_v63 = vld [vmem:[%s8411_s12 + $0x770] ss:$36 sps:$4 sm:$0xff]  }
 0x332   : > { %v3902_v10 = vpop.f32.mrb[59].mxu1 }
 0x334   : > { %6737 = vmatmul.mubr.bf16.gmra.mrb[164].mxu1 %v7617_v1 }
 0x335   : > { %4562 = vmatmul.mubr.bf16.gmra.mrb[100].mxu0 %v7616_v5  ;;  %6740 = vmatprep.mubr.bf16.mxu1 %v7620_v8  ;;  %v7633_v8 = vld [vmem:[%s8411_s12 + $0x844] ss:$36 sps:$4 sm:$0xff]  }
 0x336   : > { %4569 = vmatprep.mubr.bf16.mxu0 %v7618_v11 }
 0x337   : > { %v9024_v14 = vpop.f32.mrb[60].mxu1 }
 0x338   : > { %v3907_v16 = vpop.f32.mrb[61].mxu1 }
 0x339   : > { %v9027_v18 = vpop.f32.mrb[62].mxu1 }
 0x33a   : > { %v3910_v25 = vpop.f32.mrb[63].mxu1 }
 0x33c   : > { %6741 = vmatmul.mubr.bf16.gmra.mrb[168].mxu1 %v7622_v17 }
 0x33d   : > { %4570 = vmatmul.mubr.bf16.gmra.mrb[104].mxu0 %v7621_v21  ;;  %6744 = vmatprep.mubr.bf16.mxu1 %v7625_v22  ;;  %v7637_v21 = vld [vmem:[%s8411_s12 + $0x7b8] ss:$36 sps:$4 sm:$0xff]  }
 0x33e   : > { %4577 = vmatprep.mubr.bf16.mxu0 %v7623_v26 }
 0x33f   : > { %v9032_v27 = vpop.f32.mrb[64].mxu1 }
 0x340   : > { %v4363_v29 = vpop.f32.mrb[0].mxu0  ;;  %v3915_v32 = vpop.f32.mrb[65].mxu1 }
 0x341   : > { %v9036_v34 = vadd.f32 %v4363_v29, %v8800_v50  ;;  %v4365_v35 = vpop.f32.mrb[1].mxu0  ;;  %v9038_v36 = vpop.f32.mrb[66].mxu1  ;;  %v7640_v29 = vld [vmem:[%s8411_s12 + $0x800] ss:$36 sps:$4 sm:$0xff]  }
 0x342   : > { %v4366_v42 = vpop.f32.mrb[2].mxu0  ;;  %v3918_v44 = vpop.f32.mrb[67].mxu1  ;;  %v7638_v35 = vld [vmem:[%s8411_s12 + $0x88c] ss:$36 sps:$4 sm:$0xff]  }
 0x343   : > { %v9044_v46 = vadd.f32 %v4366_v42, %v8803_v53  ;;  %v4368_v47 = vpop.f32.mrb[3].mxu0  ;;  %v7631_v53 = vld [vmem:[%s8411_s12 + $0x7f8] ss:$36 sps:$4 sm:$0xff]  }
 0x344   : > { %6745 = vmatmul.mubr.bf16.gmra.mrb[172].mxu1 %v7627_v33 }
 0x345   : > { %4578 = vmatmul.mubr.bf16.gmra.mrb[108].mxu0 %v7626_v38  ;;  %6748 = vmatprep.mubr.bf16.mxu1 %v7630_v41 }
 0x346   : > { %4585 = vmatprep.mubr.bf16.mxu0 %v7628_v7  ;;  %v7642_v7 = vld [vmem:[%s8411_s12 + $0x848] ss:$36 sps:$4 sm:$0xff]  }
 0x347   : > { %v9046_v50 = vpop.f32.mrb[68].mxu1 }
 0x348   : > { %v4371_v51 = vpop.f32.mrb[4].mxu0  ;;  %v3923_v52 = vpop.f32.mrb[69].mxu1 }
 0x349   : > { %v9050_v56 = vadd.f32 %v4371_v51, %v8808_v58  ;;  %v4373_v57 = vpop.f32.mrb[5].mxu0  ;;  %v9052_v59 = vpop.f32.mrb[70].mxu1 }
 0x34a   : > { %v4374_v1 = vpop.f32.mrb[6].mxu0  ;;  %v3926_v5 = vpop.f32.mrb[71].mxu1 }
 0x34b   : > { %v9058_v10 = vadd.f32 %v4374_v1, %v8811_v61  ;;  %v4376_v11 = vpop.f32.mrb[7].mxu0  ;;  %v7636_v61 = vld [vmem:[%s8411_s12 + $0x840] ss:$36 sps:$4 sm:$0xff]  }
 0x34c   : > { %6749 = vmatmul.mubr.bf16.gmra.mrb[176].mxu1 %v7632_v55  ;;  %v7645_v55 = vld [vmem:[%s8411_s12 + $0x890] ss:$36 sps:$4 sm:$0xff]  }
 0x34d   : > { %4586 = vmatmul.mubr.bf16.gmra.mrb[112].mxu0 %v7631_v53  ;;  %6752 = vmatprep.mubr.bf16.mxu1 %v7635_v63  ;;  %v7643_v63 = vld [vmem:[%s8411_s12 + $0x8d4] ss:$36 sps:$4 sm:$0xff]  }
 0x34e   : > { %4593 = vmatprep.mubr.bf16.mxu0 %v7633_v8 }
 0x34f   : > { %v9060_v58 = vpop.f32.mrb[72].mxu1 }
 0x350   : > { %v4379_v16 = vpop.f32.mrb[8].mxu0  ;;  %v3931_v17 = vpop.f32.mrb[73].mxu1 }
 0x351   : > { %v9064_v22 = vadd.f32 %v4379_v16, %v8816_v3  ;;  %v4381_v25 = vpop.f32.mrb[9].mxu0  ;;  %v9066_v26 = vpop.f32.mrb[74].mxu1  ;;  %v7647_v16 = vld [vmem:[%s8411_s12 + $0x8d8] ss:$36 sps:$4 sm:$0xff]  }
 0x352   : > { %v4382_v32 = vpop.f32.mrb[10].mxu0  ;;  %v3934_v33 = vpop.f32.mrb[75].mxu1 }
 0x353   : > { %v9072_v38 = vadd.f32 %v4382_v32, %v8819_v6  ;;  %v4384_v41 = vpop.f32.mrb[11].mxu0  ;;  %v7641_v6 = vld [vmem:[%s8411_s12 + $0x888] ss:$36 sps:$4 sm:$0xff]  }
 0x354   : > { %6753 = vmatmul.mubr.bf16.gmra.mrb[180].mxu1 %v7637_v21 }
 0x355   : > { %4594 = vmatmul.mubr.bf16.gmra.mrb[116].mxu0 %v7636_v61  ;;  %6756 = vmatprep.mubr.bf16.mxu1 %v7640_v29  ;;  %v7646_v61 = vld [vmem:[%s8411_s12 + $0x8d0] ss:$36 sps:$4 sm:$0xff]  }
 0x356   : > { %4601 = vmatprep.mubr.bf16.mxu0 %v7638_v35 }
 0x357   : > { %v9074_v3 = vpop.f32.mrb[76].mxu1 }
 0x358   : > { %v4387_v42 = vpop.f32.mrb[12].mxu0  ;;  %v3939_v44 = vpop.f32.mrb[77].mxu1 }
 0x359   : > { %v9078_v47 = vadd.f32 %v4387_v42, %v8824_v12  ;;  %v4389_v51 = vpop.f32.mrb[13].mxu0  ;;  %v9080_v52 = vpop.f32.mrb[78].mxu1 }
 0x35a   : > { %v4390_v57 = vpop.f32.mrb[14].mxu0  ;;  %v3942_v53 = vpop.f32.mrb[79].mxu1 }
 0x35b   : > { %v9086_v1 = vadd.f32 %v4390_v57, %v8827_v15  ;;  %v4392_v5 = vpop.f32.mrb[15].mxu0 }
 0x35c   : > { %6757 = vmatmul.mubr.bf16.gmra.mrb[184].mxu1 %v7642_v7 }
 0x35d   : > { %4602 = vmatmul.mubr.bf16.gmra.mrb[120].mxu0 %v7641_v6  ;;  %6760 = vmatprep.mubr.bf16.mxu1 %v7645_v55 }
 0x35e   : > { %4609 = vmatprep.mubr.bf16.mxu0 %v7643_v63 }
 0x35f   : > { %v9088_v12 = vpop.f32.mrb[80].mxu1 }
 0x360   : > { %v4395_v8 = vpop.f32.mrb[16].mxu0  ;;  %v3947_v11 = vpop.f32.mrb[81].mxu1 }
 0x361   : > { %v9092_v17 = vadd.f32 %v4395_v8, %v8832_v20  ;;  %v4397_v21 = vpop.f32.mrb[17].mxu0  ;;  %v9094_v25 = vpop.f32.mrb[82].mxu1 }
 0x362   : > { %v4398_v29 = vpop.f32.mrb[18].mxu0  ;;  %v3950_v15 = vpop.f32.mrb[83].mxu1 }
 0x363   : > { %v9098_v32 = vadd.f32 %v4398_v29, %v8835_v23  ;;  %v4400_v33 = vpop.f32.mrb[19].mxu0 }
 0x364   : > { %6761 = vmatmul.mubr.bf16.gmra.mrb[188].mxu1 %v7647_v16 }
 0x365   : > { %4610 = vmatmul.mubr.bf16.gmra.mrb[124].mxu0 %v7646_v61 }
 0x367   : > { %v9100_v35 = vpop.f32.mrb[84].mxu1 }
 0x368   : > { %v4403_v41 = vpop.f32.mrb[20].mxu0  ;;  %v3955_v42 = vpop.f32.mrb[85].mxu1 }
 0x369   : > { %v9103_v44 = vadd.f32 %v4403_v41, %v8840_v28  ;;  %v4405_v20 = vpop.f32.mrb[21].mxu0  ;;  %v9105_v7 = vpop.f32.mrb[86].mxu1 }
 0x36a   : > { %v4406_v51 = vpop.f32.mrb[22].mxu0  ;;  %v3958_v6 = vpop.f32.mrb[87].mxu1 }
 0x36b   : > { %v9108_v55 = vadd.f32 %v4406_v51, %v8843_v31  ;;  %v4408_v23 = vpop.f32.mrb[23].mxu0 }
 0x36f   : > { %v9110_v57 = vpop.f32.mrb[88].mxu1 }
 0x370   : > { %v4411_v53 = vpop.f32.mrb[24].mxu0  ;;  %v3963_v63 = vpop.f32.mrb[89].mxu1 }
 0x371   : > { %v9113_v5 = vadd.f32 %v4411_v53, %v8851_v37  ;;  %v4413_v8 = vpop.f32.mrb[25].mxu0  ;;  %v9115_v11 = vpop.f32.mrb[90].mxu1 }
 0x372   : > { %v4414_v28 = vpop.f32.mrb[26].mxu0  ;;  %v3966_v16 = vpop.f32.mrb[91].mxu1 }
 0x373   : > { %v9118_v21 = vadd.f32 %v4414_v28, %v8854_v40  ;;  %v4416_v61 = vpop.f32.mrb[27].mxu0 }
 0x377   : > { %v9120_v29 = vpop.f32.mrb[92].mxu1 }
 0x378   : > { %v4419_v31 = vpop.f32.mrb[28].mxu0  ;;  %v3971_v15 = vpop.f32.mrb[93].mxu1 }
 0x379   : > { %v9123_v33 = vadd.f32 %v4419_v31, %v8860_v45  ;;  %v4421_v41 = vpop.f32.mrb[29].mxu0  ;;  %v9125_v42 = vpop.f32.mrb[94].mxu1 }
 0x37a   : > { %9595 = vst [vmem:[#allocation4_spill] sm:$0xff] %v9125_v42  ;;  %v4422_v37 = vpop.f32.mrb[30].mxu0  ;;  %v3974_v20 = vpop.f32.mrb[95].mxu1 }
 0x37b   : > { %v9128_v51 = vadd.f32 %v4422_v37, %v8864_v49  ;;  %v4424_v6 = vpop.f32.mrb[31].mxu0 }
 0x37f   : > { %v9130_v23 = vpop.f32.mrb[96].mxu1 }
 0x380   : > { %9596 = vst [vmem:[#allocation5_spill] sm:$0xff] %v9130_v23  ;;  %v4427_v40 = vpop.f32.mrb[32].mxu0  ;;  %v3979_v53 = vpop.f32.mrb[97].mxu1 }
 0x381   : > { %v9133_v63 = vadd.f32 %v4427_v40, %v8968_v60  ;;  %v4429_v8 = vpop.f32.mrb[33].mxu0  ;;  %v9135_v28 = vpop.f32.mrb[98].mxu1 }
 0x382   : > { %9597 = vst [vmem:[#allocation6_spill] sm:$0xff] %v9135_v28  ;;  %v4430_v45 = vpop.f32.mrb[34].mxu0  ;;  %v3982_v16 = vpop.f32.mrb[99].mxu1 }
 0x383   : > { %v9138_v61 = vadd.f32 %v4430_v45, %v8971_v0  ;;  %v4432_v31 = vpop.f32.mrb[35].mxu0 }
 0x387   : > { %v9140_v15 = vpop.f32.mrb[100].mxu1 }
 0x388   : > { %9598 = vst [vmem:[#allocation7_spill] sm:$0xff] %v9140_v15  ;;  %v4435_v49 = vpop.f32.mrb[36].mxu0  ;;  %v3987_v41 = vpop.f32.mrb[101].mxu1 }
 0x389   : > { %v9143_v37 = vadd.f32 %v4435_v49, %v8976_v9  ;;  %v4437_v20 = vpop.f32.mrb[37].mxu0  ;;  %v9145_v6 = vpop.f32.mrb[102].mxu1 }
 0x38a   : > { %9599 = vst [vmem:[#allocation8_spill] sm:$0xff] %v9145_v6  ;;  %v4438_v60 = vpop.f32.mrb[38].mxu0  ;;  %v3990_v40 = vpop.f32.mrb[103].mxu1 }
 0x38b   : > { %v9148_v53 = vadd.f32 %v4438_v60, %v8979_v13  ;;  %v4440_v8 = vpop.f32.mrb[39].mxu0 }
 0x38f   : > { %v9150_v16 = vpop.f32.mrb[104].mxu1 }
 0x390   : > { %9600 = vst [vmem:[#allocation9_spill] sm:$0xff] %v9150_v16  ;;  %v4443_v0 = vpop.f32.mrb[40].mxu0  ;;  %v3995_v45 = vpop.f32.mrb[105].mxu1 }
 0x391   : > { %v9153_v31 = vadd.f32 %v4443_v0, %v8984_v19  ;;  %v4445_v41 = vpop.f32.mrb[41].mxu0  ;;  %v9155_v15 = vpop.f32.mrb[106].mxu1 }
 0x392   : > { %9601 = vst [vmem:[#allocation10_spill] sm:$0xff] %v9155_v15  ;;  %v4446_v9 = vpop.f32.mrb[42].mxu0  ;;  %v3998_v49 = vpop.f32.mrb[107].mxu1 }
 0x393   : > { %v9158_v20 = vadd.f32 %v4446_v9, %v8987_v24  ;;  %v4448_v40 = vpop.f32.mrb[43].mxu0 }
 0x397   : > { %v9160_v6 = vpop.f32.mrb[108].mxu1 }
 0x398   : > { %9602 = vst [vmem:[#allocation11_spill] sm:$0xff] %v9160_v6  ;;  %v4451_v13 = vpop.f32.mrb[44].mxu0  ;;  %v4003_v60 = vpop.f32.mrb[109].mxu1 }
 0x399   : > { %v9163_v8 = vadd.f32 %v4451_v13, %v8992_v30  ;;  %v4453_v45 = vpop.f32.mrb[45].mxu0  ;;  %v9165_v16 = vpop.f32.mrb[110].mxu1 }
 0x39a   : > { %9603 = vst [vmem:[#allocation12_spill] sm:$0xff] %v9165_v16  ;;  %v4454_v19 = vpop.f32.mrb[46].mxu0  ;;  %v4006_v0 = vpop.f32.mrb[111].mxu1 }
 0x39b   : > { %v9168_v41 = vadd.f32 %v4454_v19, %v8995_v2  ;;  %v4456_v49 = vpop.f32.mrb[47].mxu0 }
 0x39f   : > { %v9170_v15 = vpop.f32.mrb[112].mxu1 }
 0x3a0   : > { %9604 = vst [vmem:[#allocation13_spill] sm:$0xff] %v9170_v15  ;;  %v4459_v24 = vpop.f32.mrb[48].mxu0  ;;  %v4011_v9 = vpop.f32.mrb[113].mxu1 }
 0x3a1   : > { %v9173_v40 = vadd.f32 %v4459_v24, %v9000_v39  ;;  %v4461_v60 = vpop.f32.mrb[49].mxu0  ;;  %v9175_v6 = vpop.f32.mrb[114].mxu1 }
 0x3a2   : > { %9605 = vst [vmem:[#allocation14_spill] sm:$0xff] %v9175_v6  ;;  %v4462_v30 = vpop.f32.mrb[50].mxu0  ;;  %v4014_v13 = vpop.f32.mrb[115].mxu1 }
 0x3a3   : > { %v9178_v45 = vadd.f32 %v4462_v30, %v9003_v43  ;;  %v4464_v0 = vpop.f32.mrb[51].mxu0 }
 0x3a7   : > { %v9180_v16 = vpop.f32.mrb[116].mxu1 }
 0x3a8   : > { %9606 = vst [vmem:[#allocation15_spill] sm:$0xff] %v9180_v16  ;;  %v4467_v2 = vpop.f32.mrb[52].mxu0  ;;  %v4019_v19 = vpop.f32.mrb[117].mxu1 }
 0x3a9   : > { %v9183_v49 = vadd.f32 %v4467_v2, %v9008_v48  ;;  %v4469_v9 = vpop.f32.mrb[53].mxu0  ;;  %v9185_v15 = vpop.f32.mrb[118].mxu1 }
 0x3aa   : > { %9607 = vst [vmem:[#allocation16_spill] sm:$0xff] %v9185_v15  ;;  %v4470_v39 = vpop.f32.mrb[54].mxu0  ;;  %v4022_v24 = vpop.f32.mrb[119].mxu1 }
 0x3ab   : > { %v9188_v60 = vadd.f32 %v4470_v39, %v9011_v54  ;;  %v4472_v13 = vpop.f32.mrb[55].mxu0 }
 0x3af   : > { %v9190_v6 = vpop.f32.mrb[120].mxu1 }
 0x3b0   : > { %9608 = vst [vmem:[#allocation17_spill] sm:$0xff] %v9190_v6  ;;  %v4475_v43 = vpop.f32.mrb[56].mxu0  ;;  %v4027_v30 = vpop.f32.mrb[121].mxu1 }
 0x3b1   : > { %v9193_v0 = vadd.f32 %v4475_v43, %v9016_v62  ;;  %v4477_v19 = vpop.f32.mrb[57].mxu0  ;;  %v9195_v16 = vpop.f32.mrb[122].mxu1 }
 0x3b2   : > { %9609 = vst [vmem:[#allocation18_spill] sm:$0xff] %v9195_v16  ;;  %v4478_v48 = vpop.f32.mrb[58].mxu0  ;;  %v4030_v2 = vpop.f32.mrb[123].mxu1  ;;  %v1032_v16 = vld [vmem:[#allocation2 + $0x10] sm:$0xff] }
 0x3b3   : > { %v9198_v9 = vadd.f32 %v4478_v48, %v9019_v4  ;;  %v4480_v24 = vpop.f32.mrb[59].mxu0 }
 0x3b5   : > { %9610 = vst [vmem:[#allocation19_spill] sm:$0xff] %v9198_v9 }
 0x3b7   : > { %v9200_v15 = vpop.f32.mrb[124].mxu1 }
 0x3b8   : > { %9611 = vst [vmem:[#allocation20_spill] sm:$0xff] %v9200_v15  ;;  %v4483_v54 = vpop.f32.mrb[60].mxu0  ;;  %v4035_v39 = vpop.f32.mrb[125].mxu1  ;;  %v1030_v15 = vld [vmem:[#allocation2] sm:$0xff] }
 0x3b9   : > { %v9203_v13 = vadd.f32 %v4483_v54, %v9024_v14  ;;  %v4485_v30 = vpop.f32.mrb[61].mxu0  ;;  %v9205_v6 = vpop.f32.mrb[126].mxu1 }
 0x3ba   : > { %9612 = vst [vmem:[#allocation21_spill] sm:$0xff] %v9205_v6  ;;  %v4486_v62 = vpop.f32.mrb[62].mxu0  ;;  %v4038_v43 = vpop.f32.mrb[127].mxu1  ;;  %v1033_v30 = vld [vmem:[#allocation2 + $0x18] sm:$0xff] }
 0x3bb   : > { %v9208_v19 = vadd.f32 %v4486_v62, %v9027_v18  ;;  %v4488_v2 = vpop.f32.mrb[63].mxu0  ;;  %v1031_v62 = vld [vmem:[#allocation2 + $0x8] sm:$0xff] }
 0x3bf   : > { %v6702_v4 = vpop.f32.mrb[128].mxu1 }
 0x3c0   : > { %v4491_v48 = vpop.f32.mrb[64].mxu0  ;;  %v4661_v24 = vadd.f32 %v9050_v56, %v6702_v4  ;;  %v4652_v28 = vpop.f32.mrb[129].mxu1 }
 0x3c1   : > { %v9212_v39 = vadd.f32 %v4491_v48, %v9032_v27  ;;  %v4493_v14 = vpop.f32.mrb[65].mxu0  ;;  %v4653_v54 = vadd.f32 %v9036_v34, %v4652_v28  ;;  %v6703_v6 = vpop.f32.mrb[130].mxu1  ;;  %v1036_v34 = vld [vmem:[#allocation2 + $0x30] sm:$0xff] }
 0x3c2   : > { %v4909_v43 = vadd.f32 %v4661_v24, %v1032_v16  ;;  %v4494_v23 = vpop.f32.mrb[66].mxu0  ;;  %v4664_v18 = vadd.f32 %v9058_v10, %v6703_v6  ;;  %v4655_v2 = vpop.f32.mrb[131].mxu1  ;;  %v1034_v6 = vld [vmem:[#allocation2 + $0x20] sm:$0xff] }
 0x3c3   : > { %v4907_v9 = vadd.f32 %v4653_v54, %v1030_v15  ;;  %v9217_v42 = vadd.f32 %v4494_v23, %v9038_v36  ;;  %v4496_v56 = vpop.f32.mrb[67].mxu0  ;;  %v4656_v4 = vadd.f32 %v9044_v46, %v4655_v2  ;;  %v1037_v46 = vld [vmem:[#allocation2 + $0x38] sm:$0xff] }
 0x3c4   : > { %4973 = vst [vmem:[#allocation2 + $0x10] sm:$0xff] %v4909_v43  ;;  %v4910_v27 = vadd.f32 %v4664_v18, %v1033_v30  ;;  %v1035_v43 = vld [vmem:[#allocation2 + $0x28] sm:$0xff] }
 0x3c5   : > { %4971 = vst [vmem:[#allocation2] sm:$0xff] %v4907_v9  ;;  %v4908_v48 = vadd.f32 %v4656_v4, %v1031_v62 }
 0x3c6   : > { %4974 = vst [vmem:[#allocation2 + $0x18] sm:$0xff] %v4910_v27 }
 0x3c7   : > { %4972 = vst [vmem:[#allocation2 + $0x8] sm:$0xff] %v4908_v48  ;;  %v6706_v28 = vpop.f32.mrb[132].mxu1 }
 0x3c8   : > { %v4499_v16 = vpop.f32.mrb[68].mxu0  ;;  %v4677_v10 = vadd.f32 %v9078_v47, %v6706_v28  ;;  %v4668_v24 = vpop.f32.mrb[133].mxu1 }
 0x3c9   : > { %v9222_v15 = vadd.f32 %v4499_v16, %v9046_v50  ;;  %v4501_v36 = vpop.f32.mrb[69].mxu0  ;;  %v4669_v23 = vadd.f32 %v9064_v22, %v4668_v24  ;;  %v6707_v14 = vpop.f32.mrb[134].mxu1  ;;  %v1040_v22 = vld [vmem:[#allocation2 + $0x50] sm:$0xff] }
 0x3ca   : > { %v4913_v54 = vadd.f32 %v4677_v10, %v1036_v34  ;;  %v4502_v9 = vpop.f32.mrb[70].mxu0  ;;  %v4680_v30 = vadd.f32 %v9086_v1, %v6707_v14  ;;  %v4671_v18 = vpop.f32.mrb[135].mxu1  ;;  %v1038_v34 = vld [vmem:[#allocation2 + $0x40] sm:$0xff] }
 0x3cb   : > { %v4911_v62 = vadd.f32 %v4669_v23, %v1034_v6  ;;  %v9227_v2 = vadd.f32 %v4502_v9, %v9052_v59  ;;  %v4504_v47 = vpop.f32.mrb[71].mxu0  ;;  %v4672_v56 = vadd.f32 %v9072_v38, %v4671_v18  ;;  %v1041_v38 = vld [vmem:[#allocation2 + $0x58] sm:$0xff] }
 0x3cc   : > { %4977 = vst [vmem:[#allocation2 + $0x30] sm:$0xff] %v4913_v54  ;;  %v4914_v50 = vadd.f32 %v4680_v30, %v1037_v46  ;;  %v1039_v46 = vld [vmem:[#allocation2 + $0x48] sm:$0xff]  ;;  %v1042_v47 = vld [vmem:[#allocation2 + $0x60] sm:$0xff] }
 0x3cd   : > { %4975 = vst [vmem:[#allocation2 + $0x20] sm:$0xff] %v4911_v62  ;;  %v4912_v4 = vadd.f32 %v4672_v56, %v1035_v43 }
 0x3ce   : > { %4978 = vst [vmem:[#allocation2 + $0x38] sm:$0xff] %v4914_v50 }
 0x3cf   : > { %4976 = vst [vmem:[#allocation2 + $0x28] sm:$0xff] %v4912_v4  ;;  %v6710_v27 = vpop.f32.mrb[136].mxu1 }
 0x3d0   : > { %v4507_v48 = vpop.f32.mrb[72].mxu0  ;;  %v4693_v1 = vadd.f32 %v9103_v44, %v6710_v27  ;;  %v4684_v28 = vpop.f32.mrb[137].mxu1 }
 0x3d1   : > { %v9232_v16 = vadd.f32 %v4507_v48, %v9060_v58  ;;  %v4509_v59 = vpop.f32.mrb[73].mxu0  ;;  %v4685_v10 = vadd.f32 %v9092_v17, %v4684_v28  ;;  %v6711_v6 = vpop.f32.mrb[138].mxu1  ;;  %v1044_v17 = vld [vmem:[#allocation2 + $0x70] sm:$0xff] }
 0x3d2   : > { %v4917_v24 = vadd.f32 %v4693_v1, %v1040_v22  ;;  %v4510_v36 = vpop.f32.mrb[74].mxu0  ;;  %v4696_v23 = vadd.f32 %v9108_v55, %v6711_v6  ;;  %v4687_v14 = vpop.f32.mrb[139].mxu1 }
 0x3d3   : > { %v4915_v54 = vadd.f32 %v4685_v10, %v1038_v34  ;;  %v9237_v9 = vadd.f32 %v4510_v36, %v9066_v26  ;;  %v4512_v44 = vpop.f32.mrb[75].mxu0  ;;  %v4688_v30 = vadd.f32 %v9098_v32, %v4687_v14  ;;  %v1045_v32 = vld [vmem:[#allocation2 + $0x78] sm:$0xff]  ;;  %v1043_v34 = vld [vmem:[#allocation2 + $0x68] sm:$0xff] }
 0x3d4   : > { %4981 = vst [vmem:[#allocation2 + $0x50] sm:$0xff] %v4917_v24  ;;  %v4918_v58 = vadd.f32 %v4696_v23, %v1041_v38  ;;  %v1046_v23 = vld [vmem:[#allocation2 + $0x80] sm:$0xff] }
 0x3d5   : > { %4979 = vst [vmem:[#allocation2 + $0x40] sm:$0xff] %v4915_v54  ;;  %v4916_v43 = vadd.f32 %v4688_v30, %v1039_v46 }
 0x3d6   : > { %4982 = vst [vmem:[#allocation2 + $0x58] sm:$0xff] %v4918_v58 }
 0x3d7   : > { %4980 = vst [vmem:[#allocation2 + $0x48] sm:$0xff] %v4916_v43  ;;  %v6714_v18 = vpop.f32.mrb[140].mxu1 }
 0x3d8   : > { %v4515_v62 = vpop.f32.mrb[76].mxu0  ;;  %v4709_v55 = vadd.f32 %v9123_v33, %v6714_v18  ;;  %v4700_v56 = vpop.f32.mrb[141].mxu1 }
 0x3d9   : > { %v9242_v50 = vadd.f32 %v4515_v62, %v9074_v3  ;;  %v4517_v26 = vpop.f32.mrb[77].mxu0  ;;  %v4701_v4 = vadd.f32 %v9113_v5, %v4700_v56  ;;  %v6715_v22 = vpop.f32.mrb[142].mxu1  ;;  %v1048_v5 = vld [vmem:[#allocation2 + $0x90] sm:$0xff] }
 0x3da   : > { %v4921_v27 = vadd.f32 %v4709_v55, %v1044_v17  ;;  %v4518_v48 = vpop.f32.mrb[78].mxu0  ;;  %v4712_v1 = vadd.f32 %v9128_v51, %v6715_v22  ;;  %v4703_v28 = vpop.f32.mrb[143].mxu1  ;;  %v1047_v17 = vld [vmem:[#allocation2 + $0x88] sm:$0xff] }
 0x3db   : > { %v4919_v59 = vadd.f32 %v4701_v4, %v1042_v47  ;;  %v9247_v10 = vadd.f32 %v4518_v48, %v9080_v52  ;;  %v4520_v33 = vpop.f32.mrb[79].mxu0  ;;  %v4704_v38 = vadd.f32 %v9118_v21, %v4703_v28  ;;  %v1049_v21 = vld [vmem:[#allocation2 + $0x98] sm:$0xff] }
 0x3dc   : > { %4985 = vst [vmem:[#allocation2 + $0x70] sm:$0xff] %v4921_v27  ;;  %v4922_v3 = vadd.f32 %v4712_v1, %v1045_v32  ;;  %v1050_v32 = vld [vmem:[#allocation2 + $0xa0] sm:$0xff]  ;;  %v1051_v33 = vld [vmem:[#allocation2 + $0xa8] sm:$0xff] }
 0x3dd   : > { %4983 = vst [vmem:[#allocation2 + $0x60] sm:$0xff] %v4919_v59  ;;  %v4920_v6 = vadd.f32 %v4704_v38, %v1043_v34 }
 0x3de   : > { %4986 = vst [vmem:[#allocation2 + $0x78] sm:$0xff] %v4922_v3 }
 0x3df   : > { %4984 = vst [vmem:[#allocation2 + $0x68] sm:$0xff] %v4920_v6  ;;  %v6718_v24 = vpop.f32.mrb[144].mxu1 }
 0x3e0   : > { %v4523_v36 = vpop.f32.mrb[80].mxu0  ;;  %v4725_v51 = vadd.f32 %v9143_v37, %v6718_v24  ;;  %v4716_v46 = vpop.f32.mrb[145].mxu1 }
 0x3e1   : > { %v9252_v14 = vadd.f32 %v4523_v36, %v9088_v12  ;;  %v4525_v52 = vpop.f32.mrb[81].mxu0  ;;  %v4717_v54 = vadd.f32 %v9133_v63, %v4716_v46  ;;  %v6719_v44 = vpop.f32.mrb[146].mxu1  ;;  %v1052_v63 = vld [vmem:[#allocation2 + $0xb0] sm:$0xff] }
 0x3e2   : > { %v4925_v30 = vadd.f32 %v4725_v51, %v1048_v5  ;;  %v4526_v58 = vpop.f32.mrb[82].mxu0  ;;  %v4728_v43 = vadd.f32 %v9148_v53, %v6719_v44  ;;  %v4719_v18 = vpop.f32.mrb[147].mxu1 }
 0x3e3   : > { %v4923_v62 = vadd.f32 %v4717_v54, %v1046_v23  ;;  %v9257_v55 = vadd.f32 %v4526_v58, %v9094_v25  ;;  %v4528_v37 = vpop.f32.mrb[83].mxu0  ;;  %v4720_v47 = vadd.f32 %v9138_v61, %v4719_v18  ;;  %v1053_v61 = vld [vmem:[#allocation2 + $0xb8] sm:$0xff]  ;;  %v1054_v23 = vld [vmem:[#allocation2 + $0xc0] sm:$0xff] }
 0x3e4   : > { %4989 = vst [vmem:[#allocation2 + $0x90] sm:$0xff] %v4925_v30  ;;  %v4926_v12 = vadd.f32 %v4728_v43, %v1049_v21  ;;  %v1055_v43 = vld [vmem:[#allocation2 + $0xc8] sm:$0xff] }
 0x3e5   : > { %4987 = vst [vmem:[#allocation2 + $0x80] sm:$0xff] %v4923_v62  ;;  %v4924_v56 = vadd.f32 %v4720_v47, %v1047_v17 }
 0x3e6   : > { %4990 = vst [vmem:[#allocation2 + $0x98] sm:$0xff] %v4926_v12 }
 0x3e7   : > { %4988 = vst [vmem:[#allocation2 + $0x88] sm:$0xff] %v4924_v56  ;;  %v6722_v26 = vpop.f32.mrb[148].mxu1 }
 0x3e8   : > { %v4531_v4 = vpop.f32.mrb[84].mxu0  ;;  %v4741_v53 = vadd.f32 %v9163_v8, %v6722_v26  ;;  %v4732_v22 = vpop.f32.mrb[149].mxu1 }
 0x3e9   : > { %v9262_v27 = vadd.f32 %v4531_v4, %v9100_v35  ;;  %v4533_v25 = vpop.f32.mrb[85].mxu0  ;;  %v4733_v48 = vadd.f32 %v9153_v31, %v4732_v22  ;;  %v6723_v1 = vpop.f32.mrb[150].mxu1  ;;  %v1056_v31 = vld [vmem:[#allocation2 + $0xd0] sm:$0xff] }
 0x3ea   : > { %v4929_v34 = vadd.f32 %v4741_v53, %v1052_v63  ;;  %v4534_v28 = vpop.f32.mrb[86].mxu0  ;;  %v4744_v59 = vadd.f32 %v9168_v41, %v6723_v1  ;;  %v4735_v38 = vpop.f32.mrb[151].mxu1  ;;  %v1058_v63 = vld [vmem:[#allocation2 + $0xe0] sm:$0xff] }
 0x3eb   : > { %v4927_v3 = vadd.f32 %v4733_v48, %v1050_v32  ;;  %v9267_v6 = vadd.f32 %v4534_v28, %v9105_v7  ;;  %v4536_v8 = vpop.f32.mrb[87].mxu0  ;;  %v4736_v5 = vadd.f32 %v9158_v20, %v4735_v38  ;;  %v1057_v20 = vld [vmem:[#allocation2 + $0xd8] sm:$0xff]  ;;  %v9613_v28 = vld [vmem:[#allocation4_spill] sm:$0xff] }
 0x3ec   : > { %4993 = vst [vmem:[#allocation2 + $0xb0] sm:$0xff] %v4929_v34  ;;  %v4930_v35 = vadd.f32 %v4744_v59, %v1053_v61  ;;  %v1059_v61 = vld [vmem:[#allocation2 + $0xe8] sm:$0xff] }
 0x3ed   : > { %4991 = vst [vmem:[#allocation2 + $0xa0] sm:$0xff] %v4927_v3  ;;  %v4928_v24 = vadd.f32 %v4736_v5, %v1051_v33  ;;  %v9614_v33 = vld [vmem:[#allocation19_spill] sm:$0xff] }
 0x3ee   : > { %4994 = vst [vmem:[#allocation2 + $0xb8] sm:$0xff] %v4930_v35  ;;  %v1062_v35 = vld [vmem:[#allocation2 + $0x100] sm:$0xff] }
 0x3ef   : > { %4992 = vst [vmem:[#allocation2 + $0xa8] sm:$0xff] %v4928_v24  ;;  %v6726_v36 = vpop.f32.mrb[152].mxu1 }
 0x3f0   : > { %v4539_v51 = vpop.f32.mrb[88].mxu0  ;;  %v4757_v41 = vadd.f32 %v9183_v49, %v6726_v36  ;;  %v4748_v46 = vpop.f32.mrb[153].mxu1 }
 0x3f1   : > { %v9272_v52 = vadd.f32 %v4539_v51, %v9110_v57  ;;  %v4541_v7 = vpop.f32.mrb[89].mxu0  ;;  %v4749_v54 = vadd.f32 %v9173_v40, %v4748_v46  ;;  %v6727_v21 = vpop.f32.mrb[154].mxu1  ;;  %v1060_v40 = vld [vmem:[#allocation2 + $0xf0] sm:$0xff] }
 0x3f2   : > { %v4933_v44 = vadd.f32 %v4757_v41, %v1056_v31  ;;  %v4542_v30 = vpop.f32.mrb[90].mxu0  ;;  %v4760_v58 = vadd.f32 %v9188_v60, %v6727_v21  ;;  %v4751_v17 = vpop.f32.mrb[155].mxu1  ;;  %v9615_v31 = vld [vmem:[#allocation5_spill] sm:$0xff] }
 0x3f3   : > { %v4931_v18 = vadd.f32 %v4749_v54, %v1054_v23  ;;  %v9277_v62 = vadd.f32 %v4542_v30, %v9115_v11  ;;  %v4544_v49 = vpop.f32.mrb[91].mxu0  ;;  %v4752_v37 = vadd.f32 %v9178_v45, %v4751_v17  ;;  %v1061_v45 = vld [vmem:[#allocation2 + $0xf8] sm:$0xff]  ;;  %v1063_v21 = vld [vmem:[#allocation2 + $0x108] sm:$0xff] }
 0x3f4   : > { %4997 = vst [vmem:[#allocation2 + $0xd0] sm:$0xff] %v4933_v44  ;;  %v4934_v57 = vadd.f32 %v4760_v58, %v1057_v20  ;;  %v1065_v23 = vld [vmem:[#allocation2 + $0x118] sm:$0xff]  ;;  %v9616_v58 = vld [vmem:[#allocation6_spill] sm:$0xff] }
 0x3f5   : > { %4995 = vst [vmem:[#allocation2 + $0xc0] sm:$0xff] %v4931_v18  ;;  %v4932_v47 = vadd.f32 %v4752_v37, %v1055_v43 }
 0x3f6   : > { %4998 = vst [vmem:[#allocation2 + $0xd8] sm:$0xff] %v4934_v57 }
 0x3f7   : > { %4996 = vst [vmem:[#allocation2 + $0xc8] sm:$0xff] %v4932_v47  ;;  %v6730_v12 = vpop.f32.mrb[156].mxu1  ;;  %v1066_v47 = vld [vmem:[#allocation2 + $0x120] sm:$0xff] }
 0x3f8   : > { %v4547_v56 = vpop.f32.mrb[92].mxu0  ;;  %v4773_v60 = vadd.f32 %v9203_v13, %v6730_v12  ;;  %v4764_v26 = vpop.f32.mrb[157].mxu1  ;;  %v9617_v12 = vld [vmem:[#allocation7_spill] sm:$0xff] }
 0x3f9   : > { %v9282_v4 = vadd.f32 %v4547_v56, %v9120_v29  ;;  %v4549_v11 = vpop.f32.mrb[93].mxu0  ;;  %v4765_v53 = vadd.f32 %v9193_v0, %v4764_v26  ;;  %v6731_v32 = vpop.f32.mrb[158].mxu1  ;;  %v1064_v0 = vld [vmem:[#allocation2 + $0x110] sm:$0xff] }
 0x3fa   : > { %v4937_v22 = vadd.f32 %v4773_v60, %v1060_v40  ;;  %v4550_v25 = vpop.f32.mrb[94].mxu0  ;;  %v4776_v48 = vadd.f32 %v9208_v19, %v6731_v32  ;;  %v4767_v1 = vpop.f32.mrb[159].mxu1  ;;  %v1067_v32 = vld [vmem:[#allocation2 + $0x128] sm:$0xff] }
 0x3fb   : > { %v4935_v34 = vadd.f32 %v4765_v53, %v1058_v63  ;;  %v9287_v59 = vadd.f32 %v4550_v25, %v9613_v28  ;;  %v4552_v13 = vpop.f32.mrb[95].mxu0  ;;  %v4768_v38 = vadd.f32 %v9614_v33, %v4767_v1 }
 0x3fc   : > { %5001 = vst [vmem:[#allocation2 + $0xf0] sm:$0xff] %v4937_v22  ;;  %v4938_v29 = vadd.f32 %v4776_v48, %v1061_v45  ;;  %v9618_v48 = vld [vmem:[#allocation8_spill] sm:$0xff] }
 0x3fd   : > { %4999 = vst [vmem:[#allocation2 + $0xe0] sm:$0xff] %v4935_v34  ;;  %v4936_v3 = vadd.f32 %v4768_v38, %v1059_v61  ;;  %v1070_v38 = vld [vmem:[#allocation2 + $0x140] sm:$0xff] }
 0x3fe   : > { %5002 = vst [vmem:[#allocation2 + $0xf8] sm:$0xff] %v4938_v29 }
 0x3ff   : > { %5000 = vst [vmem:[#allocation2 + $0xe8] sm:$0xff] %v4936_v3  ;;  %v6734_v8 = vpop.f32.mrb[160].mxu1  ;;  %v9619_v3 = vld [vmem:[#allocation9_spill] sm:$0xff] }
 0x400   : > { %v4555_v5 = vpop.f32.mrb[96].mxu0  ;;  %v4789_v19 = vadd.f32 %v9222_v15, %v6734_v8  ;;  %v4780_v24 = vpop.f32.mrb[161].mxu1 }
 0x401   : > { %v9292_v36 = vadd.f32 %v4555_v5, %v9615_v31  ;;  %v4557_v51 = vpop.f32.mrb[97].mxu0  ;;  %v4781_v41 = vadd.f32 %v9212_v39, %v4780_v24  ;;  %v6735_v46 = vpop.f32.mrb[162].mxu1  ;;  %v1068_v39 = vld [vmem:[#allocation2 + $0x130] sm:$0xff] }
 0x402   : > { %v4941_v7 = vadd.f32 %v4789_v19, %v1064_v0  ;;  %v4558_v54 = vpop.f32.mrb[98].mxu0  ;;  %v4792_v20 = vadd.f32 %v9227_v2, %v6735_v46  ;;  %v4783_v44 = vpop.f32.mrb[163].mxu1  ;;  %v1071_v51 = vld [vmem:[#allocation2 + $0x148] sm:$0xff]  ;;  %v9620_v46 = vld [vmem:[#allocation10_spill] sm:$0xff] }
 0x403   : > { %v4939_v30 = vadd.f32 %v4781_v41, %v1062_v35  ;;  %v9297_v43 = vadd.f32 %v4558_v54, %v9616_v58  ;;  %v4560_v15 = vpop.f32.mrb[99].mxu0  ;;  %v4784_v17 = vadd.f32 %v9217_v42, %v4783_v44  ;;  %v1069_v42 = vld [vmem:[#allocation2 + $0x138] sm:$0xff]  ;;  %v1074_v58 = vld [vmem:[#allocation2 + $0x160] sm:$0xff] }
 0x404   : > { %5005 = vst [vmem:[#allocation2 + $0x110] sm:$0xff] %v4941_v7  ;;  %v4942_v18 = vadd.f32 %v4792_v20, %v1065_v23 }
 0x405   : > { %5003 = vst [vmem:[#allocation2 + $0x100] sm:$0xff] %v4939_v30  ;;  %v4940_v49 = vadd.f32 %v4784_v17, %v1063_v21  ;;  %v9621_v17 = vld [vmem:[#allocation11_spill] sm:$0xff] }
 0x406   : > { %5006 = vst [vmem:[#allocation2 + $0x118] sm:$0xff] %v4942_v18 }
 0x407   : > { %5004 = vst [vmem:[#allocation2 + $0x108] sm:$0xff] %v4940_v49  ;;  %v6738_v37 = vpop.f32.mrb[164].mxu1 }
 0x408   : > { %v4563_v57 = vpop.f32.mrb[100].mxu0  ;;  %v4805_v2 = vadd.f32 %v9242_v50, %v6738_v37  ;;  %v4796_v40 = vpop.f32.mrb[165].mxu1  ;;  %v1077_v37 = vld [vmem:[#allocation2 + $0x178] sm:$0xff] }
 0x409   : > { %v9302_v56 = vadd.f32 %v4563_v57, %v9617_v12  ;;  %v4565_v60 = vpop.f32.mrb[101].mxu0  ;;  %v4797_v63 = vadd.f32 %v9232_v16, %v4796_v40  ;;  %v6739_v26 = vpop.f32.mrb[166].mxu1  ;;  %v1072_v16 = vld [vmem:[#allocation2 + $0x150] sm:$0xff]  ;;  %v1075_v40 = vld [vmem:[#allocation2 + $0x168] sm:$0xff] }
 0x40a   : > { %v4945_v11 = vadd.f32 %v4805_v2, %v1068_v39  ;;  %v4566_v53 = vpop.f32.mrb[102].mxu0  ;;  %v4808_v45 = vadd.f32 %v9247_v10, %v6739_v26  ;;  %v4799_v22 = vpop.f32.mrb[167].mxu1 }
 0x40b   : > { %v4943_v25 = vadd.f32 %v4797_v63, %v1066_v47  ;;  %v9307_v61 = vadd.f32 %v4566_v53, %v9618_v48  ;;  %v4568_v50 = vpop.f32.mrb[103].mxu0  ;;  %v4800_v1 = vadd.f32 %v9237_v9, %v4799_v22  ;;  %v1073_v9 = vld [vmem:[#allocation2 + $0x158] sm:$0xff]  ;;  %v9622_v63 = vld [vmem:[#allocation12_spill] sm:$0xff]  ;;  %v9623_v48 = vld [vmem:[#allocation13_spill] sm:$0xff] }
 0x40c   : > { %5009 = vst [vmem:[#allocation2 + $0x130] sm:$0xff] %v4945_v11  ;;  %v4946_v34 = vadd.f32 %v4808_v45, %v1069_v42 }
 0x40d   : > { %5007 = vst [vmem:[#allocation2 + $0x120] sm:$0xff] %v4943_v25  ;;  %v4944_v28 = vadd.f32 %v4800_v1, %v1067_v32 }
 0x40e   : > { %5010 = vst [vmem:[#allocation2 + $0x138] sm:$0xff] %v4946_v34 }
 0x40f   : > { %5008 = vst [vmem:[#allocation2 + $0x128] sm:$0xff] %v4944_v28  ;;  %v6742_v13 = vpop.f32.mrb[168].mxu1  ;;  %v1081_v28 = vld [vmem:[#allocation2 + $0x198] sm:$0xff] }
 0x410   : > { %v4571_v33 = vpop.f32.mrb[104].mxu0  ;;  %v4821_v10 = vadd.f32 %v9262_v27, %v6742_v13  ;;  %v4812_v29 = vpop.f32.mrb[169].mxu1 }
 0x411   : > { %v9312_v0 = vadd.f32 %v4571_v33, %v9619_v3  ;;  %v4573_v8 = vpop.f32.mrb[105].mxu0  ;;  %v4813_v5 = vadd.f32 %v9252_v14, %v4812_v29  ;;  %v6743_v19 = vpop.f32.mrb[170].mxu1  ;;  %v1076_v14 = vld [vmem:[#allocation2 + $0x170] sm:$0xff] }
 0x412   : > { %v4949_v35 = vadd.f32 %v4821_v10, %v1072_v16  ;;  %v4574_v24 = vpop.f32.mrb[106].mxu0  ;;  %v4824_v31 = vadd.f32 %v9267_v6, %v6743_v19  ;;  %v4815_v41 = vpop.f32.mrb[171].mxu1  ;;  %v1079_v10 = vld [vmem:[#allocation2 + $0x188] sm:$0xff]  ;;  %v9624_v3 = vld [vmem:[#allocation14_spill] sm:$0xff] }
 0x413   : > { %v4947_v23 = vadd.f32 %v4813_v5, %v1070_v38  ;;  %v9317_v7 = vadd.f32 %v4574_v24, %v9620_v46  ;;  %v4576_v27 = vpop.f32.mrb[107].mxu0  ;;  %v4816_v54 = vadd.f32 %v9257_v55, %v4815_v41  ;;  %v9625_v41 = vld [vmem:[#allocation15_spill] sm:$0xff] }
 0x414   : > { %5013 = vst [vmem:[#allocation2 + $0x150] sm:$0xff] %v4949_v35  ;;  %v4950_v20 = vadd.f32 %v4824_v31, %v1073_v9 }
 0x415   : > { %5011 = vst [vmem:[#allocation2 + $0x140] sm:$0xff] %v4947_v23  ;;  %v4948_v21 = vadd.f32 %v4816_v54, %v1071_v51  ;;  %v1082_v51 = vld [vmem:[#allocation2 + $0x1a0] sm:$0xff]  ;;  %v1085_v54 = vld [vmem:[#allocation2 + $0x1b8] sm:$0xff] }
 0x416   : > { %5014 = vst [vmem:[#allocation2 + $0x158] sm:$0xff] %v4950_v20 }
 0x417   : > { %5012 = vst [vmem:[#allocation2 + $0x148] sm:$0xff] %v4948_v21  ;;  %v6746_v44 = vpop.f32.mrb[172].mxu1 }
 0x418   : > { %v4579_v30 = vpop.f32.mrb[108].mxu0  ;;  %v4837_v6 = vadd.f32 %v9282_v4, %v6746_v44  ;;  %v4828_v15 = vpop.f32.mrb[173].mxu1  ;;  %v1083_v44 = vld [vmem:[#allocation2 + $0x1a8] sm:$0xff] }
 0x419   : > { %v6850_v18 = vadd.f32 %v4579_v30, %v9621_v17  ;;  %v4581_v49 = vpop.f32.mrb[109].mxu0  ;;  %v4829_v39 = vadd.f32 %v9272_v52, %v4828_v15  ;;  %v6747_v55 = vpop.f32.mrb[174].mxu1  ;;  %v1080_v52 = vld [vmem:[#allocation2 + $0x190] sm:$0xff] }
 0x41a   : > { %v4953_v57 = vadd.f32 %v4837_v6, %v1076_v14  ;;  %v4582_v2 = vpop.f32.mrb[110].mxu0  ;;  %v4840_v47 = vadd.f32 %v9287_v59, %v6747_v55  ;;  %v4831_v12 = vpop.f32.mrb[175].mxu1  ;;  %v1078_v59 = vld [vmem:[#allocation2 + $0x180] sm:$0xff] }
 0x41b   : > { %v4951_v60 = vadd.f32 %v4829_v39, %v1074_v58  ;;  %v6851_v42 = vadd.f32 %v4582_v2, %v9622_v63  ;;  %v4584_v26 = vpop.f32.mrb[111].mxu0  ;;  %v4832_v4 = vadd.f32 %v9277_v62, %v4831_v12  ;;  %v9626_v58 = vld [vmem:[#allocation16_spill] sm:$0xff] }
 0x41c   : > { %5017 = vst [vmem:[#allocation2 + $0x170] sm:$0xff] %v4953_v57  ;;  %v4954_v11 = vadd.f32 %v4840_v47, %v1077_v37  ;;  %v1086_v2 = vld [vmem:[#allocation2 + $0x1c0] sm:$0xff] }
 0x41d   : > { %5015 = vst [vmem:[#allocation2 + $0x160] sm:$0xff] %v4951_v60  ;;  %v4952_v53 = vadd.f32 %v4832_v4, %v1075_v40  ;;  %v9627_v40 = vld [vmem:[#allocation17_spill] sm:$0xff] }
 0x41e   : > { %5018 = vst [vmem:[#allocation2 + $0x178] sm:$0xff] %v4954_v11 }
 0x41f   : > { %5016 = vst [vmem:[#allocation2 + $0x168] sm:$0xff] %v4952_v53  ;;  %v6750_v45 = vpop.f32.mrb[176].mxu1  ;;  %v1087_v53 = vld [vmem:[#allocation2 + $0x1c8] sm:$0xff] }
 0x420   : > { %v4587_v32 = vpop.f32.mrb[112].mxu0  ;;  %v4853_v22 = vadd.f32 %v9302_v56, %v6750_v45  ;;  %v4844_v25 = vpop.f32.mrb[177].mxu1 }
 0x421   : > { %v6852_v50 = vadd.f32 %v4587_v32, %v9623_v48  ;;  %v4589_v1 = vpop.f32.mrb[113].mxu0  ;;  %v4845_v34 = vadd.f32 %v9292_v36, %v4844_v25  ;;  %v6751_v62 = vpop.f32.mrb[178].mxu1  ;;  %v1084_v36 = vld [vmem:[#allocation2 + $0x1b0] sm:$0xff] }
 0x422   : > { %v4957_v16 = vadd.f32 %v4853_v22, %v1080_v52  ;;  %v4590_v13 = vpop.f32.mrb[114].mxu0  ;;  %v4856_v33 = vadd.f32 %v9307_v61, %v6751_v62  ;;  %v4847_v38 = vpop.f32.mrb[179].mxu1  ;;  %v9628_v32 = vld [vmem:[#allocation18_spill] sm:$0xff] }
 0x423   : > { %v4955_v29 = vadd.f32 %v4845_v34, %v1078_v59  ;;  %v6853_v8 = vadd.f32 %v4590_v13, %v9624_v3  ;;  %v4592_v5 = vpop.f32.mrb[115].mxu0  ;;  %v4848_v56 = vadd.f32 %v9297_v43, %v4847_v38 }
 0x424   : > { %5021 = vst [vmem:[#allocation2 + $0x190] sm:$0xff] %v4957_v16  ;;  %v4958_v9 = vadd.f32 %v4856_v33, %v1081_v28  ;;  %v1090_v28 = vld [vmem:[#allocation2 + $0x1e0] sm:$0xff]  ;;  %v1091_v5 = vld [vmem:[#allocation2 + $0x1e8] sm:$0xff] }
 0x425   : > { %5019 = vst [vmem:[#allocation2 + $0x180] sm:$0xff] %v4955_v29  ;;  %v4956_v19 = vadd.f32 %v4848_v56, %v1079_v10  ;;  %v9629_v16 = vld [vmem:[#allocation20_spill] sm:$0xff]  ;;  %v1092_v29 = vld [vmem:[#allocation2 + $0x1f0] sm:$0xff] }
 0x426   : > { %5022 = vst [vmem:[#allocation2 + $0x198] sm:$0xff] %v4958_v9 }
 0x427   : > { %5020 = vst [vmem:[#allocation2 + $0x188] sm:$0xff] %v4956_v19  ;;  %v6754_v35 = vpop.f32.mrb[180].mxu1  ;;  %v9630_v19 = vld [vmem:[#allocation21_spill] sm:$0xff] }
 0x428   : > { %v4595_v24 = vpop.f32.mrb[116].mxu0  ;;  %v4869_v31 = vadd.f32 %v6850_v18, %v6754_v35  ;;  %v4860_v61 = vpop.f32.mrb[181].mxu1 }
 0x429   : > { %v6854_v23 = vadd.f32 %v4595_v24, %v9625_v41  ;;  %v4597_v46 = vpop.f32.mrb[117].mxu0  ;;  %v4861_v27 = vadd.f32 %v9312_v0, %v4860_v61  ;;  %v6755_v20 = vpop.f32.mrb[182].mxu1  ;;  %v1088_v0 = vld [vmem:[#allocation2 + $0x1d0] sm:$0xff] }
 0x42a   : > { %v4961_v43 = vadd.f32 %v4869_v31, %v1084_v36  ;;  %v4598_v21 = vpop.f32.mrb[118].mxu0  ;;  %v4872_v14 = vadd.f32 %v6851_v42, %v6755_v20  ;;  %v4863_v30 = vpop.f32.mrb[183].mxu1  ;;  %v1089_v42 = vld [vmem:[#allocation2 + $0x1d8] sm:$0xff]  ;;  %v5039_v46 = vld [vmem:[#allocation2] sm:$0xff] (!%p6317_p11) }
 0x42b   : > { %v4959_v6 = vadd.f32 %v4861_v27, %v1082_v51  ;;  %v6855_v15 = vadd.f32 %v4598_v21, %v9626_v58  ;;  %v4600_v17 = vpop.f32.mrb[119].mxu0  ;;  %v4864_v18 = vadd.f32 %v9317_v7, %v4863_v30  ;;  %v1093_v31 = vld [vmem:[#allocation2 + $0x1f8] sm:$0xff]  ;;  %v5040_v27 = vld [vmem:[#allocation2 + $0x8] sm:$0xff] (!%p6317_p11)  ;;  %v9351_v21 = vld [vmem:[%s9593_s3] ss:$0 sm:$0xff] (!%p6317_p11) }
 0x42c   : > { %5025 = vst [vmem:[#allocation2 + $0x1b0] sm:$0xff] %v4961_v43  ;;  %v4962_v49 = vadd.f32 %v4872_v14, %v1085_v54  ;;  %v9344_v54 = vld [vmem:[%s9592_s2] ss:$0 sm:$0xff] (!%p6317_p11)  ;;  %v5041_v14 = vld [vmem:[#allocation2 + $0x10] sm:$0xff] (!%p6317_p11) }
 0x42d   : > { %5023 = vst [vmem:[#allocation2 + $0x1a0] sm:$0xff] %v4959_v6  ;;  %v4960_v39 = vadd.f32 %v4864_v18, %v1083_v44  ;;  %v5110_v20 = vadd.f32 (!%p6317_p11), %v9344_v54, %v5039_v46  ;;  %v5111_v43 = vadd.f32 (!%p6317_p11), %v9344_v54, %v5040_v27  ;;  %v5042_v44 = vld [vmem:[#allocation2 + $0x18] sm:$0xff] (!%p6317_p11)  ;;  %v5112_v30 = vadd.f32 (!%p6317_p11), %v9344_v54, %v5041_v14  ;;  %v5043_v58 = vld [vmem:[#allocation2 + $0x20] sm:$0xff] (!%p6317_p11) }
 0x42e   : > { %5026 = vst [vmem:[#allocation2 + $0x1b8] sm:$0xff] %v4962_v49  ;;  %v5113_v6 = vadd.f32 (!%p6317_p11), %v9344_v54, %v5042_v44  ;;  %v5045_v49 = vld [vmem:[#allocation2 + $0x30] sm:$0xff] (!%p6317_p11) }
 0x42f   : > { %5024 = vst [vmem:[#allocation2 + $0x1a8] sm:$0xff] %v4960_v39  ;;  %v6758_v37 = vpop.f32.mrb[184].mxu1  ;;  %vm5174_vm0 = vcmp.ge.f32.partialorder (!%p6317_p11), %v5110_v20, 0.0  ;;  %vm5175_vm1 = vcmp.ge.f32.partialorder (!%p6317_p11), %v5111_v43, 0.0  ;;  %v5245_v17 = vmul.f32 (!%p6317_p11), %v9351_v21, %v5110_v20  ;;  %v5246_v18 = vmul.f32 (!%p6317_p11), %v9351_v21, %v5111_v43 }
 0x430   : > { %v4603_v55 = vpop.f32.mrb[120].mxu0  ;;  %v4885_v57 = vadd.f32 %v6854_v23, %v6758_v37  ;;  %v4876_v47 = vpop.f32.mrb[185].mxu1  ;;  %vm5176_vm2 = vcmp.ge.f32.partialorder (!%p6317_p11), %v5112_v30, 0.0  ;;  %vm5177_vm3 = vcmp.ge.f32.partialorder (!%p6317_p11), %v5113_v6, 0.0  ;;  %v5247_v39 = vmul.f32 (!%p6317_p11), %v9351_v21, %v5112_v30 }
 0x431   : > { %v6856_v12 = vadd.f32 %v4603_v55, %v9627_v40  ;;  %v4605_v60 = vpop.f32.mrb[121].mxu0  ;;  %v4877_v63 = vadd.f32 %v6852_v50, %v4876_v47  ;;  %v6759_v26 = vpop.f32.mrb[186].mxu1  ;;  %v5309_v37 = vsel (!%p6317_p11), %vm5174_vm0, %v5110_v20, %v5245_v17  ;;  %v5310_v55 = vsel (!%p6317_p11), %vm5175_vm1, %v5111_v43, %v5246_v18  ;;  %v5046_v47 = vld [vmem:[#allocation2 + $0x38] sm:$0xff] (!%p6317_p11)  ;;  %v5059_v18 = vld [vmem:[#allocation2 + $0xa0] sm:$0xff] (!%p6317_p11) }
 0x432   : > { %v4965_v4 = vadd.f32 %v4885_v57, %v1088_v0  ;;  %v4606_v7 = vpop.f32.mrb[122].mxu0  ;;  %v4888_v11 = vadd.f32 %v6855_v15, %v6759_v26  ;;  %v4879_v52 = vpop.f32.mrb[187].mxu1  ;;  %v5044_v15 = vld [vmem:[#allocation2 + $0x28] sm:$0xff] (!%p6317_p11)  ;;  %v5248_v0 = vmul.f32 (!%p6317_p11), %v9351_v21, %v5113_v6  ;;  %v5114_v57 = vadd.f32 (!%p6317_p11), %v9344_v54, %v5043_v58  ;;  %v5058_v17 = vld [vmem:[#allocation2 + $0x98] sm:$0xff] (!%p6317_p11) }
 0x433   : > { %v4963_v45 = vadd.f32 %v4877_v63, %v1086_v2  ;;  %v6857_v22 = vadd.f32 %v4606_v7, %v9628_v32  ;;  %v4608_v59 = vpop.f32.mrb[123].mxu0  ;;  %v4880_v25 = vadd.f32 %v6853_v8, %v4879_v52  ;;  %v5115_v2 = vadd.f32 (!%p6317_p11), %v9344_v54, %v5044_v15  ;;  %v5048_v26 = vld [vmem:[#allocation2 + $0x48] sm:$0xff] (!%p6317_p11)  ;;  %v5057_v15 = vld [vmem:[#allocation2 + $0x90] sm:$0xff] (!%p6317_p11) }
 0x434   : > { %5029 = vst [vmem:[#allocation2 + $0x1d0] sm:$0xff] %v4965_v4  ;;  %v4966_v48 = vadd.f32 %v4888_v11, %v1089_v42  ;;  %v6456_v40 = vpack.c.bf16 (!%p6317_p11), %v5310_v55, %v5309_v37  ;;  %v5312_v60 = vsel (!%p6317_p11), %vm5177_vm3, %v5113_v6, %v5248_v0  ;;  %v5116_v63 = vadd.f32 (!%p6317_p11), %v9344_v54, %v5045_v49  ;;  %v5047_v42 = vld [vmem:[#allocation2 + $0x40] sm:$0xff] (!%p6317_p11)  ;;  %v5049_v4 = vld [vmem:[#allocation2 + $0x50] sm:$0xff] (!%p6317_p11)  ;;  %v5060_v0 = vld [vmem:[#allocation2 + $0xa8] sm:$0xff] (!%p6317_p11) }
 0x435   : > { %5027 = vst [vmem:[#allocation2 + $0x1c0] sm:$0xff] %v4963_v45  ;;  %v4964_v1 = vadd.f32 %v4880_v25, %v1087_v53  ;;  %vm5178_vm4 = vcmp.ge.f32.partialorder (!%p6317_p11), %v5114_v57, 0.0  ;;  %vm5179_vm5 = vcmp.ge.f32.partialorder (!%p6317_p11), %v5115_v2, 0.0  ;;  %v5249_v11 = vmul.f32 (!%p6317_p11), %v9351_v21, %v5114_v57  ;;  %v5050_v25 = vld [vmem:[#allocation2 + $0x58] sm:$0xff] (!%p6317_p11) }
 0x436   : > { %5030 = vst [vmem:[#allocation2 + $0x1d8] sm:$0xff] %v4966_v48  ;;  %6457 = vst [vmem:[%s9594_s4] sm:$0xff] (!%p6317_p11), %v6456_v40   ;;  %v5250_v53 = vmul.f32 (!%p6317_p11), %v9351_v21, %v5115_v2  ;;  %v5117_v52 = vadd.f32 (!%p6317_p11), %v9344_v54, %v5046_v47  ;;  %vm5180_vm6 = vcmp.ge.f32.partialorder (!%p6317_p11), %v5116_v63, 0.0  ;;  %v5251_v45 = vmul.f32 (!%p6317_p11), %v9351_v21, %v5116_v63 }
 0x437   : > { %5028 = vst [vmem:[#allocation2 + $0x1c8] sm:$0xff] %v4964_v1  ;;  %v6762_v34 = vpop.f32.mrb[188].mxu1  ;;  %v5313_v32 = vsel (!%p6317_p11), %vm5178_vm4, %v5114_v57, %v5249_v11  ;;  %v5119_v59 = vadd.f32 (!%p6317_p11), %v9344_v54, %v5048_v26  ;;  %v5120_v48 = vadd.f32 (!%p6317_p11), %v9344_v54, %v5049_v4  ;;  %v5128_v47 = vadd.f32 (!%p6317_p11), %v9344_v54, %v5057_v15  ;;  %v5061_v4 = vld [vmem:[#allocation2 + $0xb0] sm:$0xff] (!%p6317_p11) }
 0x438   : > { %v4611_v50 = vpop.f32.mrb[124].mxu0  ;;  %v4892_v62 = vpop.f32.mrb[189].mxu1  ;;  %v5314_v1 = vsel (!%p6317_p11), %vm5179_vm5, %v5115_v2, %v5250_v53  ;;  %vm5181_vm7 = vcmp.ge.f32.partialorder (!%p6317_p11), %v5117_v52, 0.0  ;;  %v5129_v40 = vadd.f32 (!%p6317_p11), %v9344_v54, %v5058_v17  ;;  %v5131_v26 = vadd.f32 (!%p6317_p11), %v9344_v54, %v5060_v0 }
 0x439   : > { %v6858_v13 = vadd.f32 %v4611_v50, %v9629_v16  ;;  %v4613_v33 = vpop.f32.mrb[125].mxu0  ;;  %v4893_v10 = vadd.f32 %v6856_v12, %v4892_v62  ;;  %v6763_v38 = vpop.f32.mrb[190].mxu1  ;;  %v5311_v12 = vsel (!%p6317_p11), %vm5176_vm2, %v5112_v30, %v5247_v39  ;;  %v5315_v50 = vsel (!%p6317_p11), %vm5180_vm6, %v5116_v63, %v5251_v45  ;;  %v5064_v45 = vld [vmem:[#allocation2 + $0xc8] sm:$0xff] (!%p6317_p11) }
 0x43a   : > { %v4614_v3 = vpop.f32.mrb[126].mxu0  ;;  %v4895_v56 = vpop.f32.mrb[191].mxu1  ;;  %v6461_v7 = vpack.c.bf16 (!%p6317_p11), %v5312_v60, %v5311_v12  ;;  %v6466_v62 = vpack.c.bf16 (!%p6317_p11), %v5314_v1, %v5313_v32  ;;  %vm5183_vm9 = vcmp.ge.f32.partialorder (!%p6317_p11), %v5119_v59, 0.0  ;;  %vm5184_vm10 = vcmp.ge.f32.partialorder (!%p6317_p11), %v5120_v48, 0.0 }
 0x43b   : > { %v4901_v8 = vadd.f32 %v6858_v13, %v6762_v34  ;;  %v4967_v9 = vadd.f32 %v4893_v10, %v1090_v28  ;;  %v6859_v36 = vadd.f32 %v4614_v3, %v9630_v19  ;;  %v4616_v35 = vpop.f32.mrb[127].mxu0  ;;  %v4896_v24 = vadd.f32 %v6857_v22, %v4895_v56  ;;  %5038 = sbr.rel (%p6317_p11) target bundleno = 1152 (0x480), region = 70  ;;  %v5051_v28 = vld [vmem:[#allocation2 + $0x60] sm:$0xff] (!%p6317_p11)  ;;  %v5052_v13 = vld [vmem:[#allocation2 + $0x68] sm:$0xff] (!%p6317_p11) }
 0x43c   : > { %6613 = vst [vmem:[%s9594_s4 + $0x8] sm:$0xff] (!%p6317_p11), %v6461_v7   ;;  %v5118_v22 = vadd.f32 (!%p6317_p11), %v9344_v54, %v5047_v42  ;;  %v5252_v34 = vmul.f32 (!%p6317_p11), %v9351_v21, %v5117_v52  ;;  %v5254_v10 = vmul.f32 (!%p6317_p11), %v9351_v21, %v5119_v59  ;;  %6614 = vst [vmem:[%s9594_s4 + $0x10] sm:$0xff] (!%p6317_p11), %v6466_v62   ;;  %v5054_v35 = vld [vmem:[#allocation2 + $0x78] sm:$0xff] (!%p6317_p11)  ;;  %vm5192_vm2 = vcmp.ge.f32.partialorder (!%p6317_p11), %v5128_v47, 0.0 }
 0x43d   : > { %v4969_v51 = vadd.f32 %v4901_v8, %v1092_v29  ;;  %5031 = vst [vmem:[#allocation2 + $0x1e0] sm:$0xff] %v4967_v9  ;;  %v4904_v61 = vadd.f32 %v6859_v36, %v6763_v38  ;;  %v4968_v41 = vadd.f32 %v4896_v24, %v1091_v5  ;;  %v5121_v38 = vadd.f32 (!%p6317_p11), %v9344_v54, %v5050_v25  ;;  %v5053_v8 = vld [vmem:[#allocation2 + $0x70] sm:$0xff] (!%p6317_p11)  ;;  %v5055_v24 = vld [vmem:[#allocation2 + $0x80] sm:$0xff] (!%p6317_p11)  ;;  %v5062_v7 = vld [vmem:[#allocation2 + $0xb8] sm:$0xff] (!%p6317_p11) }
 0x43e   : > { %vm5182_vm8 = vcmp.ge.f32.partialorder (!%p6317_p11), %v5118_v22, 0.0  ;;  %v5253_v16 = vmul.f32 (!%p6317_p11), %v9351_v21, %v5118_v22  ;;  %v5316_v33 = vsel (!%p6317_p11), %vm5181_vm7, %v5117_v52, %v5252_v34  ;;  %v5255_v5 = vmul.f32 (!%p6317_p11), %v9351_v21, %v5120_v48  ;;  %v5063_v52 = vld [vmem:[#allocation2 + $0xc0] sm:$0xff] (!%p6317_p11) }
 0x43f   : > { %5033 = vst [vmem:[#allocation2 + $0x1f0] sm:$0xff] %v4969_v51  ;;  %v4970_v23 = vadd.f32 %v4904_v61, %v1093_v31  ;;  %5032 = vst [vmem:[#allocation2 + $0x1e8] sm:$0xff] %v4968_v41  ;;  %v6471_v29 = vpack.c.bf16 (!%p6317_p11), %v5316_v33, %v5315_v50  ;;  %v5122_v56 = vadd.f32 (!%p6317_p11), %v9344_v54, %v5051_v28  ;;  %vm5185_vm11 = vcmp.ge.f32.partialorder (!%p6317_p11), %v5121_v38, 0.0  ;;  %v5056_v41 = vld [vmem:[#allocation2 + $0x88] sm:$0xff] (!%p6317_p11) }
 0x440   : > { %v5317_v3 = vsel (!%p6317_p11), %vm5182_vm8, %v5118_v22, %v5253_v16  ;;  %v5318_v9 = vsel (!%p6317_p11), %vm5183_vm9, %v5119_v59, %v5254_v10  ;;  %v5256_v19 = vmul.f32 (!%p6317_p11), %v9351_v21, %v5121_v38  ;;  %v5123_v36 = vadd.f32 (!%p6317_p11), %v9344_v54, %v5052_v13  ;;  %v5065_v16 = vld [vmem:[#allocation2 + $0xd0] sm:$0xff] (!%p6317_p11)  ;;  %v5066_v10 = vld [vmem:[#allocation2 + $0xd8] sm:$0xff] (!%p6317_p11) }
 0x441   : > { %5034 = vst [vmem:[#allocation2 + $0x1f8] sm:$0xff] %v4970_v23  ;;  %6615 = vst [vmem:[%s9594_s4 + $0x18] sm:$0xff] (!%p6317_p11), %v6471_v29   ;;  %v6476_v31 = vpack.c.bf16 (!%p6317_p11), %v5318_v9, %v5317_v3  ;;  %v5319_v51 = vsel (!%p6317_p11), %vm5184_vm10, %v5120_v48, %v5255_v5  ;;  %vm5186_vm12 = vcmp.ge.f32.partialorder (!%p6317_p11), %v5122_v56, 0.0  ;;  %v5257_v61 = vmul.f32 (!%p6317_p11), %v9351_v21, %v5122_v56 }
 0x442   : > { %v5320_v23 = vsel %vm5185_vm11, %v5121_v38, %v5256_v19  ;;  %vm5187_vm13 = vcmp.ge.f32.partialorder %v5123_v36, 0.0  ;;  %v5258_v46 = vmul.f32 %v9351_v21, %v5123_v36  ;;  %v5124_v27 = vadd.f32 %v9344_v54, %v5053_v8  ;;  %v5067_v38 = vld [vmem:[#allocation2 + $0xe0] sm:$0xff] }
 0x443   : > { %6616 = vst [vmem:[%s9594_s4 + $0x20] sm:$0xff] %v6476_v31   ;;  %v6481_v20 = vpack.c.bf16 %v5320_v23, %v5319_v51  ;;  %v5321_v43 = vsel %vm5186_vm12, %v5122_v56, %v5257_v61  ;;  %v5125_v14 = vadd.f32 %v9344_v54, %v5054_v35  ;;  %v5126_v44 = vadd.f32 %v9344_v54, %v5055_v24  ;;  %v5068_v24 = vld [vmem:[#allocation2 + $0xe8] sm:$0xff]  ;;  %v5069_v51 = vld [vmem:[#allocation2 + $0xf0] sm:$0xff] }
 0x444   : > { %v5322_v30 = vsel %vm5187_vm13, %v5123_v36, %v5258_v46  ;;  %vm5188_vm14 = vcmp.ge.f32.partialorder %v5124_v27, 0.0  ;;  %v5259_v6 = vmul.f32 %v9351_v21, %v5124_v27  ;;  %v5127_v58 = vadd.f32 %v9344_v54, %v5056_v41  ;;  %v5070_v46 = vld [vmem:[#allocation2 + $0xf8] sm:$0xff] }
 0x445   : > { %6617 = vst [vmem:[%s9594_s4 + $0x28] sm:$0xff] %v6481_v20   ;;  %v6486_v49 = vpack.c.bf16 %v5322_v30, %v5321_v43  ;;  %vm5189_vm15 = vcmp.ge.f32.partialorder %v5125_v14, 0.0  ;;  %v5260_v39 = vmul.f32 %v9351_v21, %v5125_v14  ;;  %vm5190_vm0 = vcmp.ge.f32.partialorder %v5126_v44, 0.0 }
 0x446   : > { %v5323_v37 = vsel %vm5188_vm14, %v5124_v27, %v5259_v6  ;;  %vm5191_vm1 = vcmp.ge.f32.partialorder %v5127_v58, 0.0  ;;  %v5261_v55 = vmul.f32 %v9351_v21, %v5126_v44  ;;  %v5262_v57 = vmul.f32 %v9351_v21, %v5127_v58  ;;  %v5071_v27 = vld [vmem:[#allocation2 + $0x100] sm:$0xff] }
 0x447   : > { %6618 = vst [vmem:[%s9594_s4 + $0x30] sm:$0xff] %v6486_v49   ;;  %v5324_v2 = vsel %vm5189_vm15, %v5125_v14, %v5260_v39  ;;  %v5130_v12 = vadd.f32 %v9344_v54, %v5059_v18  ;;  %vm5193_vm3 = vcmp.ge.f32.partialorder %v5129_v40, 0.0  ;;  %v5263_v53 = vmul.f32 %v9351_v21, %v5128_v47  ;;  %v5072_v18 = vld [vmem:[#allocation2 + $0x108] sm:$0xff] }
 0x448   : > { %v6491_v60 = vpack.c.bf16 %v5324_v2, %v5323_v37  ;;  %v5325_v63 = vsel %vm5190_vm0, %v5126_v44, %v5261_v55  ;;  %v5326_v42 = vsel %vm5191_vm1, %v5127_v58, %v5262_v57  ;;  %v5264_v32 = vmul.f32 %v9351_v21, %v5129_v40  ;;  %v5073_v55 = vld [vmem:[#allocation2 + $0x110] sm:$0xff] }
 0x449   : > { %v6496_v11 = vpack.c.bf16 %v5326_v42, %v5325_v63  ;;  %vm5194_vm4 = vcmp.ge.f32.partialorder %v5130_v12, 0.0  ;;  %vm5195_vm5 = vcmp.ge.f32.partialorder %v5131_v26, 0.0  ;;  %v5265_v22 = vmul.f32 %v9351_v21, %v5130_v12  ;;  %v5075_v63 = vld [vmem:[#allocation2 + $0x120] sm:$0xff] }
 0x44a   : > { %6619 = vst [vmem:[%s9594_s4 + $0x38] sm:$0xff] %v6491_v60   ;;  %v5327_v59 = vsel %vm5192_vm2, %v5128_v47, %v5263_v53  ;;  %v5266_v25 = vmul.f32 %v9351_v21, %v5131_v26  ;;  %v5132_v48 = vadd.f32 %v9344_v54, %v5061_v4  ;;  %v5133_v1 = vadd.f32 %v9344_v54, %v5062_v7  ;;  %v5074_v60 = vld [vmem:[#allocation2 + $0x118] sm:$0xff]  ;;  %v5077_v53 = vld [vmem:[#allocation2 + $0x130] sm:$0xff] }
 0x44b   : > { %6620 = vst [vmem:[%s9594_s4 + $0x40] sm:$0xff] %v6496_v11   ;;  %v5328_v34 = vsel %vm5193_vm3, %v5129_v40, %v5264_v32  ;;  %v5329_v50 = vsel %vm5194_vm4, %v5130_v12, %v5265_v22  ;;  %v5134_v28 = vadd.f32 %v9344_v54, %v5063_v52  ;;  %v5135_v62 = vadd.f32 %v9344_v54, %v5064_v45  ;;  %v5076_v11 = vld [vmem:[#allocation2 + $0x128] sm:$0xff]  ;;  %v5078_v52 = vld [vmem:[#allocation2 + $0x138] sm:$0xff] }
 0x44c   : > { %v6501_v13 = vpack.c.bf16 %v5328_v34, %v5327_v59  ;;  %v5330_v33 = vsel %vm5195_vm5, %v5131_v26, %v5266_v25  ;;  %vm5196_vm6 = vcmp.ge.f32.partialorder %v5132_v48, 0.0  ;;  %vm5197_vm7 = vcmp.ge.f32.partialorder %v5133_v1, 0.0 }
 0x44d   : > { %v6506_v29 = vpack.c.bf16 %v5330_v33, %v5329_v50  ;;  %v5267_v3 = vmul.f32 %v9351_v21, %v5132_v48  ;;  %v5268_v5 = vmul.f32 %v9351_v21, %v5133_v1  ;;  %vm5198_vm8 = vcmp.ge.f32.partialorder %v5134_v28, 0.0 }
 0x44e   : > { %6621 = vst [vmem:[%s9594_s4 + $0x48] sm:$0xff] %v6501_v13   ;;  %vm5199_vm9 = vcmp.ge.f32.partialorder %v5135_v62, 0.0  ;;  %v5269_v56 = vmul.f32 %v9351_v21, %v5134_v28  ;;  %v5270_v8 = vmul.f32 %v9351_v21, %v5135_v62  ;;  %v5136_v9 = vadd.f32 %v9344_v54, %v5065_v16 }
 0x44f   : > { %6622 = vst [vmem:[%s9594_s4 + $0x50] sm:$0xff] %v6506_v29   ;;  %v5331_v19 = vsel %vm5196_vm6, %v5132_v48, %v5267_v3  ;;  %v5332_v36 = vsel %vm5197_vm7, %v5133_v1, %v5268_v5  ;;  %v5137_v35 = vadd.f32 %v9344_v54, %v5066_v10  ;;  %v5138_v31 = vadd.f32 %v9344_v54, %v5067_v38  ;;  %v5079_v38 = vld [vmem:[#allocation2 + $0x140] sm:$0xff]  ;;  %v5080_v29 = vld [vmem:[#allocation2 + $0x148] sm:$0xff] }
 0x450   : > { %v6511_v61 = vpack.c.bf16 %v5332_v36, %v5331_v19  ;;  %v5333_v41 = vsel %vm5198_vm8, %v5134_v28, %v5269_v56  ;;  %v5334_v23 = vsel %vm5199_vm9, %v5135_v62, %v5270_v8  ;;  %vm5200_vm10 = vcmp.ge.f32.partialorder %v5136_v9, 0.0  ;;  %v5081_v56 = vld [vmem:[#allocation2 + $0x150] sm:$0xff]  ;;  %v5082_v8 = vld [vmem:[#allocation2 + $0x158] sm:$0xff] }
 0x451   : > { %v6516_v20 = vpack.c.bf16 %v5334_v23, %v5333_v41  ;;  %vm5201_vm11 = vcmp.ge.f32.partialorder %v5137_v35, 0.0  ;;  %v5271_v43 = vmul.f32 %v9351_v21, %v5136_v9  ;;  %v5272_v14 = vmul.f32 %v9351_v21, %v5137_v35 }
 0x452   : > { %6623 = vst [vmem:[%s9594_s4 + $0x58] sm:$0xff] %v6511_v61   ;;  %v5139_v44 = vadd.f32 %v9344_v54, %v5068_v24  ;;  %vm5202_vm12 = vcmp.ge.f32.partialorder %v5138_v31, 0.0  ;;  %v5273_v30 = vmul.f32 %v9351_v21, %v5138_v31  ;;  %v5140_v6 = vadd.f32 %v9344_v54, %v5069_v51 }
 0x453   : > { %6624 = vst [vmem:[%s9594_s4 + $0x60] sm:$0xff] %v6516_v20   ;;  %v5335_v58 = vsel %vm5200_vm10, %v5136_v9, %v5271_v43  ;;  %v5336_v15 = vsel %vm5201_vm11, %v5137_v35, %v5272_v14  ;;  %v5141_v17 = vadd.f32 %v9344_v54, %v5070_v46  ;;  %v5142_v49 = vadd.f32 %v9344_v54, %v5071_v27  ;;  %v5083_v9 = vld [vmem:[#allocation2 + $0x160] sm:$0xff]  ;;  %v5084_v20 = vld [vmem:[#allocation2 + $0x168] sm:$0xff] }
 0x454   : > { %v6521_v39 = vpack.c.bf16 %v5336_v15, %v5335_v58  ;;  %vm5203_vm13 = vcmp.ge.f32.partialorder %v5139_v44, 0.0  ;;  %v5274_v0 = vmul.f32 %v9351_v21, %v5139_v44  ;;  %v5337_v37 = vsel %vm5202_vm12, %v5138_v31, %v5273_v30  ;;  %v5085_v30 = vld [vmem:[#allocation2 + $0x170] sm:$0xff] }
 0x455   : > { %vm5204_vm14 = vcmp.ge.f32.partialorder %v5140_v6, 0.0  ;;  %vm5205_vm15 = vcmp.ge.f32.partialorder %v5141_v17, 0.0  ;;  %v5275_v57 = vmul.f32 %v9351_v21, %v5140_v6  ;;  %v5276_v2 = vmul.f32 %v9351_v21, %v5141_v17 }
 0x456   : > { %6625 = vst [vmem:[%s9594_s4 + $0x68] sm:$0xff] %v6521_v39   ;;  %v5338_v47 = vsel %vm5203_vm13, %v5139_v44, %v5274_v0  ;;  %v5143_v40 = vadd.f32 %v9344_v54, %v5072_v18  ;;  %vm5206_vm0 = vcmp.ge.f32.partialorder %v5142_v49, 0.0  ;;  %v5277_v12 = vmul.f32 %v9351_v21, %v5142_v49 }
 0x457   : > { %v6526_v42 = vpack.c.bf16 %v5338_v47, %v5337_v37  ;;  %v5339_v26 = vsel %vm5204_vm14, %v5140_v6, %v5275_v57  ;;  %v5340_v4 = vsel %vm5205_vm15, %v5141_v17, %v5276_v2  ;;  %v5144_v7 = vadd.f32 %v9344_v54, %v5073_v55  ;;  %v5087_v57 = vld [vmem:[#allocation2 + $0x180] sm:$0xff]  ;;  %v5088_v2 = vld [vmem:[#allocation2 + $0x188] sm:$0xff] }
 0x458   : > { %v6531_v45 = vpack.c.bf16 %v5340_v4, %v5339_v26  ;;  %vm5207_vm1 = vcmp.ge.f32.partialorder %v5143_v40, 0.0  ;;  %v5278_v32 = vmul.f32 %v9351_v21, %v5143_v40  ;;  %v5341_v22 = vsel %vm5206_vm0, %v5142_v49, %v5277_v12  ;;  %v5086_v49 = vld [vmem:[#allocation2 + $0x178] sm:$0xff] }
 0x459   : > { %6626 = vst [vmem:[%s9594_s4 + $0x70] sm:$0xff] %v6526_v42   ;;  %v5145_v59 = vadd.f32 %v9344_v54, %v5074_v60  ;;  %vm5208_vm2 = vcmp.ge.f32.partialorder %v5144_v7, 0.0  ;;  %v5279_v25 = vmul.f32 %v9351_v21, %v5144_v7  ;;  %v5146_v48 = vadd.f32 %v9344_v54, %v5075_v63  ;;  %v5089_v60 = vld [vmem:[#allocation2 + $0x190] sm:$0xff] }
 0x45a   : > { %6627 = vst [vmem:[%s9594_s4 + $0x78] sm:$0xff] %v6531_v45   ;;  %v5342_v1 = vsel %vm5207_vm1, %v5143_v40, %v5278_v32  ;;  %v5147_v34 = vadd.f32 %v9344_v54, %v5076_v11  ;;  %v5148_v50 = vadd.f32 %v9344_v54, %v5077_v53  ;;  %v5149_v28 = vadd.f32 %v9344_v54, %v5078_v52  ;;  %v5090_v52 = vld [vmem:[#allocation2 + $0x198] sm:$0xff] }
 0x45b   : > { %v6536_v62 = vpack.c.bf16 %v5342_v1, %v5341_v22  ;;  %vm5209_vm3 = vcmp.ge.f32.partialorder %v5145_v59, 0.0  ;;  %v5280_v16 = vmul.f32 %v9351_v21, %v5145_v59  ;;  %v5343_v13 = vsel %vm5208_vm2, %v5144_v7, %v5279_v25  ;;  %v5092_v1 = vld [vmem:[#allocation2 + $0x1a8] sm:$0xff] }
 0x45c   : > { %vm5210_vm4 = vcmp.ge.f32.partialorder %v5146_v48, 0.0  ;;  %vm5211_vm5 = vcmp.ge.f32.partialorder %v5147_v34, 0.0  ;;  %v5281_v33 = vmul.f32 %v9351_v21, %v5146_v48  ;;  %v5282_v10 = vmul.f32 %v9351_v21, %v5147_v34 }
 0x45d   : > { %6628 = vst [vmem:[%s9594_s4 + $0x80] sm:$0xff] %v6536_v62   ;;  %v5344_v3 = vsel %vm5209_vm3, %v5145_v59, %v5280_v16  ;;  %vm5212_vm6 = vcmp.ge.f32.partialorder %v5148_v50, 0.0  ;;  %vm5213_vm7 = vcmp.ge.f32.partialorder %v5149_v28, 0.0  ;;  %v5283_v5 = vmul.f32 %v9351_v21, %v5148_v50  ;;  %v5091_v59 = vld [vmem:[#allocation2 + $0x1a0] sm:$0xff] }
 0x45e   : > { %v6541_v19 = vpack.c.bf16 %v5344_v3, %v5343_v13  ;;  %v5345_v36 = vsel %vm5210_vm4, %v5146_v48, %v5281_v33  ;;  %v5346_v35 = vsel %vm5211_vm5, %v5147_v34, %v5282_v10  ;;  %v5284_v24 = vmul.f32 %v9351_v21, %v5149_v28  ;;  %v5093_v10 = vld [vmem:[#allocation2 + $0x1b0] sm:$0xff] }
 0x45f   : > { %v6546_v31 = vpack.c.bf16 %v5346_v35, %v5345_v36  ;;  %v5347_v51 = vsel %vm5212_vm6, %v5148_v50, %v5283_v5  ;;  %v5150_v61 = vadd.f32 %v9344_v54, %v5079_v38  ;;  %v5151_v41 = vadd.f32 %v9344_v54, %v5080_v29  ;;  %v5094_v5 = vld [vmem:[#allocation2 + $0x1b8] sm:$0xff]  ;;  %v5096_v36 = vld [vmem:[#allocation2 + $0x1c8] sm:$0xff] }
 0x460   : > { %6629 = vst [vmem:[%s9594_s4 + $0x88] sm:$0xff] %v6541_v19   ;;  %v5348_v23 = vsel %vm5213_vm7, %v5149_v28, %v5284_v24  ;;  %v5152_v46 = vadd.f32 %v9344_v54, %v5081_v56  ;;  %v5153_v27 = vadd.f32 %v9344_v54, %v5082_v8  ;;  %v5154_v43 = vadd.f32 %v9344_v54, %v5083_v9  ;;  %v5095_v56 = vld [vmem:[#allocation2 + $0x1c0] sm:$0xff] }
 0x461   : > { %6630 = vst [vmem:[%s9594_s4 + $0x90] sm:$0xff] %v6546_v31   ;;  %v6551_v14 = vpack.c.bf16 %v5348_v23, %v5347_v51  ;;  %vm5214_vm8 = vcmp.ge.f32.partialorder %v5150_v61, 0.0  ;;  %vm5215_vm9 = vcmp.ge.f32.partialorder %v5151_v41, 0.0  ;;  %v5285_v44 = vmul.f32 %v9351_v21, %v5150_v61 }
 0x462   : > { %v5286_v6 = vmul.f32 %v9351_v21, %v5151_v41  ;;  %vm5216_vm10 = vcmp.ge.f32.partialorder %v5152_v46, 0.0  ;;  %vm5217_vm11 = vcmp.ge.f32.partialorder %v5153_v27, 0.0  ;;  %v5287_v58 = vmul.f32 %v9351_v21, %v5152_v46 }
 0x463   : > { %6631 = vst [vmem:[%s9594_s4 + $0x98] sm:$0xff] %v6551_v14   ;;  %v5349_v15 = vsel %vm5214_vm8, %v5150_v61, %v5285_v44  ;;  %v5288_v17 = vmul.f32 %v9351_v21, %v5153_v27  ;;  %v5155_v18 = vadd.f32 %v9344_v54, %v5084_v20  ;;  %vm5218_vm12 = vcmp.ge.f32.partialorder %v5154_v43, 0.0  ;;  %v5098_v14 = vld [vmem:[#allocation2 + $0x1d8] sm:$0xff]  ;;  %v5099_v44 = vld [vmem:[#allocation2 + $0x1e0] sm:$0xff] }
 0x464   : > { %v5350_v39 = vsel %vm5215_vm9, %v5151_v41, %v5286_v6  ;;  %v5351_v0 = vsel %vm5216_vm10, %v5152_v46, %v5287_v58  ;;  %v5289_v37 = vmul.f32 %v9351_v21, %v5154_v43  ;;  %v5156_v55 = vadd.f32 %v9344_v54, %v5085_v30  ;;  %v5100_v58 = vld [vmem:[#allocation2 + $0x1e8] sm:$0xff] }
 0x465   : > { %v6556_v47 = vpack.c.bf16 %v5350_v39, %v5349_v15  ;;  %v5352_v40 = vsel %vm5217_vm11, %v5153_v27, %v5288_v17  ;;  %vm5219_vm13 = vcmp.ge.f32.partialorder %v5155_v18, 0.0  ;;  %v5290_v12 = vmul.f32 %v9351_v21, %v5155_v18 }
 0x466   : > { %v6561_v63 = vpack.c.bf16 %v5352_v40, %v5351_v0  ;;  %v5353_v42 = vsel %vm5218_vm12, %v5154_v43, %v5289_v37  ;;  %v5157_v26 = vadd.f32 %v9344_v54, %v5086_v49  ;;  %vm5220_vm14 = vcmp.ge.f32.partialorder %v5156_v55, 0.0  ;;  %v5097_v43 = vld [vmem:[#allocation2 + $0x1d0] sm:$0xff] }
 0x467   : > { %6632 = vst [vmem:[%s9594_s4 + $0xa0] sm:$0xff] %v6556_v47   ;;  %v5354_v4 = vsel %vm5219_vm13, %v5155_v18, %v5290_v12  ;;  %v5291_v7 = vmul.f32 %v9351_v21, %v5156_v55  ;;  %v5158_v11 = vadd.f32 %v9344_v54, %v5087_v57  ;;  %v5159_v53 = vadd.f32 %v9344_v54, %v5088_v2  ;;  %v5101_v40 = vld [vmem:[#allocation2 + $0x1f0] sm:$0xff]  ;;  %v5102_v12 = vld [vmem:[#allocation2 + $0x1f8] sm:$0xff] }
 0x468   : > { %6633 = vst [vmem:[%s9594_s4 + $0xa8] sm:$0xff] %v6561_v63   ;;  %v6566_v45 = vpack.c.bf16 %v5354_v4, %v5353_v42  ;;  %vm5221_vm15 = vcmp.ge.f32.partialorder %v5157_v26, 0.0  ;;  %v5292_v32 = vmul.f32 %v9351_v21, %v5157_v26  ;;  %v5160_v22 = vadd.f32 %v9344_v54, %v5089_v60 }
 0x469   : > { %v5355_v25 = vsel %vm5220_vm14, %v5156_v55, %v5291_v7  ;;  %vm5222_vm0 = vcmp.ge.f32.partialorder %v5158_v11, 0.0  ;;  %vm5223_vm1 = vcmp.ge.f32.partialorder %v5159_v53, 0.0  ;;  %v5293_v48 = vmul.f32 %v9351_v21, %v5158_v11 }
 0x46a   : > { %6634 = vst [vmem:[%s9594_s4 + $0xb0] sm:$0xff] %v6566_v45   ;;  %v5356_v34 = vsel %vm5221_vm15, %v5157_v26, %v5292_v32  ;;  %v5294_v50 = vmul.f32 %v9351_v21, %v5159_v53  ;;  %v5161_v28 = vadd.f32 %v9344_v54, %v5090_v52  ;;  %vm5224_vm2 = vcmp.ge.f32.partialorder %v5160_v22, 0.0 }
 0x46b   : > { %v6571_v62 = vpack.c.bf16 %v5356_v34, %v5355_v25  ;;  %v5357_v16 = vsel %vm5222_vm0, %v5158_v11, %v5293_v48  ;;  %v5295_v13 = vmul.f32 %v9351_v21, %v5160_v22  ;;  %v5162_v33 = vadd.f32 %v9344_v54, %v5091_v59 }
 0x46c   : > { %v5358_v38 = vsel %vm5223_vm1, %v5159_v53, %v5294_v50  ;;  %vm5225_vm3 = vcmp.ge.f32.partialorder %v5161_v28, 0.0  ;;  %v5296_v29 = vmul.f32 %v9351_v21, %v5161_v28  ;;  %v5163_v3 = vadd.f32 %v9344_v54, %v5092_v1 }
 0x46d   : > { %6635 = vst [vmem:[%s9594_s4 + $0xb8] sm:$0xff] %v6571_v62   ;;  %v6576_v8 = vpack.c.bf16 %v5358_v38, %v5357_v16  ;;  %v5359_v9 = vsel %vm5224_vm2, %v5160_v22, %v5295_v13  ;;  %vm5226_vm4 = vcmp.ge.f32.partialorder %v5162_v33, 0.0  ;;  %v5297_v19 = vmul.f32 %v9351_v21, %v5162_v33 }
 0x46e   : > { %v5360_v35 = vsel %vm5225_vm3, %v5161_v28, %v5296_v29  ;;  %vm5227_vm5 = vcmp.ge.f32.partialorder %v5163_v3, 0.0  ;;  %v5298_v24 = vmul.f32 %v9351_v21, %v5163_v3  ;;  %v5164_v31 = vadd.f32 %v9344_v54, %v5093_v10 }
 0x46f   : > { %6636 = vst [vmem:[%s9594_s4 + $0xc0] sm:$0xff] %v6576_v8   ;;  %v6581_v51 = vpack.c.bf16 %v5360_v35, %v5359_v9  ;;  %v5361_v61 = vsel %vm5226_vm4, %v5162_v33, %v5297_v19  ;;  %v5165_v41 = vadd.f32 %v9344_v54, %v5094_v5  ;;  %v5166_v23 = vadd.f32 %v9344_v54, %v5095_v56 }
 0x470   : > { %v5362_v46 = vsel %vm5227_vm5, %v5163_v3, %v5298_v24  ;;  %vm5228_vm6 = vcmp.ge.f32.partialorder %v5164_v31, 0.0  ;;  %v5299_v27 = vmul.f32 %v9351_v21, %v5164_v31  ;;  %v5167_v20 = vadd.f32 %v9344_v54, %v5096_v36 }
 0x471   : > { %6637 = vst [vmem:[%s9594_s4 + $0xc8] sm:$0xff] %v6581_v51   ;;  %v6586_v30 = vpack.c.bf16 %v5362_v46, %v5361_v61  ;;  %vm5229_vm7 = vcmp.ge.f32.partialorder %v5165_v41, 0.0  ;;  %v5300_v6 = vmul.f32 %v9351_v21, %v5165_v41  ;;  %vm5230_vm8 = vcmp.ge.f32.partialorder %v5166_v23, 0.0 }
 0x472   : > { %v5363_v15 = vsel %vm5228_vm6, %v5164_v31, %v5299_v27  ;;  %vm5231_vm9 = vcmp.ge.f32.partialorder %v5167_v20, 0.0  ;;  %v5301_v17 = vmul.f32 %v9351_v21, %v5166_v23  ;;  %v5302_v18 = vmul.f32 %v9351_v21, %v5167_v20 }
 0x473   : > { %6638 = vst [vmem:[%s9594_s4 + $0xd0] sm:$0xff] %v6586_v30   ;;  %v5364_v49 = vsel %vm5229_vm7, %v5165_v41, %v5300_v6  ;;  %v5168_v39 = vadd.f32 %v9344_v54, %v5097_v43  ;;  %v5169_v0 = vadd.f32 %v9344_v54, %v5098_v14  ;;  %v5170_v37 = vadd.f32 %v9344_v54, %v5099_v44 }
 0x474   : > { %v6591_v55 = vpack.c.bf16 %v5364_v49, %v5363_v15  ;;  %v5365_v57 = vsel %vm5230_vm8, %v5166_v23, %v5301_v17  ;;  %v5366_v2 = vsel %vm5231_vm9, %v5167_v20, %v5302_v18  ;;  %v5171_v47 = vadd.f32 %v9344_v54, %v5100_v58 }
 0x475   : > { %v6596_v60 = vpack.c.bf16 %v5366_v2, %v5365_v57  ;;  %vm5232_vm10 = vcmp.ge.f32.partialorder %v5168_v39, 0.0  ;;  %vm5233_vm11 = vcmp.ge.f32.partialorder %v5169_v0, 0.0  ;;  %v5303_v63 = vmul.f32 %v9351_v21, %v5168_v39 }
 0x476   : > { %6639 = vst [vmem:[%s9594_s4 + $0xd8] sm:$0xff] %v6591_v55   ;;  %v5304_v42 = vmul.f32 %v9351_v21, %v5169_v0  ;;  %vm5234_vm12 = vcmp.ge.f32.partialorder %v5170_v37, 0.0  ;;  %vm5235_vm13 = vcmp.ge.f32.partialorder %v5171_v47, 0.0  ;;  %v5305_v26 = vmul.f32 %v9351_v21, %v5170_v37 }
 0x477   : > { %6640 = vst [vmem:[%s9594_s4 + $0xe0] sm:$0xff] %v6596_v60   ;;  %v5367_v4 = vsel %vm5232_vm10, %v5168_v39, %v5303_v63  ;;  %v5306_v7 = vmul.f32 %v9351_v21, %v5171_v47  ;;  %v5172_v11 = vadd.f32 %v9344_v54, %v5101_v40  ;;  %v5173_v53 = vadd.f32 %v9344_v54, %v5102_v12 }
 0x478   : > { %v5368_v52 = vsel %vm5233_vm11, %v5169_v0, %v5304_v42  ;;  %v5369_v45 = vsel %vm5234_vm12, %v5170_v37, %v5305_v26 }
 0x479   : > { %v6601_v32 = vpack.c.bf16 %v5368_v52, %v5367_v4  ;;  %v5370_v22 = vsel %vm5235_vm13, %v5171_v47, %v5306_v7  ;;  %vm5236_vm14 = vcmp.ge.f32.partialorder %v5172_v11, 0.0  ;;  %vm5237_vm15 = vcmp.ge.f32.partialorder %v5173_v53, 0.0 }
 0x47a   : > { %v6606_v59 = vpack.c.bf16 %v5370_v22, %v5369_v45  ;;  %v5307_v25 = vmul.f32 %v9351_v21, %v5172_v11  ;;  %v5308_v48 = vmul.f32 %v9351_v21, %v5173_v53 }
 0x47b   : > { %6641 = vst [vmem:[%s9594_s4 + $0xe8] sm:$0xff] %v6601_v32  }
 0x47c   : > { %6642 = vst [vmem:[%s9594_s4 + $0xf0] sm:$0xff] %v6606_v59   ;;  %v5371_v54 = vsel %vm5236_vm14, %v5172_v11, %v5307_v25  ;;  %v5372_v1 = vsel %vm5237_vm15, %v5173_v53, %v5308_v48 }
 0x47d   : > { %v6611_v34 = vpack.c.bf16 %v5372_v1, %v5371_v54 }
 0x47f   : > { %6643 = vst [vmem:[%s9594_s4 + $0xf8] sm:$0xff] %v6611_v34  }
 0x480 PF: > { %s14_s19 = sadd.s32 1, %s7686_s19   ;;  %s9631_s15 = smov %s7674_s16 }
 0x481   : > { %p11_p12 = scmp.ge.s32.totalorder %s14_s19, 4   ;;  %s9632_s16 = smov %s7750_s23 }
 0x482   : > { %s9633_s17 = smov %s7682_s18  ;;  %s9634_s18 = smov %s9636_s20 }
 0x483   :  { %13 = sbr.rel (!%p11_p12) target bundleno = 3 (0x3), region = 120 }

// kernel: pspnet_forward.6
= control target key start
LH: loop header
LB: loop body
LE: loop exit
PB: predicated region body
PF: predicated region fallthrough
CT: control target
= control target key end

     0   :  { %s4390_s15 = smov 0   ;;  %s4392_s16 = smov 0   ;;  %s5273_s0 = inlined_call_operand.vmem [shape: bf16[2048,576], index: 0, kind: input, shape index: {}]   ;;  %s5274_s1 = inlined_call_operand.vmem [shape: bf16[576,128], index: 1, kind: input, shape index: {}]   ;;  %s5275_s2 = inlined_call_operand.vmem [shape: f32[1,128], index: 2, kind: input, shape index: {}]   ;;  %s5276_s3 = inlined_call_operand.vmem [shape: f32[1,128], index: 3, kind: input, shape index: {}]   ;;  %s5277_s4 = inlined_call_operand.vmem [shape: bf16[2048,128], index: 4, kind: output, shape index: {}]  }
   0x1   :  { %s4394_s17 = smov 0  }
   0x2 LB: > { %s33_s18 = sadd.s32 1, %s4358_s16  ;;  %p3212_p0 = scmp.ge.s32.totalorder %s4362_s17, 1  ;;  %s4362_s17 = sphi %s4394_s17, %s14_s17   ;;  %s4358_s16 = sphi %s4392_s16, %s5315_s16   ;;  %s4354_s15 = sphi %s4390_s15, %s5314_s15  }
   0x3   : > { %p35_p1 = scmp.ge.s32.totalorder %s33_s18, 4  ;;  %p224_p2 = scmp.lt.s32.totalorder %s4362_s17, 5 }
   0x5   : > { %s5317_s18 = smov (%p35_p1, %s33_s18), 0  ;;  %p225_p3 = pnand %p3212_p0, %p224_p2 }
   0x7   : > { %228 = sbr.rel (%p225_p3) target bundleno = 615 (0x267), region = 36 }
   0xe   : > { %v4078_v0 = vld [vmem:[%s5274_s1] sm:$0xff]   ;;  %v4364_v1 = vmov 0   ;;  %s3213_s21 = sshll.u32 %s4354_s15, 6  ;;  %v4079_v2 = vld [vmem:[%s5274_s1 + $0x8] sm:$0xff]   ;;  %v4080_v3 = vld [vmem:[%s5274_s1 + $0x10] sm:$0xff]   ;;  %vm1596_vm0 = vcmask 523264  }
   0xf   : > { %1693 = vmatprep.subr.bf16.mxu0 %v4364_v1  ;;  %3876 = vmatprep.subr.bf16.mxu1 %v4364_v1  ;;  %p274_p4 = scmp.lt.s32.totalorder %s3213_s21, 255  ;;  %v4081_v4 = vld [vmem:[%s5274_s1 + $0x18] sm:$0xff]   ;;  %v4082_v5 = vld [vmem:[%s5274_s1 + $0x20] sm:$0xff]   ;;  %v4083_v7 = vld [vmem:[%s5274_s1 + $0x28] sm:$0xff]  }
  0x10   : > { %1694 = vmatpush1.bf16.msra.mxu0 %v4078_v0  ;;  %3892 = vmatpush1.bf16.msra.mxu1 %v4078_v0  ;;  %v4084_v9 = vld [vmem:[%s5274_s1 + $0x30] sm:$0xff]   ;;  %v4085_v10 = vld [vmem:[%s5274_s1 + $0x38] sm:$0xff]   ;;  %v4086_v11 = vld [vmem:[%s5274_s1 + $0x40] sm:$0xff]  }
  0x11   : > { %1695 = vmatprep.subr.bf16.mxu0 %v4364_v1  ;;  %3877 = vmatprep.subr.bf16.mxu1 %v4364_v1  ;;  %s5319_s21 = smov (!%p274_p4, %s3213_s21), 255  ;;  %v4087_v12 = vld [vmem:[%s5274_s1 + $0x48] sm:$0xff]   ;;  %v4088_v13 = vld [vmem:[%s5274_s1 + $0x50] sm:$0xff]   ;;  %v4089_v14 = vld [vmem:[%s5274_s1 + $0x58] sm:$0xff]  }
  0x12   : > { %s4052_s28 = smul.u32 20, %s5319_s21  ;;  %v4090_v15 = vld [vmem:[%s5274_s1 + $0x60] sm:$0xff]   ;;  %v4091_v16 = vld [vmem:[%s5274_s1 + $0x68] sm:$0xff]   ;;  %v4092_v17 = vld [vmem:[%s5274_s1 + $0x70] sm:$0xff]   ;;  %s3216_s10 = sshll.u32 %s5319_s21, 2 }
  0x13   : > { %v4093_v18 = vld [vmem:[%s5274_s1 + $0x78] sm:$0xff]   ;;  %v4101_v19 = vld [vmem:[%s5274_s1 + $0x100] sm:$0xff]   ;;  %v4150_v25 = vld [vmem:[%s5274_s1 + $0x108] sm:$0xff]   ;;  %s4996_s12 = scalar_lea.vmem %s5277_s4, %s3216_s10 }
  0x14   : > { %1696 = vmatpush1.bf16.msra.mxu0 %v4079_v2  ;;  %3893 = vmatpush1.bf16.msra.mxu1 %v4079_v2  ;;  %s4437_s7 = scalar_lea.vmem %s5273_s0, %s4052_s28  ;;  %v4100_v22 = vld [vmem:[%s5274_s1 + $0x80] sm:$0xff]   ;;  %v4102_v26 = vld [vmem:[%s5274_s1 + $0x88] sm:$0xff]   ;;  %v4109_v29 = vld [vmem:[%s5274_s1 + $0x90] sm:$0xff]  }
  0x15   : > { %1697 = vmatprep.subr.bf16.mxu0 %v4364_v1  ;;  %3878 = vmatprep.subr.bf16.mxu1 %v4364_v1  ;;  %v4096_v6 = vld [vmem:[%s4437_s7 + $0x4] ss:$20 sps:$4 sm:$0xff]   ;;  %v4094_v20 = vld [vmem:[%s4437_s7] ss:$20 sps:$4 sm:$0xff]   ;;  %v4107_v27 = vld [vmem:[%s4437_s7 + $0x28] ss:$20 sps:$4 sm:$0xff]  }
  0x16   : > { %v4099_v8 = vld [vmem:[%s4437_s7 + $0x144] ss:$20 sps:$4 sm:$0xff]   ;;  %1725 = vmatprep.mubr.bf16.mxu0 %v4096_v6  ;;  %v4097_v21 = vld [vmem:[%s4437_s7 + $0x140] ss:$20 sps:$4 sm:$0xff]   ;;  %v4108_v28 = vld [vmem:[%s4437_s7 + $0x168] ss:$20 sps:$4 sm:$0xff]  }
  0x17   : > { %1789 = vmatprep.mubr.bf16.mxu1 %v4099_v8  ;;  %v4103_v23 = vld [vmem:[%s4437_s7 + $0x2c] ss:$20 sps:$4 sm:$0xff]   ;;  %v4190_v30 = vld [vmem:[%s5274_s1 + $0x110] sm:$0xff]   ;;  %v4110_v33 = vld [vmem:[%s5274_s1 + $0x98] sm:$0xff]  }
  0x18   : > { %1698 = vmatpush1.bf16.msra.mxu0 %v4080_v3  ;;  %3894 = vmatpush1.bf16.msra.mxu1 %v4080_v3  ;;  %v4105_v24 = vld [vmem:[%s4437_s7 + $0x16c] ss:$20 sps:$4 sm:$0xff]   ;;  %v4111_v31 = vld [vmem:[%s4437_s7 + $0x54] ss:$20 sps:$4 sm:$0xff]   ;;  %v4115_v34 = vld [vmem:[%s4437_s7 + $0x50] ss:$20 sps:$4 sm:$0xff]  }
  0x19   : > { %1699 = vmatprep.subr.bf16.mxu0 %v4364_v1  ;;  %3879 = vmatprep.subr.bf16.mxu1 %v4364_v1  ;;  %v4113_v32 = vld [vmem:[%s4437_s7 + $0x194] ss:$20 sps:$4 sm:$0xff]   ;;  %v4116_v35 = vld [vmem:[%s4437_s7 + $0x190] ss:$20 sps:$4 sm:$0xff]   ;;  %v4123_v40 = vld [vmem:[%s4437_s7 + $0x78] ss:$20 sps:$4 sm:$0xff]  }
  0x1a   : > { %v4117_v36 = vld [vmem:[%s5274_s1 + $0xa0] sm:$0xff]   ;;  %v4119_v37 = vld [vmem:[%s4437_s7 + $0x7c] ss:$20 sps:$4 sm:$0xff]   ;;  %v4118_v39 = vld [vmem:[%s5274_s1 + $0xa8] sm:$0xff]  }
  0x1b   : > { %v4121_v38 = vld [vmem:[%s4437_s7 + $0x1bc] ss:$20 sps:$4 sm:$0xff]   ;;  %v4124_v41 = vld [vmem:[%s4437_s7 + $0x1b8] ss:$20 sps:$4 sm:$0xff]   ;;  %v4131_v47 = vld [vmem:[%s4437_s7 + $0xa0] ss:$20 sps:$4 sm:$0xff]  }
  0x1c   : > { %1700 = vmatpush1.bf16.msra.mxu0 %v4081_v4  ;;  %3895 = vmatpush1.bf16.msra.mxu1 %v4081_v4  ;;  %v4125_v42 = vld [vmem:[%s5274_s1 + $0xb0] sm:$0xff]   ;;  %v4127_v43 = vld [vmem:[%s4437_s7 + $0xa4] ss:$20 sps:$4 sm:$0xff]   ;;  %v4135_v50 = vld [vmem:[%s4437_s7 + $0xcc] ss:$20 sps:$4 sm:$0xff]  }
  0x1d   : > { %1701 = vmatprep.subr.bf16.mxu0 %v4364_v1  ;;  %3880 = vmatprep.subr.bf16.mxu1 %v4364_v1  ;;  %v4227_v44 = vld [vmem:[%s5274_s1 + $0x118] sm:$0xff]   ;;  %v4132_v48 = vld [vmem:[%s4437_s7 + $0x1e0] ss:$20 sps:$4 sm:$0xff]   ;;  %v4134_v52 = vld [vmem:[%s5274_s1 + $0xc8] sm:$0xff]  }
  0x1e   : > { %v4129_v45 = vld [vmem:[%s4437_s7 + $0x1e4] ss:$20 sps:$4 sm:$0xff]   ;;  %v4137_v51 = vld [vmem:[%s4437_s7 + $0x20c] ss:$20 sps:$4 sm:$0xff]   ;;  %v4139_v53 = vld [vmem:[%s4437_s7 + $0xc8] ss:$20 sps:$4 sm:$0xff]  }
  0x1f   : > { %v4126_v46 = vld [vmem:[%s5274_s1 + $0xb8] sm:$0xff]   ;;  %v4133_v49 = vld [vmem:[%s5274_s1 + $0xc0] sm:$0xff]   ;;  %v4141_v55 = vld [vmem:[%s5274_s1 + $0xd0] sm:$0xff]  }
  0x20   : > { %1702 = vmatpush1.bf16.msra.mxu0 %v4082_v5  ;;  %3896 = vmatpush1.bf16.msra.mxu1 %v4082_v5  ;;  %v4140_v54 = vld [vmem:[%s4437_s7 + $0x208] ss:$20 sps:$4 sm:$0xff]   ;;  %v4147_v59 = vld [vmem:[%s4437_s7 + $0xf0] ss:$20 sps:$4 sm:$0xff]   ;;  %v4156_v2 = vld [vmem:[%s4437_s7 + $0x118] ss:$20 sps:$4 sm:$0xff]  }
  0x21   : > { %1703 = vmatprep.subr.bf16.mxu0 %v4364_v1  ;;  %3881 = vmatprep.subr.bf16.mxu1 %v4364_v1  ;;  %v4143_v56 = vld [vmem:[%s4437_s7 + $0xf4] ss:$20 sps:$4 sm:$0xff]   ;;  %v4142_v58 = vld [vmem:[%s5274_s1 + $0xd8] sm:$0xff]   ;;  %v4148_v60 = vld [vmem:[%s4437_s7 + $0x230] ss:$20 sps:$4 sm:$0xff]  }
  0x22   : > { %v4145_v57 = vld [vmem:[%s4437_s7 + $0x234] ss:$20 sps:$4 sm:$0xff]   ;;  %v4149_v61 = vld [vmem:[%s5274_s1 + $0xe0] sm:$0xff]   ;;  %v4152_v62 = vld [vmem:[%s4437_s7 + $0x11c] ss:$20 sps:$4 sm:$0xff]  }
  0x23   : > { %v4154_v63 = vld [vmem:[%s4437_s7 + $0x25c] ss:$20 sps:$4 sm:$0xff]   ;;  %v4151_v0 = vld [vmem:[%s5274_s1 + $0xe8] sm:$0xff]   ;;  %v4160_v5 = vld [vmem:[%s4437_s7 + $0x284] ss:$20 sps:$4 sm:$0xff]  }
  0x24   : > { %1704 = vmatpush1.bf16.msra.mxu0 %v4083_v7  ;;  %3897 = vmatpush1.bf16.msra.mxu1 %v4083_v7  ;;  %v4157_v3 = vld [vmem:[%s4437_s7 + $0x258] ss:$20 sps:$4 sm:$0xff]   ;;  %v4158_v4 = vld [vmem:[%s5274_s1 + $0xf0] sm:$0xff]   ;;  %v4162_v8 = vld [vmem:[%s4437_s7 + $0x8] ss:$20 sps:$4 sm:$0xff]  }
  0x25   : > { %1705 = vmatprep.subr.bf16.mxu0 %v4364_v1  ;;  %3882 = vmatprep.subr.bf16.mxu1 %v4364_v1  ;;  %v4164_v6 = vld [vmem:[%s4437_s7 + $0xc] ss:$20 sps:$4 sm:$0xff]   ;;  %v4159_v7 = vld [vmem:[%s5274_s1 + $0xf8] sm:$0xff]  }
  0x28   : > { %1706 = vmatpush1.bf16.msra.mxu0 %v4084_v9  ;;  %3898 = vmatpush1.bf16.msra.mxu1 %v4084_v9  ;;  %v4165_v9 = vld [vmem:[%s4437_s7 + $0x280] ss:$20 sps:$4 sm:$0xff]  }
  0x29   : > { %1707 = vmatprep.subr.bf16.mxu0 %v4364_v1  ;;  %3883 = vmatprep.subr.bf16.mxu1 %v4364_v1 }
  0x2c   : > { %1708 = vmatpush1.bf16.msra.mxu0 %v4085_v10  ;;  %3899 = vmatpush1.bf16.msra.mxu1 %v4085_v10  ;;  %v4166_v10 = vld [vmem:[%s4437_s7 + $0x2ac] ss:$20 sps:$4 sm:$0xff]  }
  0x2d   : > { %1709 = vmatprep.subr.bf16.mxu0 %v4364_v1  ;;  %3884 = vmatprep.subr.bf16.mxu1 %v4364_v1 }
  0x30   : > { %1710 = vmatpush1.bf16.msra.mxu0 %v4086_v11  ;;  %3900 = vmatpush1.bf16.msra.mxu1 %v4086_v11  ;;  %v4168_v11 = vld [vmem:[%s4437_s7 + $0x34] ss:$20 sps:$4 sm:$0xff]  }
  0x31   : > { %1711 = vmatprep.subr.bf16.mxu0 %v4364_v1  ;;  %3885 = vmatprep.subr.bf16.mxu1 %v4364_v1 }
  0x34   : > { %1712 = vmatpush1.bf16.msra.mxu0 %v4087_v12  ;;  %3901 = vmatpush1.bf16.msra.mxu1 %v4087_v12  ;;  %v4170_v12 = vld [vmem:[%s4437_s7 + $0x2a8] ss:$20 sps:$4 sm:$0xff]  }
  0x35   : > { %1713 = vmatprep.subr.bf16.mxu0 %v4364_v1  ;;  %3886 = vmatprep.subr.bf16.mxu1 %v4364_v1 }
  0x38   : > { %1714 = vmatpush1.bf16.msra.mxu0 %v4088_v13  ;;  %3902 = vmatpush1.bf16.msra.mxu1 %v4088_v13  ;;  %v4171_v13 = vld [vmem:[%s4437_s7 + $0x30] ss:$20 sps:$4 sm:$0xff]  }
  0x39   : > { %1715 = vmatprep.subr.bf16.mxu0 %v4364_v1  ;;  %3887 = vmatprep.subr.bf16.mxu1 %v4364_v1 }
  0x3c   : > { %1716 = vmatpush1.bf16.msra.mxu0 %v4089_v14  ;;  %3903 = vmatpush1.bf16.msra.mxu1 %v4089_v14  ;;  %v4172_v14 = vld [vmem:[%s4437_s7 + $0x2d4] ss:$20 sps:$4 sm:$0xff]  }
  0x3d   : > { %1717 = vmatprep.subr.bf16.mxu0 %v4364_v1  ;;  %3888 = vmatprep.subr.bf16.mxu1 %v4364_v1 }
  0x40   : > { %1718 = vmatpush1.bf16.msra.mxu0 %v4090_v15  ;;  %3904 = vmatpush1.bf16.msra.mxu1 %v4090_v15  ;;  %v4176_v15 = vld [vmem:[%s4437_s7 + $0x2d0] ss:$20 sps:$4 sm:$0xff]  }
  0x41   : > { %1719 = vmatprep.subr.bf16.mxu0 %v4364_v1  ;;  %3889 = vmatprep.subr.bf16.mxu1 %v4364_v1 }
  0x44   : > { %1720 = vmatpush1.bf16.msra.mxu0 %v4091_v16  ;;  %3905 = vmatpush1.bf16.msra.mxu1 %v4091_v16  ;;  %v4177_v16 = vld [vmem:[%s4437_s7 + $0x58] ss:$20 sps:$4 sm:$0xff]  }
  0x45   : > { %1721 = vmatprep.subr.bf16.mxu0 %v4364_v1  ;;  %3890 = vmatprep.subr.bf16.mxu1 %v4364_v1 }
  0x48   : > { %1722 = vmatpush1.bf16.msra.mxu0 %v4092_v17  ;;  %3906 = vmatpush1.bf16.msra.mxu1 %v4092_v17  ;;  %v4178_v17 = vld [vmem:[%s4437_s7 + $0x2fc] ss:$20 sps:$4 sm:$0xff]  }
  0x49   : > { %1723 = vmatprep.subr.bf16.mxu0 %v4364_v1  ;;  %3891 = vmatprep.subr.bf16.mxu1 %v4364_v1 }
  0x4c   : > { %1724 = vmatpush1.bf16.msra.mxu0 %v4093_v18  ;;  %3907 = vmatpush1.bf16.msra.mxu1 %v4093_v18  ;;  %v4180_v18 = vld [vmem:[%s4437_s7 + $0x84] ss:$20 sps:$4 sm:$0xff]  }
  0x4d   : > { %1982 = vmatprep.subr.bf16.mxu0 %v4364_v1  ;;  %3804 = vmatprep.subr.bf16.mxu1 %v4101_v19 }
  0x4f   : > { %1726 = vmatmul.mubr.bf16.vlgmr.msra.gmra.mrb[0].mxu0 %v4094_v20  ;;  %1790 = vmatmul.mubr.bf16.vlgmr.msra.gmra.mrb[0].mxu1 %v4097_v21  ;;  %v4183_v20 = vld [vmem:[%s4437_s7 + $0x80] ss:$20 sps:$4 sm:$0xff]   ;;  %v4184_v21 = vld [vmem:[%s4437_s7 + $0x324] ss:$20 sps:$4 sm:$0xff]  }
  0x50   : > { %1983 = vmatpush1.bf16.msra.mxu0 %v4100_v22  ;;  %3805 = vmatpush3.bf16.msra.mxu1 %v4101_v19  ;;  %v4182_v19 = vld [vmem:[%s4437_s7 + $0x2f8] ss:$20 sps:$4 sm:$0xff]  }
  0x51   : > { %1984 = vmatprep.subr.bf16.mxu0 %v4364_v1  ;;  %1733 = vmatprep.mubr.bf16.mxu0 %v4103_v23  ;;  %v4186_v22 = vld [vmem:[%s4437_s7 + $0xac] ss:$20 sps:$4 sm:$0xff]  }
  0x52   : > { %1797 = vmatprep.mubr.bf16.mxu1 %v4105_v24  ;;  %3806 = vmatprep.subr.bf16.mxu1 %v4150_v25  ;;  %v4188_v23 = vld [vmem:[%s4437_s7 + $0x320] ss:$20 sps:$4 sm:$0xff]   ;;  %v4189_v24 = vld [vmem:[%s4437_s7 + $0xa8] ss:$20 sps:$4 sm:$0xff]  }
  0x54   : > { %1985 = vmatpush1.bf16.msra.mxu0 %v4102_v26  ;;  %3807 = vmatpush3.bf16.msra.mxu1 %v4150_v25  ;;  %v4191_v25 = vld [vmem:[%s4437_s7 + $0x34c] ss:$20 sps:$4 sm:$0xff]   ;;  %v4193_v26 = vld [vmem:[%s4437_s7 + $0xd4] ss:$20 sps:$4 sm:$0xff]  }
  0x55   : > { %1986 = vmatprep.subr.bf16.mxu0 %v4364_v1  ;;  %3808 = vmatprep.subr.bf16.mxu1 %v4190_v30 }
  0x57   : > { %1734 = vmatmul.mubr.bf16.gmra.mrb[4].mxu0 %v4107_v27  ;;  %1798 = vmatmul.mubr.bf16.gmra.mrb[4].mxu1 %v4108_v28  ;;  %v4195_v27 = vld [vmem:[%s4437_s7 + $0x348] ss:$20 sps:$4 sm:$0xff]   ;;  %v4196_v28 = vld [vmem:[%s4437_s7 + $0xd0] ss:$20 sps:$4 sm:$0xff]  }
  0x58   : > { %1987 = vmatpush1.bf16.msra.mxu0 %v4109_v29  ;;  %1741 = vmatprep.mubr.bf16.mxu0 %v4111_v31  ;;  %v4197_v29 = vld [vmem:[%s4437_s7 + $0x374] ss:$20 sps:$4 sm:$0xff]   ;;  %v4201_v31 = vld [vmem:[%s4437_s7 + $0x370] ss:$20 sps:$4 sm:$0xff]  }
  0x59   : > { %1988 = vmatprep.subr.bf16.mxu0 %v4364_v1  ;;  %1805 = vmatprep.mubr.bf16.mxu1 %v4113_v32  ;;  %v4202_v32 = vld [vmem:[%s4437_s7 + $0xf8] ss:$20 sps:$4 sm:$0xff]  }
  0x5a   : > { %3809 = vmatpush3.bf16.msra.mxu1 %v4190_v30  ;;  %v4199_v30 = vld [vmem:[%s4437_s7 + $0xfc] ss:$20 sps:$4 sm:$0xff]  }
  0x5b   : > { %3810 = vmatprep.subr.bf16.mxu1 %v4227_v44 }
  0x5c   : > { %1989 = vmatpush1.bf16.msra.mxu0 %v4110_v33  ;;  %v4203_v33 = vld [vmem:[%s4437_s7 + $0x39c] ss:$20 sps:$4 sm:$0xff]  }
  0x5d   : > { %1990 = vmatprep.subr.bf16.mxu0 %v4364_v1 }
  0x5e   : > { %3811 = vmatpush3.bf16.msra.mxu1 %v4227_v44  ;;  %v4220_v44 = vld [vmem:[%s4437_s7 + $0x170] ss:$20 sps:$4 sm:$0xff]  }
  0x5f   : > { %1742 = vmatmul.mubr.bf16.gmra.mrb[8].mxu0 %v4115_v34  ;;  %1806 = vmatmul.mubr.bf16.gmra.mrb[8].mxu1 %v4116_v35  ;;  %v4205_v34 = vld [vmem:[%s4437_s7 + $0x124] ss:$20 sps:$4 sm:$0xff]  }
  0x60   : > { %1991 = vmatpush1.bf16.msra.mxu0 %v4117_v36  ;;  %1749 = vmatprep.mubr.bf16.mxu0 %v4119_v37  ;;  %v4207_v35 = vld [vmem:[%s4437_s7 + $0x398] ss:$20 sps:$4 sm:$0xff]   ;;  %v4208_v36 = vld [vmem:[%s4437_s7 + $0x120] ss:$20 sps:$4 sm:$0xff]  }
  0x61   : > { %1992 = vmatprep.subr.bf16.mxu0 %v4364_v1  ;;  %1813 = vmatprep.mubr.bf16.mxu1 %v4121_v38  ;;  %v4209_v37 = vld [vmem:[%s4437_s7 + $0x3c4] ss:$20 sps:$4 sm:$0xff]   ;;  %v4211_v38 = vld [vmem:[%s4437_s7 + $0x14c] ss:$20 sps:$4 sm:$0xff]  }
  0x64   : > { %1993 = vmatpush1.bf16.msra.mxu0 %v4118_v39  ;;  %v4213_v39 = vld [vmem:[%s4437_s7 + $0x3c0] ss:$20 sps:$4 sm:$0xff]  }
  0x65   : > { %1994 = vmatprep.subr.bf16.mxu0 %v4364_v1 }
  0x67   : > { %1750 = vmatmul.mubr.bf16.gmra.mrb[12].mxu0 %v4123_v40  ;;  %1814 = vmatmul.mubr.bf16.gmra.mrb[12].mxu1 %v4124_v41  ;;  %v4214_v40 = vld [vmem:[%s4437_s7 + $0x148] ss:$20 sps:$4 sm:$0xff]   ;;  %v4215_v41 = vld [vmem:[%s4437_s7 + $0x3ec] ss:$20 sps:$4 sm:$0xff]  }
  0x68   : > { %1995 = vmatpush1.bf16.msra.mxu0 %v4125_v42  ;;  %1757 = vmatprep.mubr.bf16.mxu0 %v4127_v43  ;;  %v4217_v42 = vld [vmem:[%s4437_s7 + $0x174] ss:$20 sps:$4 sm:$0xff]  }
  0x69   : > { %1996 = vmatprep.subr.bf16.mxu0 %v4364_v1  ;;  %1821 = vmatprep.mubr.bf16.mxu1 %v4129_v45  ;;  %v4219_v43 = vld [vmem:[%s4437_s7 + $0x3e8] ss:$20 sps:$4 sm:$0xff]  }
  0x6a   : > { %v4221_v45 = vld [vmem:[%s4437_s7 + $0x414] ss:$20 sps:$4 sm:$0xff]  }
  0x6c   : > { %1997 = vmatpush1.bf16.msra.mxu0 %v4126_v46  ;;  %v4223_v46 = vld [vmem:[%s4437_s7 + $0x19c] ss:$20 sps:$4 sm:$0xff]  }
  0x6d   : > { %1998 = vmatprep.subr.bf16.mxu0 %v4364_v1 }
  0x6f   : > { %1758 = vmatmul.mubr.bf16.gmra.mrb[16].mxu0 %v4131_v47  ;;  %1822 = vmatmul.mubr.bf16.gmra.mrb[16].mxu1 %v4132_v48  ;;  %v4225_v47 = vld [vmem:[%s4437_s7 + $0x410] ss:$20 sps:$4 sm:$0xff]   ;;  %v4226_v48 = vld [vmem:[%s4437_s7 + $0x198] ss:$20 sps:$4 sm:$0xff]  }
  0x70   : > { %1999 = vmatpush1.bf16.msra.mxu0 %v4133_v49  ;;  %1765 = vmatprep.mubr.bf16.mxu0 %v4135_v50  ;;  %v4228_v49 = vld [vmem:[%s4437_s7 + $0x43c] ss:$20 sps:$4 sm:$0xff]   ;;  %v4230_v50 = vld [vmem:[%s4437_s7 + $0x1c4] ss:$20 sps:$4 sm:$0xff]  }
  0x71   : > { %2000 = vmatprep.subr.bf16.mxu0 %v4364_v1  ;;  %1829 = vmatprep.mubr.bf16.mxu1 %v4137_v51  ;;  %v4232_v51 = vld [vmem:[%s4437_s7 + $0x438] ss:$20 sps:$4 sm:$0xff]  }
  0x74   : > { %2001 = vmatpush1.bf16.msra.mxu0 %v4134_v52  ;;  %v4233_v52 = vld [vmem:[%s4437_s7 + $0x1c0] ss:$20 sps:$4 sm:$0xff]  }
  0x75   : > { %2002 = vmatprep.subr.bf16.mxu0 %v4364_v1 }
  0x77   : > { %1766 = vmatmul.mubr.bf16.gmra.mrb[20].mxu0 %v4139_v53  ;;  %1830 = vmatmul.mubr.bf16.gmra.mrb[20].mxu1 %v4140_v54  ;;  %v4234_v53 = vld [vmem:[%s4437_s7 + $0x464] ss:$20 sps:$4 sm:$0xff]   ;;  %v4236_v54 = vld [vmem:[%s4437_s7 + $0x1ec] ss:$20 sps:$4 sm:$0xff]  }
  0x78   : > { %2003 = vmatpush1.bf16.msra.mxu0 %v4141_v55  ;;  %1773 = vmatprep.mubr.bf16.mxu0 %v4143_v56  ;;  %v4238_v55 = vld [vmem:[%s4437_s7 + $0x460] ss:$20 sps:$4 sm:$0xff]   ;;  %v4239_v56 = vld [vmem:[%s4437_s7 + $0x1e8] ss:$20 sps:$4 sm:$0xff]  }
  0x79   : > { %2004 = vmatprep.subr.bf16.mxu0 %v4364_v1  ;;  %1837 = vmatprep.mubr.bf16.mxu1 %v4145_v57  ;;  %v4240_v57 = vld [vmem:[%s4437_s7 + $0x48c] ss:$20 sps:$4 sm:$0xff]  }
  0x7c   : > { %2005 = vmatpush1.bf16.msra.mxu0 %v4142_v58  ;;  %v4242_v58 = vld [vmem:[%s4437_s7 + $0x214] ss:$20 sps:$4 sm:$0xff]  }
  0x7d   : > { %2006 = vmatprep.subr.bf16.mxu0 %v4364_v1 }
  0x7f   : > { %1774 = vmatmul.mubr.bf16.gmra.mrb[24].mxu0 %v4147_v59  ;;  %1838 = vmatmul.mubr.bf16.gmra.mrb[24].mxu1 %v4148_v60  ;;  %v4244_v59 = vld [vmem:[%s4437_s7 + $0x488] ss:$20 sps:$4 sm:$0xff]   ;;  %v4245_v60 = vld [vmem:[%s4437_s7 + $0x210] ss:$20 sps:$4 sm:$0xff]  }
  0x80   : > { %2007 = vmatpush1.bf16.msra.mxu0 %v4149_v61  ;;  %1781 = vmatprep.mubr.bf16.mxu0 %v4152_v62  ;;  %v4246_v61 = vld [vmem:[%s4437_s7 + $0x4b4] ss:$20 sps:$4 sm:$0xff]   ;;  %v4248_v62 = vld [vmem:[%s4437_s7 + $0x23c] ss:$20 sps:$4 sm:$0xff]  }
  0x81   : > { %2008 = vmatprep.subr.bf16.mxu0 %v4364_v1  ;;  %1845 = vmatprep.mubr.bf16.mxu1 %v4154_v63  ;;  %v4250_v63 = vld [vmem:[%s4437_s7 + $0x4b0] ss:$20 sps:$4 sm:$0xff]  }
  0x84   : > { %2009 = vmatpush1.bf16.msra.mxu0 %v4151_v0  ;;  %v4251_v0 = vld [vmem:[%s4437_s7 + $0x238] ss:$20 sps:$4 sm:$0xff]  }
  0x85   : > { %2010 = vmatprep.subr.bf16.mxu0 %v4364_v1 }
  0x87   : > { %1782 = vmatmul.mubr.bf16.gmra.mrb[28].mxu0 %v4156_v2  ;;  %1846 = vmatmul.mubr.bf16.gmra.mrb[28].mxu1 %v4157_v3  ;;  %v4252_v2 = vld [vmem:[%s4437_s7 + $0x4dc] ss:$20 sps:$4 sm:$0xff]   ;;  %v4254_v3 = vld [vmem:[%s4437_s7 + $0x264] ss:$20 sps:$4 sm:$0xff]  }
  0x88   : > { %2011 = vmatpush1.bf16.msra.mxu0 %v4158_v4  ;;  %1853 = vmatprep.mubr.bf16.mxu1 %v4160_v5  ;;  %v4256_v4 = vld [vmem:[%s4437_s7 + $0x4d8] ss:$20 sps:$4 sm:$0xff]   ;;  %v4257_v5 = vld [vmem:[%s4437_s7 + $0x260] ss:$20 sps:$4 sm:$0xff]  }
  0x89   : > { %2012 = vmatprep.subr.bf16.mxu0 %v4364_v1  ;;  %2014 = vmatprep.mubr.bf16.mxu0 %v4164_v6  ;;  %v4174_v1 = vld [vmem:[%s4437_s7 + $0x5c] ss:$20 sps:$4 sm:$0xff]   ;;  %v4258_v6 = vld [vmem:[%s4437_s7 + $0x28c] ss:$20 sps:$4 sm:$0xff]  }
  0x8c   : > { %2013 = vmatpush1.bf16.msra.mxu0 %v4159_v7  ;;  %v4260_v7 = vld [vmem:[%s4437_s7 + $0x10] ss:$20 sps:$4 sm:$0xff]  }
  0x8f   : > { %1854 = vmatmul.mubr.bf16.gmra.mrb[32].mxu1 %v4165_v9  ;;  %2015 = vmatmul.mubr.bf16.vlgmr.msra.gmra.mrb[0].mxu0 %v4162_v8  ;;  %v4261_v8 = vld [vmem:[%s4437_s7 + $0x288] ss:$20 sps:$4 sm:$0xff]   ;;  %v4262_v9 = vld [vmem:[%s4437_s7 + $0x38] ss:$20 sps:$4 sm:$0xff]  }
  0x90   : > { %1861 = vmatprep.mubr.bf16.mxu1 %v4166_v10  ;;  %2022 = vmatprep.mubr.bf16.mxu0 %v4168_v11  ;;  %v4263_v10 = vld [vmem:[%s4437_s7 + $0x2b4] ss:$20 sps:$4 sm:$0xff]  }
  0x91   : > { %v4265_v11 = vld [vmem:[%s4437_s7 + $0x60] ss:$20 sps:$4 sm:$0xff]  }
  0x97   : > { %1862 = vmatmul.mubr.bf16.gmra.mrb[36].mxu1 %v4170_v12  ;;  %2023 = vmatmul.mubr.bf16.gmra.mrb[4].mxu0 %v4171_v13  ;;  %v4266_v12 = vld [vmem:[%s4437_s7 + $0x2b0] ss:$20 sps:$4 sm:$0xff]   ;;  %v4267_v13 = vld [vmem:[%s4437_s7 + $0x88] ss:$20 sps:$4 sm:$0xff]  }
  0x98   : > { %1869 = vmatprep.mubr.bf16.mxu1 %v4172_v14  ;;  %2030 = vmatprep.mubr.bf16.mxu0 %v4174_v1  ;;  %v4268_v14 = vld [vmem:[%s4437_s7 + $0x2dc] ss:$20 sps:$4 sm:$0xff]  }
  0x99   : > { %v4270_v1 = vld [vmem:[%s4437_s7 + $0xb0] ss:$20 sps:$4 sm:$0xff]  }
  0x9f   : > { %1870 = vmatmul.mubr.bf16.gmra.mrb[40].mxu1 %v4176_v15  ;;  %2031 = vmatmul.mubr.bf16.gmra.mrb[8].mxu0 %v4177_v16  ;;  %v4271_v15 = vld [vmem:[%s4437_s7 + $0x2d8] ss:$20 sps:$4 sm:$0xff]  }
  0xa0   : > { %1877 = vmatprep.mubr.bf16.mxu1 %v4178_v17  ;;  %2038 = vmatprep.mubr.bf16.mxu0 %v4180_v18  ;;  %v4272_v16 = vld [vmem:[%s4437_s7 + $0xd8] ss:$20 sps:$4 sm:$0xff]   ;;  %v4275_v18 = vld [vmem:[%s4437_s7 + $0x100] ss:$20 sps:$4 sm:$0xff]  }
  0xa1   : > { %v4273_v17 = vld [vmem:[%s4437_s7 + $0x304] ss:$20 sps:$4 sm:$0xff]  }
  0xa7   : > { %1878 = vmatmul.mubr.bf16.gmra.mrb[44].mxu1 %v4182_v19  ;;  %2039 = vmatmul.mubr.bf16.gmra.mrb[12].mxu0 %v4183_v20 }
  0xa8   : > { %1885 = vmatprep.mubr.bf16.mxu1 %v4184_v21  ;;  %2046 = vmatprep.mubr.bf16.mxu0 %v4186_v22  ;;  %v4276_v21 = vld [vmem:[%s4437_s7 + $0x300] ss:$20 sps:$4 sm:$0xff]   ;;  %v4277_v22 = vld [vmem:[%s4437_s7 + $0x128] ss:$20 sps:$4 sm:$0xff]  }
  0xaf   : > { %1886 = vmatmul.mubr.bf16.gmra.mrb[48].mxu1 %v4188_v23  ;;  %2047 = vmatmul.mubr.bf16.gmra.mrb[16].mxu0 %v4189_v24  ;;  %v4278_v24 = vld [vmem:[%s4437_s7 + $0x32c] ss:$20 sps:$4 sm:$0xff]  }
  0xb0   : > { %1893 = vmatprep.mubr.bf16.mxu1 %v4191_v25  ;;  %2054 = vmatprep.mubr.bf16.mxu0 %v4193_v26  ;;  %v4280_v25 = vld [vmem:[%s4437_s7 + $0x150] ss:$20 sps:$4 sm:$0xff]  }
  0xb7   : > { %1894 = vmatmul.mubr.bf16.gmra.mrb[52].mxu1 %v4195_v27  ;;  %2055 = vmatmul.mubr.bf16.gmra.mrb[20].mxu0 %v4196_v28 }
  0xb8   : > { %1901 = vmatprep.mubr.bf16.mxu1 %v4197_v29  ;;  %2062 = vmatprep.mubr.bf16.mxu0 %v4199_v30  ;;  %v4281_v29 = vld [vmem:[%s4437_s7 + $0x328] ss:$20 sps:$4 sm:$0xff]   ;;  %v4282_v30 = vld [vmem:[%s4437_s7 + $0x178] ss:$20 sps:$4 sm:$0xff]  }
  0xbf   : > { %1902 = vmatmul.mubr.bf16.gmra.mrb[56].mxu1 %v4201_v31  ;;  %2063 = vmatmul.mubr.bf16.gmra.mrb[24].mxu0 %v4202_v32  ;;  %v4283_v32 = vld [vmem:[%s4437_s7 + $0x354] ss:$20 sps:$4 sm:$0xff]  }
  0xc0   : > { %1909 = vmatprep.mubr.bf16.mxu1 %v4203_v33  ;;  %2070 = vmatprep.mubr.bf16.mxu0 %v4205_v34  ;;  %v4285_v33 = vld [vmem:[%s4437_s7 + $0x1a0] ss:$20 sps:$4 sm:$0xff]  }
  0xc7   : > { %1910 = vmatmul.mubr.bf16.gmra.mrb[60].mxu1 %v4207_v35  ;;  %2071 = vmatmul.mubr.bf16.gmra.mrb[28].mxu0 %v4208_v36 }
  0xc8   : > { %1917 = vmatprep.mubr.bf16.mxu1 %v4209_v37  ;;  %2078 = vmatprep.mubr.bf16.mxu0 %v4211_v38  ;;  %v4286_v37 = vld [vmem:[%s4437_s7 + $0x350] ss:$20 sps:$4 sm:$0xff]   ;;  %v4287_v38 = vld [vmem:[%s4437_s7 + $0x1c8] ss:$20 sps:$4 sm:$0xff]  }
  0xcf   : > { %1918 = vmatmul.mubr.bf16.gmra.mrb[64].mxu1 %v4213_v39  ;;  %2079 = vmatmul.mubr.bf16.gmra.mrb[32].mxu0 %v4214_v40  ;;  %v4288_v40 = vld [vmem:[%s4437_s7 + $0x37c] ss:$20 sps:$4 sm:$0xff]  }
  0xd0   : > { %1925 = vmatprep.mubr.bf16.mxu1 %v4215_v41  ;;  %2086 = vmatprep.mubr.bf16.mxu0 %v4217_v42  ;;  %v4290_v41 = vld [vmem:[%s4437_s7 + $0x1f0] ss:$20 sps:$4 sm:$0xff]  }
  0xd7   : > { %1926 = vmatmul.mubr.bf16.gmra.mrb[68].mxu1 %v4219_v43  ;;  %2087 = vmatmul.mubr.bf16.gmra.mrb[36].mxu0 %v4220_v44 }
  0xd8   : > { %1933 = vmatprep.mubr.bf16.mxu1 %v4221_v45  ;;  %2094 = vmatprep.mubr.bf16.mxu0 %v4223_v46  ;;  %v4291_v45 = vld [vmem:[%s4437_s7 + $0x378] ss:$20 sps:$4 sm:$0xff]  }
  0xd9   : > { %v4292_v46 = vld [vmem:[%s4437_s7 + $0x218] ss:$20 sps:$4 sm:$0xff]  }
  0xdf   : > { %1934 = vmatmul.mubr.bf16.gmra.mrb[72].mxu1 %v4225_v47  ;;  %2095 = vmatmul.mubr.bf16.gmra.mrb[40].mxu0 %v4226_v48  ;;  %v4293_v48 = vld [vmem:[%s4437_s7 + $0x3a4] ss:$20 sps:$4 sm:$0xff]  }
  0xe0   : > { %1941 = vmatprep.mubr.bf16.mxu1 %v4228_v49  ;;  %2102 = vmatprep.mubr.bf16.mxu0 %v4230_v50  ;;  %v4295_v49 = vld [vmem:[%s4437_s7 + $0x240] ss:$20 sps:$4 sm:$0xff]  }
  0xe7   : > { %1942 = vmatmul.mubr.bf16.gmra.mrb[76].mxu1 %v4232_v51  ;;  %2103 = vmatmul.mubr.bf16.gmra.mrb[44].mxu0 %v4233_v52 }
  0xe8   : > { %1949 = vmatprep.mubr.bf16.mxu1 %v4234_v53  ;;  %2110 = vmatprep.mubr.bf16.mxu0 %v4236_v54  ;;  %v4296_v53 = vld [vmem:[%s4437_s7 + $0x3a0] ss:$20 sps:$4 sm:$0xff]   ;;  %v4297_v54 = vld [vmem:[%s4437_s7 + $0x268] ss:$20 sps:$4 sm:$0xff]  }
  0xef   : > { %1950 = vmatmul.mubr.bf16.gmra.mrb[80].mxu1 %v4238_v55  ;;  %2111 = vmatmul.mubr.bf16.gmra.mrb[48].mxu0 %v4239_v56  ;;  %v4298_v56 = vld [vmem:[%s4437_s7 + $0x3cc] ss:$20 sps:$4 sm:$0xff]  }
  0xf0   : > { %1957 = vmatprep.mubr.bf16.mxu1 %v4240_v57  ;;  %2118 = vmatprep.mubr.bf16.mxu0 %v4242_v58  ;;  %v4300_v57 = vld [vmem:[%s4437_s7 + $0x290] ss:$20 sps:$4 sm:$0xff]  }
  0xf7   : > { %1958 = vmatmul.mubr.bf16.gmra.mrb[84].mxu1 %v4244_v59  ;;  %2119 = vmatmul.mubr.bf16.gmra.mrb[52].mxu0 %v4245_v60 }
  0xf8   : > { %1965 = vmatprep.mubr.bf16.mxu1 %v4246_v61  ;;  %2126 = vmatprep.mubr.bf16.mxu0 %v4248_v62  ;;  %v4301_v61 = vld [vmem:[%s4437_s7 + $0x3c8] ss:$20 sps:$4 sm:$0xff]   ;;  %v4302_v62 = vld [vmem:[%s4437_s7 + $0x2b8] ss:$20 sps:$4 sm:$0xff]  }
  0xff   : > { %1966 = vmatmul.mubr.bf16.gmra.mrb[88].mxu1 %v4250_v63  ;;  %2127 = vmatmul.mubr.bf16.gmra.mrb[56].mxu0 %v4251_v0  ;;  %v4303_v0 = vld [vmem:[%s4437_s7 + $0x3f4] ss:$20 sps:$4 sm:$0xff]  }
 0x100   : > { %1973 = vmatprep.mubr.bf16.mxu1 %v4252_v2  ;;  %2134 = vmatprep.mubr.bf16.mxu0 %v4254_v3  ;;  %v4305_v2 = vld [vmem:[%s4437_s7 + $0x2e0] ss:$20 sps:$4 sm:$0xff]  }
 0x107   : > { %1974 = vmatmul.mubr.bf16.gmra.mrb[92].mxu1 %v4256_v4  ;;  %2135 = vmatmul.mubr.bf16.gmra.mrb[60].mxu0 %v4257_v5 }
 0x108   : > { %2142 = vmatprep.mubr.bf16.mxu0 %v4258_v6  ;;  %3812 = vmatprep.mubr.msk.bf16.mxu1 %vm1596_vm0, %v4260_v7  ;;  %v4306_v6 = vld [vmem:[%s4437_s7 + $0x3f0] ss:$20 sps:$4 sm:$0xff]   ;;  %v4307_v7 = vld [vmem:[%s4437_s7 + $0x308] ss:$20 sps:$4 sm:$0xff]  }
 0x10f   : > { %2143 = vmatmul.mubr.bf16.gmra.mrb[64].mxu0 %v4261_v8  ;;  %3813 = vmatmul.mubr.msk.bf16.vlgmr.msra.gmra.mrb[96].mxu1 %vm1596_vm0, %v4262_v9  ;;  %v4308_v9 = vld [vmem:[%s4437_s7 + $0x41c] ss:$20 sps:$4 sm:$0xff]  }
 0x110   : > { %2150 = vmatprep.mubr.bf16.mxu0 %v4263_v10  ;;  %3816 = vmatprep.mubr.msk.bf16.mxu1 %vm1596_vm0, %v4265_v11  ;;  %v4310_v10 = vld [vmem:[%s4437_s7 + $0x330] ss:$20 sps:$4 sm:$0xff]  }
 0x117   : > { %2151 = vmatmul.mubr.bf16.gmra.mrb[68].mxu0 %v4266_v12  ;;  %3817 = vmatmul.mubr.msk.bf16.gmra.mrb[100].mxu1 %vm1596_vm0, %v4267_v13 }
 0x118   : > { %2158 = vmatprep.mubr.bf16.mxu0 %v4268_v14  ;;  %3820 = vmatprep.mubr.msk.bf16.mxu1 %vm1596_vm0, %v4270_v1  ;;  %v4311_v14 = vld [vmem:[%s4437_s7 + $0x418] ss:$20 sps:$4 sm:$0xff]  }
 0x119   : > { %v4312_v1 = vld [vmem:[%s4437_s7 + $0x358] ss:$20 sps:$4 sm:$0xff]  }
 0x11f   : > { %2159 = vmatmul.mubr.bf16.gmra.mrb[72].mxu0 %v4271_v15  ;;  %3821 = vmatmul.mubr.msk.bf16.gmra.mrb[104].mxu1 %vm1596_vm0, %v4272_v16  ;;  %v4313_v16 = vld [vmem:[%s4437_s7 + $0x444] ss:$20 sps:$4 sm:$0xff]  }
 0x120   : > { %2166 = vmatprep.mubr.bf16.mxu0 %v4273_v17  ;;  %3824 = vmatprep.mubr.msk.bf16.mxu1 %vm1596_vm0, %v4275_v18  ;;  %v4315_v17 = vld [vmem:[%s4437_s7 + $0x380] ss:$20 sps:$4 sm:$0xff]  }
 0x122   : > { %v4689_v19 = vpop.f32.mrb[0].mxu1 }
 0x123   : > { %v1793_v20 = vpop.f32.mrb[1].mxu1 }
 0x124   : > { %v4693_v23 = vpop.f32.mrb[2].mxu1 }
 0x125   : > { %v1796_v26 = vpop.f32.mrb[3].mxu1 }
 0x126   : > { %v4317_v26 = vld [vmem:[%s4437_s7 + $0x3a8] ss:$20 sps:$4 sm:$0xff]  }
 0x127   : > { %2167 = vmatmul.mubr.bf16.gmra.mrb[76].mxu0 %v4276_v21  ;;  %3825 = vmatmul.mubr.msk.bf16.gmra.mrb[108].mxu1 %vm1596_vm0, %v4277_v22 }
 0x128   : > { %2174 = vmatprep.mubr.bf16.mxu0 %v4278_v24  ;;  %3828 = vmatprep.mubr.msk.bf16.mxu1 %vm1596_vm0, %v4280_v25  ;;  %v4316_v25 = vld [vmem:[%s4437_s7 + $0x440] ss:$20 sps:$4 sm:$0xff]  }
 0x12a   : > { %v4699_v27 = vpop.f32.mrb[4].mxu1 }
 0x12b   : > { %v1801_v28 = vpop.f32.mrb[5].mxu1 }
 0x12c   : > { %v4703_v31 = vpop.f32.mrb[6].mxu1 }
 0x12d   : > { %v1804_v34 = vpop.f32.mrb[7].mxu1 }
 0x12f   : > { %2175 = vmatmul.mubr.bf16.gmra.mrb[80].mxu0 %v4281_v29  ;;  %3829 = vmatmul.mubr.msk.bf16.gmra.mrb[112].mxu1 %vm1596_vm0, %v4282_v30  ;;  %v4318_v30 = vld [vmem:[%s4437_s7 + $0x46c] ss:$20 sps:$4 sm:$0xff]  }
 0x130   : > { %2182 = vmatprep.mubr.bf16.mxu0 %v4283_v32  ;;  %3832 = vmatprep.mubr.msk.bf16.mxu1 %vm1596_vm0, %v4285_v33  ;;  %v4320_v32 = vld [vmem:[%s4437_s7 + $0x3d0] ss:$20 sps:$4 sm:$0xff]  }
 0x132   : > { %v4709_v35 = vpop.f32.mrb[8].mxu1 }
 0x133   : > { %v1809_v36 = vpop.f32.mrb[9].mxu1 }
 0x134   : > { %v4713_v39 = vpop.f32.mrb[10].mxu1 }
 0x135   : > { %v1812_v42 = vpop.f32.mrb[11].mxu1 }
 0x136   : > { %v4322_v42 = vld [vmem:[%s4437_s7 + $0x3f8] ss:$20 sps:$4 sm:$0xff]  }
 0x137   : > { %2183 = vmatmul.mubr.bf16.gmra.mrb[84].mxu0 %v4286_v37  ;;  %3833 = vmatmul.mubr.msk.bf16.gmra.mrb[116].mxu1 %vm1596_vm0, %v4287_v38 }
 0x138   : > { %2190 = vmatprep.mubr.bf16.mxu0 %v4288_v40  ;;  %3836 = vmatprep.mubr.msk.bf16.mxu1 %vm1596_vm0, %v4290_v41  ;;  %v4321_v41 = vld [vmem:[%s4437_s7 + $0x468] ss:$20 sps:$4 sm:$0xff]  }
 0x13a   : > { %v4719_v43 = vpop.f32.mrb[12].mxu1 }
 0x13b   : > { %v1817_v44 = vpop.f32.mrb[13].mxu1 }
 0x13c   : > { %v4723_v47 = vpop.f32.mrb[14].mxu1 }
 0x13d   : > { %v1820_v50 = vpop.f32.mrb[15].mxu1 }
 0x13f   : > { %2191 = vmatmul.mubr.bf16.gmra.mrb[88].mxu0 %v4291_v45  ;;  %3837 = vmatmul.mubr.msk.bf16.gmra.mrb[120].mxu1 %vm1596_vm0, %v4292_v46  ;;  %v4323_v46 = vld [vmem:[%s4437_s7 + $0x494] ss:$20 sps:$4 sm:$0xff]  }
 0x140   : > { %2198 = vmatprep.mubr.bf16.mxu0 %v4293_v48  ;;  %3840 = vmatprep.mubr.msk.bf16.mxu1 %vm1596_vm0, %v4295_v49  ;;  %v4325_v48 = vld [vmem:[%s4437_s7 + $0x420] ss:$20 sps:$4 sm:$0xff]  }
 0x142   : > { %v4729_v51 = vpop.f32.mrb[16].mxu1 }
 0x143   : > { %v1825_v52 = vpop.f32.mrb[17].mxu1 }
 0x144   : > { %v4733_v55 = vpop.f32.mrb[18].mxu1 }
 0x145   : > { %v1828_v58 = vpop.f32.mrb[19].mxu1 }
 0x146   : > { %v4327_v58 = vld [vmem:[%s4437_s7 + $0x448] ss:$20 sps:$4 sm:$0xff]  }
 0x147   : > { %2199 = vmatmul.mubr.bf16.gmra.mrb[92].mxu0 %v4296_v53  ;;  %3841 = vmatmul.mubr.msk.bf16.gmra.mrb[124].mxu1 %vm1596_vm0, %v4297_v54 }
 0x148   : > { %2206 = vmatprep.mubr.bf16.mxu0 %v4298_v56  ;;  %3844 = vmatprep.mubr.msk.bf16.mxu1 %vm1596_vm0, %v4300_v57  ;;  %v4326_v57 = vld [vmem:[%s4437_s7 + $0x490] ss:$20 sps:$4 sm:$0xff]  }
 0x14a   : > { %v4739_v59 = vpop.f32.mrb[20].mxu1 }
 0x14b   : > { %v1833_v60 = vpop.f32.mrb[21].mxu1 }
 0x14c   : > { %v4743_v63 = vpop.f32.mrb[22].mxu1 }
 0x14d   : > { %v1836_v3 = vpop.f32.mrb[23].mxu1 }
 0x14f   : > { %2207 = vmatmul.mubr.bf16.gmra.mrb[96].mxu0 %v4301_v61  ;;  %3845 = vmatmul.mubr.msk.bf16.gmra.mrb[128].mxu1 %vm1596_vm0, %v4302_v62  ;;  %v4328_v62 = vld [vmem:[%s4437_s7 + $0x4bc] ss:$20 sps:$4 sm:$0xff]  }
 0x150   : > { %2214 = vmatprep.mubr.bf16.mxu0 %v4303_v0  ;;  %3848 = vmatprep.mubr.msk.bf16.mxu1 %vm1596_vm0, %v4305_v2  ;;  %v4330_v0 = vld [vmem:[%s4437_s7 + $0x470] ss:$20 sps:$4 sm:$0xff]  }
 0x152   : > { %v4749_v4 = vpop.f32.mrb[24].mxu1 }
 0x153   : > { %v1841_v5 = vpop.f32.mrb[25].mxu1 }
 0x154   : > { %v4753_v8 = vpop.f32.mrb[26].mxu1 }
 0x155   : > { %v1844_v11 = vpop.f32.mrb[27].mxu1 }
 0x156   : > { %v4332_v11 = vld [vmem:[%s4437_s7 + $0x498] ss:$20 sps:$4 sm:$0xff]  }
 0x157   : > { %2215 = vmatmul.mubr.bf16.gmra.mrb[100].mxu0 %v4306_v6  ;;  %3849 = vmatmul.mubr.msk.bf16.gmra.mrb[132].mxu1 %vm1596_vm0, %v4307_v7 }
 0x158   : > { %2222 = vmatprep.mubr.bf16.mxu0 %v4308_v9  ;;  %3852 = vmatprep.mubr.msk.bf16.mxu1 %vm1596_vm0, %v4310_v10  ;;  %v4331_v10 = vld [vmem:[%s4437_s7 + $0x4b8] ss:$20 sps:$4 sm:$0xff]  }
 0x15a   : > { %v4759_v12 = vpop.f32.mrb[28].mxu1 }
 0x15b   : > { %v1849_v13 = vpop.f32.mrb[29].mxu1 }
 0x15c   : > { %v4763_v15 = vpop.f32.mrb[30].mxu1 }
 0x15d   : > { %v1852_v18 = vpop.f32.mrb[31].mxu1 }
 0x15f   : > { %2223 = vmatmul.mubr.bf16.gmra.mrb[104].mxu0 %v4311_v14  ;;  %3853 = vmatmul.mubr.msk.bf16.gmra.mrb[136].mxu1 %vm1596_vm0, %v4312_v1  ;;  %v4333_v1 = vld [vmem:[%s4437_s7 + $0x4e4] ss:$20 sps:$4 sm:$0xff]  }
 0x160   : > { %2230 = vmatprep.mubr.bf16.mxu0 %v4313_v16  ;;  %3856 = vmatprep.mubr.msk.bf16.mxu1 %vm1596_vm0, %v4315_v17  ;;  %v4335_v16 = vld [vmem:[%s4437_s7 + $0x4c0] ss:$20 sps:$4 sm:$0xff]  }
 0x162   : > { %v4769_v20 = vpop.f32.mrb[32].mxu1  ;;  %v4771_v21 = vpop.f32.mrb[0].mxu0 }
 0x163   : > { %v1857_v22 = vpop.f32.mrb[33].mxu1  ;;  %v2018_v24 = vpop.f32.mrb[1].mxu0 }
 0x164   : > { %v4775_v28 = vpop.f32.mrb[34].mxu1  ;;  %v4777_v29 = vpop.f32.mrb[2].mxu0 }
 0x165   : > { %v1860_v33 = vpop.f32.mrb[35].mxu1  ;;  %v2021_v34 = vpop.f32.mrb[3].mxu0 }
 0x167   : > { %2231 = vmatmul.mubr.bf16.gmra.mrb[108].mxu0 %v4316_v25  ;;  %3857 = vmatmul.mubr.msk.bf16.gmra.mrb[140].mxu1 %vm1596_vm0, %v4317_v26 }
 0x168   : > { %2238 = vmatprep.mubr.bf16.mxu0 %v4318_v30  ;;  %3860 = vmatprep.mubr.msk.bf16.mxu1 %vm1596_vm0, %v4320_v32  ;;  %v4336_v30 = vld [vmem:[%s4437_s7 + $0x4e0] ss:$20 sps:$4 sm:$0xff]   ;;  %v4337_v32 = vld [vmem:[%s4437_s7 + $0x4e8] ss:$20 sps:$4 sm:$0xff]  }
 0x16a   : > { %v4783_v36 = vpop.f32.mrb[36].mxu1  ;;  %v4785_v37 = vpop.f32.mrb[4].mxu0 }
 0x16b   : > { %v1865_v38 = vpop.f32.mrb[37].mxu1  ;;  %v2026_v40 = vpop.f32.mrb[5].mxu0 }
 0x16c   : > { %v4789_v44 = vpop.f32.mrb[38].mxu1  ;;  %v4791_v45 = vpop.f32.mrb[6].mxu0 }
 0x16d   : > { %v1868_v49 = vpop.f32.mrb[39].mxu1  ;;  %v2029_v50 = vpop.f32.mrb[7].mxu0 }
 0x16f   : > { %2239 = vmatmul.mubr.bf16.gmra.mrb[112].mxu0 %v4321_v41  ;;  %3861 = vmatmul.mubr.msk.bf16.gmra.mrb[144].mxu1 %vm1596_vm0, %v4322_v42 }
 0x170   : > { %2246 = vmatprep.mubr.bf16.mxu0 %v4323_v46  ;;  %3864 = vmatprep.mubr.msk.bf16.mxu1 %vm1596_vm0, %v4325_v48 }
 0x172   : > { %v4797_v52 = vpop.f32.mrb[40].mxu1  ;;  %v4799_v53 = vpop.f32.mrb[8].mxu0 }
 0x173   : > { %v1873_v54 = vpop.f32.mrb[41].mxu1  ;;  %v2034_v56 = vpop.f32.mrb[9].mxu0 }
 0x174   : > { %v4803_v60 = vpop.f32.mrb[42].mxu1  ;;  %v4805_v61 = vpop.f32.mrb[10].mxu0 }
 0x175   : > { %v1876_v2 = vpop.f32.mrb[43].mxu1  ;;  %v2037_v3 = vpop.f32.mrb[11].mxu0 }
 0x177   : > { %2247 = vmatmul.mubr.bf16.gmra.mrb[116].mxu0 %v4326_v57  ;;  %3865 = vmatmul.mubr.msk.bf16.gmra.mrb[148].mxu1 %vm1596_vm0, %v4327_v58 }
 0x178   : > { %2254 = vmatprep.mubr.bf16.mxu0 %v4328_v62  ;;  %3868 = vmatprep.mubr.msk.bf16.mxu1 %vm1596_vm0, %v4330_v0 }
 0x17a   : > { %v4811_v5 = vpop.f32.mrb[44].mxu1  ;;  %v4813_v6 = vpop.f32.mrb[12].mxu0 }
 0x17b   : > { %v1881_v7 = vpop.f32.mrb[45].mxu1  ;;  %v2042_v9 = vpop.f32.mrb[13].mxu0 }
 0x17c   : > { %v4817_v13 = vpop.f32.mrb[46].mxu1  ;;  %v4819_v14 = vpop.f32.mrb[14].mxu0 }
 0x17d   : > { %v1884_v17 = vpop.f32.mrb[47].mxu1  ;;  %v2045_v18 = vpop.f32.mrb[15].mxu0 }
 0x17f   : > { %2255 = vmatmul.mubr.bf16.gmra.mrb[120].mxu0 %v4331_v10  ;;  %3869 = vmatmul.mubr.msk.bf16.gmra.mrb[152].mxu1 %vm1596_vm0, %v4332_v11 }
 0x180   : > { %2262 = vmatprep.mubr.bf16.mxu0 %v4333_v1  ;;  %3872 = vmatprep.mubr.msk.bf16.mxu1 %vm1596_vm0, %v4335_v16 }
 0x182   : > { %v4825_v22 = vpop.f32.mrb[48].mxu1  ;;  %v4827_v24 = vpop.f32.mrb[16].mxu0 }
 0x183   : > { %v1889_v25 = vpop.f32.mrb[49].mxu1  ;;  %v2050_v26 = vpop.f32.mrb[17].mxu0 }
 0x184   : > { %v4831_v33 = vpop.f32.mrb[50].mxu1  ;;  %v4833_v34 = vpop.f32.mrb[18].mxu0 }
 0x185   : > { %v1892_v38 = vpop.f32.mrb[51].mxu1  ;;  %v2053_v40 = vpop.f32.mrb[19].mxu0 }
 0x187   : > { %2263 = vmatmul.mubr.bf16.gmra.mrb[124].mxu0 %v4336_v30  ;;  %3873 = vmatmul.mubr.msk.bf16.gmra.mrb[156].mxu1 %vm1596_vm0, %v4337_v32  ;;  %v4863_v30 = vld [vmem:[%s5275_s2] ss:$0 sm:$0xff] }
 0x188   : > { %v1792_v32 = vadd.f32 %v4863_v30, %v4689_v19  ;;  %v1800_v19 = vadd.f32 %v4863_v30, %v4699_v27  ;;  %v1808_v27 = vadd.f32 %v4863_v30, %v4709_v35  ;;  %v1816_v35 = vadd.f32 %v4863_v30, %v4719_v43 }
 0x189   : > { %v1824_v43 = vadd.f32 %v4863_v30, %v4729_v51  ;;  %v1832_v51 = vadd.f32 %v4863_v30, %v4739_v59  ;;  %v1840_v59 = vadd.f32 %v4863_v30, %v4749_v4  ;;  %v1848_v4 = vadd.f32 %v4863_v30, %v4759_v12 }
 0x18a   : > { %v4836_v41 = vpop.f32.mrb[52].mxu1  ;;  %v4838_v42 = vpop.f32.mrb[20].mxu0  ;;  %v1856_v12 = vadd.f32 %v4863_v30, %v4769_v20 }
 0x18b   : > { %v1897_v46 = vpop.f32.mrb[53].mxu1  ;;  %v2058_v48 = vpop.f32.mrb[21].mxu0 }
 0x18c   : > { %v4840_v49 = vpop.f32.mrb[54].mxu1  ;;  %v4842_v50 = vpop.f32.mrb[22].mxu0  ;;  %v1795_v46 = vadd.f32 %v4863_v30, %v4693_v23  ;;  %v1803_v23 = vadd.f32 %v4863_v30, %v4703_v31  ;;  %v1811_v31 = vadd.f32 %v4863_v30, %v4713_v39  ;;  %v1819_v39 = vadd.f32 %v4863_v30, %v4723_v47 }
 0x18d   : > { %v1900_v54 = vpop.f32.mrb[55].mxu1  ;;  %v2061_v56 = vpop.f32.mrb[23].mxu0  ;;  %v1827_v47 = vadd.f32 %v4863_v30, %v4733_v55  ;;  %v1835_v55 = vadd.f32 %v4863_v30, %v4743_v63  ;;  %v1843_v63 = vadd.f32 %v4863_v30, %v4753_v8  ;;  %v1851_v8 = vadd.f32 %v4863_v30, %v4763_v15 }
 0x18e   : > { %v3908_v15 = vadd.f32 %v4863_v30, %v4771_v21  ;;  %v3909_v21 = vadd.f32 %v4863_v30, %v4777_v29  ;;  %v1864_v29 = vadd.f32 %v4863_v30, %v4783_v36  ;;  %v3912_v36 = vadd.f32 %v4863_v30, %v4799_v53 }
 0x192   : > { %v4844_v57 = vpop.f32.mrb[56].mxu1  ;;  %v4846_v58 = vpop.f32.mrb[24].mxu0 }
 0x193   : > { %v1905_v62 = vpop.f32.mrb[57].mxu1  ;;  %v2066_v0 = vpop.f32.mrb[25].mxu0 }
 0x194   : > { %v4848_v2 = vpop.f32.mrb[58].mxu1  ;;  %v4850_v3 = vpop.f32.mrb[26].mxu0 }
 0x195   : > { %v1908_v7 = vpop.f32.mrb[59].mxu1  ;;  %v2069_v9 = vpop.f32.mrb[27].mxu0 }
 0x19a   : > { %v4852_v10 = vpop.f32.mrb[60].mxu1  ;;  %v4854_v11 = vpop.f32.mrb[28].mxu0 }
 0x19b   : > { %v1913_v1 = vpop.f32.mrb[61].mxu1  ;;  %v2074_v16 = vpop.f32.mrb[29].mxu0 }
 0x19c   : > { %v4856_v17 = vpop.f32.mrb[62].mxu1  ;;  %v4858_v18 = vpop.f32.mrb[30].mxu0 }
 0x19d   : > { %v1916_v25 = vpop.f32.mrb[63].mxu1  ;;  %v2077_v26 = vpop.f32.mrb[31].mxu0 }
 0x1a2   : > { %v4867_v38 = vpop.f32.mrb[64].mxu1  ;;  %v2080_v40 = vpop.f32.mrb[32].mxu0 }
 0x1a3   : > { %5278 = vst [vmem:[#allocation2_spill] sm:$0xff] %v4867_v38  ;;  %v4871_v48 = vadd.f32 %v2080_v40, %v1792_v32  ;;  %v1921_v54 = vpop.f32.mrb[65].mxu1  ;;  %v2082_v56 = vpop.f32.mrb[33].mxu0 }
 0x1a4   : > { %v4873_v62 = vpop.f32.mrb[66].mxu1  ;;  %v2083_v0 = vpop.f32.mrb[34].mxu0 }
 0x1a5   : > { %5279 = vst [vmem:[#allocation3_spill] sm:$0xff] %v4873_v62  ;;  %v4875_v7 = vadd.f32 %v2083_v0, %v1795_v46  ;;  %v1924_v9 = vpop.f32.mrb[67].mxu1  ;;  %v2085_v1 = vpop.f32.mrb[35].mxu0 }
 0x1aa   : > { %v4879_v16 = vpop.f32.mrb[68].mxu1  ;;  %v2088_v25 = vpop.f32.mrb[36].mxu0 }
 0x1ab   : > { %5280 = vst [vmem:[#allocation4_spill] sm:$0xff] %v4879_v16  ;;  %v4883_v26 = vadd.f32 %v2088_v25, %v1800_v19  ;;  %v1929_v32 = vpop.f32.mrb[69].mxu1  ;;  %v2090_v40 = vpop.f32.mrb[37].mxu0 }
 0x1ac   : > { %v4885_v54 = vpop.f32.mrb[70].mxu1  ;;  %v2091_v56 = vpop.f32.mrb[38].mxu0 }
 0x1ad   : > { %5281 = vst [vmem:[#allocation5_spill] sm:$0xff] %v4885_v54  ;;  %v4887_v46 = vadd.f32 %v2091_v56, %v1803_v23  ;;  %v1932_v0 = vpop.f32.mrb[71].mxu1  ;;  %v2093_v9 = vpop.f32.mrb[39].mxu0 }
 0x1b2   : > { %v4891_v1 = vpop.f32.mrb[72].mxu1  ;;  %v2096_v16 = vpop.f32.mrb[40].mxu0 }
 0x1b3   : > { %5282 = vst [vmem:[#allocation6_spill] sm:$0xff] %v4891_v1  ;;  %v4895_v19 = vadd.f32 %v2096_v16, %v1808_v27  ;;  %v1937_v25 = vpop.f32.mrb[73].mxu1  ;;  %v2098_v32 = vpop.f32.mrb[41].mxu0 }
 0x1b4   : > { %v4897_v40 = vpop.f32.mrb[74].mxu1  ;;  %v2099_v54 = vpop.f32.mrb[42].mxu0 }
 0x1b5   : > { %5283 = vst [vmem:[#allocation7_spill] sm:$0xff] %v4897_v40  ;;  %v4899_v23 = vadd.f32 %v2099_v54, %v1811_v31  ;;  %v1940_v56 = vpop.f32.mrb[75].mxu1  ;;  %v2101_v0 = vpop.f32.mrb[43].mxu0 }
 0x1ba   : > { %v4903_v9 = vpop.f32.mrb[76].mxu1  ;;  %v2104_v1 = vpop.f32.mrb[44].mxu0 }
 0x1bb   : > { %5284 = vst [vmem:[#allocation8_spill] sm:$0xff] %v4903_v9  ;;  %v4907_v16 = vadd.f32 %v2104_v1, %v1816_v35  ;;  %v1945_v27 = vpop.f32.mrb[77].mxu1  ;;  %v2106_v25 = vpop.f32.mrb[45].mxu0 }
 0x1bc   : > { %v4909_v32 = vpop.f32.mrb[78].mxu1  ;;  %v2107_v40 = vpop.f32.mrb[46].mxu0 }
 0x1bd   : > { %5285 = vst [vmem:[#allocation9_spill] sm:$0xff] %v4909_v32  ;;  %v4911_v54 = vadd.f32 %v2107_v40, %v1819_v39  ;;  %v1948_v31 = vpop.f32.mrb[79].mxu1  ;;  %v2109_v56 = vpop.f32.mrb[47].mxu0 }
 0x1c2   : > { %v4915_v0 = vpop.f32.mrb[80].mxu1  ;;  %v2112_v9 = vpop.f32.mrb[48].mxu0 }
 0x1c3   : > { %5286 = vst [vmem:[#allocation10_spill] sm:$0xff] %v4915_v0  ;;  %v4919_v1 = vadd.f32 %v2112_v9, %v1824_v43  ;;  %v1953_v35 = vpop.f32.mrb[81].mxu1  ;;  %v2114_v27 = vpop.f32.mrb[49].mxu0 }
 0x1c4   : > { %v4921_v25 = vpop.f32.mrb[82].mxu1  ;;  %v2115_v32 = vpop.f32.mrb[50].mxu0 }
 0x1c5   : > { %5287 = vst [vmem:[#allocation11_spill] sm:$0xff] %v4921_v25  ;;  %v4923_v40 = vadd.f32 %v2115_v32, %v1827_v47  ;;  %v1956_v39 = vpop.f32.mrb[83].mxu1  ;;  %v2117_v31 = vpop.f32.mrb[51].mxu0 }
 0x1ca   : > { %v4927_v56 = vpop.f32.mrb[84].mxu1  ;;  %v2120_v0 = vpop.f32.mrb[52].mxu0 }
 0x1cb   : > { %5288 = vst [vmem:[#allocation12_spill] sm:$0xff] %v4927_v56  ;;  %v4931_v9 = vadd.f32 %v2120_v0, %v1832_v51  ;;  %v1961_v43 = vpop.f32.mrb[85].mxu1  ;;  %v2122_v35 = vpop.f32.mrb[53].mxu0 }
 0x1cc   : > { %v4933_v27 = vpop.f32.mrb[86].mxu1  ;;  %v2123_v25 = vpop.f32.mrb[54].mxu0 }
 0x1cd   : > { %5289 = vst [vmem:[#allocation13_spill] sm:$0xff] %v4933_v27  ;;  %v4935_v32 = vadd.f32 %v2123_v25, %v1835_v55  ;;  %v1964_v47 = vpop.f32.mrb[87].mxu1  ;;  %v2125_v39 = vpop.f32.mrb[55].mxu0 }
 0x1d2   : > { %v4939_v31 = vpop.f32.mrb[88].mxu1  ;;  %v2128_v56 = vpop.f32.mrb[56].mxu0 }
 0x1d3   : > { %5290 = vst [vmem:[#allocation14_spill] sm:$0xff] %v4939_v31  ;;  %v4943_v0 = vadd.f32 %v2128_v56, %v1840_v59  ;;  %v1969_v51 = vpop.f32.mrb[89].mxu1  ;;  %v2130_v43 = vpop.f32.mrb[57].mxu0 }
 0x1d4   : > { %v4945_v35 = vpop.f32.mrb[90].mxu1  ;;  %v2131_v27 = vpop.f32.mrb[58].mxu0 }
 0x1d5   : > { %5291 = vst [vmem:[#allocation15_spill] sm:$0xff] %v4945_v35  ;;  %v4947_v25 = vadd.f32 %v2131_v27, %v1843_v63  ;;  %v1972_v55 = vpop.f32.mrb[91].mxu1  ;;  %v2133_v47 = vpop.f32.mrb[59].mxu0 }
 0x1d6   : > { %v3910_v47 = vadd.f32 %v4863_v30, %v4785_v37 }
 0x1d7   : > { %5292 = vst [vmem:[#allocation16_spill] sm:$0xff] %v4947_v25 }
 0x1da   : > { %v4951_v39 = vpop.f32.mrb[92].mxu1  ;;  %v2136_v31 = vpop.f32.mrb[60].mxu0 }
 0x1db   : > { %5293 = vst [vmem:[#allocation17_spill] sm:$0xff] %v4951_v39  ;;  %v4955_v56 = vadd.f32 %v2136_v31, %v1848_v4  ;;  %v1977_v59 = vpop.f32.mrb[93].mxu1  ;;  %v2138_v51 = vpop.f32.mrb[61].mxu0 }
 0x1dc   : > { %v4957_v43 = vpop.f32.mrb[94].mxu1  ;;  %v2139_v35 = vpop.f32.mrb[62].mxu0  ;;  %v4970_v59 = vld [vmem:[%s5276_s3] ss:$0 sm:$0xff] }
 0x1dd   : > { %5294 = vst [vmem:[#allocation18_spill] sm:$0xff] %v4957_v43  ;;  %v4959_v27 = vadd.f32 %v2139_v35, %v1851_v8  ;;  %v1980_v63 = vpop.f32.mrb[95].mxu1  ;;  %v2141_v55 = vpop.f32.mrb[63].mxu0  ;;  %v1859_v35 = vadd.f32 %v4863_v30, %v4775_v28  ;;  %v3911_v8 = vadd.f32 %v4863_v30, %v4791_v45 }
 0x1df   : > { %5295 = vst [vmem:[#allocation19_spill] sm:$0xff] %v4959_v27 }
 0x1e2   : > { %v2144_v31 = vpop.f32.mrb[64].mxu0  ;;  %v3814_v4 = vpop.f32.mrb[96].mxu1 }
 0x1e3   : > { %v4976_v20 = vadd.f32 %v2144_v31, %v1856_v12  ;;  %v2314_v37 = vadd.f32 %v3910_v47, %v3814_v4  ;;  %v2146_v51 = vpop.f32.mrb[65].mxu0  ;;  %v2305_v63 = vpop.f32.mrb[97].mxu1 }
 0x1e4   : > { %v2306_v55 = vadd.f32 %v3908_v15, %v2305_v63  ;;  %v2147_v43 = vpop.f32.mrb[66].mxu0  ;;  %v3815_v39 = vpop.f32.mrb[98].mxu1 }
 0x1e5   : > { %v2633_v62 = vmul.f32 %v4970_v59, %v2314_v37  ;;  %v4981_v38 = vadd.f32 %v2147_v43, %v1859_v35  ;;  %v2317_v28 = vadd.f32 %v3911_v8, %v3815_v39  ;;  %v2149_v25 = vpop.f32.mrb[67].mxu0  ;;  %v2308_v27 = vpop.f32.mrb[99].mxu1  ;;  %vm2562_vm1 = vcmp.ge.f32.partialorder %v2314_v37, 0.0 }
 0x1e6   : > { %v2631_v45 = vmul.f32 %v4970_v59, %v2306_v55  ;;  %v2309_v12 = vadd.f32 %v3909_v21, %v2308_v27  ;;  %vm2560_vm2 = vcmp.ge.f32.partialorder %v2306_v55, 0.0  ;;  %v1867_v39 = vadd.f32 %v4863_v30, %v4789_v44 }
 0x1e7   : > { %vm2563_vm3 = vcmp.ge.f32.partialorder %v2317_v28, 0.0  ;;  %v2634_v47 = vmul.f32 %v4970_v59, %v2317_v28  ;;  %v3914_v25 = vadd.f32 %v4863_v30, %v4813_v6  ;;  %v2697_v43 = vsel %vm2562_vm1, %v2314_v37, %v2633_v62 }
 0x1e8   : > { %vm2561_vm4 = vcmp.ge.f32.partialorder %v2309_v12, 0.0  ;;  %v2632_v15 = vmul.f32 %v4970_v59, %v2309_v12  ;;  %v2695_v31 = vsel %vm2560_vm2, %v2306_v55, %v2631_v45  ;;  %v3915_v6 = vadd.f32 %v4863_v30, %v4819_v14 }
 0x1e9   : > { %v2698_v27 = vsel %vm2563_vm3, %v2317_v28, %v2634_v47  ;;  %v3913_v28 = vadd.f32 %v4863_v30, %v4805_v61 }
 0x1ea   : > { %v3585_v4 = vpack.c.bf16 %v2698_v27, %v2697_v43  ;;  %v2696_v35 = vsel %vm2561_vm4, %v2309_v12, %v2632_v15  ;;  %v2152_v8 = vpop.f32.mrb[68].mxu0  ;;  %v3818_v44 = vpop.f32.mrb[100].mxu1  ;;  %v1872_v27 = vadd.f32 %v4863_v30, %v4797_v52 }
 0x1eb   : > { %v3580_v62 = vpack.c.bf16 %v2696_v35, %v2695_v31  ;;  %v5002_v37 = vadd.f32 %v2152_v8, %v1864_v29  ;;  %v2330_v51 = vadd.f32 %v3914_v25, %v3818_v44  ;;  %v2154_v63 = vpop.f32.mrb[69].mxu0  ;;  %v2321_v21 = vpop.f32.mrb[101].mxu1  ;;  %v3918_v31 = vadd.f32 %v4863_v30, %v4838_v42 }
 0x1ec   : > { %3737 = vst [vmem:[%s4996_s12 + $0x8] sm:$0xff] %v3585_v4   ;;  %v2322_v53 = vadd.f32 %v3912_v36, %v2321_v21  ;;  %v2155_v55 = vpop.f32.mrb[70].mxu0  ;;  %v3819_v45 = vpop.f32.mrb[102].mxu1  ;;  %v3916_v8 = vadd.f32 %v4863_v30, %v4827_v24  ;;  %v3919_v21 = vadd.f32 %v4863_v30, %v4842_v50 }
 0x1ed   : > { %3581 = vst [vmem:[%s4996_s12] sm:$0xff] %v3580_v62   ;;  %v2637_v12 = vmul.f32 %v4970_v59, %v2330_v51  ;;  %v5009_v47 = vadd.f32 %v2155_v55, %v1867_v39  ;;  %v2333_v15 = vadd.f32 %v3915_v6, %v3819_v45  ;;  %v2157_v14 = vpop.f32.mrb[71].mxu0  ;;  %v2324_v43 = vpop.f32.mrb[103].mxu1  ;;  %vm2566_vm5 = vcmp.ge.f32.partialorder %v2330_v51, 0.0 }
 0x1ee   : > { %v2635_v29 = vmul.f32 %v4970_v59, %v2322_v53  ;;  %v2325_v25 = vadd.f32 %v3913_v28, %v2324_v43  ;;  %vm2564_vm6 = vcmp.ge.f32.partialorder %v2322_v53, 0.0  ;;  %v1875_v39 = vadd.f32 %v4863_v30, %v4803_v60 }
 0x1ef   : > { %vm2567_vm7 = vcmp.ge.f32.partialorder %v2333_v15, 0.0  ;;  %v2638_v61 = vmul.f32 %v4970_v59, %v2333_v15  ;;  %v2701_v4 = vsel %vm2566_vm5, %v2330_v51, %v2637_v12  ;;  %v3917_v51 = vadd.f32 %v4863_v30, %v4833_v34 }
 0x1f0   : > { %vm2565_vm8 = vcmp.ge.f32.partialorder %v2325_v25, 0.0  ;;  %v2636_v36 = vmul.f32 %v4970_v59, %v2325_v25  ;;  %v2699_v44 = vsel %vm2564_vm6, %v2322_v53, %v2635_v29 }
 0x1f1   : > { %v2702_v35 = vsel %vm2567_vm7, %v2333_v15, %v2638_v61 }
 0x1f2   : > { %v3595_v6 = vpack.c.bf16 %v2702_v35, %v2701_v4  ;;  %v2700_v62 = vsel %vm2565_vm8, %v2325_v25, %v2636_v36  ;;  %v2160_v52 = vpop.f32.mrb[72].mxu0  ;;  %v3822_v63 = vpop.f32.mrb[104].mxu1 }
 0x1f3   : > { %v3590_v28 = vpack.c.bf16 %v2700_v62, %v2699_v44  ;;  %v5024_v60 = vadd.f32 %v2160_v52, %v1872_v27  ;;  %v2346_v55 = vadd.f32 %v3918_v31, %v3822_v63  ;;  %v2162_v42 = vpop.f32.mrb[73].mxu0  ;;  %v2337_v45 = vpop.f32.mrb[105].mxu1  ;;  %v1880_v27 = vadd.f32 %v4863_v30, %v4811_v5 }
 0x1f4   : > { %3739 = vst [vmem:[%s4996_s12 + $0x18] sm:$0xff] %v3595_v6   ;;  %v2338_v24 = vadd.f32 %v3916_v8, %v2337_v45  ;;  %v2163_v53 = vpop.f32.mrb[74].mxu0  ;;  %v3823_v12 = vpop.f32.mrb[106].mxu1  ;;  %v3922_v31 = vadd.f32 %v4863_v30, %v4854_v11  ;;  %v3920_v8 = vadd.f32 %v4863_v30, %v4846_v58  ;;  %v3923_v63 = vadd.f32 %v4863_v30, %v4858_v18 }
 0x1f5   : > { %3738 = vst [vmem:[%s4996_s12 + $0x10] sm:$0xff] %v3590_v28   ;;  %v2641_v15 = vmul.f32 %v4970_v59, %v2346_v55  ;;  %v5031_v14 = vadd.f32 %v2163_v53, %v1875_v39  ;;  %v2349_v43 = vadd.f32 %v3919_v21, %v3823_v12  ;;  %v2165_v50 = vpop.f32.mrb[75].mxu0  ;;  %v2340_v29 = vpop.f32.mrb[107].mxu1  ;;  %vm2570_vm9 = vcmp.ge.f32.partialorder %v2346_v55, 0.0 }
 0x1f6   : > { %v2639_v25 = vmul.f32 %v4970_v59, %v2338_v24  ;;  %v2341_v61 = vadd.f32 %v3917_v51, %v2340_v29  ;;  %vm2568_vm10 = vcmp.ge.f32.partialorder %v2338_v24, 0.0  ;;  %v1883_v39 = vadd.f32 %v4863_v30, %v4817_v13 }
 0x1f7   : > { %vm2571_vm11 = vcmp.ge.f32.partialorder %v2349_v43, 0.0  ;;  %v2642_v34 = vmul.f32 %v4970_v59, %v2349_v43  ;;  %v2705_v4 = vsel %vm2570_vm9, %v2346_v55, %v2641_v15  ;;  %v3921_v55 = vadd.f32 %v4863_v30, %v4850_v3 }
 0x1f8   : > { %vm2569_vm12 = vcmp.ge.f32.partialorder %v2341_v61, 0.0  ;;  %v2640_v36 = vmul.f32 %v4970_v59, %v2341_v61  ;;  %v2703_v44 = vsel %vm2568_vm10, %v2338_v24, %v2639_v25  ;;  %v1888_v25 = vadd.f32 %v4863_v30, %v4825_v22 }
 0x1f9   : > { %v2706_v35 = vsel %vm2571_vm11, %v2349_v43, %v2642_v34 }
 0x1fa   : > { %v3605_v6 = vpack.c.bf16 %v2706_v35, %v2705_v4  ;;  %v2704_v62 = vsel %vm2569_vm12, %v2341_v61, %v2640_v36  ;;  %v2168_v5 = vpop.f32.mrb[76].mxu0  ;;  %v3826_v52 = vpop.f32.mrb[108].mxu1  ;;  %v1891_v35 = vadd.f32 %v4863_v30, %v4831_v33 }
 0x1fb   : > { %v3600_v21 = vpack.c.bf16 %v2704_v62, %v2703_v44  ;;  %v5046_v13 = vadd.f32 %v2168_v5, %v1880_v27  ;;  %v2362_v28 = vadd.f32 %v3922_v31, %v3826_v52  ;;  %v2170_v11 = vpop.f32.mrb[77].mxu0  ;;  %v2353_v42 = vpop.f32.mrb[109].mxu1 }
 0x1fc   : > { %3741 = vst [vmem:[%s4996_s12 + $0x28] sm:$0xff] %v3605_v6   ;;  %v2354_v58 = vadd.f32 %v3920_v8, %v2353_v42  ;;  %v2171_v45 = vpop.f32.mrb[78].mxu0  ;;  %v3827_v51 = vpop.f32.mrb[110].mxu1 }
 0x1fd   : > { %3740 = vst [vmem:[%s4996_s12 + $0x20] sm:$0xff] %v3600_v21   ;;  %v2645_v24 = vmul.f32 %v4970_v59, %v2362_v28  ;;  %v5053_v53 = vadd.f32 %v2171_v45, %v1883_v39  ;;  %v2365_v12 = vadd.f32 %v3923_v63, %v3827_v51  ;;  %v2173_v18 = vpop.f32.mrb[79].mxu0  ;;  %v2356_v15 = vpop.f32.mrb[111].mxu1  ;;  %vm2574_vm13 = vcmp.ge.f32.partialorder %v2362_v28, 0.0 }
 0x1fe   : > { %v2643_v43 = vmul.f32 %v4970_v59, %v2354_v58  ;;  %v2357_v50 = vadd.f32 %v3921_v55, %v2356_v15  ;;  %vm2572_vm14 = vcmp.ge.f32.partialorder %v2354_v58, 0.0  ;;  %v1896_v45 = vadd.f32 %v4863_v30, %v4836_v41 }
 0x1ff   : > { %vm2575_vm15 = vcmp.ge.f32.partialorder %v2365_v12, 0.0  ;;  %v2646_v3 = vmul.f32 %v4970_v59, %v2365_v12  ;;  %v2709_v61 = vsel %vm2574_vm13, %v2362_v28, %v2645_v24 }
 0x200   : > { %vm2573_vm0 = vcmp.ge.f32.partialorder %v2357_v50, 0.0  ;;  %v2644_v29 = vmul.f32 %v4970_v59, %v2357_v50  ;;  %v2707_v27 = vsel %vm2572_vm14, %v2354_v58, %v2643_v43 }
 0x201   : > { %v2710_v34 = vsel %vm2575_vm15, %v2365_v12, %v2646_v3 }
 0x202   : > { %v3615_v36 = vpack.c.bf16 %v2710_v34, %v2709_v61  ;;  %v2708_v39 = vsel %vm2573_vm0, %v2357_v50, %v2644_v29  ;;  %v2176_v31 = vpop.f32.mrb[80].mxu0  ;;  %v3830_v4 = vpop.f32.mrb[112].mxu1 }
 0x203   : > { %v3610_v8 = vpack.c.bf16 %v2708_v39, %v2707_v27  ;;  %v5062_v44 = vadd.f32 %v2176_v31, %v1888_v25  ;;  %v2378_v6 = vadd.f32 %v3830_v4, %v4883_v26  ;;  %v2178_v62 = vpop.f32.mrb[81].mxu0  ;;  %v2369_v5 = vpop.f32.mrb[113].mxu1 }
 0x204   : > { %3743 = vst [vmem:[%s4996_s12 + $0x38] sm:$0xff] %v3615_v36   ;;  %v2370_v22 = vadd.f32 %v2369_v5, %v4871_v48  ;;  %v2179_v52 = vpop.f32.mrb[82].mxu0  ;;  %v3831_v63 = vpop.f32.mrb[114].mxu1 }
 0x205   : > { %3742 = vst [vmem:[%s4996_s12 + $0x30] sm:$0xff] %v3610_v8   ;;  %v2649_v21 = vmul.f32 %v4970_v59, %v2378_v6  ;;  %v5069_v28 = vadd.f32 %v2179_v52, %v1891_v35  ;;  %v2381_v11 = vadd.f32 %v3831_v63, %v4887_v46  ;;  %v2181_v33 = vpop.f32.mrb[83].mxu0  ;;  %v2372_v42 = vpop.f32.mrb[115].mxu1  ;;  %vm2578_vm1 = vcmp.ge.f32.partialorder %v2378_v6, 0.0 }
 0x206   : > { %v2647_v55 = vmul.f32 %v4970_v59, %v2370_v22  ;;  %v2373_v26 = vadd.f32 %v2372_v42, %v4875_v7  ;;  %vm2576_vm2 = vcmp.ge.f32.partialorder %v2370_v22, 0.0  ;;  %v1899_v7 = vadd.f32 %v4863_v30, %v4840_v49 }
 0x207   : > { %vm2579_vm3 = vcmp.ge.f32.partialorder %v2381_v11, 0.0  ;;  %v2650_v48 = vmul.f32 %v4970_v59, %v2381_v11  ;;  %v2713_v51 = vsel %vm2578_vm1, %v2378_v6, %v2649_v21  ;;  %v1904_v6 = vadd.f32 %v4863_v30, %v4844_v57 }
 0x208   : > { %vm2577_vm4 = vcmp.ge.f32.partialorder %v2373_v26, 0.0  ;;  %v2648_v58 = vmul.f32 %v4970_v59, %v2373_v26  ;;  %v2711_v24 = vsel %vm2576_vm2, %v2370_v22, %v2647_v55 }
 0x209   : > { %v2714_v46 = vsel %vm2579_vm3, %v2381_v11, %v2650_v48 }
 0x20a   : > { %v3625_v12 = vpack.c.bf16 %v2714_v46, %v2713_v51  ;;  %v2712_v18 = vsel %vm2577_vm4, %v2373_v26, %v2648_v58  ;;  %v2184_v15 = vpop.f32.mrb[84].mxu0  ;;  %v3834_v43 = vpop.f32.mrb[116].mxu1 }
 0x20b   : > { %v3620_v50 = vpack.c.bf16 %v2712_v18, %v2711_v24  ;;  %v5080_v3 = vadd.f32 %v2184_v15, %v1896_v45  ;;  %v2394_v29 = vadd.f32 %v3834_v43, %v4907_v16  ;;  %v2186_v25 = vpop.f32.mrb[85].mxu0  ;;  %v2385_v61 = vpop.f32.mrb[117].mxu1  ;;  %v1912_v15 = vadd.f32 %v4863_v30, %v4852_v10 }
 0x20c   : > { %3745 = vst [vmem:[%s4996_s12 + $0x48] sm:$0xff] %v3625_v12   ;;  %v2386_v41 = vadd.f32 %v2385_v61, %v4895_v19  ;;  %v2187_v34 = vpop.f32.mrb[86].mxu0  ;;  %v3835_v27 = vpop.f32.mrb[118].mxu1 }
 0x20d   : > { %3744 = vst [vmem:[%s4996_s12 + $0x40] sm:$0xff] %v3620_v50   ;;  %v2653_v36 = vmul.f32 %v4970_v59, %v2394_v29  ;;  %v5087_v39 = vadd.f32 %v2187_v34, %v1899_v7  ;;  %v2397_v31 = vadd.f32 %v3835_v27, %v4911_v54  ;;  %v2189_v49 = vpop.f32.mrb[87].mxu0  ;;  %v2388_v4 = vpop.f32.mrb[119].mxu1  ;;  %vm2582_vm5 = vcmp.ge.f32.partialorder %v2394_v29, 0.0 }
 0x20e   : > { %v2651_v35 = vmul.f32 %v4970_v59, %v2386_v41  ;;  %v2389_v16 = vadd.f32 %v2388_v4, %v4899_v23  ;;  %vm2580_vm6 = vcmp.ge.f32.partialorder %v2386_v41, 0.0  ;;  %v1907_v23 = vadd.f32 %v4863_v30, %v4848_v2 }
 0x20f   : > { %vm2583_vm7 = vcmp.ge.f32.partialorder %v2397_v31, 0.0  ;;  %v2654_v19 = vmul.f32 %v4970_v59, %v2397_v31  ;;  %v2717_v62 = vsel %vm2582_vm5, %v2394_v29, %v2653_v36 }
 0x210   : > { %vm2581_vm8 = vcmp.ge.f32.partialorder %v2389_v16, 0.0  ;;  %v2652_v8 = vmul.f32 %v4970_v59, %v2389_v16  ;;  %v2715_v5 = vsel %vm2580_vm6, %v2386_v41, %v2651_v35 }
 0x211   : > { %v2718_v54 = vsel %vm2583_vm7, %v2397_v31, %v2654_v19  ;;  %v5296_v19 = vld [vmem:[#allocation19_spill] sm:$0xff] }
 0x212   : > { %v3635_v22 = vpack.c.bf16 %v2718_v54, %v2717_v62  ;;  %v2716_v52 = vsel %vm2581_vm8, %v2389_v16, %v2652_v8  ;;  %v2192_v63 = vpop.f32.mrb[88].mxu0  ;;  %v3838_v21 = vpop.f32.mrb[120].mxu1 }
 0x213   : > { %v3630_v11 = vpack.c.bf16 %v2716_v52, %v2715_v5  ;;  %v5098_v33 = vadd.f32 %v2192_v63, %v1904_v6  ;;  %v2410_v42 = vadd.f32 %v3838_v21, %v4931_v9  ;;  %v2194_v55 = vpop.f32.mrb[89].mxu0  ;;  %v2401_v26 = vpop.f32.mrb[121].mxu1 }
 0x214   : > { %3747 = vst [vmem:[%s4996_s12 + $0x58] sm:$0xff] %v3635_v22   ;;  %v2402_v57 = vadd.f32 %v2401_v26, %v4919_v1  ;;  %v2195_v48 = vpop.f32.mrb[90].mxu0  ;;  %v3839_v58 = vpop.f32.mrb[122].mxu1  ;;  %v5298_v22 = vld [vmem:[#allocation2_spill] sm:$0xff] }
 0x215   : > { %3746 = vst [vmem:[%s4996_s12 + $0x50] sm:$0xff] %v3630_v11   ;;  %v2657_v45 = vmul.f32 %v4970_v59, %v2410_v42  ;;  %v5105_v51 = vadd.f32 %v2195_v48, %v1907_v23  ;;  %v2413_v46 = vadd.f32 %v3839_v58, %v4935_v32  ;;  %v2197_v2 = vpop.f32.mrb[91].mxu0  ;;  %v2404_v24 = vpop.f32.mrb[123].mxu1  ;;  %vm2586_vm9 = vcmp.ge.f32.partialorder %v2410_v42, 0.0 }
 0x216   : > { %v2655_v12 = vmul.f32 %v4970_v59, %v2402_v57  ;;  %v2405_v9 = vadd.f32 %v2404_v24, %v4923_v40  ;;  %vm2584_vm10 = vcmp.ge.f32.partialorder %v2402_v57, 0.0  ;;  %v1915_v40 = vadd.f32 %v4863_v30, %v4856_v17 }
 0x217   : > { %vm2587_vm11 = vcmp.ge.f32.partialorder %v2413_v46, 0.0  ;;  %v2658_v1 = vmul.f32 %v4970_v59, %v2413_v46  ;;  %v2721_v43 = vsel %vm2586_vm9, %v2410_v42, %v2657_v45  ;;  %v1920_v52 = vadd.f32 %v4863_v30, %v5298_v22 }
 0x218   : > { %vm2585_vm12 = vcmp.ge.f32.partialorder %v2405_v9, 0.0  ;;  %v2656_v18 = vmul.f32 %v4970_v59, %v2405_v9  ;;  %v2719_v7 = vsel %vm2584_vm10, %v2402_v57, %v2655_v12  ;;  %v5299_v57 = vld [vmem:[#allocation3_spill] sm:$0xff] }
 0x219   : > { %v2722_v32 = vsel %vm2587_vm11, %v2413_v46, %v2658_v1  ;;  %v1923_v48 = vadd.f32 %v4863_v30, %v5299_v57 }
 0x21a   : > { %v3645_v50 = vpack.c.bf16 %v2722_v32, %v2721_v43  ;;  %v2720_v29 = vsel %vm2585_vm12, %v2405_v9, %v2656_v18  ;;  %v2200_v25 = vpop.f32.mrb[92].mxu0  ;;  %v3842_v61 = vpop.f32.mrb[124].mxu1 }
 0x21b   : > { %v3640_v41 = vpack.c.bf16 %v2720_v29, %v2719_v7  ;;  %v5116_v34 = vadd.f32 %v2200_v25, %v1912_v15  ;;  %v2426_v27 = vadd.f32 %v3842_v61, %v4955_v56  ;;  %v2202_v36 = vpop.f32.mrb[93].mxu0  ;;  %v2417_v31 = vpop.f32.mrb[125].mxu1  ;;  %v5297_v56 = vld [vmem:[#allocation16_spill] sm:$0xff] }
 0x21c   : > { %3749 = vst [vmem:[%s4996_s12 + $0x68] sm:$0xff] %v3645_v50   ;;  %v2418_v10 = vadd.f32 %v2417_v31, %v4943_v0  ;;  %v2203_v49 = vpop.f32.mrb[94].mxu0  ;;  %v3843_v4 = vpop.f32.mrb[126].mxu1  ;;  %v5300_v25 = vld [vmem:[#allocation4_spill] sm:$0xff] }
 0x21d   : > { %3748 = vst [vmem:[%s4996_s12 + $0x60] sm:$0xff] %v3640_v41   ;;  %v2661_v35 = vmul.f32 %v4970_v59, %v2426_v27  ;;  %v5123_v16 = vadd.f32 %v2203_v49, %v1915_v40  ;;  %v2429_v8 = vadd.f32 %v3843_v4, %v5296_v19  ;;  %v2205_v17 = vpop.f32.mrb[95].mxu0  ;;  %v2420_v6 = vpop.f32.mrb[127].mxu1  ;;  %vm2590_vm13 = vcmp.ge.f32.partialorder %v2426_v27, 0.0 }
 0x21e   : > { %v2659_v62 = vmul.f32 %v4970_v59, %v2418_v10  ;;  %v2421_v54 = vadd.f32 %v2420_v6, %v5297_v56  ;;  %vm2588_vm14 = vcmp.ge.f32.partialorder %v2418_v10, 0.0  ;;  %v1928_v61 = vadd.f32 %v4863_v30, %v5300_v25 }
 0x21f   : > { %vm2591_vm15 = vcmp.ge.f32.partialorder %v2429_v8, 0.0  ;;  %v2662_v0 = vmul.f32 %v4970_v59, %v2429_v8  ;;  %v2725_v63 = vsel %vm2590_vm13, %v2426_v27, %v2661_v35 }
 0x220   : > { %vm2589_vm0 = vcmp.ge.f32.partialorder %v2421_v54, 0.0  ;;  %v2660_v5 = vmul.f32 %v4970_v59, %v2421_v54  ;;  %v2723_v23 = vsel %vm2588_vm14, %v2418_v10, %v2659_v62 }
 0x221   : > { %v2726_v21 = vsel %vm2591_vm15, %v2429_v8, %v2662_v0 }
 0x222   : > { %v3655_v11 = vpack.c.bf16 %v2726_v21, %v2725_v63  ;;  %v2724_v42 = vsel %vm2589_vm0, %v2421_v54, %v2660_v5  ;;  %v2208_v55 = vpop.f32.mrb[96].mxu0  ;;  %v3846_v26 = vpop.f32.mrb[128].mxu1 }
 0x223   : > { %v3650_v58 = vpack.c.bf16 %v2724_v42, %v2723_v23  ;;  %v5134_v45 = vadd.f32 %v2208_v55, %v1920_v52  ;;  %v2442_v46 = vadd.f32 %v3846_v26, %v5002_v37  ;;  %v2210_v2 = vpop.f32.mrb[97].mxu0  ;;  %v2433_v24 = vpop.f32.mrb[129].mxu1  ;;  %v5302_v23 = vld [vmem:[#allocation6_spill] sm:$0xff] }
 0x224   : > { %3751 = vst [vmem:[%s4996_s12 + $0x78] sm:$0xff] %v3655_v11   ;;  %v2434_v12 = vadd.f32 %v2433_v24, %v4976_v20  ;;  %v2211_v9 = vpop.f32.mrb[98].mxu0  ;;  %v3847_v1 = vpop.f32.mrb[130].mxu1  ;;  %v1936_v11 = vadd.f32 %v4863_v30, %v5302_v23  ;;  %v5306_v23 = vld [vmem:[#allocation10_spill] sm:$0xff] }
 0x225   : > { %3750 = vst [vmem:[%s4996_s12 + $0x70] sm:$0xff] %v3650_v58   ;;  %v2665_v18 = vmul.f32 %v4970_v59, %v2442_v46  ;;  %v5141_v15 = vadd.f32 %v2211_v9, %v1923_v48  ;;  %v2445_v43 = vadd.f32 %v3847_v1, %v5009_v47  ;;  %v2213_v32 = vpop.f32.mrb[99].mxu0  ;;  %v2436_v7 = vpop.f32.mrb[131].mxu1  ;;  %vm2594_vm1 = vcmp.ge.f32.partialorder %v2442_v46, 0.0 }
 0x226   : > { %v2663_v50 = vmul.f32 %v4970_v59, %v2434_v12  ;;  %v2437_v37 = vadd.f32 %v2436_v7, %v4981_v38  ;;  %vm2592_vm2 = vcmp.ge.f32.partialorder %v2434_v12, 0.0  ;;  %v5301_v38 = vld [vmem:[#allocation5_spill] sm:$0xff] }
 0x227   : > { %vm2595_vm3 = vcmp.ge.f32.partialorder %v2445_v43, 0.0  ;;  %v2666_v20 = vmul.f32 %v4970_v59, %v2445_v43  ;;  %v2729_v40 = vsel %vm2594_vm1, %v2442_v46, %v2665_v18  ;;  %v1931_v49 = vadd.f32 %v4863_v30, %v5301_v38 }
 0x228   : > { %vm2593_vm4 = vcmp.ge.f32.partialorder %v2437_v37, 0.0  ;;  %v2664_v29 = vmul.f32 %v4970_v59, %v2437_v37  ;;  %v2727_v41 = vsel %vm2592_vm2, %v2434_v12, %v2663_v50 }
 0x229   : > { %v2730_v47 = vsel %vm2595_vm3, %v2445_v43, %v2666_v20 }
 0x22a   : > { %v3665_v27 = vpack.c.bf16 %v2730_v47, %v2729_v40  ;;  %v2728_v36 = vsel %vm2593_vm4, %v2437_v37, %v2664_v29  ;;  %v2216_v31 = vpop.f32.mrb[100].mxu0  ;;  %v3850_v10 = vpop.f32.mrb[132].mxu1  ;;  %v5304_v40 = vld [vmem:[#allocation8_spill] sm:$0xff] }
 0x22b   : > { %v3660_v4 = vpack.c.bf16 %v2728_v36, %v2727_v41  ;;  %v5152_v35 = vadd.f32 %v2216_v31, %v1928_v61  ;;  %v2458_v19 = vadd.f32 %v3850_v10, %v5046_v13  ;;  %v2218_v8 = vpop.f32.mrb[101].mxu0  ;;  %v2449_v17 = vpop.f32.mrb[133].mxu1  ;;  %v1944_v47 = vadd.f32 %v4863_v30, %v5304_v40 }
 0x22c   : > { %3753 = vst [vmem:[%s4996_s12 + $0x88] sm:$0xff] %v3665_v27   ;;  %v2450_v6 = vadd.f32 %v2449_v17, %v5024_v60  ;;  %v2219_v62 = vpop.f32.mrb[102].mxu0  ;;  %v3851_v56 = vpop.f32.mrb[134].mxu1 }
 0x22d   : > { %3752 = vst [vmem:[%s4996_s12 + $0x80] sm:$0xff] %v3660_v4   ;;  %v2669_v54 = vmul.f32 %v4970_v59, %v2458_v19  ;;  %v5159_v0 = vadd.f32 %v2219_v62, %v1931_v49  ;;  %v2461_v5 = vadd.f32 %v3851_v56, %v5053_v53  ;;  %v2221_v22 = vpop.f32.mrb[103].mxu0  ;;  %v2452_v52 = vpop.f32.mrb[135].mxu1  ;;  %vm2598_vm5 = vcmp.ge.f32.partialorder %v2458_v19, 0.0 }
 0x22e   : > { %v2667_v63 = vmul.f32 %v4970_v59, %v2450_v6  ;;  %v2453_v13 = vadd.f32 %v2452_v52, %v5031_v14  ;;  %vm2596_vm6 = vcmp.ge.f32.partialorder %v2450_v6, 0.0  ;;  %v5303_v14 = vld [vmem:[#allocation7_spill] sm:$0xff] }
 0x22f   : > { %vm2599_vm7 = vcmp.ge.f32.partialorder %v2461_v5, 0.0  ;;  %v2670_v60 = vmul.f32 %v4970_v59, %v2461_v5  ;;  %v2733_v42 = vsel %vm2598_vm5, %v2458_v19, %v2669_v54  ;;  %v1939_v46 = vadd.f32 %v4863_v30, %v5303_v14 }
 0x230   : > { %vm2597_vm8 = vcmp.ge.f32.partialorder %v2453_v13, 0.0  ;;  %v2668_v21 = vmul.f32 %v4970_v59, %v2453_v13  ;;  %v2731_v55 = vsel %vm2596_vm6, %v2450_v6, %v2667_v63 }
 0x231   : > { %v2734_v53 = vsel %vm2599_vm7, %v2461_v5, %v2670_v60 }
 0x232   : > { %v3675_v26 = vpack.c.bf16 %v2734_v53, %v2733_v42  ;;  %v2732_v57 = vsel %vm2597_vm8, %v2453_v13, %v2668_v21  ;;  %v2224_v48 = vpop.f32.mrb[104].mxu0  ;;  %v3854_v58 = vpop.f32.mrb[136].mxu1 }
 0x233   : > { %v3670_v2 = vpack.c.bf16 %v2732_v57, %v2731_v55  ;;  %v5170_v24 = vadd.f32 %v2224_v48, %v1936_v11  ;;  %v2474_v12 = vadd.f32 %v3854_v58, %v5080_v3  ;;  %v2226_v9 = vpop.f32.mrb[105].mxu0  ;;  %v2465_v1 = vpop.f32.mrb[137].mxu1  ;;  %v1952_v11 = vadd.f32 %v4863_v30, %v5306_v23 }
 0x234   : > { %3755 = vst [vmem:[%s4996_s12 + $0x98] sm:$0xff] %v3675_v26   ;;  %v2466_v18 = vadd.f32 %v2465_v1, %v5062_v44  ;;  %v2227_v43 = vpop.f32.mrb[106].mxu0  ;;  %v3855_v32 = vpop.f32.mrb[138].mxu1 }
 0x235   : > { %3754 = vst [vmem:[%s4996_s12 + $0x90] sm:$0xff] %v3670_v2   ;;  %v2673_v7 = vmul.f32 %v4970_v59, %v2474_v12  ;;  %v5177_v50 = vadd.f32 %v2227_v43, %v1939_v46  ;;  %v2477_v37 = vadd.f32 %v3855_v32, %v5087_v39  ;;  %v2229_v20 = vpop.f32.mrb[107].mxu0  ;;  %v2468_v29 = vpop.f32.mrb[139].mxu1  ;;  %vm2602_vm9 = vcmp.ge.f32.partialorder %v2474_v12, 0.0 }
 0x236   : > { %v2671_v25 = vmul.f32 %v4970_v59, %v2466_v18  ;;  %v2469_v3 = vadd.f32 %v2468_v29, %v5069_v28  ;;  %vm2600_vm10 = vcmp.ge.f32.partialorder %v2466_v18, 0.0  ;;  %v5305_v28 = vld [vmem:[#allocation9_spill] sm:$0xff] }
 0x237   : > { %vm2603_vm11 = vcmp.ge.f32.partialorder %v2477_v37, 0.0  ;;  %v2674_v44 = vmul.f32 %v4970_v59, %v2477_v37  ;;  %v2737_v41 = vsel %vm2602_vm9, %v2474_v12, %v2673_v7  ;;  %v1947_v49 = vadd.f32 %v4863_v30, %v5305_v28 }
 0x238   : > { %vm2601_vm12 = vcmp.ge.f32.partialorder %v2469_v3, 0.0  ;;  %v2672_v61 = vmul.f32 %v4970_v59, %v2469_v3  ;;  %v2735_v27 = vsel %vm2600_vm10, %v2466_v18, %v2671_v25 }
 0x239   : > { %v2738_v39 = vsel %vm2603_vm11, %v2477_v37, %v2674_v44 }
 0x23a   : > { %v3685_v36 = vpack.c.bf16 %v2738_v39, %v2737_v41  ;;  %v2736_v31 = vsel %vm2601_vm12, %v2469_v3, %v2672_v61  ;;  %v2232_v10 = vpop.f32.mrb[108].mxu0  ;;  %v3858_v38 = vpop.f32.mrb[140].mxu1  ;;  %v5223_v3 = vld [vmem:[%s5275_s2] ss:$0 sm:$0xff] }
 0x23b   : > { %v3680_v4 = vpack.c.bf16 %v2736_v31, %v2735_v27  ;;  %v5188_v19 = vadd.f32 %v2232_v10, %v1944_v47  ;;  %v2490_v8 = vadd.f32 %v3858_v38, %v5116_v34  ;;  %v2234_v17 = vpop.f32.mrb[109].mxu0  ;;  %v2481_v6 = vpop.f32.mrb[141].mxu1 }
 0x23c   : > { %3757 = vst [vmem:[%s4996_s12 + $0xa8] sm:$0xff] %v3685_v36   ;;  %v2482_v62 = vadd.f32 %v2481_v6, %v5098_v33  ;;  %v2235_v56 = vpop.f32.mrb[110].mxu0  ;;  %v3859_v54 = vpop.f32.mrb[142].mxu1  ;;  %v5309_v36 = vld [vmem:[#allocation13_spill] sm:$0xff] }
 0x23d   : > { %3756 = vst [vmem:[%s4996_s12 + $0xa0] sm:$0xff] %v3680_v4   ;;  %v2677_v5 = vmul.f32 %v4970_v59, %v2490_v8  ;;  %v5195_v22 = vadd.f32 %v2235_v56, %v1947_v49  ;;  %v2493_v52 = vadd.f32 %v3859_v54, %v5123_v16  ;;  %v2237_v63 = vpop.f32.mrb[111].mxu0  ;;  %v2484_v13 = vpop.f32.mrb[143].mxu1  ;;  %vm2606_vm13 = vcmp.ge.f32.partialorder %v2490_v8, 0.0 }
 0x23e   : > { %v2675_v60 = vmul.f32 %v4970_v59, %v2482_v62  ;;  %v2485_v34 = vadd.f32 %v2484_v13, %v5105_v51  ;;  %vm2604_vm14 = vcmp.ge.f32.partialorder %v2482_v62, 0.0  ;;  %v5307_v51 = vld [vmem:[#allocation11_spill] sm:$0xff]  ;;  %v1963_v31 = vadd.f32 %v5223_v3, %v5309_v36 }
 0x23f   : > { %vm2607_vm15 = vcmp.ge.f32.partialorder %v2493_v52, 0.0  ;;  %v2678_v33 = vmul.f32 %v4970_v59, %v2493_v52  ;;  %v2741_v42 = vsel %vm2606_vm13, %v2490_v8, %v2677_v5  ;;  %v1955_v58 = vadd.f32 %v4863_v30, %v5307_v51 }
 0x240   : > { %vm2605_vm0 = vcmp.ge.f32.partialorder %v2485_v34, 0.0  ;;  %v2676_v21 = vmul.f32 %v4970_v59, %v2485_v34  ;;  %v2739_v53 = vsel %vm2604_vm14, %v2482_v62, %v2675_v60  ;;  %v5310_v60 = vld [vmem:[#allocation14_spill] sm:$0xff] }
 0x241   : > { %v2742_v16 = vsel %vm2607_vm15, %v2493_v52, %v2678_v33 }
 0x242   : > { %v3695_v55 = vpack.c.bf16 %v2742_v16, %v2741_v42  ;;  %v2740_v26 = vsel %vm2605_vm0, %v2485_v34, %v2676_v21  ;;  %v2240_v57 = vpop.f32.mrb[112].mxu0  ;;  %v3862_v48 = vpop.f32.mrb[144].mxu1  ;;  %v1968_v34 = vadd.f32 %v5223_v3, %v5310_v60 }
 0x243   : > { %v3690_v14 = vpack.c.bf16 %v2740_v26, %v2739_v53  ;;  %v5206_v46 = vadd.f32 %v2240_v57, %v1952_v11  ;;  %v2506_v2 = vadd.f32 %v3862_v48, %v5152_v35  ;;  %v2242_v12 = vpop.f32.mrb[113].mxu0  ;;  %v2497_v9 = vpop.f32.mrb[145].mxu1 }
 0x244   : > { %3759 = vst [vmem:[%s4996_s12 + $0xb8] sm:$0xff] %v3695_v55   ;;  %v2498_v1 = vadd.f32 %v2497_v9, %v5134_v45  ;;  %v2243_v18 = vpop.f32.mrb[114].mxu0  ;;  %v3863_v43 = vpop.f32.mrb[146].mxu1 }
 0x245   : > { %3758 = vst [vmem:[%s4996_s12 + $0xb0] sm:$0xff] %v3690_v14   ;;  %v2681_v32 = vmul.f32 %v4970_v59, %v2506_v2  ;;  %v5213_v7 = vadd.f32 %v2243_v18, %v1955_v58  ;;  %v2509_v37 = vadd.f32 %v3863_v43, %v5159_v0  ;;  %v2245_v30 = vpop.f32.mrb[115].mxu0  ;;  %v2500_v20 = vpop.f32.mrb[147].mxu1  ;;  %vm2610_vm1 = vcmp.ge.f32.partialorder %v2506_v2, 0.0  ;;  %v5308_v0 = vld [vmem:[#allocation12_spill] sm:$0xff] }
 0x246   : > { %v2679_v29 = vmul.f32 %v4970_v59, %v2498_v1  ;;  %v2501_v35 = vadd.f32 %v2500_v20, %v5141_v15  ;;  %vm2608_vm2 = vcmp.ge.f32.partialorder %v2498_v1, 0.0  ;;  %v1960_v44 = vadd.f32 %v5223_v3, %v5308_v0  ;;  %v5312_v20 = vld [vmem:[#allocation17_spill] sm:$0xff] }
 0x247   : > { %vm2611_vm3 = vcmp.ge.f32.partialorder %v2509_v37, 0.0  ;;  %v2682_v45 = vmul.f32 %v4970_v59, %v2509_v37  ;;  %v2745_v61 = vsel %vm2610_vm1, %v2506_v2, %v2681_v32 }
 0x248   : > { %vm2609_vm4 = vcmp.ge.f32.partialorder %v2501_v35, 0.0  ;;  %v2680_v25 = vmul.f32 %v4970_v59, %v2501_v35  ;;  %v2743_v15 = vsel %vm2608_vm2, %v2498_v1, %v2679_v29  ;;  %v1976_v29 = vadd.f32 %v5223_v3, %v5312_v20 }
 0x249   : > { %v2746_v40 = vsel %vm2611_vm3, %v2509_v37, %v2682_v45 }
 0x24a   : > { %v3705_v47 = vpack.c.bf16 %v2746_v40, %v2745_v61  ;;  %v2744_v41 = vsel %vm2609_vm4, %v2501_v35, %v2680_v25  ;;  %v2248_v39 = vpop.f32.mrb[116].mxu0  ;;  %v3866_v27 = vpop.f32.mrb[148].mxu1 }
 0x24b   : > { %v3700_v10 = vpack.c.bf16 %v2744_v41, %v2743_v15  ;;  %v2249_v38 = vadd.f32 %v2248_v39, %v1960_v44  ;;  %v2522_v28 = vadd.f32 %v3866_v27, %v5188_v19  ;;  %v2250_v49 = vpop.f32.mrb[117].mxu0  ;;  %v2513_v4 = vpop.f32.mrb[149].mxu1 }
 0x24c   : > { %3761 = vst [vmem:[%s4996_s12 + $0xc8] sm:$0xff] %v3705_v47   ;;  %v2514_v8 = vadd.f32 %v2513_v4, %v5170_v24  ;;  %v2251_v17 = vpop.f32.mrb[118].mxu0  ;;  %v3867_v6 = vpop.f32.mrb[150].mxu1 }
 0x24d   : > { %3760 = vst [vmem:[%s4996_s12 + $0xc0] sm:$0xff] %v3700_v10   ;;  %v2685_v62 = vmul.f32 %v4970_v59, %v2522_v28  ;;  %v2252_v56 = vadd.f32 %v2251_v17, %v1963_v31  ;;  %v2525_v54 = vadd.f32 %v3867_v6, %v5195_v22  ;;  %v2253_v5 = vpop.f32.mrb[119].mxu0  ;;  %v2516_v52 = vpop.f32.mrb[151].mxu1  ;;  %vm2614_vm5 = vcmp.ge.f32.partialorder %v2522_v28, 0.0 }
 0x24e   : > { %v2683_v63 = vmul.f32 %v4970_v59, %v2514_v8  ;;  %v2517_v19 = vadd.f32 %v2516_v52, %v5177_v50  ;;  %vm2612_vm6 = vcmp.ge.f32.partialorder %v2514_v8, 0.0  ;;  %v5311_v50 = vld [vmem:[#allocation15_spill] sm:$0xff] }
 0x24f   : > { %vm2615_vm7 = vcmp.ge.f32.partialorder %v2525_v54, 0.0  ;;  %v2686_v13 = vmul.f32 %v4970_v59, %v2525_v54  ;;  %v2749_v33 = vsel %vm2614_vm5, %v2522_v28, %v2685_v62  ;;  %v1971_v53 = vadd.f32 %v5223_v3, %v5311_v50  ;;  %v4339_v62 = vld [vmem:[%s5276_s3] ss:$0 sm:$0xff] }
 0x250   : > { %vm2613_vm8 = vcmp.ge.f32.partialorder %v2517_v19, 0.0  ;;  %v2684_v24 = vmul.f32 %v4970_v59, %v2517_v19  ;;  %v2747_v21 = vsel %vm2612_vm6, %v2514_v8, %v2683_v63 }
 0x251   : > { %v2750_v22 = vsel %vm2615_vm7, %v2525_v54, %v2686_v13 }
 0x252   : > { %v3715_v23 = vpack.c.bf16 %v2750_v22, %v2749_v33  ;;  %v2748_v11 = vsel %vm2613_vm8, %v2517_v19, %v2684_v24  ;;  %v2256_v42 = vpop.f32.mrb[120].mxu0  ;;  %v3870_v16 = vpop.f32.mrb[152].mxu1 }
 0x253   : > { %v3710_v55 = vpack.c.bf16 %v2748_v11, %v2747_v21  ;;  %v2257_v26 = vadd.f32 %v2256_v42, %v1968_v34  ;;  %v2538_v57 = vadd.f32 %v3870_v16, %v2249_v38  ;;  %v2258_v48 = vpop.f32.mrb[121].mxu0  ;;  %v2529_v51 = vpop.f32.mrb[153].mxu1 }
 0x254   : > { %3763 = vst [vmem:[%s4996_s12 + $0xd8] sm:$0xff] %v3715_v23   ;;  %v2530_v58 = vadd.f32 %v2529_v51, %v5206_v46  ;;  %v2259_v14 = vpop.f32.mrb[122].mxu0  ;;  %v3871_v2 = vpop.f32.mrb[154].mxu1 }
 0x255   : > { %3762 = vst [vmem:[%s4996_s12 + $0xd0] sm:$0xff] %v3710_v55   ;;  %v2689_v12 = vmul.f32 %v4970_v59, %v2538_v57  ;;  %v2260_v9 = vadd.f32 %v2259_v14, %v1971_v53  ;;  %v2541_v1 = vadd.f32 %v3871_v2, %v2252_v56  ;;  %v2261_v18 = vpop.f32.mrb[123].mxu0  ;;  %v2532_v43 = vpop.f32.mrb[155].mxu1  ;;  %vm2618_vm9 = vcmp.ge.f32.partialorder %v2538_v57, 0.0 }
 0x256   : > { %v2687_v32 = vmul.f32 %v4970_v59, %v2530_v58  ;;  %v2533_v37 = vadd.f32 %v2532_v43, %v5213_v7  ;;  %vm2616_vm10 = vcmp.ge.f32.partialorder %v2530_v58, 0.0  ;;  %v5313_v7 = vld [vmem:[#allocation18_spill] sm:$0xff] }
 0x257   : > { %vm2619_vm11 = vcmp.ge.f32.partialorder %v2541_v1, 0.0  ;;  %v2690_v30 = vmul.f32 %v4970_v59, %v2541_v1  ;;  %v2753_v35 = vsel %vm2618_vm9, %v2538_v57, %v2689_v12  ;;  %v1979_v15 = vadd.f32 %v5223_v3, %v5313_v7 }
 0x258   : > { %vm2617_vm12 = vcmp.ge.f32.partialorder %v2533_v37, 0.0  ;;  %v2688_v46 = vmul.f32 %v4970_v59, %v2533_v37  ;;  %v2751_v25 = vsel %vm2616_vm10, %v2530_v58, %v2687_v32 }
 0x259   : > { %v2754_v45 = vsel %vm2619_vm11, %v2541_v1, %v2690_v30 }
 0x25a   : > { %v3725_v0 = vpack.c.bf16 %v2754_v45, %v2753_v35  ;;  %v2752_v44 = vsel %vm2617_vm12, %v2533_v37, %v2688_v46  ;;  %v2264_v61 = vpop.f32.mrb[124].mxu0  ;;  %v3874_v40 = vpop.f32.mrb[156].mxu1 }
 0x25b   : > { %v3720_v47 = vpack.c.bf16 %v2752_v44, %v2751_v25  ;;  %v2265_v41 = vadd.f32 %v2264_v61, %v1976_v29  ;;  %v2266_v39 = vpop.f32.mrb[125].mxu0  ;;  %v2545_v27 = vpop.f32.mrb[157].mxu1 }
 0x25c   : > { %3765 = vst [vmem:[%s4996_s12 + $0xe8] sm:$0xff] %v3725_v0   ;;  %v2546_v36 = vadd.f32 %v2545_v27, %v2257_v26  ;;  %v2267_v31 = vpop.f32.mrb[126].mxu0  ;;  %v3875_v10 = vpop.f32.mrb[158].mxu1 }
 0x25d   : > { %3764 = vst [vmem:[%s4996_s12 + $0xe0] sm:$0xff] %v3720_v47   ;;  %v2554_v38 = vadd.f32 %v3874_v40, %v2265_v41  ;;  %v2268_v28 = vadd.f32 %v2267_v31, %v1979_v15  ;;  %v2269_v49 = vpop.f32.mrb[127].mxu0  ;;  %v2548_v4 = vpop.f32.mrb[159].mxu1 }
 0x25e   : > { %v2691_v8 = vmul.f32 %v4970_v59, %v2546_v36  ;;  %v2549_v17 = vadd.f32 %v2548_v4, %v2260_v9  ;;  %vm2620_vm13 = vcmp.ge.f32.partialorder %v2546_v36, 0.0 }
 0x25f   : > { %v2693_v6 = vmul.f32 %v4970_v59, %v2554_v38  ;;  %v2557_v3 = vadd.f32 %v3875_v10, %v2268_v28  ;;  %vm2622_vm14 = vcmp.ge.f32.partialorder %v2554_v38, 0.0 }
 0x260   : > { %vm2621_vm15 = vcmp.ge.f32.partialorder %v2549_v17, 0.0  ;;  %v2692_v56 = vmul.f32 %v4339_v62, %v2549_v17  ;;  %v2755_v5 = vsel %vm2620_vm13, %v2546_v36, %v2691_v8 }
 0x261   : > { %vm2623_vm0 = vcmp.ge.f32.partialorder %v2557_v3, 0.0  ;;  %v2694_v54 = vmul.f32 %v4339_v62, %v2557_v3  ;;  %v2757_v63 = vsel %vm2622_vm14, %v2554_v38, %v2693_v6 }
 0x262   : > { %v2756_v52 = vsel %vm2621_vm15, %v2549_v17, %v2692_v56 }
 0x263   : > { %v2758_v19 = vsel %vm2623_vm0, %v2557_v3, %v2694_v54  ;;  %v3730_v13 = vpack.c.bf16 %v2756_v52, %v2755_v5 }
 0x264   : > { %v3735_v24 = vpack.c.bf16 %v2758_v19, %v2757_v63 }
 0x265   : > { %3766 = vst [vmem:[%s4996_s12 + $0xf0] sm:$0xff] %v3730_v13  }
 0x266   : > { %3767 = vst [vmem:[%s4996_s12 + $0xf8] sm:$0xff] %v3735_v24  }
 0x267 PF: > { %s14_s17 = sadd.s32 1, %s4362_s17   ;;  %s5314_s15 = smov %s4358_s16 }
 0x268   : > { %p11_p5 = scmp.ge.s32.totalorder %s14_s17, 6   ;;  %s5315_s16 = smov %s5317_s18 }
 0x26a   :  { %13 = sbr.rel (!%p11_p5) target bundleno = 2 (0x2), region = 75 }

// kernel: pspnet_forward.7
= control target key start
LH: loop header
LB: loop body
LE: loop exit
PB: predicated region body
PF: predicated region fallthrough
CT: control target
= control target key end

     0   :  { %s4209_s18 = smov 0   ;;  %s4211_s19 = smov 0   ;;  %s5073_s0 = inlined_call_operand.vmem [shape: bf16[2048,576], index: 0, kind: input, shape index: {}]   ;;  %s5074_s1 = inlined_call_operand.vmem [shape: bf16[576,128], index: 1, kind: input, shape index: {}]   ;;  %s5075_s2 = inlined_call_operand.vmem [shape: f32[1,128], index: 2, kind: input, shape index: {}]   ;;  %s5076_s3 = inlined_call_operand.vmem [shape: bf16[128,128], index: 3, kind: input, shape index: {}]   ;;  %s5077_s4 = inlined_call_operand.vmem [shape: f32[1,128], index: 4, kind: input, shape index: {}]   ;;  %s5078_s5 = inlined_call_operand.vmem [shape: f32[2048,128], index: 5, kind: output, shape index: {}]  }
   0x1   :  { %s4213_s20 = smov 0  }
   0x2 LB: > { %s34_s21 = sadd.s32 1, %s4172_s19  ;;  %p3195_p0 = scmp.ge.s32.totalorder %s4176_s20, 1  ;;  %s4176_s20 = sphi %s4213_s20, %s15_s20   ;;  %s4172_s19 = sphi %s4211_s19, %s5114_s19   ;;  %s4168_s18 = sphi %s4209_s18, %s5113_s18  }
   0x3   : > { %p36_p1 = scmp.ge.s32.totalorder %s34_s21, 4  ;;  %p239_p2 = scmp.lt.s32.totalorder %s4176_s20, 5 }
   0x5   : > { %s5116_s21 = smov (%p36_p1, %s34_s21), 0  ;;  %p240_p3 = pnand %p3195_p0, %p239_p2 }
   0x7   : > { %243 = sbr.rel (%p240_p3) target bundleno = 895 (0x37f), region = 40 }
   0xe   : > { %v3886_v0 = vld [vmem:[%s5074_s1] sm:$0xff]   ;;  %v4178_v1 = vmov 0   ;;  %s3196_s24 = sshll.u32 %s4168_s18, 6  ;;  %v3887_v2 = vld [vmem:[%s5074_s1 + $0x8] sm:$0xff]   ;;  %v3888_v3 = vld [vmem:[%s5074_s1 + $0x10] sm:$0xff]   ;;  %vm1601_vm0 = vcmask 523264  }
   0xf   : > { %1698 = vmatprep.subr.bf16.mxu0 %v4178_v1  ;;  %3668 = vmatprep.subr.bf16.mxu1 %v4178_v1  ;;  %p285_p4 = scmp.lt.s32.totalorder %s3196_s24, 255  ;;  %v3889_v4 = vld [vmem:[%s5074_s1 + $0x18] sm:$0xff]   ;;  %v3890_v5 = vld [vmem:[%s5074_s1 + $0x20] sm:$0xff]   ;;  %v3891_v7 = vld [vmem:[%s5074_s1 + $0x28] sm:$0xff]  }
  0x10   : > { %1699 = vmatpush1.bf16.msra.mxu0 %v3886_v0  ;;  %3684 = vmatpush1.bf16.msra.mxu1 %v3886_v0  ;;  %v3892_v9 = vld [vmem:[%s5074_s1 + $0x30] sm:$0xff]   ;;  %v3893_v10 = vld [vmem:[%s5074_s1 + $0x38] sm:$0xff]   ;;  %v3894_v11 = vld [vmem:[%s5074_s1 + $0x40] sm:$0xff]  }
  0x11   : > { %1700 = vmatprep.subr.bf16.mxu0 %v4178_v1  ;;  %3669 = vmatprep.subr.bf16.mxu1 %v4178_v1  ;;  %s5118_s24 = smov (!%p285_p4, %s3196_s24), 255  ;;  %v3895_v12 = vld [vmem:[%s5074_s1 + $0x48] sm:$0xff]   ;;  %v3896_v13 = vld [vmem:[%s5074_s1 + $0x50] sm:$0xff]   ;;  %v3897_v14 = vld [vmem:[%s5074_s1 + $0x58] sm:$0xff]  }
  0x12   : > { %s3860_s6 = smul.u32 20, %s5118_s24  ;;  %v3898_v15 = vld [vmem:[%s5074_s1 + $0x60] sm:$0xff]   ;;  %v3899_v16 = vld [vmem:[%s5074_s1 + $0x68] sm:$0xff]   ;;  %v3900_v17 = vld [vmem:[%s5074_s1 + $0x70] sm:$0xff]  }
  0x13   : > { %v3901_v18 = vld [vmem:[%s5074_s1 + $0x78] sm:$0xff]   ;;  %v3908_v21 = vld [vmem:[%s5074_s1 + $0x80] sm:$0xff]   ;;  %v3915_v24 = vld [vmem:[%s5074_s1 + $0x88] sm:$0xff]  }
  0x14   : > { %1701 = vmatpush1.bf16.msra.mxu0 %v3887_v2  ;;  %3685 = vmatpush1.bf16.msra.mxu1 %v3887_v2  ;;  %s4256_s11 = scalar_lea.vmem %s5073_s0, %s3860_s6  ;;  %v3922_v29 = vld [vmem:[%s5074_s1 + $0x90] sm:$0xff]   ;;  %v4007_v30 = vld [vmem:[%s5074_s1 + $0x100] sm:$0xff]   ;;  %v4008_v31 = vld [vmem:[%s5074_s1 + $0x108] sm:$0xff]  }
  0x15   : > { %1702 = vmatprep.subr.bf16.mxu0 %v4178_v1  ;;  %3670 = vmatprep.subr.bf16.mxu1 %v4178_v1  ;;  %v3904_v6 = vld [vmem:[%s4256_s11 + $0x4] ss:$20 sps:$4 sm:$0xff]   ;;  %v3902_v19 = vld [vmem:[%s4256_s11] ss:$20 sps:$4 sm:$0xff]   ;;  %v3911_v25 = vld [vmem:[%s4256_s11 + $0x28] ss:$20 sps:$4 sm:$0xff]  }
  0x16   : > { %v3907_v8 = vld [vmem:[%s4256_s11 + $0x284] ss:$20 sps:$4 sm:$0xff]   ;;  %1730 = vmatprep.mubr.bf16.mxu0 %v3904_v6  ;;  %v3905_v20 = vld [vmem:[%s4256_s11 + $0x280] ss:$20 sps:$4 sm:$0xff]   ;;  %v3914_v26 = vld [vmem:[%s4256_s11 + $0x2a8] ss:$20 sps:$4 sm:$0xff]  }
  0x17   : > { %1858 = vmatprep.mubr.bf16.mxu1 %v3907_v8  ;;  %v3909_v22 = vld [vmem:[%s4256_s11 + $0x2c] ss:$20 sps:$4 sm:$0xff]   ;;  %v3916_v27 = vld [vmem:[%s4256_s11 + $0x54] ss:$20 sps:$4 sm:$0xff]   ;;  %v3918_v32 = vld [vmem:[%s4256_s11 + $0x50] ss:$20 sps:$4 sm:$0xff]  }
  0x18   : > { %1703 = vmatpush1.bf16.msra.mxu0 %v3888_v3  ;;  %3686 = vmatpush1.bf16.msra.mxu1 %v3888_v3  ;;  %v3912_v23 = vld [vmem:[%s4256_s11 + $0x2ac] ss:$20 sps:$4 sm:$0xff]   ;;  %v3919_v28 = vld [vmem:[%s4256_s11 + $0x2d4] ss:$20 sps:$4 sm:$0xff]   ;;  %v3929_v33 = vld [vmem:[%s5074_s1 + $0x98] sm:$0xff]  }
  0x19   : > { %1704 = vmatprep.subr.bf16.mxu0 %v4178_v1  ;;  %3671 = vmatprep.subr.bf16.mxu1 %v4178_v1  ;;  %v3921_v34 = vld [vmem:[%s4256_s11 + $0x2d0] ss:$20 sps:$4 sm:$0xff]   ;;  %v4017_v39 = vld [vmem:[%s5074_s1 + $0x118] sm:$0xff]   ;;  %v3943_v40 = vld [vmem:[%s5074_s1 + $0xa8] sm:$0xff]  }
  0x1a   : > { %v3923_v35 = vld [vmem:[%s4256_s11 + $0x7c] ss:$20 sps:$4 sm:$0xff]   ;;  %v3936_v37 = vld [vmem:[%s5074_s1 + $0xa0] sm:$0xff]   ;;  %v3925_v41 = vld [vmem:[%s4256_s11 + $0x78] ss:$20 sps:$4 sm:$0xff]  }
  0x1b   : > { %v3926_v36 = vld [vmem:[%s4256_s11 + $0x2fc] ss:$20 sps:$4 sm:$0xff]   ;;  %v3928_v42 = vld [vmem:[%s4256_s11 + $0x2f8] ss:$20 sps:$4 sm:$0xff]   ;;  %v3932_v47 = vld [vmem:[%s4256_s11 + $0xa0] ss:$20 sps:$4 sm:$0xff]  }
  0x1c   : > { %1705 = vmatpush1.bf16.msra.mxu0 %v3889_v4  ;;  %3687 = vmatpush1.bf16.msra.mxu1 %v3889_v4  ;;  %v4016_v38 = vld [vmem:[%s5074_s1 + $0x110] sm:$0xff]   ;;  %v3930_v43 = vld [vmem:[%s4256_s11 + $0xa4] ss:$20 sps:$4 sm:$0xff]   ;;  %v3937_v49 = vld [vmem:[%s4256_s11 + $0xcc] ss:$20 sps:$4 sm:$0xff]  }
  0x1d   : > { %1706 = vmatprep.subr.bf16.mxu0 %v4178_v1  ;;  %3672 = vmatprep.subr.bf16.mxu1 %v4178_v1  ;;  %v3933_v44 = vld [vmem:[%s4256_s11 + $0x324] ss:$20 sps:$4 sm:$0xff]   ;;  %v3950_v45 = vld [vmem:[%s5074_s1 + $0xb0] sm:$0xff]   ;;  %v3940_v50 = vld [vmem:[%s4256_s11 + $0x34c] ss:$20 sps:$4 sm:$0xff]  }
  0x1e   : > { %v3957_v46 = vld [vmem:[%s5074_s1 + $0xb8] sm:$0xff]   ;;  %v3935_v48 = vld [vmem:[%s4256_s11 + $0x320] ss:$20 sps:$4 sm:$0xff]   ;;  %v3971_v52 = vld [vmem:[%s5074_s1 + $0xc8] sm:$0xff]  }
  0x1f   : > { %v3964_v51 = vld [vmem:[%s5074_s1 + $0xc0] sm:$0xff]   ;;  %v3939_v53 = vld [vmem:[%s4256_s11 + $0xc8] ss:$20 sps:$4 sm:$0xff]   ;;  %v3978_v57 = vld [vmem:[%s5074_s1 + $0xd0] sm:$0xff]  }
  0x20   : > { %1707 = vmatpush1.bf16.msra.mxu0 %v3890_v5  ;;  %3688 = vmatpush1.bf16.msra.mxu1 %v3890_v5  ;;  %v3942_v54 = vld [vmem:[%s4256_s11 + $0x348] ss:$20 sps:$4 sm:$0xff]   ;;  %v3946_v59 = vld [vmem:[%s4256_s11 + $0xf0] ss:$20 sps:$4 sm:$0xff]   ;;  %v3953_v2 = vld [vmem:[%s4256_s11 + $0x118] ss:$20 sps:$4 sm:$0xff]  }
  0x21   : > { %1708 = vmatprep.subr.bf16.mxu0 %v4178_v1  ;;  %3673 = vmatprep.subr.bf16.mxu1 %v4178_v1  ;;  %v3944_v55 = vld [vmem:[%s4256_s11 + $0xf4] ss:$20 sps:$4 sm:$0xff]   ;;  %v3985_v58 = vld [vmem:[%s5074_s1 + $0xd8] sm:$0xff]   ;;  %v3949_v60 = vld [vmem:[%s4256_s11 + $0x370] ss:$20 sps:$4 sm:$0xff]  }
  0x22   : > { %v3947_v56 = vld [vmem:[%s4256_s11 + $0x374] ss:$20 sps:$4 sm:$0xff]   ;;  %v3951_v61 = vld [vmem:[%s4256_s11 + $0x11c] ss:$20 sps:$4 sm:$0xff]   ;;  %v3992_v63 = vld [vmem:[%s5074_s1 + $0xe0] sm:$0xff]  }
  0x23   : > { %v3954_v62 = vld [vmem:[%s4256_s11 + $0x39c] ss:$20 sps:$4 sm:$0xff]   ;;  %v3999_v0 = vld [vmem:[%s5074_s1 + $0xe8] sm:$0xff]   ;;  %v3958_v4 = vld [vmem:[%s4256_s11 + $0x144] ss:$20 sps:$4 sm:$0xff]  }
  0x24   : > { %1709 = vmatpush1.bf16.msra.mxu0 %v3891_v7  ;;  %3689 = vmatpush1.bf16.msra.mxu1 %v3891_v7  ;;  %v3956_v3 = vld [vmem:[%s4256_s11 + $0x398] ss:$20 sps:$4 sm:$0xff]   ;;  %v4006_v6 = vld [vmem:[%s5074_s1 + $0xf0] sm:$0xff]  }
  0x25   : > { %1710 = vmatprep.subr.bf16.mxu0 %v4178_v1  ;;  %3674 = vmatprep.subr.bf16.mxu1 %v4178_v1  ;;  %v3961_v5 = vld [vmem:[%s4256_s11 + $0x3c4] ss:$20 sps:$4 sm:$0xff]   ;;  %v3960_v8 = vld [vmem:[%s4256_s11 + $0x140] ss:$20 sps:$4 sm:$0xff]  }
  0x26   : > { %v4015_v7 = vld [vmem:[%s5074_s1 + $0xf8] sm:$0xff]  }
  0x28   : > { %1711 = vmatpush1.bf16.msra.mxu0 %v3892_v9  ;;  %3690 = vmatpush1.bf16.msra.mxu1 %v3892_v9  ;;  %v3963_v9 = vld [vmem:[%s4256_s11 + $0x3c0] ss:$20 sps:$4 sm:$0xff]  }
  0x29   : > { %1712 = vmatprep.subr.bf16.mxu0 %v4178_v1  ;;  %3675 = vmatprep.subr.bf16.mxu1 %v4178_v1 }
  0x2c   : > { %1713 = vmatpush1.bf16.msra.mxu0 %v3893_v10  ;;  %3691 = vmatpush1.bf16.msra.mxu1 %v3893_v10  ;;  %v3965_v10 = vld [vmem:[%s4256_s11 + $0x16c] ss:$20 sps:$4 sm:$0xff]  }
  0x2d   : > { %1714 = vmatprep.subr.bf16.mxu0 %v4178_v1  ;;  %3676 = vmatprep.subr.bf16.mxu1 %v4178_v1 }
  0x30   : > { %1715 = vmatpush1.bf16.msra.mxu0 %v3894_v11  ;;  %3692 = vmatpush1.bf16.msra.mxu1 %v3894_v11  ;;  %v3968_v11 = vld [vmem:[%s4256_s11 + $0x3ec] ss:$20 sps:$4 sm:$0xff]  }
  0x31   : > { %1716 = vmatprep.subr.bf16.mxu0 %v4178_v1  ;;  %3677 = vmatprep.subr.bf16.mxu1 %v4178_v1 }
  0x34   : > { %1717 = vmatpush1.bf16.msra.mxu0 %v3895_v12  ;;  %3693 = vmatpush1.bf16.msra.mxu1 %v3895_v12  ;;  %v3967_v12 = vld [vmem:[%s4256_s11 + $0x168] ss:$20 sps:$4 sm:$0xff]  }
  0x35   : > { %1718 = vmatprep.subr.bf16.mxu0 %v4178_v1  ;;  %3678 = vmatprep.subr.bf16.mxu1 %v4178_v1 }
  0x38   : > { %1719 = vmatpush1.bf16.msra.mxu0 %v3896_v13  ;;  %3694 = vmatpush1.bf16.msra.mxu1 %v3896_v13  ;;  %v3970_v13 = vld [vmem:[%s4256_s11 + $0x3e8] ss:$20 sps:$4 sm:$0xff]  }
  0x39   : > { %1720 = vmatprep.subr.bf16.mxu0 %v4178_v1  ;;  %3679 = vmatprep.subr.bf16.mxu1 %v4178_v1 }
  0x3c   : > { %1721 = vmatpush1.bf16.msra.mxu0 %v3897_v14  ;;  %3695 = vmatpush1.bf16.msra.mxu1 %v3897_v14  ;;  %v3972_v14 = vld [vmem:[%s4256_s11 + $0x194] ss:$20 sps:$4 sm:$0xff]  }
  0x3d   : > { %1722 = vmatprep.subr.bf16.mxu0 %v4178_v1  ;;  %3680 = vmatprep.subr.bf16.mxu1 %v4178_v1 }
  0x40   : > { %1723 = vmatpush1.bf16.msra.mxu0 %v3898_v15  ;;  %3696 = vmatpush1.bf16.msra.mxu1 %v3898_v15  ;;  %v3975_v15 = vld [vmem:[%s4256_s11 + $0x414] ss:$20 sps:$4 sm:$0xff]  }
  0x41   : > { %1724 = vmatprep.subr.bf16.mxu0 %v4178_v1  ;;  %3681 = vmatprep.subr.bf16.mxu1 %v4178_v1 }
  0x44   : > { %1725 = vmatpush1.bf16.msra.mxu0 %v3899_v16  ;;  %3697 = vmatpush1.bf16.msra.mxu1 %v3899_v16  ;;  %v3977_v16 = vld [vmem:[%s4256_s11 + $0x410] ss:$20 sps:$4 sm:$0xff]  }
  0x45   : > { %1726 = vmatprep.subr.bf16.mxu0 %v4178_v1  ;;  %3682 = vmatprep.subr.bf16.mxu1 %v4178_v1 }
  0x48   : > { %1727 = vmatpush1.bf16.msra.mxu0 %v3900_v17  ;;  %3698 = vmatpush1.bf16.msra.mxu1 %v3900_v17  ;;  %v3979_v17 = vld [vmem:[%s4256_s11 + $0x1bc] ss:$20 sps:$4 sm:$0xff]  }
  0x49   : > { %1728 = vmatprep.subr.bf16.mxu0 %v4178_v1  ;;  %3683 = vmatprep.subr.bf16.mxu1 %v4178_v1 }
  0x4c   : > { %1729 = vmatpush1.bf16.msra.mxu0 %v3901_v18  ;;  %3699 = vmatpush1.bf16.msra.mxu1 %v3901_v18  ;;  %v3982_v18 = vld [vmem:[%s4256_s11 + $0x43c] ss:$20 sps:$4 sm:$0xff]  }
  0x4d   : > { %1987 = vmatprep.subr.bf16.mxu0 %v4178_v1  ;;  %3516 = vmatprep.subr.bf16.mxu1 %v4007_v30 }
  0x4f   : > { %1731 = vmatmul.mubr.bf16.vlgmr.msra.gmra.mrb[0].mxu0 %v3902_v19  ;;  %1859 = vmatmul.mubr.bf16.vlgmr.msra.gmra.mrb[0].mxu1 %v3905_v20  ;;  %v3981_v19 = vld [vmem:[%s4256_s11 + $0x1b8] ss:$20 sps:$4 sm:$0xff]  }
  0x50   : > { %1988 = vmatpush1.bf16.msra.mxu0 %v3908_v21  ;;  %1738 = vmatprep.mubr.bf16.mxu0 %v3909_v22  ;;  %v3984_v20 = vld [vmem:[%s4256_s11 + $0x438] ss:$20 sps:$4 sm:$0xff]  }
  0x51   : > { %1866 = vmatprep.mubr.bf16.mxu1 %v3912_v23  ;;  %1989 = vmatprep.subr.bf16.mxu0 %v4178_v1  ;;  %v3986_v21 = vld [vmem:[%s4256_s11 + $0x1e4] ss:$20 sps:$4 sm:$0xff]   ;;  %v3988_v23 = vld [vmem:[%s4256_s11 + $0x1e0] ss:$20 sps:$4 sm:$0xff]  }
  0x52   : > { %3517 = vmatpush3.bf16.msra.mxu1 %v4007_v30  ;;  %v3989_v22 = vld [vmem:[%s4256_s11 + $0x464] ss:$20 sps:$4 sm:$0xff]   ;;  %v4003_v30 = vld [vmem:[%s4256_s11 + $0x4b4] ss:$20 sps:$4 sm:$0xff]  }
  0x53   : > { %3518 = vmatprep.subr.bf16.mxu1 %v4008_v31 }
  0x54   : > { %1990 = vmatpush1.bf16.msra.mxu0 %v3915_v24  ;;  %v3991_v24 = vld [vmem:[%s4256_s11 + $0x460] ss:$20 sps:$4 sm:$0xff]  }
  0x55   : > { %1991 = vmatprep.subr.bf16.mxu0 %v4178_v1 }
  0x56   : > { %3519 = vmatpush3.bf16.msra.mxu1 %v4008_v31  ;;  %v4002_v31 = vld [vmem:[%s4256_s11 + $0x230] ss:$20 sps:$4 sm:$0xff]  }
  0x57   : > { %1739 = vmatmul.mubr.bf16.gmra.mrb[4].mxu0 %v3911_v25  ;;  %1867 = vmatmul.mubr.bf16.gmra.mrb[4].mxu1 %v3914_v26  ;;  %v3993_v25 = vld [vmem:[%s4256_s11 + $0x20c] ss:$20 sps:$4 sm:$0xff]  }
  0x58   : > { %1746 = vmatprep.mubr.bf16.mxu0 %v3916_v27  ;;  %1874 = vmatprep.mubr.bf16.mxu1 %v3919_v28  ;;  %v3996_v26 = vld [vmem:[%s4256_s11 + $0x48c] ss:$20 sps:$4 sm:$0xff]   ;;  %v3995_v27 = vld [vmem:[%s4256_s11 + $0x208] ss:$20 sps:$4 sm:$0xff]  }
  0x59   : > { %1992 = vmatpush1.bf16.msra.mxu0 %v3922_v29  ;;  %3520 = vmatprep.subr.bf16.mxu1 %v4016_v38  ;;  %v3998_v28 = vld [vmem:[%s4256_s11 + $0x488] ss:$20 sps:$4 sm:$0xff]  }
  0x5a   : > { %1993 = vmatprep.subr.bf16.mxu0 %v4178_v1  ;;  %3521 = vmatpush3.bf16.msra.mxu1 %v4016_v38  ;;  %v4000_v29 = vld [vmem:[%s4256_s11 + $0x234] ss:$20 sps:$4 sm:$0xff]   ;;  %v4021_v38 = vld [vmem:[%s4256_s11 + $0x10] ss:$20 sps:$4 sm:$0xff]  }
  0x5b   : > { %3522 = vmatprep.subr.bf16.mxu1 %v4017_v39 }
  0x5d   : > { %1994 = vmatpush1.bf16.msra.mxu0 %v3929_v33  ;;  %v4009_v33 = vld [vmem:[%s4256_s11 + $0x25c] ss:$20 sps:$4 sm:$0xff]  }
  0x5e   : > { %1995 = vmatprep.subr.bf16.mxu0 %v4178_v1  ;;  %3523 = vmatpush3.bf16.msra.mxu1 %v4017_v39  ;;  %v4018_v39 = vld [vmem:[%s4256_s11 + $0x8] ss:$20 sps:$4 sm:$0xff]  }
  0x5f   : > { %1747 = vmatmul.mubr.bf16.gmra.mrb[8].mxu0 %v3918_v32  ;;  %1875 = vmatmul.mubr.bf16.gmra.mrb[8].mxu1 %v3921_v34  ;;  %v4005_v32 = vld [vmem:[%s4256_s11 + $0x4b0] ss:$20 sps:$4 sm:$0xff]  }
  0x60   : > { %1754 = vmatprep.mubr.bf16.mxu0 %v3923_v35  ;;  %1882 = vmatprep.mubr.bf16.mxu1 %v3926_v36  ;;  %v4012_v34 = vld [vmem:[%s4256_s11 + $0x4dc] ss:$20 sps:$4 sm:$0xff]   ;;  %v4011_v35 = vld [vmem:[%s4256_s11 + $0x258] ss:$20 sps:$4 sm:$0xff]  }
  0x61   : > { %1996 = vmatpush1.bf16.msra.mxu0 %v3936_v37  ;;  %v4014_v36 = vld [vmem:[%s4256_s11 + $0x4d8] ss:$20 sps:$4 sm:$0xff]  }
  0x62   : > { %1997 = vmatprep.subr.bf16.mxu0 %v4178_v1  ;;  %v4020_v37 = vld [vmem:[%s4256_s11 + $0xc] ss:$20 sps:$4 sm:$0xff]  }
  0x65   : > { %1998 = vmatpush1.bf16.msra.mxu0 %v3943_v40  ;;  %v4022_v40 = vld [vmem:[%s4256_s11 + $0x38] ss:$20 sps:$4 sm:$0xff]  }
  0x66   : > { %1999 = vmatprep.subr.bf16.mxu0 %v4178_v1 }
  0x67   : > { %1755 = vmatmul.mubr.bf16.gmra.mrb[12].mxu0 %v3925_v41  ;;  %1883 = vmatmul.mubr.bf16.gmra.mrb[12].mxu1 %v3928_v42  ;;  %v4023_v41 = vld [vmem:[%s4256_s11 + $0x34] ss:$20 sps:$4 sm:$0xff]  }
  0x68   : > { %1762 = vmatprep.mubr.bf16.mxu0 %v3930_v43  ;;  %1890 = vmatprep.mubr.bf16.mxu1 %v3933_v44  ;;  %v4029_v42 = vld [vmem:[%s4256_s11 + $0x60] ss:$20 sps:$4 sm:$0xff]   ;;  %v4025_v43 = vld [vmem:[%s4256_s11 + $0x30] ss:$20 sps:$4 sm:$0xff]   ;;  %v4030_v44 = vld [vmem:[%s4256_s11 + $0x88] ss:$20 sps:$4 sm:$0xff]  }
  0x69   : > { %2000 = vmatpush1.bf16.msra.mxu0 %v3950_v45  ;;  %v4026_v45 = vld [vmem:[%s4256_s11 + $0x5c] ss:$20 sps:$4 sm:$0xff]  }
  0x6a   : > { %2001 = vmatprep.subr.bf16.mxu0 %v4178_v1 }
  0x6d   : > { %2002 = vmatpush1.bf16.msra.mxu0 %v3957_v46  ;;  %v4037_v46 = vld [vmem:[%s4256_s11 + $0xb0] ss:$20 sps:$4 sm:$0xff]  }
  0x6e   : > { %2003 = vmatprep.subr.bf16.mxu0 %v4178_v1 }
  0x6f   : > { %1763 = vmatmul.mubr.bf16.gmra.mrb[16].mxu0 %v3932_v47  ;;  %1891 = vmatmul.mubr.bf16.gmra.mrb[16].mxu1 %v3935_v48  ;;  %v4028_v47 = vld [vmem:[%s4256_s11 + $0x58] ss:$20 sps:$4 sm:$0xff]  }
  0x70   : > { %1770 = vmatprep.mubr.bf16.mxu0 %v3937_v49  ;;  %1898 = vmatprep.mubr.bf16.mxu1 %v3940_v50  ;;  %v4038_v48 = vld [vmem:[%s4256_s11 + $0xd8] ss:$20 sps:$4 sm:$0xff]   ;;  %v4045_v50 = vld [vmem:[%s4256_s11 + $0x100] ss:$20 sps:$4 sm:$0xff]  }
  0x71   : > { %2004 = vmatpush1.bf16.msra.mxu0 %v3964_v51  ;;  %v4031_v49 = vld [vmem:[%s4256_s11 + $0x84] ss:$20 sps:$4 sm:$0xff]   ;;  %v4033_v51 = vld [vmem:[%s4256_s11 + $0x80] ss:$20 sps:$4 sm:$0xff]  }
  0x72   : > { %2005 = vmatprep.subr.bf16.mxu0 %v4178_v1 }
  0x75   : > { %2006 = vmatpush1.bf16.msra.mxu0 %v3971_v52  ;;  %v4046_v52 = vld [vmem:[%s4256_s11 + $0x128] ss:$20 sps:$4 sm:$0xff]  }
  0x76   : > { %2007 = vmatprep.subr.bf16.mxu0 %v4178_v1 }
  0x77   : > { %1771 = vmatmul.mubr.bf16.gmra.mrb[20].mxu0 %v3939_v53  ;;  %1899 = vmatmul.mubr.bf16.gmra.mrb[20].mxu1 %v3942_v54  ;;  %v4034_v53 = vld [vmem:[%s4256_s11 + $0xac] ss:$20 sps:$4 sm:$0xff]   ;;  %v4053_v54 = vld [vmem:[%s4256_s11 + $0x150] ss:$20 sps:$4 sm:$0xff]  }
  0x78   : > { %1778 = vmatprep.mubr.bf16.mxu0 %v3944_v55  ;;  %1906 = vmatprep.mubr.bf16.mxu1 %v3947_v56  ;;  %v4036_v55 = vld [vmem:[%s4256_s11 + $0xa8] ss:$20 sps:$4 sm:$0xff]   ;;  %v4054_v56 = vld [vmem:[%s4256_s11 + $0x178] ss:$20 sps:$4 sm:$0xff]  }
  0x79   : > { %2008 = vmatpush1.bf16.msra.mxu0 %v3978_v57  ;;  %v4039_v57 = vld [vmem:[%s4256_s11 + $0xd4] ss:$20 sps:$4 sm:$0xff]  }
  0x7a   : > { %2009 = vmatprep.subr.bf16.mxu0 %v4178_v1 }
  0x7d   : > { %2010 = vmatpush1.bf16.msra.mxu0 %v3985_v58  ;;  %v4061_v58 = vld [vmem:[%s4256_s11 + $0x1a0] ss:$20 sps:$4 sm:$0xff]  }
  0x7e   : > { %2011 = vmatprep.subr.bf16.mxu0 %v4178_v1 }
  0x7f   : > { %1779 = vmatmul.mubr.bf16.gmra.mrb[24].mxu0 %v3946_v59  ;;  %1907 = vmatmul.mubr.bf16.gmra.mrb[24].mxu1 %v3949_v60  ;;  %v4041_v59 = vld [vmem:[%s4256_s11 + $0xd0] ss:$20 sps:$4 sm:$0xff]   ;;  %v4062_v60 = vld [vmem:[%s4256_s11 + $0x1c8] ss:$20 sps:$4 sm:$0xff]  }
  0x80   : > { %1786 = vmatprep.mubr.bf16.mxu0 %v3951_v61  ;;  %1914 = vmatprep.mubr.bf16.mxu1 %v3954_v62  ;;  %v4042_v61 = vld [vmem:[%s4256_s11 + $0xfc] ss:$20 sps:$4 sm:$0xff]  }
  0x81   : > { %2012 = vmatpush1.bf16.msra.mxu0 %v3992_v63  ;;  %v4069_v62 = vld [vmem:[%s4256_s11 + $0x1f0] ss:$20 sps:$4 sm:$0xff]   ;;  %v4044_v63 = vld [vmem:[%s4256_s11 + $0xf8] ss:$20 sps:$4 sm:$0xff]  }
  0x82   : > { %2013 = vmatprep.subr.bf16.mxu0 %v4178_v1 }
  0x85   : > { %2014 = vmatpush1.bf16.msra.mxu0 %v3999_v0  ;;  %v4070_v0 = vld [vmem:[%s4256_s11 + $0x218] ss:$20 sps:$4 sm:$0xff]  }
  0x86   : > { %2015 = vmatprep.subr.bf16.mxu0 %v4178_v1 }
  0x87   : > { %1787 = vmatmul.mubr.bf16.gmra.mrb[28].mxu0 %v3953_v2  ;;  %1915 = vmatmul.mubr.bf16.gmra.mrb[28].mxu1 %v3956_v3  ;;  %v4047_v2 = vld [vmem:[%s4256_s11 + $0x124] ss:$20 sps:$4 sm:$0xff]   ;;  %v4077_v3 = vld [vmem:[%s4256_s11 + $0x240] ss:$20 sps:$4 sm:$0xff]  }
  0x88   : > { %1794 = vmatprep.mubr.bf16.mxu0 %v3958_v4  ;;  %1922 = vmatprep.mubr.bf16.mxu1 %v3961_v5  ;;  %v4049_v4 = vld [vmem:[%s4256_s11 + $0x120] ss:$20 sps:$4 sm:$0xff]   ;;  %v4078_v5 = vld [vmem:[%s4256_s11 + $0x268] ss:$20 sps:$4 sm:$0xff]  }
  0x89   : > { %2016 = vmatpush1.bf16.msra.mxu0 %v4006_v6  ;;  %v4050_v6 = vld [vmem:[%s4256_s11 + $0x14c] ss:$20 sps:$4 sm:$0xff]  }
  0x8a   : > { %2017 = vmatprep.subr.bf16.mxu0 %v4178_v1  ;;  %v3974_v1 = vld [vmem:[%s4256_s11 + $0x190] ss:$20 sps:$4 sm:$0xff]  }
  0x8d   : > { %2018 = vmatpush1.bf16.msra.mxu0 %v4015_v7  ;;  %v4085_v7 = vld [vmem:[%s4256_s11 + $0x290] ss:$20 sps:$4 sm:$0xff]  }
  0x8f   : > { %1795 = vmatmul.mubr.bf16.gmra.mrb[32].mxu0 %v3960_v8  ;;  %1923 = vmatmul.mubr.bf16.gmra.mrb[32].mxu1 %v3963_v9  ;;  %v4052_v8 = vld [vmem:[%s4256_s11 + $0x148] ss:$20 sps:$4 sm:$0xff]   ;;  %v4086_v9 = vld [vmem:[%s4256_s11 + $0x2b8] ss:$20 sps:$4 sm:$0xff]  }
  0x90   : > { %1802 = vmatprep.mubr.bf16.mxu0 %v3965_v10  ;;  %1930 = vmatprep.mubr.bf16.mxu1 %v3968_v11  ;;  %v4055_v10 = vld [vmem:[%s4256_s11 + $0x174] ss:$20 sps:$4 sm:$0xff]  }
  0x91   : > { %v4093_v11 = vld [vmem:[%s4256_s11 + $0x2e0] ss:$20 sps:$4 sm:$0xff]  }
  0x97   : > { %1803 = vmatmul.mubr.bf16.gmra.mrb[36].mxu0 %v3967_v12  ;;  %1931 = vmatmul.mubr.bf16.gmra.mrb[36].mxu1 %v3970_v13  ;;  %v4119_v12 = vld [vmem:[%s5076_s3] sm:$0xff]  }
  0x98   : > { %1810 = vmatprep.mubr.bf16.mxu0 %v3972_v14  ;;  %1938 = vmatprep.mubr.bf16.mxu1 %v3975_v15  ;;  %v4057_v13 = vld [vmem:[%s4256_s11 + $0x170] ss:$20 sps:$4 sm:$0xff]   ;;  %v4094_v14 = vld [vmem:[%s4256_s11 + $0x308] ss:$20 sps:$4 sm:$0xff]  }
  0x99   : > { %3588 = vmatprep.subr.bf16.mxu1 %v4119_v12  ;;  %v4058_v15 = vld [vmem:[%s4256_s11 + $0x19c] ss:$20 sps:$4 sm:$0xff]  }
  0x9f   : > { %1811 = vmatmul.mubr.bf16.gmra.mrb[40].mxu0 %v3974_v1  ;;  %1939 = vmatmul.mubr.bf16.gmra.mrb[40].mxu1 %v3977_v16  ;;  %v4101_v1 = vld [vmem:[%s4256_s11 + $0x330] ss:$20 sps:$4 sm:$0xff]   ;;  %v4123_v16 = vld [vmem:[%s5076_s3 + $0x8] sm:$0xff]  }
  0xa0   : > { %1818 = vmatprep.mubr.bf16.mxu0 %v3979_v17  ;;  %1946 = vmatprep.mubr.bf16.mxu1 %v3982_v18  ;;  %v4126_v17 = vld [vmem:[%s5076_s3 + $0x10] sm:$0xff]   ;;  %v4060_v18 = vld [vmem:[%s4256_s11 + $0x198] ss:$20 sps:$4 sm:$0xff]  }
  0xa7   : > { %1819 = vmatmul.mubr.bf16.gmra.mrb[44].mxu0 %v3981_v19  ;;  %1947 = vmatmul.mubr.bf16.gmra.mrb[44].mxu1 %v3984_v20  ;;  %v4102_v19 = vld [vmem:[%s4256_s11 + $0x358] ss:$20 sps:$4 sm:$0xff]  }
  0xa8   : > { %1826 = vmatprep.mubr.bf16.mxu0 %v3986_v21  ;;  %1954 = vmatprep.mubr.bf16.mxu1 %v3989_v22  ;;  %v4063_v20 = vld [vmem:[%s4256_s11 + $0x1c4] ss:$20 sps:$4 sm:$0xff]   ;;  %v4109_v21 = vld [vmem:[%s4256_s11 + $0x380] ss:$20 sps:$4 sm:$0xff]  }
  0xa9   : > { %v4130_v22 = vld [vmem:[%s5076_s3 + $0x18] sm:$0xff]  }
  0xaf   : > { %1827 = vmatmul.mubr.bf16.gmra.mrb[48].mxu0 %v3988_v23  ;;  %1955 = vmatmul.mubr.bf16.gmra.mrb[48].mxu1 %v3991_v24  ;;  %v4065_v24 = vld [vmem:[%s4256_s11 + $0x1c0] ss:$20 sps:$4 sm:$0xff]  }
  0xb0   : > { %1834 = vmatprep.mubr.bf16.mxu0 %v3993_v25  ;;  %1962 = vmatprep.mubr.bf16.mxu1 %v3996_v26  ;;  %v4110_v26 = vld [vmem:[%s4256_s11 + $0x3a8] ss:$20 sps:$4 sm:$0xff]  }
  0xb7   : > { %1835 = vmatmul.mubr.bf16.gmra.mrb[52].mxu0 %v3995_v27  ;;  %1963 = vmatmul.mubr.bf16.gmra.mrb[52].mxu1 %v3998_v28  ;;  %v4133_v27 = vld [vmem:[%s5076_s3 + $0x20] sm:$0xff]  }
  0xb8   : > { %1842 = vmatprep.mubr.bf16.mxu0 %v4000_v29  ;;  %1970 = vmatprep.mubr.bf16.mxu1 %v4003_v30  ;;  %v4066_v28 = vld [vmem:[%s4256_s11 + $0x1ec] ss:$20 sps:$4 sm:$0xff]   ;;  %v4117_v30 = vld [vmem:[%s4256_s11 + $0x3d0] ss:$20 sps:$4 sm:$0xff]  }
  0xbf   : > { %1843 = vmatmul.mubr.bf16.gmra.mrb[56].mxu0 %v4002_v31  ;;  %1971 = vmatmul.mubr.bf16.gmra.mrb[56].mxu1 %v4005_v32  ;;  %v4137_v32 = vld [vmem:[%s5076_s3 + $0x28] sm:$0xff]  }
  0xc0   : > { %1850 = vmatprep.mubr.bf16.mxu0 %v4009_v33  ;;  %1978 = vmatprep.mubr.bf16.mxu1 %v4012_v34  ;;  %v4068_v34 = vld [vmem:[%s4256_s11 + $0x1e8] ss:$20 sps:$4 sm:$0xff]  }
  0xc7   : > { %1851 = vmatmul.mubr.bf16.gmra.mrb[60].mxu0 %v4011_v35  ;;  %1979 = vmatmul.mubr.bf16.gmra.mrb[60].mxu1 %v4014_v36  ;;  %v4118_v36 = vld [vmem:[%s4256_s11 + $0x3f8] ss:$20 sps:$4 sm:$0xff]  }
  0xc8   : > { %2019 = vmatprep.mubr.bf16.mxu0 %v4020_v37  ;;  %3524 = vmatprep.mubr.msk.bf16.mxu1 %vm1601_vm0, %v4021_v38  ;;  %v4140_v37 = vld [vmem:[%s5076_s3 + $0x30] sm:$0xff]  }
  0xc9   : > { %v4071_v38 = vld [vmem:[%s4256_s11 + $0x214] ss:$20 sps:$4 sm:$0xff]  }
  0xcf   : > { %2020 = vmatmul.mubr.bf16.vlgmr.msra.gmra.mrb[0].mxu0 %v4018_v39  ;;  %3525 = vmatmul.mubr.msk.bf16.vlgmr.msra.gmra.mrb[64].mxu1 %vm1601_vm0, %v4022_v40  ;;  %v4124_v40 = vld [vmem:[%s4256_s11 + $0x420] ss:$20 sps:$4 sm:$0xff]  }
  0xd0   : > { %2027 = vmatprep.mubr.bf16.mxu0 %v4023_v41  ;;  %3528 = vmatprep.mubr.msk.bf16.mxu1 %vm1601_vm0, %v4029_v42  ;;  %v4144_v42 = vld [vmem:[%s5076_s3 + $0x38] sm:$0xff]  }
  0xd1   : > { %3589 = vmatpush3.bf16.msra.mxu1 %v4119_v12  ;;  %v4090_v12 = vld [vmem:[%s4256_s11 + $0x2dc] ss:$20 sps:$4 sm:$0xff]  }
  0xd2   : > { %3590 = vmatprep.subr.bf16.mxu1 %v4123_v16 }
  0xd5   : > { %3591 = vmatpush3.bf16.msra.mxu1 %v4123_v16 }
  0xd6   : > { %3592 = vmatprep.subr.bf16.mxu1 %v4126_v17 }
  0xd7   : > { %2028 = vmatmul.mubr.bf16.gmra.mrb[4].mxu0 %v4025_v43  ;;  %3529 = vmatmul.mubr.msk.bf16.gmra.mrb[68].mxu1 %vm1601_vm0, %v4030_v44  ;;  %v4073_v44 = vld [vmem:[%s4256_s11 + $0x210] ss:$20 sps:$4 sm:$0xff]  }
  0xd8   : > { %2035 = vmatprep.mubr.bf16.mxu0 %v4026_v45  ;;  %3532 = vmatprep.mubr.msk.bf16.mxu1 %vm1601_vm0, %v4037_v46  ;;  %v4125_v46 = vld [vmem:[%s4256_s11 + $0x448] ss:$20 sps:$4 sm:$0xff]  }
  0xd9   : > { %3593 = vmatpush3.bf16.msra.mxu1 %v4126_v17  ;;  %v4095_v17 = vld [vmem:[%s4256_s11 + $0x304] ss:$20 sps:$4 sm:$0xff]  }
  0xda   : > { %3594 = vmatprep.subr.bf16.mxu1 %v4130_v22 }
  0xdd   : > { %3595 = vmatpush3.bf16.msra.mxu1 %v4130_v22 }
  0xde   : > { %3596 = vmatprep.subr.bf16.mxu1 %v4133_v27 }
  0xdf   : > { %2036 = vmatmul.mubr.bf16.gmra.mrb[8].mxu0 %v4028_v47  ;;  %3533 = vmatmul.mubr.msk.bf16.gmra.mrb[72].mxu1 %vm1601_vm0, %v4038_v48  ;;  %v4074_v47 = vld [vmem:[%s4256_s11 + $0x23c] ss:$20 sps:$4 sm:$0xff]  }
  0xe0   : > { %2043 = vmatprep.mubr.bf16.mxu0 %v4031_v49  ;;  %3536 = vmatprep.mubr.msk.bf16.mxu1 %vm1601_vm0, %v4045_v50  ;;  %v4131_v49 = vld [vmem:[%s4256_s11 + $0x470] ss:$20 sps:$4 sm:$0xff]  }
  0xe1   : > { %3597 = vmatpush3.bf16.msra.mxu1 %v4133_v27 }
  0xe2   : > { %3598 = vmatprep.subr.bf16.mxu1 %v4137_v32 }
  0xe5   : > { %3599 = vmatpush3.bf16.msra.mxu1 %v4137_v32 }
  0xe6   : > { %3600 = vmatprep.subr.bf16.mxu1 %v4140_v37 }
  0xe7   : > { %2044 = vmatmul.mubr.bf16.gmra.mrb[12].mxu0 %v4033_v51  ;;  %3537 = vmatmul.mubr.msk.bf16.gmra.mrb[76].mxu1 %vm1601_vm0, %v4046_v52  ;;  %v4076_v52 = vld [vmem:[%s4256_s11 + $0x238] ss:$20 sps:$4 sm:$0xff]  }
  0xe8   : > { %2051 = vmatprep.mubr.bf16.mxu0 %v4034_v53  ;;  %3540 = vmatprep.mubr.msk.bf16.mxu1 %vm1601_vm0, %v4053_v54  ;;  %v4132_v54 = vld [vmem:[%s4256_s11 + $0x498] ss:$20 sps:$4 sm:$0xff]  }
  0xe9   : > { %3601 = vmatpush3.bf16.msra.mxu1 %v4140_v37 }
  0xea   : > { %3602 = vmatprep.subr.bf16.mxu1 %v4144_v42 }
  0xed   : > { %3603 = vmatpush3.bf16.msra.mxu1 %v4144_v42 }
  0xef   : > { %2052 = vmatmul.mubr.bf16.gmra.mrb[16].mxu0 %v4036_v55  ;;  %3541 = vmatmul.mubr.msk.bf16.gmra.mrb[80].mxu1 %vm1601_vm0, %v4054_v56  ;;  %v4079_v55 = vld [vmem:[%s4256_s11 + $0x264] ss:$20 sps:$4 sm:$0xff]  }
  0xf0   : > { %2059 = vmatprep.mubr.bf16.mxu0 %v4039_v57  ;;  %3544 = vmatprep.mubr.msk.bf16.mxu1 %vm1601_vm0, %v4061_v58  ;;  %v4138_v57 = vld [vmem:[%s4256_s11 + $0x4c0] ss:$20 sps:$4 sm:$0xff]  }
  0xf7   : > { %2060 = vmatmul.mubr.bf16.gmra.mrb[20].mxu0 %v4041_v59  ;;  %3545 = vmatmul.mubr.msk.bf16.gmra.mrb[84].mxu1 %vm1601_vm0, %v4062_v60  ;;  %v4081_v60 = vld [vmem:[%s4256_s11 + $0x260] ss:$20 sps:$4 sm:$0xff]  }
  0xf8   : > { %2067 = vmatprep.mubr.bf16.mxu0 %v4042_v61  ;;  %3548 = vmatprep.mubr.msk.bf16.mxu1 %vm1601_vm0, %v4069_v62  ;;  %v4139_v62 = vld [vmem:[%s4256_s11 + $0x4e8] ss:$20 sps:$4 sm:$0xff]  }
  0xff   : > { %2068 = vmatmul.mubr.bf16.gmra.mrb[24].mxu0 %v4044_v63  ;;  %3549 = vmatmul.mubr.msk.bf16.gmra.mrb[88].mxu1 %vm1601_vm0, %v4070_v0  ;;  %v4082_v63 = vld [vmem:[%s4256_s11 + $0x28c] ss:$20 sps:$4 sm:$0xff]  }
 0x100   : > { %2075 = vmatprep.mubr.bf16.mxu0 %v4047_v2  ;;  %3552 = vmatprep.mubr.msk.bf16.mxu1 %vm1601_vm0, %v4077_v3 }
 0x107   : > { %2076 = vmatmul.mubr.bf16.gmra.mrb[28].mxu0 %v4049_v4  ;;  %3553 = vmatmul.mubr.msk.bf16.gmra.mrb[92].mxu1 %vm1601_vm0, %v4078_v5  ;;  %v4084_v4 = vld [vmem:[%s4256_s11 + $0x288] ss:$20 sps:$4 sm:$0xff]  }
 0x108   : > { %2083 = vmatprep.mubr.bf16.mxu0 %v4050_v6  ;;  %3556 = vmatprep.mubr.msk.bf16.mxu1 %vm1601_vm0, %v4085_v7  ;;  %v4087_v6 = vld [vmem:[%s4256_s11 + $0x2b4] ss:$20 sps:$4 sm:$0xff]  }
 0x10f   : > { %2084 = vmatmul.mubr.bf16.gmra.mrb[32].mxu0 %v4052_v8  ;;  %3557 = vmatmul.mubr.msk.bf16.gmra.mrb[96].mxu1 %vm1601_vm0, %v4086_v9 }
 0x110   : > { %2091 = vmatprep.mubr.bf16.mxu0 %v4055_v10  ;;  %3560 = vmatprep.mubr.msk.bf16.mxu1 %vm1601_vm0, %v4093_v11  ;;  %v4089_v10 = vld [vmem:[%s4256_s11 + $0x2b0] ss:$20 sps:$4 sm:$0xff]  }
 0x117   : > { %2092 = vmatmul.mubr.bf16.gmra.mrb[36].mxu0 %v4057_v13  ;;  %3561 = vmatmul.mubr.msk.bf16.gmra.mrb[100].mxu1 %vm1601_vm0, %v4094_v14 }
 0x118   : > { %2099 = vmatprep.mubr.bf16.mxu0 %v4058_v15  ;;  %3564 = vmatprep.mubr.msk.bf16.mxu1 %vm1601_vm0, %v4101_v1  ;;  %v4092_v1 = vld [vmem:[%s4256_s11 + $0x2d8] ss:$20 sps:$4 sm:$0xff]  }
 0x11f   : > { %2100 = vmatmul.mubr.bf16.gmra.mrb[40].mxu0 %v4060_v18  ;;  %3565 = vmatmul.mubr.msk.bf16.gmra.mrb[104].mxu1 %vm1601_vm0, %v4102_v19 }
 0x120   : > { %2107 = vmatprep.mubr.bf16.mxu0 %v4063_v20  ;;  %3568 = vmatprep.mubr.msk.bf16.mxu1 %vm1601_vm0, %v4109_v21  ;;  %v4097_v21 = vld [vmem:[%s4256_s11 + $0x300] ss:$20 sps:$4 sm:$0xff]  }
 0x122   : > { %v4536_v23 = vpop.f32.mrb[0].mxu1 }
 0x123   : > { %v1862_v25 = vpop.f32.mrb[1].mxu1 }
 0x124   : > { %v4544_v29 = vpop.f32.mrb[2].mxu1 }
 0x125   : > { %v1865_v31 = vpop.f32.mrb[3].mxu1 }
 0x126   : > { %v4103_v31 = vld [vmem:[%s4256_s11 + $0x354] ss:$20 sps:$4 sm:$0xff]  }
 0x127   : > { %2108 = vmatmul.mubr.bf16.gmra.mrb[44].mxu0 %v4065_v24  ;;  %3569 = vmatmul.mubr.msk.bf16.gmra.mrb[108].mxu1 %vm1601_vm0, %v4110_v26  ;;  %v4098_v24 = vld [vmem:[%s4256_s11 + $0x32c] ss:$20 sps:$4 sm:$0xff]  }
 0x128   : > { %2115 = vmatprep.mubr.bf16.mxu0 %v4066_v28  ;;  %3572 = vmatprep.mubr.msk.bf16.mxu1 %vm1601_vm0, %v4117_v30  ;;  %v4100_v28 = vld [vmem:[%s4256_s11 + $0x328] ss:$20 sps:$4 sm:$0xff]  }
 0x12a   : > { %v4552_v33 = vpop.f32.mrb[4].mxu1 }
 0x12b   : > { %v1870_v35 = vpop.f32.mrb[5].mxu1 }
 0x12c   : > { %v4560_v39 = vpop.f32.mrb[6].mxu1 }
 0x12d   : > { %v1873_v41 = vpop.f32.mrb[7].mxu1 }
 0x12f   : > { %2116 = vmatmul.mubr.bf16.gmra.mrb[48].mxu0 %v4068_v34  ;;  %3573 = vmatmul.mubr.msk.bf16.gmra.mrb[112].mxu1 %vm1601_vm0, %v4118_v36  ;;  %v4105_v36 = vld [vmem:[%s4256_s11 + $0x350] ss:$20 sps:$4 sm:$0xff]  }
 0x130   : > { %2123 = vmatprep.mubr.bf16.mxu0 %v4071_v38  ;;  %3576 = vmatprep.mubr.msk.bf16.mxu1 %vm1601_vm0, %v4124_v40  ;;  %v4106_v38 = vld [vmem:[%s4256_s11 + $0x37c] ss:$20 sps:$4 sm:$0xff]  }
 0x132   : > { %v4568_v43 = vpop.f32.mrb[8].mxu1 }
 0x133   : > { %v1878_v45 = vpop.f32.mrb[9].mxu1 }
 0x134   : > { %v4573_v48 = vpop.f32.mrb[10].mxu1 }
 0x135   : > { %v1881_v50 = vpop.f32.mrb[11].mxu1 }
 0x137   : > { %2124 = vmatmul.mubr.bf16.gmra.mrb[52].mxu0 %v4073_v44  ;;  %3577 = vmatmul.mubr.msk.bf16.gmra.mrb[116].mxu1 %vm1601_vm0, %v4125_v46  ;;  %v4108_v44 = vld [vmem:[%s4256_s11 + $0x378] ss:$20 sps:$4 sm:$0xff]  }
 0x138   : > { %2131 = vmatprep.mubr.bf16.mxu0 %v4074_v47  ;;  %3580 = vmatprep.mubr.msk.bf16.mxu1 %vm1601_vm0, %v4131_v49  ;;  %v4111_v46 = vld [vmem:[%s4256_s11 + $0x3a4] ss:$20 sps:$4 sm:$0xff]  }
 0x13a   : > { %v4578_v51 = vpop.f32.mrb[12].mxu1 }
 0x13b   : > { %v1886_v53 = vpop.f32.mrb[13].mxu1 }
 0x13c   : > { %v4583_v56 = vpop.f32.mrb[14].mxu1 }
 0x13d   : > { %v1889_v58 = vpop.f32.mrb[15].mxu1 }
 0x13f   : > { %2132 = vmatmul.mubr.bf16.gmra.mrb[56].mxu0 %v4076_v52  ;;  %3581 = vmatmul.mubr.msk.bf16.gmra.mrb[120].mxu1 %vm1601_vm0, %v4132_v54  ;;  %v4113_v52 = vld [vmem:[%s4256_s11 + $0x3a0] ss:$20 sps:$4 sm:$0xff]  }
 0x140   : > { %2139 = vmatprep.mubr.bf16.mxu0 %v4079_v55  ;;  %3584 = vmatprep.mubr.msk.bf16.mxu1 %vm1601_vm0, %v4138_v57  ;;  %v4114_v54 = vld [vmem:[%s4256_s11 + $0x3cc] ss:$20 sps:$4 sm:$0xff]  }
 0x142   : > { %v4588_v59 = vpop.f32.mrb[16].mxu1 }
 0x143   : > { %v1894_v61 = vpop.f32.mrb[17].mxu1 }
 0x144   : > { %v4593_v0 = vpop.f32.mrb[18].mxu1 }
 0x145   : > { %v1897_v2 = vpop.f32.mrb[19].mxu1 }
 0x147   : > { %2140 = vmatmul.mubr.bf16.gmra.mrb[60].mxu0 %v4081_v60  ;;  %3585 = vmatmul.mubr.msk.bf16.gmra.mrb[124].mxu1 %vm1601_vm0, %v4139_v62  ;;  %v4116_v60 = vld [vmem:[%s4256_s11 + $0x3c8] ss:$20 sps:$4 sm:$0xff]  }
 0x148   : > { %2147 = vmatprep.mubr.bf16.mxu0 %v4082_v63  ;;  %v4120_v62 = vld [vmem:[%s4256_s11 + $0x3f4] ss:$20 sps:$4 sm:$0xff]  }
 0x14a   : > { %v4596_v3 = vpop.f32.mrb[20].mxu1 }
 0x14b   : > { %v1902_v5 = vpop.f32.mrb[21].mxu1 }
 0x14c   : > { %v4600_v7 = vpop.f32.mrb[22].mxu1  ;;  %v4122_v5 = vld [vmem:[%s4256_s11 + $0x3f0] ss:$20 sps:$4 sm:$0xff]  }
 0x14d   : > { %v1905_v8 = vpop.f32.mrb[23].mxu1 }
 0x14f   : > { %2148 = vmatmul.mubr.bf16.gmra.mrb[64].mxu0 %v4084_v4 }
 0x150   : > { %2155 = vmatprep.mubr.bf16.mxu0 %v4087_v6 }
 0x152   : > { %v4602_v9 = vpop.f32.mrb[24].mxu1 }
 0x153   : > { %v1910_v11 = vpop.f32.mrb[25].mxu1 }
 0x154   : > { %v4606_v13 = vpop.f32.mrb[26].mxu1 }
 0x155   : > { %v1913_v14 = vpop.f32.mrb[27].mxu1 }
 0x156   : > { %v4129_v14 = vld [vmem:[%s4256_s11 + $0x418] ss:$20 sps:$4 sm:$0xff]  }
 0x157   : > { %2156 = vmatmul.mubr.bf16.gmra.mrb[68].mxu0 %v4089_v10  ;;  %v4127_v10 = vld [vmem:[%s4256_s11 + $0x41c] ss:$20 sps:$4 sm:$0xff]  }
 0x158   : > { %2163 = vmatprep.mubr.bf16.mxu0 %v4090_v12 }
 0x15a   : > { %v4608_v15 = vpop.f32.mrb[28].mxu1 }
 0x15b   : > { %v1918_v16 = vpop.f32.mrb[29].mxu1 }
 0x15c   : > { %v4612_v18 = vpop.f32.mrb[30].mxu1 }
 0x15d   : > { %v1921_v19 = vpop.f32.mrb[31].mxu1 }
 0x15f   : > { %2164 = vmatmul.mubr.bf16.gmra.mrb[72].mxu0 %v4092_v1 }
 0x160   : > { %2171 = vmatprep.mubr.bf16.mxu0 %v4095_v17  ;;  %v4134_v17 = vld [vmem:[%s4256_s11 + $0x444] ss:$20 sps:$4 sm:$0xff]  }
 0x162   : > { %v4614_v20 = vpop.f32.mrb[32].mxu1 }
 0x163   : > { %v1926_v22 = vpop.f32.mrb[33].mxu1 }
 0x164   : > { %v4618_v25 = vpop.f32.mrb[34].mxu1 }
 0x165   : > { %v1929_v26 = vpop.f32.mrb[35].mxu1 }
 0x167   : > { %2172 = vmatmul.mubr.bf16.gmra.mrb[76].mxu0 %v4097_v21  ;;  %v4665_v21 = vld [vmem:[%s5075_s2] ss:$0 sm:$0xff] }
 0x168   : > { %2179 = vmatprep.mubr.bf16.mxu0 %v4098_v24 }
 0x16a   : > { %v4620_v27 = vpop.f32.mrb[36].mxu1 }
 0x16b   : > { %v1934_v30 = vpop.f32.mrb[37].mxu1 }
 0x16c   : > { %v4624_v32 = vpop.f32.mrb[38].mxu1 }
 0x16d   : > { %v1937_v34 = vpop.f32.mrb[39].mxu1 }
 0x16f   : > { %2180 = vmatmul.mubr.bf16.gmra.mrb[80].mxu0 %v4100_v28 }
 0x170   : > { %2187 = vmatprep.mubr.bf16.mxu0 %v4103_v31  ;;  %v4136_v31 = vld [vmem:[%s4256_s11 + $0x440] ss:$20 sps:$4 sm:$0xff]  }
 0x172   : > { %v4626_v35 = vpop.f32.mrb[40].mxu1 }
 0x173   : > { %5079 = vst [vmem:[#allocation2_spill] sm:$0xff] %v4626_v35  ;;  %v1942_v37 = vpop.f32.mrb[41].mxu1 }
 0x174   : > { %v4630_v40 = vpop.f32.mrb[42].mxu1  ;;  %v4141_v37 = vld [vmem:[%s4256_s11 + $0x46c] ss:$20 sps:$4 sm:$0xff]  }
 0x175   : > { %5080 = vst [vmem:[#allocation3_spill] sm:$0xff] %v4630_v40  ;;  %v1945_v41 = vpop.f32.mrb[43].mxu1 }
 0x177   : > { %2188 = vmatmul.mubr.bf16.gmra.mrb[84].mxu0 %v4105_v36 }
 0x178   : > { %2195 = vmatprep.mubr.bf16.mxu0 %v4106_v38 }
 0x17a   : > { %v4632_v42 = vpop.f32.mrb[44].mxu1 }
 0x17b   : > { %5081 = vst [vmem:[#allocation4_spill] sm:$0xff] %v4632_v42  ;;  %v1950_v45 = vpop.f32.mrb[45].mxu1 }
 0x17c   : > { %v4636_v47 = vpop.f32.mrb[46].mxu1 }
 0x17d   : > { %5082 = vst [vmem:[#allocation5_spill] sm:$0xff] %v4636_v47  ;;  %v1953_v49 = vpop.f32.mrb[47].mxu1 }
 0x17f   : > { %2196 = vmatmul.mubr.bf16.gmra.mrb[88].mxu0 %v4108_v44 }
 0x180   : > { %2203 = vmatprep.mubr.bf16.mxu0 %v4111_v46 }
 0x182   : > { %v4638_v50 = vpop.f32.mrb[48].mxu1 }
 0x183   : > { %5083 = vst [vmem:[#allocation6_spill] sm:$0xff] %v4638_v50  ;;  %v1958_v53 = vpop.f32.mrb[49].mxu1 }
 0x184   : > { %v4642_v55 = vpop.f32.mrb[50].mxu1 }
 0x185   : > { %5084 = vst [vmem:[#allocation7_spill] sm:$0xff] %v4642_v55  ;;  %v1961_v57 = vpop.f32.mrb[51].mxu1 }
 0x187   : > { %2204 = vmatmul.mubr.bf16.gmra.mrb[92].mxu0 %v4113_v52 }
 0x188   : > { %2211 = vmatprep.mubr.bf16.mxu0 %v4114_v54 }
 0x18a   : > { %v4644_v58 = vpop.f32.mrb[52].mxu1 }
 0x18b   : > { %5085 = vst [vmem:[#allocation8_spill] sm:$0xff] %v4644_v58  ;;  %v1966_v61 = vpop.f32.mrb[53].mxu1 }
 0x18c   : > { %v4648_v63 = vpop.f32.mrb[54].mxu1 }
 0x18d   : > { %5086 = vst [vmem:[#allocation9_spill] sm:$0xff] %v4648_v63  ;;  %v1969_v2 = vpop.f32.mrb[55].mxu1 }
 0x18f   : > { %2212 = vmatmul.mubr.bf16.gmra.mrb[96].mxu0 %v4116_v60 }
 0x190   : > { %2219 = vmatprep.mubr.bf16.mxu0 %v4120_v62  ;;  %v4143_v62 = vld [vmem:[%s4256_s11 + $0x468] ss:$20 sps:$4 sm:$0xff]  }
 0x192   : > { %v4650_v4 = vpop.f32.mrb[56].mxu1 }
 0x193   : > { %5087 = vst [vmem:[#allocation10_spill] sm:$0xff] %v4650_v4  ;;  %v1974_v6 = vpop.f32.mrb[57].mxu1 }
 0x194   : > { %v4653_v8 = vpop.f32.mrb[58].mxu1 }
 0x195   : > { %5088 = vst [vmem:[#allocation11_spill] sm:$0xff] %v4653_v8  ;;  %v1977_v11 = vpop.f32.mrb[59].mxu1 }
 0x197   : > { %2220 = vmatmul.mubr.bf16.gmra.mrb[100].mxu0 %v4122_v5 }
 0x198   : > { %2227 = vmatprep.mubr.bf16.mxu0 %v4127_v10  ;;  %v4145_v10 = vld [vmem:[%s4256_s11 + $0x494] ss:$20 sps:$4 sm:$0xff]  }
 0x19a   : > { %v4656_v12 = vpop.f32.mrb[60].mxu1 }
 0x19b   : > { %5089 = vst [vmem:[#allocation12_spill] sm:$0xff] %v4656_v12  ;;  %v1982_v1 = vpop.f32.mrb[61].mxu1 }
 0x19c   : > { %v4659_v16 = vpop.f32.mrb[62].mxu1 }
 0x19d   : > { %5090 = vst [vmem:[#allocation13_spill] sm:$0xff] %v4659_v16  ;;  %v1985_v19 = vpop.f32.mrb[63].mxu1 }
 0x19f   : > { %2228 = vmatmul.mubr.bf16.gmra.mrb[104].mxu0 %v4129_v14 }
 0x1a0   : > { %2235 = vmatprep.mubr.bf16.mxu0 %v4134_v17 }
 0x1a2   : > { %v2021_v22 = vpop.f32.mrb[0].mxu0  ;;  %v3526_v24 = vpop.f32.mrb[64].mxu1 }
 0x1a3   : > { %v3700_v26 = vadd.f32 %v4665_v21, %v2021_v22  ;;  %v2023_v28 = vpop.f32.mrb[1].mxu0  ;;  %v2310_v30 = vpop.f32.mrb[65].mxu1 }
 0x1a4   : > { %v2024_v34 = vpop.f32.mrb[2].mxu0  ;;  %v3527_v36 = vpop.f32.mrb[66].mxu1 }
 0x1a5   : > { %v3701_v38 = vadd.f32 %v4665_v21, %v2024_v34  ;;  %v2311_v41 = vadd.f32 %v3700_v26, %v2310_v30  ;;  %v2026_v44 = vpop.f32.mrb[3].mxu0  ;;  %v2313_v45 = vpop.f32.mrb[67].mxu1 }
 0x1a6   : > { %v4148_v44 = vld [vmem:[%s4256_s11 + $0x4bc] ss:$20 sps:$4 sm:$0xff]  }
 0x1a7   : > { %v2314_v46 = vadd.f32 %v3701_v38, %v2313_v45  ;;  %2236 = vmatmul.mubr.bf16.gmra.mrb[108].mxu0 %v4136_v31  ;;  %v2565_v49 = vmax.f32 %v2311_v41, 0.0  ;;  %v4147_v38 = vld [vmem:[%s4256_s11 + $0x490] ss:$20 sps:$4 sm:$0xff]  }
 0x1a8   : > { %2243 = vmatprep.mubr.bf16.mxu0 %v4141_v37 }
 0x1a9   : > { %v2566_v52 = vmax.f32 %v2314_v46, 0.0 }
 0x1aa   : > { %v2029_v53 = vpop.f32.mrb[4].mxu0  ;;  %v3530_v54 = vpop.f32.mrb[68].mxu1 }
 0x1ab   : > { %v2629_v57 = vpack.c.bf16 %v2566_v52, %v2565_v49  ;;  %v3702_v60 = vadd.f32 %v4665_v21, %v2029_v53  ;;  %v2031_v61 = vpop.f32.mrb[5].mxu0  ;;  %v2326_v2 = vpop.f32.mrb[69].mxu1 }
 0x1ac   : > { %v2032_v5 = vpop.f32.mrb[6].mxu0  ;;  %v3531_v6 = vpop.f32.mrb[70].mxu1 }
 0x1ad   : > { %v2319_v11 = vadd.f32 %v3702_v60, %v3526_v24  ;;  %v3703_v14 = vadd.f32 %v4665_v21, %v2032_v5  ;;  %v2034_v1 = vpop.f32.mrb[7].mxu0  ;;  %3604 = vmatprep.mubr.bf16.mxu1 %v2629_v57  ;;  %v2329_v17 = vpop.f32.mrb[71].mxu1 }
 0x1af   : > { %v2322_v19 = vadd.f32 %v3703_v14, %v3527_v36  ;;  %2244 = vmatmul.mubr.bf16.gmra.mrb[112].mxu0 %v4143_v62  ;;  %v2567_v22 = vmax.f32 %v2319_v11, 0.0  ;;  %v4150_v14 = vld [vmem:[%s4256_s11 + $0x4b8] ss:$20 sps:$4 sm:$0xff]  }
 0x1b0   : > { %2251 = vmatprep.mubr.bf16.mxu0 %v4145_v10 }
 0x1b1   : > { %v2568_v26 = vmax.f32 %v2322_v19, 0.0 }
 0x1b2   : > { %v2037_v28 = vpop.f32.mrb[8].mxu0  ;;  %v4675_v30 = vpop.f32.mrb[72].mxu1 }
 0x1b3   : > { %v2630_v31 = vpack.c.bf16 %v2568_v26, %v2567_v22  ;;  %v3704_v34 = vadd.f32 %v4665_v21, %v2037_v28  ;;  %v2039_v37 = vpop.f32.mrb[9].mxu0  ;;  %v2342_v24 = vpop.f32.mrb[73].mxu1 }
 0x1b4   : > { %v2040_v41 = vpop.f32.mrb[10].mxu0  ;;  %v3535_v45 = vpop.f32.mrb[74].mxu1 }
 0x1b5   : > { %v3705_v46 = vadd.f32 %v4665_v21, %v2040_v41  ;;  %v2327_v36 = vadd.f32 %v3704_v34, %v2326_v2  ;;  %v2042_v49 = vpop.f32.mrb[11].mxu0  ;;  %3605 = vmatmul.mubr.bf16.vlgmr.msra.gmra.mrb[128].mxu1 %v2630_v31  ;;  %v2345_v52 = vpop.f32.mrb[75].mxu1  ;;  %v4151_v2 = vld [vmem:[%s4256_s11 + $0x4e4] ss:$20 sps:$4 sm:$0xff]  }
 0x1b7   : > { %v2330_v53 = vadd.f32 %v3705_v46, %v2329_v17  ;;  %2252 = vmatmul.mubr.bf16.gmra.mrb[116].mxu0 %v4147_v38  ;;  %v2569_v57 = vmax.f32 %v2327_v36, 0.0 }
 0x1b8   : > { %2259 = vmatprep.mubr.bf16.mxu0 %v4148_v44 }
 0x1b9   : > { %v2570_v60 = vmax.f32 %v2330_v53, 0.0  ;;  %v4153_v53 = vld [vmem:[%s4256_s11 + $0x4e0] ss:$20 sps:$4 sm:$0xff]   ;;  %s3199_s11 = sshll.u32 %s5118_s24, 3 }
 0x1ba   : > { %v2045_v61 = vpop.f32.mrb[12].mxu0  ;;  %v4681_v62 = vpop.f32.mrb[76].mxu1  ;;  %s4916_s16 = scalar_lea.vmem %s5078_s5, %s3199_s11 }
 0x1bb   : > { %v2631_v5 = vpack.c.bf16 %v2570_v60, %v2569_v57  ;;  %v3706_v10 = vadd.f32 %v4665_v21, %v2045_v61  ;;  %v2047_v11 = vpop.f32.mrb[13].mxu0  ;;  %v2358_v1 = vpop.f32.mrb[77].mxu1 }
 0x1bc   : > { %v2048_v19 = vpop.f32.mrb[14].mxu0  ;;  %v4686_v22 = vpop.f32.mrb[78].mxu1 }
 0x1bd   : > { %v2335_v26 = vadd.f32 %v3706_v10, %v3530_v54  ;;  %v3707_v17 = vadd.f32 %v4665_v21, %v2048_v19  ;;  %v2050_v28 = vpop.f32.mrb[15].mxu0  ;;  %3608 = vmatprep.mubr.bf16.mxu1 %v2631_v5  ;;  %v2361_v31 = vpop.f32.mrb[79].mxu1 }
 0x1bf   : > { %v2338_v34 = vadd.f32 %v3707_v17, %v3531_v6  ;;  %2260 = vmatmul.mubr.bf16.gmra.mrb[120].mxu0 %v4150_v14  ;;  %v2571_v37 = vmax.f32 %v2335_v26, 0.0 }
 0x1c0   : > { %2267 = vmatprep.mubr.bf16.mxu0 %v4151_v2 }
 0x1c1   : > { %v2572_v38 = vmax.f32 %v2338_v34, 0.0 }
 0x1c2   : > { %v2053_v41 = vpop.f32.mrb[16].mxu0  ;;  %v4689_v44 = vpop.f32.mrb[80].mxu1 }
 0x1c3   : > { %v3708_v46 = vadd.f32 %v4665_v21, %v2053_v41  ;;  %v2055_v36 = vpop.f32.mrb[17].mxu0  ;;  %v2632_v49 = vpack.c.bf16 %v2572_v38, %v2571_v37  ;;  %v4693_v57 = vpop.f32.mrb[81].mxu1 }
 0x1c4   : > { %v2056_v54 = vpop.f32.mrb[18].mxu0  ;;  %v4695_v60 = vpop.f32.mrb[82].mxu1 }
 0x1c5   : > { %v3709_v61 = vadd.f32 %v4665_v21, %v2056_v54  ;;  %v2343_v6 = vadd.f32 %v3708_v46, %v2342_v24  ;;  %v2058_v5 = vpop.f32.mrb[19].mxu0  ;;  %3609 = vmatmul.mubr.bf16.gmra.mrb[132].mxu1 %v2632_v49  ;;  %v4698_v10 = vpop.f32.mrb[83].mxu1 }
 0x1c7   : > { %v2346_v11 = vadd.f32 %v3709_v61, %v2345_v52  ;;  %2268 = vmatmul.mubr.bf16.gmra.mrb[124].mxu0 %v4153_v53  ;;  %v2573_v14 = vmax.f32 %v2343_v6, 0.0 }
 0x1c9   : > { %v2574_v19 = vmax.f32 %v2346_v11, 0.0 }
 0x1ca   : > { %v2061_v2 = vpop.f32.mrb[20].mxu0  ;;  %v4700_v26 = vpop.f32.mrb[84].mxu1 }
 0x1cb   : > { %v2633_v17 = vpack.c.bf16 %v2574_v19, %v2573_v14  ;;  %v3710_v28 = vadd.f32 %v4665_v21, %v2061_v2  ;;  %v2063_v34 = vpop.f32.mrb[21].mxu0  ;;  %v4703_v37 = vpop.f32.mrb[85].mxu1 }
 0x1cc   : > { %v2064_v38 = vpop.f32.mrb[22].mxu0  ;;  %v4705_v41 = vpop.f32.mrb[86].mxu1 }
 0x1cd   : > { %v2351_v24 = vadd.f32 %v3710_v28, %v4675_v30  ;;  %v3711_v46 = vadd.f32 %v4665_v21, %v2064_v38  ;;  %v2066_v52 = vpop.f32.mrb[23].mxu0  ;;  %3612 = vmatprep.mubr.bf16.mxu1 %v2633_v17  ;;  %v4709_v36 = vpop.f32.mrb[87].mxu1 }
 0x1cf   : > { %v2354_v49 = vadd.f32 %v3711_v46, %v3535_v45  ;;  %v2575_v53 = vmax.f32 %v2351_v24, 0.0 }
 0x1d1   : > { %v2576_v54 = vmax.f32 %v2354_v49, 0.0 }
 0x1d2   : > { %v2069_v61 = vpop.f32.mrb[24].mxu0  ;;  %v4711_v6 = vpop.f32.mrb[88].mxu1 }
 0x1d3   : > { %v3712_v5 = vadd.f32 %v4665_v21, %v2069_v61  ;;  %v2071_v11 = vpop.f32.mrb[25].mxu0  ;;  %v2634_v14 = vpack.c.bf16 %v2576_v54, %v2575_v53  ;;  %v4714_v19 = vpop.f32.mrb[89].mxu1 }
 0x1d4   : > { %v2072_v2 = vpop.f32.mrb[26].mxu0  ;;  %v4716_v30 = vpop.f32.mrb[90].mxu1 }
 0x1d5   : > { %v3713_v28 = vadd.f32 %v4665_v21, %v2072_v2  ;;  %v2359_v17 = vadd.f32 %v3712_v5, %v2358_v1  ;;  %v2074_v34 = vpop.f32.mrb[27].mxu0  ;;  %3613 = vmatmul.mubr.bf16.gmra.mrb[136].mxu1 %v2634_v14  ;;  %v4719_v45 = vpop.f32.mrb[91].mxu1 }
 0x1d7   : > { %v2362_v38 = vadd.f32 %v3713_v28, %v2361_v31  ;;  %v2577_v24 = vmax.f32 %v2359_v17, 0.0 }
 0x1d9   : > { %v2578_v46 = vmax.f32 %v2362_v38, 0.0 }
 0x1da   : > { %v2077_v52 = vpop.f32.mrb[28].mxu0  ;;  %v4721_v49 = vpop.f32.mrb[92].mxu1 }
 0x1db   : > { %v2635_v61 = vpack.c.bf16 %v2578_v46, %v2577_v24  ;;  %v3714_v53 = vadd.f32 %v4665_v21, %v2077_v52  ;;  %v2079_v54 = vpop.f32.mrb[29].mxu0  ;;  %v4724_v11 = vpop.f32.mrb[93].mxu1 }
 0x1dc   : > { %v2080_v16 = vpop.f32.mrb[30].mxu0  ;;  %v4726_v12 = vpop.f32.mrb[94].mxu1 }
 0x1dd   : > { %v2367_v1 = vadd.f32 %v3714_v53, %v4681_v62  ;;  %v3715_v5 = vadd.f32 %v4665_v21, %v2080_v16  ;;  %v2082_v14 = vpop.f32.mrb[31].mxu0  ;;  %3616 = vmatprep.mubr.bf16.mxu1 %v2635_v61  ;;  %v4730_v31 = vpop.f32.mrb[95].mxu1 }
 0x1df   : > { %v2370_v2 = vadd.f32 %v3715_v5, %v4686_v22  ;;  %v2579_v28 = vmax.f32 %v2367_v1, 0.0 }
 0x1e1   : > { %v2580_v17 = vmax.f32 %v2370_v2, 0.0 }
 0x1e2   : > { %v2085_v34 = vpop.f32.mrb[32].mxu0  ;;  %v4733_v38 = vpop.f32.mrb[96].mxu1 }
 0x1e3   : > { %v3716_v24 = vadd.f32 %v4665_v21, %v2085_v34  ;;  %v2087_v46 = vpop.f32.mrb[33].mxu0  ;;  %v2636_v52 = vpack.c.bf16 %v2580_v17, %v2579_v28  ;;  %v4736_v54 = vpop.f32.mrb[97].mxu1 }
 0x1e4   : > { %v2088_v62 = vpop.f32.mrb[34].mxu0  ;;  %v4738_v53 = vpop.f32.mrb[98].mxu1 }
 0x1e5   : > { %v3717_v16 = vadd.f32 %v4665_v21, %v2088_v62  ;;  %v2375_v61 = vadd.f32 %v3716_v24, %v4693_v57  ;;  %v2090_v14 = vpop.f32.mrb[35].mxu0  ;;  %3617 = vmatmul.mubr.bf16.gmra.mrb[140].mxu1 %v2636_v52  ;;  %v4742_v22 = vpop.f32.mrb[99].mxu1 }
 0x1e7   : > { %v2378_v1 = vadd.f32 %v3717_v16, %v4698_v10  ;;  %v2581_v5 = vmax.f32 %v2375_v61, 0.0 }
 0x1e9   : > { %v2582_v2 = vmax.f32 %v2378_v1, 0.0 }
 0x1ea   : > { %v2093_v34 = vpop.f32.mrb[36].mxu0  ;;  %v4745_v46 = vpop.f32.mrb[100].mxu1 }
 0x1eb   : > { %v2637_v28 = vpack.c.bf16 %v2582_v2, %v2581_v5  ;;  %v3718_v17 = vadd.f32 %v4665_v21, %v2093_v34  ;;  %v2095_v8 = vpop.f32.mrb[37].mxu0  ;;  %v4748_v4 = vpop.f32.mrb[101].mxu1 }
 0x1ec   : > { %v2096_v62 = vpop.f32.mrb[38].mxu0  ;;  %v4750_v63 = vpop.f32.mrb[102].mxu1 }
 0x1ed   : > { %v2383_v57 = vadd.f32 %v3718_v17, %v4689_v44  ;;  %v3719_v24 = vadd.f32 %v4665_v21, %v2096_v62  ;;  %v2098_v52 = vpop.f32.mrb[39].mxu0  ;;  %3620 = vmatprep.mubr.bf16.mxu1 %v2637_v28  ;;  %v4754_v10 = vpop.f32.mrb[103].mxu1 }
 0x1ef   : > { %v2386_v16 = vadd.f32 %v3719_v24, %v4695_v60  ;;  %v2583_v61 = vmax.f32 %v2383_v57, 0.0 }
 0x1f1   : > { %v2584_v14 = vmax.f32 %v2386_v16, 0.0 }
 0x1f2   : > { %v2101_v1 = vpop.f32.mrb[40].mxu0  ;;  %v4757_v5 = vpop.f32.mrb[104].mxu1 }
 0x1f3   : > { %v3720_v8 = vadd.f32 %v4665_v21, %v2101_v1  ;;  %v2103_v2 = vpop.f32.mrb[41].mxu0  ;;  %v2638_v34 = vpack.c.bf16 %v2584_v14, %v2583_v61  ;;  %v4760_v58 = vpop.f32.mrb[105].mxu1 }
 0x1f4   : > { %v2104_v44 = vpop.f32.mrb[42].mxu0  ;;  %v4762_v17 = vpop.f32.mrb[106].mxu1 }
 0x1f5   : > { %v3721_v28 = vadd.f32 %v4665_v21, %v2104_v44  ;;  %v2391_v62 = vadd.f32 %v3720_v8, %v4703_v37  ;;  %v2106_v52 = vpop.f32.mrb[43].mxu0  ;;  %3621 = vmatmul.mubr.bf16.gmra.mrb[144].mxu1 %v2638_v34  ;;  %v4766_v60 = vpop.f32.mrb[107].mxu1 }
 0x1f7   : > { %v2394_v57 = vadd.f32 %v3721_v28, %v4709_v36  ;;  %v2585_v24 = vmax.f32 %v2391_v62, 0.0 }
 0x1f9   : > { %v2586_v16 = vmax.f32 %v2394_v57, 0.0 }
 0x1fa   : > { %v2109_v1 = vpop.f32.mrb[44].mxu0  ;;  %v4769_v2 = vpop.f32.mrb[108].mxu1 }
 0x1fb   : > { %v2639_v61 = vpack.c.bf16 %v2586_v16, %v2585_v24  ;;  %v3722_v14 = vadd.f32 %v4665_v21, %v2109_v1  ;;  %v2111_v55 = vpop.f32.mrb[45].mxu0  ;;  %v4772_v50 = vpop.f32.mrb[109].mxu1 }
 0x1fc   : > { %v2112_v44 = vpop.f32.mrb[46].mxu0  ;;  %v4774_v47 = vpop.f32.mrb[110].mxu1 }
 0x1fd   : > { %v2399_v37 = vadd.f32 %v3722_v14, %v4700_v26  ;;  %v3723_v8 = vadd.f32 %v4665_v21, %v2112_v44  ;;  %v2114_v34 = vpop.f32.mrb[47].mxu0  ;;  %3624 = vmatprep.mubr.bf16.mxu1 %v2639_v61  ;;  %v4778_v36 = vpop.f32.mrb[111].mxu1 }
 0x1ff   : > { %v2402_v28 = vadd.f32 %v3723_v8, %v4705_v41  ;;  %v2587_v62 = vmax.f32 %v2399_v37, 0.0 }
 0x201   : > { %v2588_v52 = vmax.f32 %v2402_v28, 0.0 }
 0x202   : > { %v2117_v57 = vpop.f32.mrb[48].mxu0  ;;  %v4781_v24 = vpop.f32.mrb[112].mxu1 }
 0x203   : > { %v3724_v55 = vadd.f32 %v4665_v21, %v2117_v57  ;;  %v2119_v16 = vpop.f32.mrb[49].mxu0  ;;  %v2640_v1 = vpack.c.bf16 %v2588_v52, %v2587_v62  ;;  %v4784_v42 = vpop.f32.mrb[113].mxu1 }
 0x204   : > { %v2120_v26 = vpop.f32.mrb[50].mxu0  ;;  %v4786_v14 = vpop.f32.mrb[114].mxu1 }
 0x205   : > { %5091 = vst [vmem:[#allocation14_spill] sm:$0xff] %v4786_v14  ;;  %v3725_v61 = vadd.f32 %v4665_v21, %v2120_v26  ;;  %v2407_v44 = vadd.f32 %v3724_v55, %v4714_v19  ;;  %v2122_v34 = vpop.f32.mrb[51].mxu0  ;;  %3625 = vmatmul.mubr.bf16.gmra.mrb[148].mxu1 %v2640_v1  ;;  %v4790_v41 = vpop.f32.mrb[115].mxu1 }
 0x207   : > { %v2410_v37 = vadd.f32 %v3725_v61, %v4719_v45  ;;  %v2589_v8 = vmax.f32 %v2407_v44, 0.0 }
 0x209   : > { %v2590_v28 = vmax.f32 %v2410_v37, 0.0 }
 0x20a   : > { %v2125_v57 = vpop.f32.mrb[52].mxu0  ;;  %v4793_v16 = vpop.f32.mrb[116].mxu1 }
 0x20b   : > { %v2641_v62 = vpack.c.bf16 %v2590_v28, %v2589_v8  ;;  %v3726_v52 = vadd.f32 %v4665_v21, %v2125_v57  ;;  %v2127_v40 = vpop.f32.mrb[53].mxu0  ;;  %v4796_v35 = vpop.f32.mrb[117].mxu1 }
 0x20c   : > { %v2128_v26 = vpop.f32.mrb[54].mxu0  ;;  %v4798_v14 = vpop.f32.mrb[118].mxu1 }
 0x20d   : > { %5092 = vst [vmem:[#allocation15_spill] sm:$0xff] %v4798_v14  ;;  %v2415_v19 = vadd.f32 %v3726_v52, %v4711_v6  ;;  %v3727_v55 = vadd.f32 %v4665_v21, %v2128_v26  ;;  %v2130_v1 = vpop.f32.mrb[55].mxu0  ;;  %3628 = vmatprep.mubr.bf16.mxu1 %v2641_v62  ;;  %v4802_v45 = vpop.f32.mrb[119].mxu1 }
 0x20f   : > { %v2418_v61 = vadd.f32 %v3727_v55, %v4716_v30  ;;  %v2591_v44 = vmax.f32 %v2415_v19, 0.0 }
 0x211   : > { %v2592_v34 = vmax.f32 %v2418_v61, 0.0 }
 0x212   : > { %v2133_v37 = vpop.f32.mrb[56].mxu0  ;;  %v4805_v8 = vpop.f32.mrb[120].mxu1 }
 0x213   : > { %5093 = vst [vmem:[#allocation16_spill] sm:$0xff] %v4805_v8  ;;  %v3728_v40 = vadd.f32 %v4665_v21, %v2133_v37  ;;  %v2135_v28 = vpop.f32.mrb[57].mxu0  ;;  %v2642_v57 = vpack.c.bf16 %v2592_v34, %v2591_v44  ;;  %v4808_v14 = vpop.f32.mrb[121].mxu1 }
 0x214   : > { %5094 = vst [vmem:[#allocation17_spill] sm:$0xff] %v4808_v14  ;;  %v2136_v6 = vpop.f32.mrb[58].mxu0  ;;  %v4810_v52 = vpop.f32.mrb[122].mxu1 }
 0x215   : > { %5095 = vst [vmem:[#allocation18_spill] sm:$0xff] %v4810_v52  ;;  %v3729_v62 = vadd.f32 %v4665_v21, %v2136_v6  ;;  %v2423_v26 = vadd.f32 %v3728_v40, %v4724_v11  ;;  %v2138_v1 = vpop.f32.mrb[59].mxu0  ;;  %3629 = vmatmul.mubr.bf16.gmra.mrb[152].mxu1 %v2642_v57  ;;  %v4814_v30 = vpop.f32.mrb[123].mxu1 }
 0x217   : > { %v2426_v19 = vadd.f32 %v3729_v62, %v4730_v31  ;;  %v2593_v55 = vmax.f32 %v2423_v26, 0.0  ;;  %v1861_v26 = vadd.f32 %v4665_v21, %v4536_v23  ;;  %v1869_v23 = vadd.f32 %v4665_v21, %v4552_v33 }
 0x218   : > { %v1877_v33 = vadd.f32 %v4665_v21, %v4568_v43  ;;  %v1885_v43 = vadd.f32 %v4665_v21, %v4578_v51  ;;  %v1893_v51 = vadd.f32 %v4665_v21, %v4588_v59  ;;  %v1901_v59 = vadd.f32 %v4665_v21, %v4596_v3 }
 0x219   : > { %v2594_v61 = vmax.f32 %v2426_v19, 0.0  ;;  %v1909_v3 = vadd.f32 %v4665_v21, %v4602_v9  ;;  %v1917_v9 = vadd.f32 %v4665_v21, %v4608_v15  ;;  %v1925_v15 = vadd.f32 %v4665_v21, %v4614_v20 }
 0x21a   : > { %v2141_v37 = vpop.f32.mrb[60].mxu0  ;;  %v4817_v28 = vpop.f32.mrb[124].mxu1  ;;  %v1933_v20 = vadd.f32 %v4665_v21, %v4620_v27 }
 0x21b   : > { %v2643_v44 = vpack.c.bf16 %v2594_v61, %v2593_v55  ;;  %v3730_v34 = vadd.f32 %v4665_v21, %v2141_v37  ;;  %v2143_v8 = vpop.f32.mrb[61].mxu0  ;;  %v4820_v52 = vpop.f32.mrb[125].mxu1  ;;  %v1864_v55 = vadd.f32 %v4665_v21, %v4544_v29  ;;  %v1872_v29 = vadd.f32 %v4665_v21, %v4560_v39 }
 0x21c   : > { %v2144_v6 = vpop.f32.mrb[62].mxu0  ;;  %v4822_v14 = vpop.f32.mrb[126].mxu1  ;;  %v1880_v39 = vadd.f32 %v4665_v21, %v4573_v48  ;;  %v1888_v48 = vadd.f32 %v4665_v21, %v4583_v56  ;;  %v1896_v56 = vadd.f32 %v4665_v21, %v4593_v0  ;;  %v1904_v0 = vadd.f32 %v4665_v21, %v4600_v7 }
 0x21d   : > { %v2431_v11 = vadd.f32 %v3730_v34, %v4721_v49  ;;  %v3731_v40 = vadd.f32 %v4665_v21, %v2144_v6  ;;  %v2146_v57 = vpop.f32.mrb[63].mxu0  ;;  %3632 = vmatprep.mubr.bf16.mxu1 %v2643_v44  ;;  %v4826_v31 = vpop.f32.mrb[127].mxu1  ;;  %v1912_v7 = vadd.f32 %v4665_v21, %v4606_v13  ;;  %v1920_v13 = vadd.f32 %v4665_v21, %v4612_v18 }
 0x21e   : > { %v1928_v18 = vadd.f32 %v4665_v21, %v4618_v25  ;;  %v1936_v25 = vadd.f32 %v4665_v21, %v4624_v32 }
 0x21f   : > { %v2434_v62 = vadd.f32 %v3731_v40, %v4726_v12  ;;  %v2595_v1 = vmax.f32 %v2431_v11, 0.0 }
 0x221   : > { %v2596_v8 = vmax.f32 %v2434_v62, 0.0 }
 0x222   : > { %v2149_v19 = vpop.f32.mrb[64].mxu0 }
 0x223   : > { %v2150_v61 = vadd.f32 %v2149_v19, %v1861_v26  ;;  %v2151_v37 = vpop.f32.mrb[65].mxu0  ;;  %v2644_v49 = vpack.c.bf16 %v2596_v8, %v2595_v1 }
 0x224   : > { %v2152_v34 = vpop.f32.mrb[66].mxu0 }
 0x225   : > { %v2153_v6 = vadd.f32 %v2152_v34, %v1864_v55  ;;  %v2439_v44 = vadd.f32 %v4736_v54, %v2150_v61  ;;  %v2154_v57 = vpop.f32.mrb[67].mxu0  ;;  %3633 = vmatmul.mubr.bf16.gmra.mrb[156].mxu1 %v2644_v49 }
 0x227   : > { %v2442_v12 = vadd.f32 %v4742_v22, %v2153_v6  ;;  %v2597_v11 = vmax.f32 %v2439_v44, 0.0 }
 0x229   : > { %v2598_v40 = vmax.f32 %v2442_v12, 0.0 }
 0x22a   : > { %v2157_v62 = vpop.f32.mrb[68].mxu0 }
 0x22b   : > { %v2645_v26 = vpack.c.bf16 %v2598_v40, %v2597_v11  ;;  %v2158_v19 = vadd.f32 %v2157_v62, %v1869_v23  ;;  %v2159_v1 = vpop.f32.mrb[69].mxu0 }
 0x22c   : > { %v2160_v8 = vpop.f32.mrb[70].mxu0 }
 0x22d   : > { %v2447_v55 = vadd.f32 %v4733_v38, %v2158_v19  ;;  %v2161_v54 = vadd.f32 %v2160_v8, %v1872_v29  ;;  %v2162_v61 = vpop.f32.mrb[71].mxu0  ;;  %3636 = vmatprep.mubr.bf16.mxu1 %v2645_v26 }
 0x22f   : > { %v2450_v22 = vadd.f32 %v4738_v53, %v2161_v54  ;;  %v2599_v37 = vmax.f32 %v2447_v55, 0.0 }
 0x231   : > { %v2600_v49 = vmax.f32 %v2450_v22, 0.0 }
 0x232   : > { %v2165_v34 = vpop.f32.mrb[72].mxu0 }
 0x233   : > { %v2166_v6 = vadd.f32 %v2165_v34, %v1877_v33  ;;  %v2167_v44 = vpop.f32.mrb[73].mxu0  ;;  %v2646_v57 = vpack.c.bf16 %v2600_v49, %v2599_v37 }
 0x234   : > { %v2168_v12 = vpop.f32.mrb[74].mxu0 }
 0x235   : > { %v2169_v23 = vadd.f32 %v2168_v12, %v1880_v39  ;;  %v2455_v38 = vadd.f32 %v4748_v4, %v2166_v6  ;;  %v2170_v11 = vpop.f32.mrb[75].mxu0  ;;  %3637 = vmatmul.mubr.bf16.gmra.mrb[160].mxu1 %v2646_v57 }
 0x237   : > { %v2458_v53 = vadd.f32 %v4754_v10, %v2169_v23  ;;  %v2601_v40 = vmax.f32 %v2455_v38, 0.0 }
 0x239   : > { %v2602_v62 = vmax.f32 %v2458_v53, 0.0 }
 0x23a   : > { %v2173_v29 = vpop.f32.mrb[76].mxu0 }
 0x23b   : > { %v2647_v26 = vpack.c.bf16 %v2602_v62, %v2601_v40  ;;  %v2174_v19 = vadd.f32 %v2173_v29, %v1885_v43  ;;  %v2175_v1 = vpop.f32.mrb[77].mxu0 }
 0x23c   : > { %v2176_v8 = vpop.f32.mrb[78].mxu0 }
 0x23d   : > { %v2463_v55 = vadd.f32 %v4745_v46, %v2174_v19  ;;  %v2177_v4 = vadd.f32 %v2176_v8, %v1888_v48  ;;  %v2178_v54 = vpop.f32.mrb[79].mxu0  ;;  %3640 = vmatprep.mubr.bf16.mxu1 %v2647_v26 }
 0x23f   : > { %v2466_v10 = vadd.f32 %v4750_v63, %v2177_v4  ;;  %v2603_v61 = vmax.f32 %v2463_v55, 0.0 }
 0x241   : > { %v2604_v22 = vmax.f32 %v2466_v10, 0.0 }
 0x242   : > { %v2181_v33 = vpop.f32.mrb[80].mxu0 }
 0x243   : > { %v2182_v37 = vadd.f32 %v2181_v33, %v1893_v51  ;;  %v2183_v49 = vpop.f32.mrb[81].mxu0  ;;  %v2648_v34 = vpack.c.bf16 %v2604_v22, %v2603_v61 }
 0x244   : > { %v2184_v39 = vpop.f32.mrb[82].mxu0 }
 0x245   : > { %v2185_v6 = vadd.f32 %v2184_v39, %v1896_v56  ;;  %v2471_v46 = vadd.f32 %v4760_v58, %v2182_v37  ;;  %v2186_v44 = vpop.f32.mrb[83].mxu0  ;;  %3641 = vmatmul.mubr.bf16.gmra.mrb[164].mxu1 %v2648_v34 }
 0x247   : > { %v2474_v63 = vadd.f32 %v4766_v60, %v2185_v6  ;;  %v2605_v57 = vmax.f32 %v2471_v46, 0.0 }
 0x249   : > { %v2606_v12 = vmax.f32 %v2474_v63, 0.0 }
 0x24a   : > { %v2189_v23 = vpop.f32.mrb[84].mxu0 }
 0x24b   : > { %v2649_v38 = vpack.c.bf16 %v2606_v12, %v2605_v57  ;;  %v2190_v11 = vadd.f32 %v2189_v23, %v1901_v59  ;;  %v2191_v53 = vpop.f32.mrb[85].mxu0 }
 0x24c   : > { %v2192_v43 = vpop.f32.mrb[86].mxu0 }
 0x24d   : > { %v2479_v40 = vadd.f32 %v4757_v5, %v2190_v11  ;;  %v2193_v58 = vadd.f32 %v2192_v43, %v1904_v0  ;;  %v2194_v62 = vpop.f32.mrb[87].mxu0  ;;  %3644 = vmatprep.mubr.bf16.mxu1 %v2649_v38 }
 0x24f   : > { %v2482_v60 = vadd.f32 %v4762_v17, %v2193_v58  ;;  %v2607_v29 = vmax.f32 %v2479_v40, 0.0 }
 0x251   : > { %v2608_v48 = vmax.f32 %v2482_v60, 0.0 }
 0x252   : > { %v2197_v26 = vpop.f32.mrb[88].mxu0 }
 0x253   : > { %v2198_v19 = vadd.f32 %v2197_v26, %v1909_v3  ;;  %v2199_v1 = vpop.f32.mrb[89].mxu0  ;;  %v2650_v8 = vpack.c.bf16 %v2608_v48, %v2607_v29  ;;  %v5096_v3 = vld [vmem:[#allocation14_spill] sm:$0xff] }
 0x254   : > { %v2200_v55 = vpop.f32.mrb[90].mxu0  ;;  %v5097_v29 = vld [vmem:[#allocation2_spill] sm:$0xff] }
 0x255   : > { %v2201_v4 = vadd.f32 %v2200_v55, %v1912_v7  ;;  %v2487_v5 = vadd.f32 %v4772_v50, %v2198_v19  ;;  %v2202_v54 = vpop.f32.mrb[91].mxu0  ;;  %3645 = vmatmul.mubr.bf16.gmra.mrb[168].mxu1 %v2650_v8  ;;  %v1941_v27 = vadd.f32 %v4665_v21, %v5097_v29  ;;  %v5098_v19 = vld [vmem:[#allocation3_spill] sm:$0xff] }
 0x256   : > { %v1944_v32 = vadd.f32 %v4665_v21, %v5098_v19 }
 0x257   : > { %v2490_v17 = vadd.f32 %v4778_v36, %v2201_v4  ;;  %v2609_v10 = vmax.f32 %v2487_v5, 0.0 }
 0x259   : > { %v2610_v51 = vmax.f32 %v2490_v17, 0.0 }
 0x25a   : > { %v2205_v61 = vpop.f32.mrb[92].mxu0 }
 0x25b   : > { %v2651_v22 = vpack.c.bf16 %v2610_v51, %v2609_v10  ;;  %v2206_v33 = vadd.f32 %v2205_v61, %v1917_v9  ;;  %v2207_v56 = vpop.f32.mrb[93].mxu0  ;;  %v5099_v9 = vld [vmem:[#allocation4_spill] sm:$0xff] }
 0x25c   : > { %v2208_v37 = vpop.f32.mrb[94].mxu0  ;;  %v1949_v10 = vadd.f32 %v4665_v21, %v5099_v9 }
 0x25d   : > { %v2495_v49 = vadd.f32 %v4769_v2, %v2206_v33  ;;  %v2209_v50 = vadd.f32 %v2208_v37, %v1920_v13  ;;  %v2210_v34 = vpop.f32.mrb[95].mxu0  ;;  %3648 = vmatprep.mubr.bf16.mxu1 %v2651_v22  ;;  %v5100_v22 = vld [vmem:[#allocation5_spill] sm:$0xff] }
 0x25e   : > { %v1952_v33 = vadd.f32 %v4665_v21, %v5100_v22 }
 0x25f   : > { %v2498_v36 = vadd.f32 %v4774_v47, %v2209_v50  ;;  %v2611_v39 = vmax.f32 %v2495_v49, 0.0 }
 0x261   : > { %v2612_v6 = vmax.f32 %v2498_v36, 0.0 }
 0x262   : > { %v2213_v46 = vpop.f32.mrb[96].mxu0 }
 0x263   : > { %v2214_v44 = vadd.f32 %v2213_v46, %v1925_v15  ;;  %v2215_v63 = vpop.f32.mrb[97].mxu0  ;;  %v2652_v59 = vpack.c.bf16 %v2612_v6, %v2611_v39  ;;  %v5102_v39 = vld [vmem:[#allocation6_spill] sm:$0xff] }
 0x264   : > { %v2216_v57 = vpop.f32.mrb[98].mxu0  ;;  %v1957_v6 = vadd.f32 %v4665_v21, %v5102_v39  ;;  %v5103_v63 = vld [vmem:[#allocation7_spill] sm:$0xff] }
 0x265   : > { %v2217_v12 = vadd.f32 %v2216_v57, %v1928_v18  ;;  %v2503_v2 = vadd.f32 %v4784_v42, %v2214_v44  ;;  %v2218_v23 = vpop.f32.mrb[99].mxu0  ;;  %3649 = vmatmul.mubr.bf16.gmra.mrb[172].mxu1 %v2652_v59  ;;  %v1960_v59 = vadd.f32 %v4665_v21, %v5103_v63 }
 0x267   : > { %v2506_v47 = vadd.f32 %v4790_v41, %v2217_v12  ;;  %v2613_v0 = vmax.f32 %v2503_v2, 0.0 }
 0x269   : > { %v2614_v38 = vmax.f32 %v2506_v47, 0.0 }
 0x26a   : > { %v2221_v11 = vpop.f32.mrb[100].mxu0 }
 0x26b   : > { %v2653_v53 = vpack.c.bf16 %v2614_v38, %v2613_v0  ;;  %v2222_v43 = vadd.f32 %v2221_v11, %v1933_v20  ;;  %v2223_v40 = vpop.f32.mrb[101].mxu0  ;;  %v4910_v38 = vld [vmem:[%s5077_s4] ss:$0 sm:$0xff] }
 0x26c   : > { %v2224_v58 = vpop.f32.mrb[102].mxu0 }
 0x26d   : > { %v2511_v62 = vadd.f32 %v4781_v24, %v2222_v43  ;;  %v2225_v42 = vadd.f32 %v2224_v58, %v1936_v25  ;;  %v2226_v60 = vpop.f32.mrb[103].mxu0  ;;  %3652 = vmatprep.mubr.bf16.mxu1 %v2653_v53  ;;  %v5105_v53 = vld [vmem:[#allocation8_spill] sm:$0xff] }
 0x26e   : > { %v1965_v43 = vadd.f32 %v4665_v21, %v5105_v53 }
 0x26f   : > { %v2514_v41 = vadd.f32 %v5096_v3, %v2225_v42  ;;  %v2615_v48 = vmax.f32 %v2511_v62, 0.0 }
 0x271   : > { %v2616_v26 = vmax.f32 %v2514_v41, 0.0  ;;  %v5106_v41 = vld [vmem:[#allocation9_spill] sm:$0xff] }
 0x272   : > { %v2229_v7 = vpop.f32.mrb[104].mxu0  ;;  %v1968_v29 = vadd.f32 %v4665_v21, %v5106_v41 }
 0x273   : > { %v2230_v1 = vadd.f32 %v2229_v7, %v1941_v27  ;;  %v2231_v8 = vpop.f32.mrb[105].mxu0  ;;  %v2654_v55 = vpack.c.bf16 %v2616_v26, %v2615_v48 }
 0x274   : > { %v2232_v4 = vpop.f32.mrb[106].mxu0  ;;  %v5107_v8 = vld [vmem:[#allocation16_spill] sm:$0xff] }
 0x275   : > { %v2233_v5 = vadd.f32 %v2232_v4, %v1944_v32  ;;  %v2519_v24 = vadd.f32 %v4796_v35, %v2230_v1  ;;  %v2234_v54 = vpop.f32.mrb[107].mxu0  ;;  %3653 = vmatmul.mubr.bf16.gmra.mrb[176].mxu1 %v2654_v55 }
 0x277   : > { %v2522_v17 = vadd.f32 %v4802_v45, %v2233_v5  ;;  %v2617_v51 = vmax.f32 %v2519_v24, 0.0  ;;  %v5101_v45 = vld [vmem:[#allocation15_spill] sm:$0xff]  ;;  %v5108_v24 = vld [vmem:[#allocation18_spill] sm:$0xff] }
 0x279   : > { %v2618_v61 = vmax.f32 %v2522_v17, 0.0  ;;  %v5109_v17 = vld [vmem:[#allocation10_spill] sm:$0xff] }
 0x27a   : > { %v2237_v13 = vpop.f32.mrb[108].mxu0  ;;  %v1973_v9 = vadd.f32 %v4665_v21, %v5109_v17 }
 0x27b   : > { %v2655_v56 = vpack.c.bf16 %v2618_v61, %v2617_v51  ;;  %v2238_v37 = vadd.f32 %v2237_v13, %v1949_v10  ;;  %v2239_v49 = vpop.f32.mrb[109].mxu0  ;;  %v5110_v13 = vld [vmem:[#allocation11_spill] sm:$0xff] }
 0x27c   : > { %v2240_v50 = vpop.f32.mrb[110].mxu0  ;;  %v1976_v22 = vadd.f32 %v4665_v21, %v5110_v13 }
 0x27d   : > { %v2527_v34 = vadd.f32 %v4793_v16, %v2238_v37  ;;  %v2241_v35 = vadd.f32 %v2240_v50, %v1952_v33  ;;  %v2242_v36 = vpop.f32.mrb[111].mxu0  ;;  %3656 = vmatprep.mubr.bf16.mxu1 %v2655_v56  ;;  %v5104_v16 = vld [vmem:[#allocation17_spill] sm:$0xff] }
 0x27f   : > { %v2530_v15 = vadd.f32 %v5101_v45, %v2241_v35  ;;  %v2619_v46 = vmax.f32 %v2527_v34, 0.0 }
 0x281   : > { %v2620_v18 = vmax.f32 %v2530_v15, 0.0  ;;  %v5111_v15 = vld [vmem:[#allocation12_spill] sm:$0xff] }
 0x282   : > { %v2245_v44 = vpop.f32.mrb[112].mxu0  ;;  %v1981_v39 = vadd.f32 %v4665_v21, %v5111_v15 }
 0x283   : > { %v2246_v57 = vadd.f32 %v2245_v44, %v1957_v6  ;;  %v2247_v12 = vpop.f32.mrb[113].mxu0  ;;  %v2656_v2 = vpack.c.bf16 %v2620_v18, %v2619_v46 }
 0x284   : > { %v2248_v23 = vpop.f32.mrb[114].mxu0 }
 0x285   : > { %v2535_v47 = vadd.f32 %v5104_v16, %v2246_v57  ;;  %v2249_v20 = vadd.f32 %v2248_v23, %v1960_v59  ;;  %v2250_v0 = vpop.f32.mrb[115].mxu0  ;;  %3657 = vmatmul.mubr.bf16.gmra.mrb[180].mxu1 %v2656_v2  ;;  %v5112_v57 = vld [vmem:[#allocation13_spill] sm:$0xff] }
 0x286   : > { %v1984_v12 = vadd.f32 %v4665_v21, %v5112_v57 }
 0x287   : > { %v2538_v11 = vadd.f32 %v4814_v30, %v2249_v20  ;;  %v2621_v40 = vmax.f32 %v2535_v47, 0.0 }
 0x288   : > { %v3606_v25 = vpop.f32.mrb[128].mxu1 }
 0x289   : > { %v2622_v58 = vmax.f32 %v2538_v11, 0.0  ;;  %v2775_v62 = vadd.f32 %v3606_v25, %v4910_v38  ;;  %v2766_v42 = vpop.f32.mrb[129].mxu1 }
 0x28a   : > { %v2767_v60 = vadd.f32 %v4910_v38, %v2766_v42  ;;  %v2253_v30 = vpop.f32.mrb[116].mxu0  ;;  %v3607_v3 = vpop.f32.mrb[130].mxu1 }
 0x28b   : > { %3023 = vst [vmem:[%s4916_s16 + $0x10] sm:$0xff] %v2775_v62  ;;  %v2254_v27 = vadd.f32 %v2253_v30, %v1965_v43  ;;  %v2778_v48 = vadd.f32 %v3607_v3, %v4910_v38  ;;  %v2255_v26 = vpop.f32.mrb[117].mxu0  ;;  %v2769_v7 = vpop.f32.mrb[131].mxu1  ;;  %v2657_v19 = vpack.c.bf16 %v2622_v58, %v2621_v40 }
 0x28c   : > { %3021 = vst [vmem:[%s4916_s16] sm:$0xff] %v2767_v60  ;;  %v2770_v32 = vadd.f32 %v4910_v38, %v2769_v7  ;;  %v2256_v1 = vpop.f32.mrb[118].mxu0 }
 0x28d   : > { %v2543_v55 = vadd.f32 %v5107_v8, %v2254_v27  ;;  %3024 = vst [vmem:[%s4916_s16 + $0x18] sm:$0xff] %v2778_v48  ;;  %v2257_v4 = vadd.f32 %v2256_v1, %v1968_v29  ;;  %v2258_v5 = vpop.f32.mrb[119].mxu0  ;;  %3660 = vmatprep.mubr.bf16.mxu1 %v2657_v19 }
 0x28e   : > { %3022 = vst [vmem:[%s4916_s16 + $0x8] sm:$0xff] %v2770_v32 }
 0x28f   : > { %v2546_v54 = vadd.f32 %v5108_v24, %v2257_v4  ;;  %v2623_v10 = vmax.f32 %v2543_v55, 0.0 }
 0x291   : > { %v2624_v51 = vmax.f32 %v2546_v54, 0.0 }
 0x292   : > { %v2261_v61 = vpop.f32.mrb[120].mxu0 }
 0x293   : > { %v2262_v33 = vadd.f32 %v2261_v61, %v1973_v9  ;;  %v2263_v56 = vpop.f32.mrb[121].mxu0  ;;  %v2658_v37 = vpack.c.bf16 %v2624_v51, %v2623_v10 }
 0x294   : > { %v2264_v49 = vpop.f32.mrb[122].mxu0 }
 0x295   : > { %v2551_v50 = vadd.f32 %v4820_v52, %v2262_v33  ;;  %v2265_v34 = vadd.f32 %v2264_v49, %v1976_v22  ;;  %v2266_v35 = vpop.f32.mrb[123].mxu0  ;;  %3661 = vmatmul.mubr.bf16.gmra.mrb[184].mxu1 %v2658_v37 }
 0x297   : > { %v2554_v36 = vadd.f32 %v4826_v31, %v2265_v34  ;;  %v2625_v6 = vmax.f32 %v2551_v50, 0.0 }
 0x298   : > { %v3610_v45 = vpop.f32.mrb[132].mxu1 }
 0x299   : > { %v2626_v46 = vmax.f32 %v2554_v36, 0.0  ;;  %v2791_v18 = vadd.f32 %v3610_v45, %v4910_v38  ;;  %v2782_v44 = vpop.f32.mrb[133].mxu1 }
 0x29a   : > { %v2783_v63 = vadd.f32 %v4910_v38, %v2782_v44  ;;  %v2269_v59 = vpop.f32.mrb[124].mxu0  ;;  %v3611_v52 = vpop.f32.mrb[134].mxu1 }
 0x29b   : > { %3027 = vst [vmem:[%s4916_s16 + $0x30] sm:$0xff] %v2791_v18  ;;  %v2270_v31 = vadd.f32 %v2269_v59, %v1981_v39  ;;  %v2794_v2 = vadd.f32 %v3611_v52, %v4910_v38  ;;  %v2271_v23 = vpop.f32.mrb[125].mxu0  ;;  %v2785_v16 = vpop.f32.mrb[135].mxu1  ;;  %v2659_v47 = vpack.c.bf16 %v2626_v46, %v2625_v6 }
 0x29c   : > { %3025 = vst [vmem:[%s4916_s16 + $0x20] sm:$0xff] %v2783_v63  ;;  %v2786_v20 = vadd.f32 %v4910_v38, %v2785_v16  ;;  %v2272_v0 = vpop.f32.mrb[126].mxu0 }
 0x29d   : > { %v2559_v11 = vadd.f32 %v4817_v28, %v2270_v31  ;;  %3028 = vst [vmem:[%s4916_s16 + $0x38] sm:$0xff] %v2794_v2  ;;  %v2273_v25 = vadd.f32 %v2272_v0, %v1984_v12  ;;  %v2274_v53 = vpop.f32.mrb[127].mxu0  ;;  %3664 = vmatprep.mubr.bf16.mxu1 %v2659_v47 }
 0x29e   : > { %3026 = vst [vmem:[%s4916_s16 + $0x28] sm:$0xff] %v2786_v20 }
 0x29f   : > { %v2562_v21 = vadd.f32 %v4822_v14, %v2273_v25  ;;  %v2627_v43 = vmax.f32 %v2559_v11, 0.0 }
 0x2a1   : > { %v2628_v40 = vmax.f32 %v2562_v21, 0.0 }
 0x2a3   : > { %v2660_v58 = vpack.c.bf16 %v2628_v40, %v2627_v43 }
 0x2a5   : > { %3665 = vmatmul.mubr.bf16.gmra.mrb[188].mxu1 %v2660_v58 }
 0x2a8   : > { %v3614_v62 = vpop.f32.mrb[136].mxu1 }
 0x2a9   : > { %v2807_v42 = vadd.f32 %v3614_v62, %v4910_v38  ;;  %v2798_v28 = vpop.f32.mrb[137].mxu1 }
 0x2aa   : > { %v2799_v60 = vadd.f32 %v4910_v38, %v2798_v28  ;;  %v3615_v30 = vpop.f32.mrb[138].mxu1 }
 0x2ab   : > { %3031 = vst [vmem:[%s4916_s16 + $0x50] sm:$0xff] %v2807_v42  ;;  %v2810_v3 = vadd.f32 %v3615_v30, %v4910_v38  ;;  %v2801_v41 = vpop.f32.mrb[139].mxu1 }
 0x2ac   : > { %3029 = vst [vmem:[%s4916_s16 + $0x40] sm:$0xff] %v2799_v60  ;;  %v2802_v14 = vadd.f32 %v4910_v38, %v2801_v41 }
 0x2ad   : > { %3032 = vst [vmem:[%s4916_s16 + $0x58] sm:$0xff] %v2810_v3 }
 0x2ae   : > { %3030 = vst [vmem:[%s4916_s16 + $0x48] sm:$0xff] %v2802_v14 }
 0x2b8   : > { %v3618_v29 = vpop.f32.mrb[140].mxu1 }
 0x2b9   : > { %v2823_v27 = vadd.f32 %v3618_v29, %v4910_v38  ;;  %v2814_v48 = vpop.f32.mrb[141].mxu1 }
 0x2ba   : > { %v2815_v26 = vadd.f32 %v4910_v38, %v2814_v48  ;;  %v3619_v7 = vpop.f32.mrb[142].mxu1 }
 0x2bb   : > { %3035 = vst [vmem:[%s4916_s16 + $0x70] sm:$0xff] %v2823_v27  ;;  %v2826_v19 = vadd.f32 %v3619_v7, %v4910_v38  ;;  %v2817_v32 = vpop.f32.mrb[143].mxu1 }
 0x2bc   : > { %3033 = vst [vmem:[%s4916_s16 + $0x60] sm:$0xff] %v2815_v26  ;;  %v2818_v1 = vadd.f32 %v4910_v38, %v2817_v32 }
 0x2bd   : > { %3036 = vst [vmem:[%s4916_s16 + $0x78] sm:$0xff] %v2826_v19 }
 0x2be   : > { %3034 = vst [vmem:[%s4916_s16 + $0x68] sm:$0xff] %v2818_v1 }
 0x2c8   : > { %v3622_v8 = vpop.f32.mrb[144].mxu1 }
 0x2c9   : > { %v2839_v55 = vadd.f32 %v3622_v8, %v4910_v38  ;;  %v2830_v4 = vpop.f32.mrb[145].mxu1 }
 0x2ca   : > { %v2831_v5 = vadd.f32 %v4910_v38, %v2830_v4  ;;  %v3623_v24 = vpop.f32.mrb[146].mxu1 }
 0x2cb   : > { %3039 = vst [vmem:[%s4916_s16 + $0x90] sm:$0xff] %v2839_v55  ;;  %v2842_v54 = vadd.f32 %v3623_v24, %v4910_v38  ;;  %v2833_v17 = vpop.f32.mrb[147].mxu1 }
 0x2cc   : > { %3037 = vst [vmem:[%s4916_s16 + $0x80] sm:$0xff] %v2831_v5  ;;  %v2834_v9 = vadd.f32 %v4910_v38, %v2833_v17 }
 0x2cd   : > { %3040 = vst [vmem:[%s4916_s16 + $0x98] sm:$0xff] %v2842_v54 }
 0x2ce   : > { %3038 = vst [vmem:[%s4916_s16 + $0x88] sm:$0xff] %v2834_v9 }
 0x2d8   : > { %v3626_v10 = vpop.f32.mrb[148].mxu1 }
 0x2d9   : > { %v2855_v51 = vadd.f32 %v3626_v10, %v4910_v38  ;;  %v2846_v61 = vpop.f32.mrb[149].mxu1 }
 0x2da   : > { %v2847_v13 = vadd.f32 %v4910_v38, %v2846_v61  ;;  %v3627_v22 = vpop.f32.mrb[150].mxu1 }
 0x2db   : > { %3043 = vst [vmem:[%s4916_s16 + $0xb0] sm:$0xff] %v2855_v51  ;;  %v2858_v33 = vadd.f32 %v3627_v22, %v4910_v38  ;;  %v2849_v56 = vpop.f32.mrb[151].mxu1 }
 0x2dc   : > { %3041 = vst [vmem:[%s4916_s16 + $0xa0] sm:$0xff] %v2847_v13  ;;  %v2850_v37 = vadd.f32 %v4910_v38, %v2849_v56 }
 0x2dd   : > { %3044 = vst [vmem:[%s4916_s16 + $0xb8] sm:$0xff] %v2858_v33 }
 0x2de   : > { %3042 = vst [vmem:[%s4916_s16 + $0xa8] sm:$0xff] %v2850_v37 }
 0x2e8   : > { %v3630_v49 = vpop.f32.mrb[152].mxu1 }
 0x2e9   : > { %v2871_v50 = vadd.f32 %v3630_v49, %v4910_v38  ;;  %v2862_v34 = vpop.f32.mrb[153].mxu1 }
 0x2ea   : > { %v2863_v35 = vadd.f32 %v4910_v38, %v2862_v34  ;;  %v3631_v36 = vpop.f32.mrb[154].mxu1 }
 0x2eb   : > { %3047 = vst [vmem:[%s4916_s16 + $0xd0] sm:$0xff] %v2871_v50  ;;  %v2874_v45 = vadd.f32 %v3631_v36, %v4910_v38  ;;  %v2865_v15 = vpop.f32.mrb[155].mxu1 }
 0x2ec   : > { %3045 = vst [vmem:[%s4916_s16 + $0xc0] sm:$0xff] %v2863_v35  ;;  %v2866_v39 = vadd.f32 %v4910_v38, %v2865_v15 }
 0x2ed   : > { %3048 = vst [vmem:[%s4916_s16 + $0xd8] sm:$0xff] %v2874_v45 }
 0x2ee   : > { %3046 = vst [vmem:[%s4916_s16 + $0xc8] sm:$0xff] %v2866_v39 }
 0x2f8   : > { %v3634_v6 = vpop.f32.mrb[156].mxu1 }
 0x2f9   : > { %v2887_v46 = vadd.f32 %v3634_v6, %v4910_v38  ;;  %v2878_v18 = vpop.f32.mrb[157].mxu1 }
 0x2fa   : > { %v2879_v44 = vadd.f32 %v4910_v38, %v2878_v18  ;;  %v3635_v63 = vpop.f32.mrb[158].mxu1 }
 0x2fb   : > { %3051 = vst [vmem:[%s4916_s16 + $0xf0] sm:$0xff] %v2887_v46  ;;  %v2890_v59 = vadd.f32 %v3635_v63, %v4910_v38  ;;  %v2881_v52 = vpop.f32.mrb[159].mxu1 }
 0x2fc   : > { %3049 = vst [vmem:[%s4916_s16 + $0xe0] sm:$0xff] %v2879_v44  ;;  %v2882_v57 = vadd.f32 %v4910_v38, %v2881_v52 }
 0x2fd   : > { %3052 = vst [vmem:[%s4916_s16 + $0xf8] sm:$0xff] %v2890_v59 }
 0x2fe   : > { %3050 = vst [vmem:[%s4916_s16 + $0xe8] sm:$0xff] %v2882_v57 }
 0x308   : > { %v3638_v12 = vpop.f32.mrb[160].mxu1 }
 0x309   : > { %v2903_v31 = vadd.f32 %v3638_v12, %v4910_v38  ;;  %v2894_v2 = vpop.f32.mrb[161].mxu1 }
 0x30a   : > { %v2895_v23 = vadd.f32 %v4910_v38, %v2894_v2  ;;  %v3639_v16 = vpop.f32.mrb[162].mxu1 }
 0x30b   : > { %3055 = vst [vmem:[%s4916_s16 + $0x110] sm:$0xff] %v2903_v31  ;;  %v2906_v47 = vadd.f32 %v3639_v16, %v4910_v38  ;;  %v2897_v20 = vpop.f32.mrb[163].mxu1 }
 0x30c   : > { %3053 = vst [vmem:[%s4916_s16 + $0x100] sm:$0xff] %v2895_v23  ;;  %v2898_v0 = vadd.f32 %v4910_v38, %v2897_v20 }
 0x30d   : > { %3056 = vst [vmem:[%s4916_s16 + $0x118] sm:$0xff] %v2906_v47 }
 0x30e   : > { %3054 = vst [vmem:[%s4916_s16 + $0x108] sm:$0xff] %v2898_v0 }
 0x318   : > { %v3642_v11 = vpop.f32.mrb[164].mxu1 }
 0x319   : > { %v2919_v25 = vadd.f32 %v3642_v11, %v4910_v38  ;;  %v2910_v53 = vpop.f32.mrb[165].mxu1 }
 0x31a   : > { %v2911_v21 = vadd.f32 %v4910_v38, %v2910_v53  ;;  %v3643_v43 = vpop.f32.mrb[166].mxu1 }
 0x31b   : > { %3059 = vst [vmem:[%s4916_s16 + $0x130] sm:$0xff] %v2919_v25  ;;  %v2922_v40 = vadd.f32 %v3643_v43, %v4910_v38  ;;  %v2913_v58 = vpop.f32.mrb[167].mxu1 }
 0x31c   : > { %3057 = vst [vmem:[%s4916_s16 + $0x120] sm:$0xff] %v2911_v21  ;;  %v2914_v62 = vadd.f32 %v4910_v38, %v2913_v58 }
 0x31d   : > { %3060 = vst [vmem:[%s4916_s16 + $0x138] sm:$0xff] %v2922_v40 }
 0x31e   : > { %3058 = vst [vmem:[%s4916_s16 + $0x128] sm:$0xff] %v2914_v62 }
 0x328   : > { %v3646_v42 = vpop.f32.mrb[168].mxu1 }
 0x329   : > { %v2935_v28 = vadd.f32 %v3646_v42, %v4910_v38  ;;  %v2926_v60 = vpop.f32.mrb[169].mxu1 }
 0x32a   : > { %v2927_v30 = vadd.f32 %v4910_v38, %v2926_v60  ;;  %v3647_v3 = vpop.f32.mrb[170].mxu1 }
 0x32b   : > { %3063 = vst [vmem:[%s4916_s16 + $0x150] sm:$0xff] %v2935_v28  ;;  %v2938_v41 = vadd.f32 %v3647_v3, %v4910_v38  ;;  %v2929_v14 = vpop.f32.mrb[171].mxu1 }
 0x32c   : > { %3061 = vst [vmem:[%s4916_s16 + $0x140] sm:$0xff] %v2927_v30  ;;  %v2930_v29 = vadd.f32 %v4910_v38, %v2929_v14 }
 0x32d   : > { %3064 = vst [vmem:[%s4916_s16 + $0x158] sm:$0xff] %v2938_v41 }
 0x32e   : > { %3062 = vst [vmem:[%s4916_s16 + $0x148] sm:$0xff] %v2930_v29 }
 0x338   : > { %v3650_v27 = vpop.f32.mrb[172].mxu1 }
 0x339   : > { %v2951_v48 = vadd.f32 %v3650_v27, %v4910_v38  ;;  %v2942_v26 = vpop.f32.mrb[173].mxu1 }
 0x33a   : > { %v2943_v7 = vadd.f32 %v4910_v38, %v2942_v26  ;;  %v3651_v19 = vpop.f32.mrb[174].mxu1 }
 0x33b   : > { %3067 = vst [vmem:[%s4916_s16 + $0x170] sm:$0xff] %v2951_v48  ;;  %v2954_v32 = vadd.f32 %v3651_v19, %v4910_v38  ;;  %v2945_v1 = vpop.f32.mrb[175].mxu1 }
 0x33c   : > { %3065 = vst [vmem:[%s4916_s16 + $0x160] sm:$0xff] %v2943_v7  ;;  %v2946_v8 = vadd.f32 %v4910_v38, %v2945_v1 }
 0x33d   : > { %3068 = vst [vmem:[%s4916_s16 + $0x178] sm:$0xff] %v2954_v32 }
 0x33e   : > { %3066 = vst [vmem:[%s4916_s16 + $0x168] sm:$0xff] %v2946_v8 }
 0x348   : > { %v3654_v55 = vpop.f32.mrb[176].mxu1 }
 0x349   : > { %v2967_v4 = vadd.f32 %v3654_v55, %v4910_v38  ;;  %v2958_v5 = vpop.f32.mrb[177].mxu1 }
 0x34a   : > { %v2959_v24 = vadd.f32 %v4910_v38, %v2958_v5  ;;  %v3655_v54 = vpop.f32.mrb[178].mxu1 }
 0x34b   : > { %3071 = vst [vmem:[%s4916_s16 + $0x190] sm:$0xff] %v2967_v4  ;;  %v2970_v17 = vadd.f32 %v3655_v54, %v4910_v38  ;;  %v2961_v9 = vpop.f32.mrb[179].mxu1 }
 0x34c   : > { %3069 = vst [vmem:[%s4916_s16 + $0x180] sm:$0xff] %v2959_v24  ;;  %v2962_v10 = vadd.f32 %v4910_v38, %v2961_v9 }
 0x34d   : > { %3072 = vst [vmem:[%s4916_s16 + $0x198] sm:$0xff] %v2970_v17 }
 0x34e   : > { %3070 = vst [vmem:[%s4916_s16 + $0x188] sm:$0xff] %v2962_v10 }
 0x358   : > { %v3658_v51 = vpop.f32.mrb[180].mxu1 }
 0x359   : > { %v2983_v61 = vadd.f32 %v3658_v51, %v4910_v38  ;;  %v2974_v13 = vpop.f32.mrb[181].mxu1 }
 0x35a   : > { %v2975_v22 = vadd.f32 %v4910_v38, %v2974_v13  ;;  %v3659_v33 = vpop.f32.mrb[182].mxu1 }
 0x35b   : > { %3075 = vst [vmem:[%s4916_s16 + $0x1b0] sm:$0xff] %v2983_v61  ;;  %v2986_v56 = vadd.f32 %v3659_v33, %v4910_v38  ;;  %v2977_v37 = vpop.f32.mrb[183].mxu1 }
 0x35c   : > { %3073 = vst [vmem:[%s4916_s16 + $0x1a0] sm:$0xff] %v2975_v22  ;;  %v2978_v49 = vadd.f32 %v4910_v38, %v2977_v37 }
 0x35d   : > { %3076 = vst [vmem:[%s4916_s16 + $0x1b8] sm:$0xff] %v2986_v56 }
 0x35e   : > { %3074 = vst [vmem:[%s4916_s16 + $0x1a8] sm:$0xff] %v2978_v49 }
 0x368   : > { %v3662_v50 = vpop.f32.mrb[184].mxu1 }
 0x369   : > { %v2999_v34 = vadd.f32 %v3662_v50, %v4910_v38  ;;  %v2990_v35 = vpop.f32.mrb[185].mxu1 }
 0x36a   : > { %v2991_v36 = vadd.f32 %v4910_v38, %v2990_v35  ;;  %v3663_v45 = vpop.f32.mrb[186].mxu1 }
 0x36b   : > { %3079 = vst [vmem:[%s4916_s16 + $0x1d0] sm:$0xff] %v2999_v34  ;;  %v3002_v15 = vadd.f32 %v3663_v45, %v4910_v38  ;;  %v2993_v39 = vpop.f32.mrb[187].mxu1 }
 0x36c   : > { %3077 = vst [vmem:[%s4916_s16 + $0x1c0] sm:$0xff] %v2991_v36  ;;  %v2994_v6 = vadd.f32 %v4910_v38, %v2993_v39 }
 0x36d   : > { %3080 = vst [vmem:[%s4916_s16 + $0x1d8] sm:$0xff] %v3002_v15 }
 0x36e   : > { %3078 = vst [vmem:[%s4916_s16 + $0x1c8] sm:$0xff] %v2994_v6 }
 0x378   : > { %v3666_v46 = vpop.f32.mrb[188].mxu1 }
 0x379   : > { %v3015_v18 = vadd.f32 %v3666_v46, %v4910_v38  ;;  %v3006_v44 = vpop.f32.mrb[189].mxu1 }
 0x37a   : > { %v3007_v63 = vadd.f32 %v4910_v38, %v3006_v44  ;;  %v3667_v59 = vpop.f32.mrb[190].mxu1 }
 0x37b   : > { %3083 = vst [vmem:[%s4916_s16 + $0x1f0] sm:$0xff] %v3015_v18  ;;  %v3018_v52 = vadd.f32 %v3667_v59, %v4910_v38  ;;  %v3009_v57 = vpop.f32.mrb[191].mxu1 }
 0x37c   : > { %3081 = vst [vmem:[%s4916_s16 + $0x1e0] sm:$0xff] %v3007_v63  ;;  %v3010_v12 = vadd.f32 %v4910_v38, %v3009_v57 }
 0x37d   : > { %3084 = vst [vmem:[%s4916_s16 + $0x1f8] sm:$0xff] %v3018_v52 }
 0x37e   : > { %3082 = vst [vmem:[%s4916_s16 + $0x1e8] sm:$0xff] %v3010_v12 }
 0x37f PF: > { %s15_s20 = sadd.s32 1, %s4176_s20   ;;  %s5113_s18 = smov %s4172_s19 }
 0x380   : > { %p12_p5 = scmp.ge.s32.totalorder %s15_s20, 6   ;;  %s5114_s19 = smov %s5116_s21 }
 0x382   :  { %14 = sbr.rel (!%p12_p5) target bundleno = 2 (0x2), region = 76 }

</bundles_post_ra>
